<compile_context>
chip_gen: v6e
topology: v6e:2x2x1
jax: 0.10.0
libtpu: 0.0.40
codegen_flags: <defaults>
</compile_context>

<pallas_src>
from functools import partial

import jax
import jax.numpy as jnp
from jax import lax
from jax.experimental import pallas as pl
from jax.experimental.pallas import tpu as pltpu


def _round_up(x, m):
    return ((x + m - 1) // m) * m


# --------------------- Kernel A: per-channel partial batch statistics -------------------- #
def _stats_kernel(x_ref, psum_ref, psumsq_ref):
    x = x_ref[...].astype(jnp.float32)                      # (TM, C)
    psum_ref[0] = jnp.sum(x, axis=0, keepdims=True)         # (1, C) partial sums
    psumsq_ref[0] = jnp.sum(x * x, axis=0, keepdims=True)


def _channel_stats(x, row_tile):
    """Per-channel mean / biased var of x:(rows, C), reduced over rows."""
    R, C = x.shape
    G = R // row_tile
    psum, psumsq = pl.pallas_call(
        _stats_kernel,
        out_shape=(jax.ShapeDtypeStruct((G, 1, C), jnp.float32),
                   jax.ShapeDtypeStruct((G, 1, C), jnp.float32)),
        grid_spec=pltpu.PrefetchScalarGridSpec(
            num_scalar_prefetch=0,
            grid=(G,),
            in_specs=[pl.BlockSpec((row_tile, C), lambda i: (i, 0))],
            out_specs=[pl.BlockSpec((1, 1, C), lambda i: (i, 0, 0)),
                       pl.BlockSpec((1, 1, C), lambda i: (i, 0, 0))]),
        compiler_params=pltpu.CompilerParams(dimension_semantics=("parallel",)),
    )(x)
    mean = psum.sum(axis=(0, 1)) / R
    # TODO(synk): E[x^2]-mean^2 is cancellation-prone for large-mean inputs; Welford
    # would be more robust for the f32 verification path.
    var = jnp.maximum(psumsq.sum(axis=(0, 1)) / R - mean * mean, 0.0)
    return mean, var


# ----------------- Kernel B: BN1 affine + ReLU + 1x1 conv + BN2 partial stats ------------ #
def _bottleneck_kernel(x_ref, scale_ref, shift_ref, w_ref, z_ref, psum_ref, psumsq_ref):
    x = x_ref[...].astype(jnp.float32)                          # (TM, Cup)
    a = jnp.maximum(x * scale_ref[...] + shift_ref[...], 0.0)   # folded BN1 + ReLU
    w = w_ref[...]                                              # (Cup, Cmid) bf16/f32
    z = jnp.dot(a.astype(w.dtype), w, preferred_element_type=jnp.float32)
    psum_ref[0] = jnp.sum(z, axis=0, keepdims=True)             # BN2 partial stats (f32 acc)
    psumsq_ref[0] = jnp.sum(z * z, axis=0, keepdims=True)
    z_ref[...] = z.astype(z_ref.dtype)                          # store z in act dtype


def _bottleneck(x_buf, cup, scale, shift, w_mat, row_tile, act_dtype):
    R = x_buf.shape[0]
    Cmid = w_mat.shape[1]
    G = R // row_tile
    z, psum, psumsq = pl.pallas_call(
        _bottleneck_kernel,
        out_shape=(jax.ShapeDtypeStruct((R, Cmid), act_dtype),
                   jax.ShapeDtypeStruct((G, 1, Cmid), jnp.float32),
                   jax.ShapeDtypeStruct((G, 1, Cmid), jnp.float32)),
        grid_spec=pltpu.PrefetchScalarGridSpec(
            num_scalar_prefetch=0,
            grid=(G,),
            in_specs=[pl.BlockSpec((row_tile, cup), lambda i: (i, 0)),
                      pl.BlockSpec((1, cup), lambda i: (0, 0)),
                      pl.BlockSpec((1, cup), lambda i: (0, 0)),
                      pl.BlockSpec((cup, Cmid), lambda i: (0, 0))],
            out_specs=[pl.BlockSpec((row_tile, Cmid), lambda i: (i, 0)),
                       pl.BlockSpec((1, 1, Cmid), lambda i: (i, 0, 0)),
                       pl.BlockSpec((1, 1, Cmid), lambda i: (i, 0, 0))]),
        compiler_params=pltpu.CompilerParams(dimension_semantics=("parallel",)),
    )(x_buf, scale[None, :], shift[None, :], w_mat)
    mean = psum.sum(axis=(0, 1)) / R
    var = jnp.maximum(psumsq.sum(axis=(0, 1)) / R - mean * mean, 0.0)
    return z, mean, var


# -------- Kernel C: BN2 affine + ReLU + 3x3 conv (pad=1) + next-layer partial stats ------ #
def _spatial_kernel(z_ref, scale_ref, shift_ref, w_ref, f_ref, psum_ref, psumsq_ref,
                    ac_ref, am_ref, ap_ref, *, H, W, pad_rows):
    HW = H * W
    Cmid = z_ref.shape[-1]
    Kpad = f_ref.shape[-1]
    slab_dtype = ac_ref.dtype

    # Zero only the vertical halo strips; the interior rows are fully overwritten below.
    # (Kept per grid step: the scratch persists across steps and each megacore core may
    # start on any step.)
    halo = jnp.zeros((pad_rows, Cmid), slab_dtype)
    for ref in (ac_ref, am_ref, ap_ref):
        ref[0:pad_rows, :] = halo
        ref[pad_rows + HW:pad_rows + HW + pad_rows, :] = halo

    z = z_ref[...].astype(jnp.float32)                           # (HW, Cmid)
    a = jnp.maximum(z * scale_ref[...] + shift_ref[...], 0.0)    # folded BN2 + ReLU

    # Horizontal (ox = +/-1) neighbours built once with XLU rolls + one select each, so
    # every tap read below is a sublane-aligned slice (offset = multiple of W); vertical
    # out-of-image taps are handled by the zero halo (no per-tap masks).
    col = jax.lax.broadcasted_iota(jnp.int32, (HW, 1), 0) % W
    a_m = jnp.where(col != 0, pltpu.roll(a, 1, axis=0), 0.0)            # row r -> a[r-1]
    a_p = jnp.where(col != W - 1, pltpu.roll(a, HW - 1, axis=0), 0.0)   # row r -> a[r+1]

    ac_ref[pad_rows:pad_rows + HW, :] = a.astype(slab_dtype)
    am_ref[pad_rows:pad_rows + HW, :] = a_m.astype(slab_dtype)
    ap_ref[pad_rows:pad_rows + HW, :] = a_p.astype(slab_dtype)

    slabs = (am_ref, ac_ref, ap_ref)                             # ox = -1, 0, +1
    acc = jnp.zeros((HW, Kpad), jnp.float32)
    for t in range(9):                                           # static 3x3 tap unroll
        oy, ox = t // 3 - 1, t % 3 - 1
        base = pad_rows + oy * W                                 # aligned (multiple of W)
        tap = slabs[ox + 1][base:base + HW, :]
        acc = acc + jnp.dot(tap, w_ref[t], preferred_element_type=jnp.float32)

    psum_ref[0] = jnp.sum(acc, axis=0, keepdims=True)            # next-layer BN1 partials
    psumsq_ref[0] = jnp.sum(acc * acc, axis=0, keepdims=True)
    f_ref[...] = acc.astype(f_ref.dtype)                         # lane-dense (Kpad=128)


def _spatial(z, scale, shift, w_taps, n_imgs, H, W, act_dtype, mxu_dtype):
    R, Cmid = z.shape
    HW = H * W
    Kpad = w_taps.shape[-1]
    pad_rows = _round_up(max(W, 8), 16)                          # sublane-aligned halo >= W
    f, psum, psumsq = pl.pallas_call(
        partial(_spatial_kernel, H=H, W=W, pad_rows=pad_rows),
        out_shape=(jax.ShapeDtypeStruct((R, Kpad), act_dtype),
                   jax.ShapeDtypeStruct((n_imgs, 1, Kpad), jnp.float32),
                   jax.ShapeDtypeStruct((n_imgs, 1, Kpad), jnp.float32)),
        grid_spec=pltpu.PrefetchScalarGridSpec(
            num_scalar_prefetch=0,
            grid=(n_imgs,),
            in_specs=[pl.BlockSpec((HW, Cmid), lambda n: (n, 0)),
                      pl.BlockSpec((1, Cmid), lambda n: (0, 0)),
                      pl.BlockSpec((1, Cmid), lambda n: (0, 0)),
                      pl.BlockSpec((9, Cmid, Kpad), lambda n: (0, 0, 0))],
            out_specs=[pl.BlockSpec((HW, Kpad), lambda n: (n, 0)),
                       pl.BlockSpec((1, 1, Kpad), lambda n: (n, 0, 0)),
                       pl.BlockSpec((1, 1, Kpad), lambda n: (n, 0, 0))],
            scratch_shapes=[pltpu.VMEM((HW + 2 * pad_rows, Cmid), mxu_dtype)] * 3),
        compiler_params=pltpu.CompilerParams(dimension_semantics=("parallel",)),
    )(z, scale[None, :], shift[None, :], w_taps)
    mean = psum.sum(axis=(0, 1)) / R
    var = jnp.maximum(psumsq.sum(axis=(0, 1)) / R - mean * mean, 0.0)
    return f, mean, var


# --------------------------------------- Wrapper ----------------------------------------- #
def _pick_row_tile(rows, cap=1024):
    """Largest multiple-of-8 divisor of rows that is <= cap (A/B are HBM-bound; bigger
    tiles amortize the per-step overhead and fit comfortably in VMEM)."""
    best = 8
    t = 8
    while t <= min(rows, cap):
        if rows % t == 0:
            best = t
        t += 8
    return best


def dense_block_forward(x_nchw, params, eps=1e-5, mxu_dtype=jnp.bfloat16, act_dtype=None):
    """DenseBlock forward. x_nchw: (N, C0, H, W) f32. Returns (N, C0 + sum(k), H, W) f32."""
    if act_dtype is None:
        act_dtype = mxu_dtype            # activations stored in MXU dtype (bf16 perf path)
    N, C0, H, W = x_nchw.shape
    R = N * H * W
    assert R % 8 == 0
    C_total = C0 + sum(p["w2"].shape[0] for p in params)
    C_pad = _round_up(C_total, 128)
    row_tile = _pick_row_tile(R, cap=1024)

    # glue: NCHW -> channels-last, spatial flattened (channels on the lane axis).
    x_cl = jnp.transpose(x_nchw, (0, 2, 3, 1)).reshape(R, C0).astype(act_dtype)

    # BN1 stats of the block input; later layers reuse old-channel stats (concat keeps them).
    means, vars_ = _channel_stats(x_cl, row_tile)

    # Preallocated channel-padded concat buffer; each layer appends its k new channels in
    # place (O(L*k) traffic instead of the O(L^2) repeated concatenate).
    x_buf = jnp.pad(x_cl, ((0, 0), (0, C_pad - C0)))

    cin = C0
    for p in params:
        cmid = p["w1"].shape[0]                     # bottleneck channels (4k, lane-aligned)
        kk = p["w2"].shape[0]                       # growth rate k
        cup = min(_round_up(cin, 128), C_pad)       # 128-multiple read window of x_buf

        # BN1 folded to a per-channel affine (ReLU between BN and conv forbids weight
        # folding); padded channels get scale=shift=0 and zero w1 rows -> exact zeros.
        scale1 = p["gamma1"] * jax.lax.rsqrt(vars_ + eps)
        shift1 = p["beta1"] - means * scale1
        scale1 = jnp.pad(scale1, (0, cup - cin))
        shift1 = jnp.pad(shift1, (0, cup - cin))
        w1 = jnp.pad(p["w1"].reshape(cmid, cin).T, ((0, cup - cin), (0, 0))).astype(mxu_dtype)

        z, mean2, var2 = _bottleneck(x_buf, cup, scale1, shift1, w1, row_tile, act_dtype)

        scale2 = p["gamma2"] * jax.lax.rsqrt(var2 + eps)
        shift2 = p["beta2"] - mean2 * scale2

        # 3x3 conv weights as 9 (Cmid, Kpad) taps; output channels zero-padded to 128 lanes.
        kpad = _round_up(kk, 128)
        w_taps = jnp.transpose(p["w2"], (2, 3, 1, 0)).reshape(9, cmid, kk)
        w_taps = jnp.pad(w_taps, ((0, 0), (0, 0), (0, kpad - kk))).astype(mxu_dtype)

        f, mean_f, var_f = _spatial(z, scale2, shift2, w_taps, N, H, W, act_dtype, mxu_dtype)

        # glue: in-place DenseNet channel append + extend per-channel BN1 stats.
        x_buf = lax.dynamic_update_slice(x_buf, f[:, :kk], (0, cin))
        means = jnp.concatenate([means, mean_f[:kk]])
        vars_ = jnp.concatenate([vars_, var_f[:kk]])
        cin += kk

    out = x_buf[:, :C_total].astype(jnp.float32)
    return jnp.transpose(out.reshape(N, H, W, C_total), (0, 3, 1, 2))


# ----------------------------------- Pure-JAX reference ---------------------------------- #
def _reference_forward(x, params, eps=1e-5, matmul_dtype=jnp.float32):
    hp = jax.lax.Precision.HIGHEST

    def bn(v, gamma, beta):
        mean = v.mean(axis=(0, 2, 3), keepdims=True)
        var = v.var(axis=(0, 2, 3), keepdims=True)          # biased, train-mode BN
        vn = (v - mean) / jnp.sqrt(var + eps)
        return vn * gamma[None, :, None, None] + beta[None, :, None, None]

    for p in params:
        xin = x
        h = jnp.maximum(bn(x, p["gamma1"], p["beta1"]), 0.0)
        w1 = p["w1"].reshape(p["w1"].shape[0], -1)
        h = jnp.einsum("nchw,oc->nohw", h.astype(matmul_dtype), w1.astype(matmul_dtype),
                       precision=hp, preferred_element_type=jnp.float32)
        h = jnp.maximum(bn(h, p["gamma2"], p["beta2"]), 0.0)
        h = jax.lax.conv_general_dilated(
            h.astype(matmul_dtype), p["w2"].astype(matmul_dtype),
            window_strides=(1, 1), padding=((1, 1), (1, 1)),
            dimension_numbers=("NCHW", "OIHW", "NCHW"),
            precision=hp, preferred_element_type=jnp.float32)
        x = jnp.concatenate([xin, h], axis=1)
    return x


if __name__ == "__main__":
    k = 32                      # growth rate from the module spec
    layer_num = 2
    N, C0, H, W = 2, 4, 16, 16  # small shapes consistent with the module

    key = jax.random.PRNGKey(0)
    key, kx = jax.random.split(key)
    x = jax.random.normal(kx, (N, C0, H, W), jnp.float32)

    # Deterministic parameters. PyTorch defaults are gamma=1 / beta=0; randomized here
    # (still deterministic) so the folded-affine path is fully exercised.
    params = []
    c_in = C0
    for _ in range(layer_num):
        key, k1, k2, k3, k4, k5, k6 = jax.random.split(key, 7)
        b1 = 1.0 / (c_in ** 0.5)                 # Conv2d default bound, fan_in = c_in*1*1
        b2 = 1.0 / ((4 * k * 9) ** 0.5)          # fan_in = 4k*3*3
        params.append(dict(
            gamma1=jax.random.uniform(k3, (c_in,), jnp.float32, 0.5, 1.5),
            beta1=0.1 * jax.random.normal(k4, (c_in,), jnp.float32),
            w1=jax.random.uniform(k1, (4 * k, c_in, 1, 1), jnp.float32, -b1, b1),
            gamma2=jax.random.uniform(k5, (4 * k,), jnp.float32, 0.5, 1.5),
            beta2=0.1 * jax.random.normal(k6, (4 * k,), jnp.float32),
            w2=jax.random.uniform(k2, (k, 4 * k, 3, 3), jnp.float32, -b2, b2),
        ))
        c_in += k

    fwd_f32 = jax.jit(partial(dense_block_forward, mxu_dtype=jnp.float32))
    fwd_bf16 = jax.jit(partial(dense_block_forward, mxu_dtype=jnp.bfloat16))

    out_shape = (N, C0 + layer_num * k, H, W)
    ref_f32 = _reference_forward(x, params, matmul_dtype=jnp.float32)

    # Tight structural check: all-f32 path (f32 activations + f32 MXU) vs f32 reference.
    out_f32 = jax.block_until_ready(fwd_f32(x, params))
    assert out_f32.shape == out_shape, out_f32.shape
    assert jnp.allclose(out_f32, ref_f32, atol=2e-3, rtol=2e-3), \
        float(jnp.abs(out_f32 - ref_f32).max())

    # Performance path: bf16 activation storage + bf16 MXU inputs, f32 accumulation and
    # f32 BN statistics. Tolerance relaxed for bf16 activation rounding.
    out_bf16 = jax.block_until_ready(fwd_bf16(x, params))
    assert out_bf16.shape == out_shape, out_bf16.shape
    assert jnp.allclose(out_bf16, ref_f32, atol=5e-2, rtol=5e-2), \
        float(jnp.abs(out_bf16 - ref_f32).max())

    print("KERNEL_OK")
</pallas_src>

<mosaic_0001>
module attributes {stable_mosaic.version = 11 : i64} {
  func.func @_stats_kernel(%arg0: i32, %arg1: memref<512x4xf32, #tpu.memory_space<vmem>>, %arg2: memref<1x1x4xf32, #tpu.memory_space<vmem>>, %arg3: memref<1x1x4xf32, #tpu.memory_space<vmem>>) attributes {dimension_semantics = [#tpu.dimension_semantics<parallel>], iteration_bounds = array<i64: 1>, scalar_prefetch = 0 : i64, scratch_operands = 0 : i64, tpu.core_type = #tpu.core_type<tc>, window_params = [{transform_indices = @transform_0, window_bounds = array<i64: 512, 4>}, {transform_indices = @transform_1, window_bounds = array<i64: 1, 1, 4>}, {transform_indices = @transform_2, window_bounds = array<i64: 1, 1, 4>}]} {
    %c0 = arith.constant 0 : index
    %c0_0 = arith.constant 0 : index
    %0 = vector.load %arg1[%c0, %c0_0] : memref<512x4xf32, #tpu.memory_space<vmem>>, vector<512x4xf32>
    %cst = arith.constant dense<0.000000e+00> : vector<4xf32>
    %1 = vector.multi_reduction <add>, %0, %cst [0] : vector<512x4xf32> to vector<4xf32>
    %2 = vector.shape_cast %1 : vector<4xf32> to vector<1x4xf32>
    %c0_1 = arith.constant 0 : index
    %c0_2 = arith.constant 0 : index
    %c0_3 = arith.constant 0 : index
    %3 = vector.load %arg2[%c0_1, %c0_2, %c0_3] : memref<1x1x4xf32, #tpu.memory_space<vmem>>, vector<1x1x4xf32>
    %4 = vector.shape_cast %3 : vector<1x1x4xf32> to vector<1x4xf32>
    %5 = vector.shape_cast %2 : vector<1x4xf32> to vector<1x1x4xf32>
    tpu.vector_store %arg2[%c0_1, %c0_2, %c0_3], %5 {strides = array<i32>} : memref<1x1x4xf32, #tpu.memory_space<vmem>>, vector<1x1x4xf32>,
    %6 = arith.mulf %0, %0 : vector<512x4xf32>
    %cst_4 = arith.constant dense<0.000000e+00> : vector<4xf32>
    %7 = vector.multi_reduction <add>, %6, %cst_4 [0] : vector<512x4xf32> to vector<4xf32>
    %8 = vector.shape_cast %7 : vector<4xf32> to vector<1x4xf32>
    %c0_5 = arith.constant 0 : index
    %c0_6 = arith.constant 0 : index
    %c0_7 = arith.constant 0 : index
    %9 = vector.load %arg3[%c0_5, %c0_6, %c0_7] : memref<1x1x4xf32, #tpu.memory_space<vmem>>, vector<1x1x4xf32>
    %10 = vector.shape_cast %9 : vector<1x1x4xf32> to vector<1x4xf32>
    %11 = vector.shape_cast %8 : vector<1x4xf32> to vector<1x1x4xf32>
    tpu.vector_store %arg3[%c0_5, %c0_6, %c0_7], %11 {strides = array<i32>} : memref<1x1x4xf32, #tpu.memory_space<vmem>>, vector<1x1x4xf32>,
    return
  }
  func.func @transform_0(%arg0: i32) -> (i32, i32) {
    %c0_i32 = arith.constant 0 : i32
    %c0_i32_0 = arith.constant 0 : i32
    return %arg0, %c0_i32 : i32, i32
  }
  func.func @transform_1(%arg0: i32) -> (i32, i32, i32) {
    %c0_i32 = arith.constant 0 : i32
    %c0_i32_0 = arith.constant 0 : i32
    %c0_i32_1 = arith.constant 0 : i32
    return %arg0, %c0_i32, %c0_i32_0 : i32, i32, i32
  }
  func.func @transform_2(%arg0: i32) -> (i32, i32, i32) {
    %c0_i32 = arith.constant 0 : i32
    %c0_i32_0 = arith.constant 0 : i32
    %c0_i32_1 = arith.constant 0 : i32
    return %arg0, %c0_i32, %c0_i32_0 : i32, i32, i32
  }
}

module attributes {stable_mosaic.version = 11 : i64} {
  func.func @_bottleneck_kernel(%arg0: i32, %arg1: memref<512x128xf32, #tpu.memory_space<vmem>>, %arg2: memref<1x128xf32, #tpu.memory_space<vmem>>, %arg3: memref<1x128xf32, #tpu.memory_space<vmem>>, %arg4: memref<128x128xf32, #tpu.memory_space<vmem>>, %arg5: memref<512x128xf32, #tpu.memory_space<vmem>>, %arg6: memref<1x1x128xf32, #tpu.memory_space<vmem>>, %arg7: memref<1x1x128xf32, #tpu.memory_space<vmem>>) attributes {dimension_semantics = [#tpu.dimension_semantics<parallel>], iteration_bounds = array<i64: 1>, scalar_prefetch = 0 : i64, scratch_operands = 0 : i64, tpu.core_type = #tpu.core_type<tc>, window_params = [{transform_indices = @transform_0, window_bounds = array<i64: 512, 128>}, {pipeline_mode = #tpu.pipeline_mode<synchronous>, transform_indices = @transform_1, window_bounds = array<i64: 1, 128>}, {pipeline_mode = #tpu.pipeline_mode<synchronous>, transform_indices = @transform_2, window_bounds = array<i64: 1, 128>}, {pipeline_mode = #tpu.pipeline_mode<synchronous>, transform_indices = @transform_3, window_bounds = array<i64: 128, 128>}, {transform_indices = @transform_4, window_bounds = array<i64: 512, 128>}, {transform_indices = @transform_5, window_bounds = array<i64: 1, 1, 128>}, {transform_indices = @transform_6, window_bounds = array<i64: 1, 1, 128>}]} {
    %c0 = arith.constant 0 : index
    %c0_0 = arith.constant 0 : index
    %0 = vector.load %arg1[%c0, %c0_0] : memref<512x128xf32, #tpu.memory_space<vmem>>, vector<512x128xf32>
    %c0_1 = arith.constant 0 : index
    %c0_2 = arith.constant 0 : index
    %1 = vector.load %arg2[%c0_1, %c0_2] : memref<1x128xf32, #tpu.memory_space<vmem>>, vector<1x128xf32>
    %2 = vector.broadcast %1 : vector<1x128xf32> to vector<512x128xf32>
    %3 = arith.mulf %0, %2 : vector<512x128xf32>
    %c0_3 = arith.constant 0 : index
    %c0_4 = arith.constant 0 : index
    %4 = vector.load %arg3[%c0_3, %c0_4] : memref<1x128xf32, #tpu.memory_space<vmem>>, vector<1x128xf32>
    %5 = vector.broadcast %4 : vector<1x128xf32> to vector<512x128xf32>
    %6 = arith.addf %3, %5 : vector<512x128xf32>
    %cst = arith.constant 0.000000e+00 : f32
    %7 = vector.broadcast %cst : f32 to vector<512x128xf32>
    %8 = arith.maximumf %6, %7 : vector<512x128xf32>
    %c0_5 = arith.constant 0 : index
    %c0_6 = arith.constant 0 : index
    %9 = vector.load %arg4[%c0_5, %c0_6] : memref<128x128xf32, #tpu.memory_space<vmem>>, vector<128x128xf32>
    %cst_7 = arith.constant dense<0.000000e+00> : vector<512x128xf32>
    %10 = tpu.matmul %8, %9, %cst_7 {dimension_numbers = #tpu.dot_dimension_numbers<[1], [0], [0], [1], [0, 0, 1, 1], [], []>} : vector<512x128xf32>, vector<128x128xf32>, vector<512x128xf32> -> vector<512x128xf32>
    %cst_8 = arith.constant dense<0.000000e+00> : vector<128xf32>
    %11 = vector.multi_reduction <add>, %10, %cst_8 [0] : vector<512x128xf32> to vector<128xf32>
    %12 = vector.shape_cast %11 : vector<128xf32> to vector<1x128xf32>
    %c0_9 = arith.constant 0 : index
    %c0_10 = arith.constant 0 : index
    %c0_11 = arith.constant 0 : index
    %13 = vector.load %arg6[%c0_9, %c0_10, %c0_11] : memref<1x1x128xf32, #tpu.memory_space<vmem>>, vector<1x1x128xf32>
    %14 = vector.shape_cast %13 : vector<1x1x128xf32> to vector<1x128xf32>
    %15 = vector.shape_cast %12 : vector<1x128xf32> to vector<1x1x128xf32>
    tpu.vector_store %arg6[%c0_9, %c0_10, %c0_11], %15 {strides = array<i32>} : memref<1x1x128xf32, #tpu.memory_space<vmem>>, vector<1x1x128xf32>,
    %16 = arith.mulf %10, %10 : vector<512x128xf32>
    %cst_12 = arith.constant dense<0.000000e+00> : vector<128xf32>
    %17 = vector.multi_reduction <add>, %16, %cst_12 [0] : vector<512x128xf32> to vector<128xf32>
    %18 = vector.shape_cast %17 : vector<128xf32> to vector<1x128xf32>
    %c0_13 = arith.constant 0 : index
    %c0_14 = arith.constant 0 : index
    %c0_15 = arith.constant 0 : index
    %19 = vector.load %arg7[%c0_13, %c0_14, %c0_15] : memref<1x1x128xf32, #tpu.memory_space<vmem>>, vector<1x1x128xf32>
    %20 = vector.shape_cast %19 : vector<1x1x128xf32> to vector<1x128xf32>
    %21 = vector.shape_cast %18 : vector<1x128xf32> to vector<1x1x128xf32>
    tpu.vector_store %arg7[%c0_13, %c0_14, %c0_15], %21 {strides = array<i32>} : memref<1x1x128xf32, #tpu.memory_space<vmem>>, vector<1x1x128xf32>,
    %c0_16 = arith.constant 0 : index
    %c0_17 = arith.constant 0 : index
    %22 = vector.load %arg5[%c0_16, %c0_17] : memref<512x128xf32, #tpu.memory_space<vmem>>, vector<512x128xf32>
    tpu.vector_store %arg5[%c0_16, %c0_17], %10 {strides = array<i32>} : memref<512x128xf32, #tpu.memory_space<vmem>>, vector<512x128xf32>,
    return
  }
  func.func @transform_0(%arg0: i32) -> (i32, i32) {
    %c0_i32 = arith.constant 0 : i32
    %c0_i32_0 = arith.constant 0 : i32
    return %arg0, %c0_i32 : i32, i32
  }
  func.func @transform_1(%arg0: i32) -> (i32, i32) {
    %c0_i32 = arith.constant 0 : i32
    %c0_i32_0 = arith.constant 0 : i32
    %c0_i32_1 = arith.constant 0 : i32
    return %c0_i32, %c0_i32_0 : i32, i32
  }
  func.func @transform_2(%arg0: i32) -> (i32, i32) {
    %c0_i32 = arith.constant 0 : i32
    %c0_i32_0 = arith.constant 0 : i32
    %c0_i32_1 = arith.constant 0 : i32
    return %c0_i32, %c0_i32_0 : i32, i32
  }
  func.func @transform_3(%arg0: i32) -> (i32, i32) {
    %c0_i32 = arith.constant 0 : i32
    %c0_i32_0 = arith.constant 0 : i32
    %c0_i32_1 = arith.constant 0 : i32
    return %c0_i32, %c0_i32_0 : i32, i32
  }
  func.func @transform_4(%arg0: i32) -> (i32, i32) {
    %c0_i32 = arith.constant 0 : i32
    %c0_i32_0 = arith.constant 0 : i32
    return %arg0, %c0_i32 : i32, i32
  }
  func.func @transform_5(%arg0: i32) -> (i32, i32, i32) {
    %c0_i32 = arith.constant 0 : i32
    %c0_i32_0 = arith.constant 0 : i32
    %c0_i32_1 = arith.constant 0 : i32
    return %arg0, %c0_i32, %c0_i32_0 : i32, i32, i32
  }
  func.func @transform_6(%arg0: i32) -> (i32, i32, i32) {
    %c0_i32 = arith.constant 0 : i32
    %c0_i32_0 = arith.constant 0 : i32
    %c0_i32_1 = arith.constant 0 : i32
    return %arg0, %c0_i32, %c0_i32_0 : i32, i32, i32
  }
}

module attributes {stable_mosaic.version = 11 : i64} {
  func.func @_spatial_kernel(%arg0: i32, %arg1: memref<256x128xf32, #tpu.memory_space<vmem>>, %arg2: memref<1x128xf32, #tpu.memory_space<vmem>>, %arg3: memref<1x128xf32, #tpu.memory_space<vmem>>, %arg4: memref<9x128x128xf32, #tpu.memory_space<vmem>>, %arg5: memref<256x128xf32, #tpu.memory_space<vmem>>, %arg6: memref<1x1x128xf32, #tpu.memory_space<vmem>>, %arg7: memref<1x1x128xf32, #tpu.memory_space<vmem>>, %arg8: memref<288x128xf32, #tpu.memory_space<vmem>>, %arg9: memref<288x128xf32, #tpu.memory_space<vmem>>, %arg10: memref<288x128xf32, #tpu.memory_space<vmem>>) attributes {dimension_semantics = [#tpu.dimension_semantics<parallel>], iteration_bounds = array<i64: 2>, scalar_prefetch = 0 : i64, scratch_operands = 3 : i64, tpu.core_type = #tpu.core_type<tc>, window_params = [{transform_indices = @transform_0, window_bounds = array<i64: 256, 128>}, {pipeline_mode = #tpu.pipeline_mode<synchronous>, transform_indices = @transform_1, window_bounds = array<i64: 1, 128>}, {pipeline_mode = #tpu.pipeline_mode<synchronous>, transform_indices = @transform_2, window_bounds = array<i64: 1, 128>}, {pipeline_mode = #tpu.pipeline_mode<synchronous>, transform_indices = @transform_3, window_bounds = array<i64: 9, 128, 128>}, {transform_indices = @transform_4, window_bounds = array<i64: 256, 128>}, {transform_indices = @transform_5, window_bounds = array<i64: 1, 1, 128>}, {transform_indices = @transform_6, window_bounds = array<i64: 1, 1, 128>}]} {
    %cst = arith.constant 0.000000e+00 : f32
    %0 = vector.broadcast %cst : f32 to vector<16x128xf32>
    %c0 = arith.constant 0 : index
    %c0_0 = arith.constant 0 : index
    %1 = vector.load %arg8[%c0, %c0_0] : memref<288x128xf32, #tpu.memory_space<vmem>>, vector<16x128xf32>
    tpu.vector_store %arg8[%c0, %c0_0], %0 {strides = array<i32>} : memref<288x128xf32, #tpu.memory_space<vmem>>, vector<16x128xf32>,
    %c272 = arith.constant 272 : index
    %c0_1 = arith.constant 0 : index
    %2 = vector.load %arg8[%c272, %c0_1] : memref<288x128xf32, #tpu.memory_space<vmem>>, vector<16x128xf32>
    tpu.vector_store %arg8[%c272, %c0_1], %0 {strides = array<i32>} : memref<288x128xf32, #tpu.memory_space<vmem>>, vector<16x128xf32>,
    %c0_2 = arith.constant 0 : index
    %c0_3 = arith.constant 0 : index
    %3 = vector.load %arg9[%c0_2, %c0_3] : memref<288x128xf32, #tpu.memory_space<vmem>>, vector<16x128xf32>
    tpu.vector_store %arg9[%c0_2, %c0_3], %0 {strides = array<i32>} : memref<288x128xf32, #tpu.memory_space<vmem>>, vector<16x128xf32>,
    %c272_4 = arith.constant 272 : index
    %c0_5 = arith.constant 0 : index
    %4 = vector.load %arg9[%c272_4, %c0_5] : memref<288x128xf32, #tpu.memory_space<vmem>>, vector<16x128xf32>
    tpu.vector_store %arg9[%c272_4, %c0_5], %0 {strides = array<i32>} : memref<288x128xf32, #tpu.memory_space<vmem>>, vector<16x128xf32>,
    %c0_6 = arith.constant 0 : index
    %c0_7 = arith.constant 0 : index
    %5 = vector.load %arg10[%c0_6, %c0_7] : memref<288x128xf32, #tpu.memory_space<vmem>>, vector<16x128xf32>
    tpu.vector_store %arg10[%c0_6, %c0_7], %0 {strides = array<i32>} : memref<288x128xf32, #tpu.memory_space<vmem>>, vector<16x128xf32>,
    %c272_8 = arith.constant 272 : index
    %c0_9 = arith.constant 0 : index
    %6 = vector.load %arg10[%c272_8, %c0_9] : memref<288x128xf32, #tpu.memory_space<vmem>>, vector<16x128xf32>
    tpu.vector_store %arg10[%c272_8, %c0_9], %0 {strides = array<i32>} : memref<288x128xf32, #tpu.memory_space<vmem>>, vector<16x128xf32>,
    %c0_10 = arith.constant 0 : index
    %c0_11 = arith.constant 0 : index
    %7 = vector.load %arg1[%c0_10, %c0_11] : memref<256x128xf32, #tpu.memory_space<vmem>>, vector<256x128xf32>
    %c0_12 = arith.constant 0 : index
    %c0_13 = arith.constant 0 : index
    %8 = vector.load %arg2[%c0_12, %c0_13] : memref<1x128xf32, #tpu.memory_space<vmem>>, vector<1x128xf32>
    %9 = vector.broadcast %8 : vector<1x128xf32> to vector<256x128xf32>
    %10 = arith.mulf %7, %9 : vector<256x128xf32>
    %c0_14 = arith.constant 0 : index
    %c0_15 = arith.constant 0 : index
    %11 = vector.load %arg3[%c0_14, %c0_15] : memref<1x128xf32, #tpu.memory_space<vmem>>, vector<1x128xf32>
    %12 = vector.broadcast %11 : vector<1x128xf32> to vector<256x128xf32>
    %13 = arith.addf %10, %12 : vector<256x128xf32>
    %cst_16 = arith.constant 0.000000e+00 : f32
    %14 = vector.broadcast %cst_16 : f32 to vector<256x128xf32>
    %15 = arith.maximumf %13, %14 : vector<256x128xf32>
    %16 = tpu.iota {dimensions = array<i32: 0>} : vector<256x1xi32>
    %c16_i32 = arith.constant 16 : i32
    %c0_i32 = arith.constant 0 : i32
    %17 = arith.cmpi eq, %c16_i32, %c0_i32 : i32
    %c1_i32 = arith.constant 1 : i32
    %18 = arith.select %17, %c1_i32, %c16_i32 : i32
    %19 = vector.broadcast %18 : i32 to vector<256x1xi32>
    %20 = arith.remsi %16, %19 : vector<256x1xi32>
    %c0_i32_17 = arith.constant 0 : i32
    %21 = vector.broadcast %c0_i32_17 : i32 to vector<256x1xi32>
    %22 = arith.cmpi ne, %20, %21 : vector<256x1xi32>
    %c0_i32_18 = arith.constant 0 : i32
    %23 = vector.broadcast %c0_i32_18 : i32 to vector<256x1xi32>
    %24 = arith.cmpi slt, %20, %23 : vector<256x1xi32>
    %c0_i32_19 = arith.constant 0 : i32
    %25 = arith.cmpi slt, %18, %c0_i32_19 : i32
    %26 = vector.broadcast %25 : i1 to vector<256x1xi1>
    %27 = vector.broadcast %26 : vector<256x1xi1> to vector<256x1xi1>
    %28 = arith.xori %24, %27 : vector<256x1xi1>
    %29 = arith.andi %28, %22 : vector<256x1xi1>
    %30 = vector.broadcast %18 : i32 to vector<256x1xi32>
    %31 = arith.addi %20, %30 : vector<256x1xi32>
    %32 = arith.select %29, %31, %20 : vector<256x1xi1>, vector<256x1xi32>
    %c0_i32_20 = arith.constant 0 : i32
    %33 = vector.broadcast %c0_i32_20 : i32 to vector<256x1xi32>
    %34 = arith.cmpi ne, %32, %33 : vector<256x1xi32>
    %c1_i32_21 = arith.constant 1 : i32
    %35 = tpu.dynamic_rotate %15 by %c1_i32_21 dim 0 : vector<256x128xf32>, i32 -> vector<256x128xf32>
    %cst_22 = arith.constant 0.000000e+00 : f32
    %36 = vector.shape_cast %34 : vector<256x1xi1> to vector<256x1xi1>
    %37 = vector.broadcast %36 : vector<256x1xi1> to vector<256x128xi1>
    %38 = vector.broadcast %cst_22 : f32 to vector<256x128xf32>
    %39 = arith.select %37, %35, %38 : vector<256x128xi1>, vector<256x128xf32>
    %c15_i32 = arith.constant 15 : i32
    %40 = vector.broadcast %c15_i32 : i32 to vector<256x1xi32>
    %41 = arith.cmpi ne, %32, %40 : vector<256x1xi32>
    %c255_i32 = arith.constant 255 : i32
    %42 = tpu.dynamic_rotate %15 by %c255_i32 dim 0 : vector<256x128xf32>, i32 -> vector<256x128xf32>
    %cst_23 = arith.constant 0.000000e+00 : f32
    %43 = vector.shape_cast %41 : vector<256x1xi1> to vector<256x1xi1>
    %44 = vector.broadcast %43 : vector<256x1xi1> to vector<256x128xi1>
    %45 = vector.broadcast %cst_23 : f32 to vector<256x128xf32>
    %46 = arith.select %44, %42, %45 : vector<256x128xi1>, vector<256x128xf32>
    %c16 = arith.constant 16 : index
    %c0_24 = arith.constant 0 : index
    %47 = vector.load %arg8[%c16, %c0_24] : memref<288x128xf32, #tpu.memory_space<vmem>>, vector<256x128xf32>
    tpu.vector_store %arg8[%c16, %c0_24], %15 {strides = array<i32>} : memref<288x128xf32, #tpu.memory_space<vmem>>, vector<256x128xf32>,
    %c16_25 = arith.constant 16 : index
    %c0_26 = arith.constant 0 : index
    %48 = vector.load %arg9[%c16_25, %c0_26] : memref<288x128xf32, #tpu.memory_space<vmem>>, vector<256x128xf32>
    tpu.vector_store %arg9[%c16_25, %c0_26], %39 {strides = array<i32>} : memref<288x128xf32, #tpu.memory_space<vmem>>, vector<256x128xf32>,
    %c16_27 = arith.constant 16 : index
    %c0_28 = arith.constant 0 : index
    %49 = vector.load %arg10[%c16_27, %c0_28] : memref<288x128xf32, #tpu.memory_space<vmem>>, vector<256x128xf32>
    tpu.vector_store %arg10[%c16_27, %c0_28], %46 {strides = array<i32>} : memref<288x128xf32, #tpu.memory_space<vmem>>, vector<256x128xf32>,
    %cst_29 = arith.constant 0.000000e+00 : f32
    %50 = vector.broadcast %cst_29 : f32 to vector<256x128xf32>
    %c0_30 = arith.constant 0 : index
    %c0_31 = arith.constant 0 : index
    %51 = vector.load %arg9[%c0_30, %c0_31] : memref<288x128xf32, #tpu.memory_space<vmem>>, vector<256x128xf32>
    %c0_32 = arith.constant 0 : index
    %c0_33 = arith.constant 0 : index
    %c0_34 = arith.constant 0 : index
    %52 = vector.load %arg4[%c0_32, %c0_33, %c0_34] : memref<9x128x128xf32, #tpu.memory_space<vmem>>, vector<1x128x128xf32>
    %53 = vector.shape_cast %52 : vector<1x128x128xf32> to vector<128x128xf32>
    %cst_35 = arith.constant dense<0.000000e+00> : vector<256x128xf32>
    %54 = tpu.matmul %51, %53, %cst_35 {dimension_numbers = #tpu.dot_dimension_numbers<[1], [0], [0], [1], [0, 0, 1, 1], [], []>} : vector<256x128xf32>, vector<128x128xf32>, vector<256x128xf32> -> vector<256x128xf32>
    %55 = arith.addf %50, %54 : vector<256x128xf32>
    %c0_36 = arith.constant 0 : index
    %c0_37 = arith.constant 0 : index
    %56 = vector.load %arg8[%c0_36, %c0_37] : memref<288x128xf32, #tpu.memory_space<vmem>>, vector<256x128xf32>
    %c1 = arith.constant 1 : index
    %c0_38 = arith.constant 0 : index
    %c0_39 = arith.constant 0 : index
    %57 = vector.load %arg4[%c1, %c0_38, %c0_39] : memref<9x128x128xf32, #tpu.memory_space<vmem>>, vector<1x128x128xf32>
    %58 = vector.shape_cast %57 : vector<1x128x128xf32> to vector<128x128xf32>
    %cst_40 = arith.constant dense<0.000000e+00> : vector<256x128xf32>
    %59 = tpu.matmul %56, %58, %cst_40 {dimension_numbers = #tpu.dot_dimension_numbers<[1], [0], [0], [1], [0, 0, 1, 1], [], []>} : vector<256x128xf32>, vector<128x128xf32>, vector<256x128xf32> -> vector<256x128xf32>
    %60 = arith.addf %55, %59 : vector<256x128xf32>
    %c0_41 = arith.constant 0 : index
    %c0_42 = arith.constant 0 : index
    %61 = vector.load %arg10[%c0_41, %c0_42] : memref<288x128xf32, #tpu.memory_space<vmem>>, vector<256x128xf32>
    %c2 = arith.constant 2 : index
    %c0_43 = arith.constant 0 : index
    %c0_44 = arith.constant 0 : index
    %62 = vector.load %arg4[%c2, %c0_43, %c0_44] : memref<9x128x128xf32, #tpu.memory_space<vmem>>, vector<1x128x128xf32>
    %63 = vector.shape_cast %62 : vector<1x128x128xf32> to vector<128x128xf32>
    %cst_45 = arith.constant dense<0.000000e+00> : vector<256x128xf32>
    %64 = tpu.matmul %61, %63, %cst_45 {dimension_numbers = #tpu.dot_dimension_numbers<[1], [0], [0], [1], [0, 0, 1, 1], [], []>} : vector<256x128xf32>, vector<128x128xf32>, vector<256x128xf32> -> vector<256x128xf32>
    %65 = arith.addf %60, %64 : vector<256x128xf32>
    %c16_46 = arith.constant 16 : index
    %c0_47 = arith.constant 0 : index
    %66 = vector.load %arg9[%c16_46, %c0_47] : memref<288x128xf32, #tpu.memory_space<vmem>>, vector<256x128xf32>
    %c3 = arith.constant 3 : index
    %c0_48 = arith.constant 0 : index
    %c0_49 = arith.constant 0 : index
    %67 = vector.load %arg4[%c3, %c0_48, %c0_49] : memref<9x128x128xf32, #tpu.memory_space<vmem>>, vector<1x128x128xf32>
    %68 = vector.shape_cast %67 : vector<1x128x128xf32> to vector<128x128xf32>
    %cst_50 = arith.constant dense<0.000000e+00> : vector<256x128xf32>
    %69 = tpu.matmul %66, %68, %cst_50 {dimension_numbers = #tpu.dot_dimension_numbers<[1], [0], [0], [1], [0, 0, 1, 1], [], []>} : vector<256x128xf32>, vector<128x128xf32>, vector<256x128xf32> -> vector<256x128xf32>
    %70 = arith.addf %65, %69 : vector<256x128xf32>
    %c16_51 = arith.constant 16 : index
    %c0_52 = arith.constant 0 : index
    %71 = vector.load %arg8[%c16_51, %c0_52] : memref<288x128xf32, #tpu.memory_space<vmem>>, vector<256x128xf32>
    %c4 = arith.constant 4 : index
    %c0_53 = arith.constant 0 : index
    %c0_54 = arith.constant 0 : index
    %72 = vector.load %arg4[%c4, %c0_53, %c0_54] : memref<9x128x128xf32, #tpu.memory_space<vmem>>, vector<1x128x128xf32>
    %73 = vector.shape_cast %72 : vector<1x128x128xf32> to vector<128x128xf32>
    %cst_55 = arith.constant dense<0.000000e+00> : vector<256x128xf32>
    %74 = tpu.matmul %71, %73, %cst_55 {dimension_numbers = #tpu.dot_dimension_numbers<[1], [0], [0], [1], [0, 0, 1, 1], [], []>} : vector<256x128xf32>, vector<128x128xf32>, vector<256x128xf32> -> vector<256x128xf32>
    %75 = arith.addf %70, %74 : vector<256x128xf32>
    %c16_56 = arith.constant 16 : index
    %c0_57 = arith.constant 0 : index
    %76 = vector.load %arg10[%c16_56, %c0_57] : memref<288x128xf32, #tpu.memory_space<vmem>>, vector<256x128xf32>
    %c5 = arith.constant 5 : index
    %c0_58 = arith.constant 0 : index
    %c0_59 = arith.constant 0 : index
    %77 = vector.load %arg4[%c5, %c0_58, %c0_59] : memref<9x128x128xf32, #tpu.memory_space<vmem>>, vector<1x128x128xf32>
    %78 = vector.shape_cast %77 : vector<1x128x128xf32> to vector<128x128xf32>
    %cst_60 = arith.constant dense<0.000000e+00> : vector<256x128xf32>
    %79 = tpu.matmul %76, %78, %cst_60 {dimension_numbers = #tpu.dot_dimension_numbers<[1], [0], [0], [1], [0, 0, 1, 1], [], []>} : vector<256x128xf32>, vector<128x128xf32>, vector<256x128xf32> -> vector<256x128xf32>
    %80 = arith.addf %75, %79 : vector<256x128xf32>
    %c32 = arith.constant 32 : index
    %c0_61 = arith.constant 0 : index
    %81 = vector.load %arg9[%c32, %c0_61] : memref<288x128xf32, #tpu.memory_space<vmem>>, vector<256x128xf32>
    %c6 = arith.constant 6 : index
    %c0_62 = arith.constant 0 : index
    %c0_63 = arith.constant 0 : index
    %82 = vector.load %arg4[%c6, %c0_62, %c0_63] : memref<9x128x128xf32, #tpu.memory_space<vmem>>, vector<1x128x128xf32>
    %83 = vector.shape_cast %82 : vector<1x128x128xf32> to vector<128x128xf32>
    %cst_64 = arith.constant dense<0.000000e+00> : vector<256x128xf32>
    %84 = tpu.matmul %81, %83, %cst_64 {dimension_numbers = #tpu.dot_dimension_numbers<[1], [0], [0], [1], [0, 0, 1, 1], [], []>} : vector<256x128xf32>, vector<128x128xf32>, vector<256x128xf32> -> vector<256x128xf32>
    %85 = arith.addf %80, %84 : vector<256x128xf32>
    %c32_65 = arith.constant 32 : index
    %c0_66 = arith.constant 0 : index
    %86 = vector.load %arg8[%c32_65, %c0_66] : memref<288x128xf32, #tpu.memory_space<vmem>>, vector<256x128xf32>
    %c7 = arith.constant 7 : index
    %c0_67 = arith.constant 0 : index
    %c0_68 = arith.constant 0 : index
    %87 = vector.load %arg4[%c7, %c0_67, %c0_68] : memref<9x128x128xf32, #tpu.memory_space<vmem>>, vector<1x128x128xf32>
    %88 = vector.shape_cast %87 : vector<1x128x128xf32> to vector<128x128xf32>
    %cst_69 = arith.constant dense<0.000000e+00> : vector<256x128xf32>
    %89 = tpu.matmul %86, %88, %cst_69 {dimension_numbers = #tpu.dot_dimension_numbers<[1], [0], [0], [1], [0, 0, 1, 1], [], []>} : vector<256x128xf32>, vector<128x128xf32>, vector<256x128xf32> -> vector<256x128xf32>
    %90 = arith.addf %85, %89 : vector<256x128xf32>
    %c32_70 = arith.constant 32 : index
    %c0_71 = arith.constant 0 : index
    %91 = vector.load %arg10[%c32_70, %c0_71] : memref<288x128xf32, #tpu.memory_space<vmem>>, vector<256x128xf32>
    %c8 = arith.constant 8 : index
    %c0_72 = arith.constant 0 : index
    %c0_73 = arith.constant 0 : index
    %92 = vector.load %arg4[%c8, %c0_72, %c0_73] : memref<9x128x128xf32, #tpu.memory_space<vmem>>, vector<1x128x128xf32>
    %93 = vector.shape_cast %92 : vector<1x128x128xf32> to vector<128x128xf32>
    %cst_74 = arith.constant dense<0.000000e+00> : vector<256x128xf32>
    %94 = tpu.matmul %91, %93, %cst_74 {dimension_numbers = #tpu.dot_dimension_numbers<[1], [0], [0], [1], [0, 0, 1, 1], [], []>} : vector<256x128xf32>, vector<128x128xf32>, vector<256x128xf32> -> vector<256x128xf32>
    %95 = arith.addf %90, %94 : vector<256x128xf32>
    %cst_75 = arith.constant dense<0.000000e+00> : vector<128xf32>
    %96 = vector.multi_reduction <add>, %95, %cst_75 [0] : vector<256x128xf32> to vector<128xf32>
    %97 = vector.shape_cast %96 : vector<128xf32> to vector<1x128xf32>
    %c0_76 = arith.constant 0 : index
    %c0_77 = arith.constant 0 : index
    %c0_78 = arith.constant 0 : index
    %98 = vector.load %arg6[%c0_76, %c0_77, %c0_78] : memref<1x1x128xf32, #tpu.memory_space<vmem>>, vector<1x1x128xf32>
    %99 = vector.shape_cast %98 : vector<1x1x128xf32> to vector<1x128xf32>
    %100 = vector.shape_cast %97 : vector<1x128xf32> to vector<1x1x128xf32>
    tpu.vector_store %arg6[%c0_76, %c0_77, %c0_78], %100 {strides = array<i32>} : memref<1x1x128xf32, #tpu.memory_space<vmem>>, vector<1x1x128xf32>,
    %101 = arith.mulf %95, %95 : vector<256x128xf32>
    %cst_79 = arith.constant dense<0.000000e+00> : vector<128xf32>
    %102 = vector.multi_reduction <add>, %101, %cst_79 [0] : vector<256x128xf32> to vector<128xf32>
    %103 = vector.shape_cast %102 : vector<128xf32> to vector<1x128xf32>
    %c0_80 = arith.constant 0 : index
    %c0_81 = arith.constant 0 : index
    %c0_82 = arith.constant 0 : index
    %104 = vector.load %arg7[%c0_80, %c0_81, %c0_82] : memref<1x1x128xf32, #tpu.memory_space<vmem>>, vector<1x1x128xf32>
    %105 = vector.shape_cast %104 : vector<1x1x128xf32> to vector<1x128xf32>
    %106 = vector.shape_cast %103 : vector<1x128xf32> to vector<1x1x128xf32>
    tpu.vector_store %arg7[%c0_80, %c0_81, %c0_82], %106 {strides = array<i32>} : memref<1x1x128xf32, #tpu.memory_space<vmem>>, vector<1x1x128xf32>,
    %c0_83 = arith.constant 0 : index
    %c0_84 = arith.constant 0 : index
    %107 = vector.load %arg5[%c0_83, %c0_84] : memref<256x128xf32, #tpu.memory_space<vmem>>, vector<256x128xf32>
    tpu.vector_store %arg5[%c0_83, %c0_84], %95 {strides = array<i32>} : memref<256x128xf32, #tpu.memory_space<vmem>>, vector<256x128xf32>,
    return
  }
  func.func @transform_0(%arg0: i32) -> (i32, i32) {
    %c0_i32 = arith.constant 0 : i32
    %c0_i32_0 = arith.constant 0 : i32
    return %arg0, %c0_i32 : i32, i32
  }
  func.func @transform_1(%arg0: i32) -> (i32, i32) {
    %c0_i32 = arith.constant 0 : i32
    %c0_i32_0 = arith.constant 0 : i32
    %c0_i32_1 = arith.constant 0 : i32
    return %c0_i32, %c0_i32_0 : i32, i32
  }
  func.func @transform_2(%arg0: i32) -> (i32, i32) {
    %c0_i32 = arith.constant 0 : i32
    %c0_i32_0 = arith.constant 0 : i32
    %c0_i32_1 = arith.constant 0 : i32
    return %c0_i32, %c0_i32_0 : i32, i32
  }
  func.func @transform_3(%arg0: i32) -> (i32, i32, i32) {
    %c0_i32 = arith.constant 0 : i32
    %c0_i32_0 = arith.constant 0 : i32
    %c0_i32_1 = arith.constant 0 : i32
    %c0_i32_2 = arith.constant 0 : i32
    return %c0_i32, %c0_i32_0, %c0_i32_1 : i32, i32, i32
  }
  func.func @transform_4(%arg0: i32) -> (i32, i32) {
    %c0_i32 = arith.constant 0 : i32
    %c0_i32_0 = arith.constant 0 : i32
    return %arg0, %c0_i32 : i32, i32
  }
  func.func @transform_5(%arg0: i32) -> (i32, i32, i32) {
    %c0_i32 = arith.constant 0 : i32
    %c0_i32_0 = arith.constant 0 : i32
    %c0_i32_1 = arith.constant 0 : i32
    return %arg0, %c0_i32, %c0_i32_0 : i32, i32, i32
  }
  func.func @transform_6(%arg0: i32) -> (i32, i32, i32) {
    %c0_i32 = arith.constant 0 : i32
    %c0_i32_0 = arith.constant 0 : i32
    %c0_i32_1 = arith.constant 0 : i32
    return %arg0, %c0_i32, %c0_i32_0 : i32, i32, i32
  }
}

module attributes {stable_mosaic.version = 11 : i64} {
  func.func @_spatial_kernel(%arg0: i32, %arg1: memref<256x128xf32, #tpu.memory_space<vmem>>, %arg2: memref<1x128xf32, #tpu.memory_space<vmem>>, %arg3: memref<1x128xf32, #tpu.memory_space<vmem>>, %arg4: memref<9x128x128xf32, #tpu.memory_space<vmem>>, %arg5: memref<256x128xf32, #tpu.memory_space<vmem>>, %arg6: memref<1x1x128xf32, #tpu.memory_space<vmem>>, %arg7: memref<1x1x128xf32, #tpu.memory_space<vmem>>, %arg8: memref<288x128xf32, #tpu.memory_space<vmem>>, %arg9: memref<288x128xf32, #tpu.memory_space<vmem>>, %arg10: memref<288x128xf32, #tpu.memory_space<vmem>>) attributes {dimension_semantics = [#tpu.dimension_semantics<parallel>], iteration_bounds = array<i64: 2>, scalar_prefetch = 0 : i64, scratch_operands = 3 : i64, tpu.core_type = #tpu.core_type<tc>, window_params = [{transform_indices = @transform_0, window_bounds = array<i64: 256, 128>}, {pipeline_mode = #tpu.pipeline_mode<synchronous>, transform_indices = @transform_1, window_bounds = array<i64: 1, 128>}, {pipeline_mode = #tpu.pipeline_mode<synchronous>, transform_indices = @transform_2, window_bounds = array<i64: 1, 128>}, {pipeline_mode = #tpu.pipeline_mode<synchronous>, transform_indices = @transform_3, window_bounds = array<i64: 9, 128, 128>}, {transform_indices = @transform_4, window_bounds = array<i64: 256, 128>}, {transform_indices = @transform_5, window_bounds = array<i64: 1, 1, 128>}, {transform_indices = @transform_6, window_bounds = array<i64: 1, 1, 128>}]} {
    %cst = arith.constant 0.000000e+00 : f32
    %0 = vector.broadcast %cst : f32 to vector<16x128xf32>
    %c0 = arith.constant 0 : index
    %c0_0 = arith.constant 0 : index
    %1 = vector.load %arg8[%c0, %c0_0] : memref<288x128xf32, #tpu.memory_space<vmem>>, vector<16x128xf32>
    tpu.vector_store %arg8[%c0, %c0_0], %0 {strides = array<i32>} : memref<288x128xf32, #tpu.memory_space<vmem>>, vector<16x128xf32>,
    %c272 = arith.constant 272 : index
    %c0_1 = arith.constant 0 : index
    %2 = vector.load %arg8[%c272, %c0_1] : memref<288x128xf32, #tpu.memory_space<vmem>>, vector<16x128xf32>
    tpu.vector_store %arg8[%c272, %c0_1], %0 {strides = array<i32>} : memref<288x128xf32, #tpu.memory_space<vmem>>, vector<16x128xf32>,
    %c0_2 = arith.constant 0 : index
    %c0_3 = arith.constant 0 : index
    %3 = vector.load %arg9[%c0_2, %c0_3] : memref<288x128xf32, #tpu.memory_space<vmem>>, vector<16x128xf32>
    tpu.vector_store %arg9[%c0_2, %c0_3], %0 {strides = array<i32>} : memref<288x128xf32, #tpu.memory_space<vmem>>, vector<16x128xf32>,
    %c272_4 = arith.constant 272 : index
    %c0_5 = arith.constant 0 : index
    %4 = vector.load %arg9[%c272_4, %c0_5] : memref<288x128xf32, #tpu.memory_space<vmem>>, vector<16x128xf32>
    tpu.vector_store %arg9[%c272_4, %c0_5], %0 {strides = array<i32>} : memref<288x128xf32, #tpu.memory_space<vmem>>, vector<16x128xf32>,
    %c0_6 = arith.constant 0 : index
    %c0_7 = arith.constant 0 : index
    %5 = vector.load %arg10[%c0_6, %c0_7] : memref<288x128xf32, #tpu.memory_space<vmem>>, vector<16x128xf32>
    tpu.vector_store %arg10[%c0_6, %c0_7], %0 {strides = array<i32>} : memref<288x128xf32, #tpu.memory_space<vmem>>, vector<16x128xf32>,
    %c272_8 = arith.constant 272 : index
    %c0_9 = arith.constant 0 : index
    %6 = vector.load %arg10[%c272_8, %c0_9] : memref<288x128xf32, #tpu.memory_space<vmem>>, vector<16x128xf32>
    tpu.vector_store %arg10[%c272_8, %c0_9], %0 {strides = array<i32>} : memref<288x128xf32, #tpu.memory_space<vmem>>, vector<16x128xf32>,
    %c0_10 = arith.constant 0 : index
    %c0_11 = arith.constant 0 : index
    %7 = vector.load %arg1[%c0_10, %c0_11] : memref<256x128xf32, #tpu.memory_space<vmem>>, vector<256x128xf32>
    %c0_12 = arith.constant 0 : index
    %c0_13 = arith.constant 0 : index
    %8 = vector.load %arg2[%c0_12, %c0_13] : memref<1x128xf32, #tpu.memory_space<vmem>>, vector<1x128xf32>
    %9 = vector.broadcast %8 : vector<1x128xf32> to vector<256x128xf32>
    %10 = arith.mulf %7, %9 : vector<256x128xf32>
    %c0_14 = arith.constant 0 : index
    %c0_15 = arith.constant 0 : index
    %11 = vector.load %arg3[%c0_14, %c0_15] : memref<1x128xf32, #tpu.memory_space<vmem>>, vector<1x128xf32>
    %12 = vector.broadcast %11 : vector<1x128xf32> to vector<256x128xf32>
    %13 = arith.addf %10, %12 : vector<256x128xf32>
    %cst_16 = arith.constant 0.000000e+00 : f32
    %14 = vector.broadcast %cst_16 : f32 to vector<256x128xf32>
    %15 = arith.maximumf %13, %14 : vector<256x128xf32>
    %16 = tpu.iota {dimensions = array<i32: 0>} : vector<256x1xi32>
    %c16_i32 = arith.constant 16 : i32
    %c0_i32 = arith.constant 0 : i32
    %17 = arith.cmpi eq, %c16_i32, %c0_i32 : i32
    %c1_i32 = arith.constant 1 : i32
    %18 = arith.select %17, %c1_i32, %c16_i32 : i32
    %19 = vector.broadcast %18 : i32 to vector<256x1xi32>
    %20 = arith.remsi %16, %19 : vector<256x1xi32>
    %c0_i32_17 = arith.constant 0 : i32
    %21 = vector.broadcast %c0_i32_17 : i32 to vector<256x1xi32>
    %22 = arith.cmpi ne, %20, %21 : vector<256x1xi32>
    %c0_i32_18 = arith.constant 0 : i32
    %23 = vector.broadcast %c0_i32_18 : i32 to vector<256x1xi32>
    %24 = arith.cmpi slt, %20, %23 : vector<256x1xi32>
    %c0_i32_19 = arith.constant 0 : i32
    %25 = arith.cmpi slt, %18, %c0_i32_19 : i32
    %26 = vector.broadcast %25 : i1 to vector<256x1xi1>
    %27 = vector.broadcast %26 : vector<256x1xi1> to vector<256x1xi1>
    %28 = arith.xori %24, %27 : vector<256x1xi1>
    %29 = arith.andi %28, %22 : vector<256x1xi1>
    %30 = vector.broadcast %18 : i32 to vector<256x1xi32>
    %31 = arith.addi %20, %30 : vector<256x1xi32>
    %32 = arith.select %29, %31, %20 : vector<256x1xi1>, vector<256x1xi32>
    %c0_i32_20 = arith.constant 0 : i32
    %33 = vector.broadcast %c0_i32_20 : i32 to vector<256x1xi32>
    %34 = arith.cmpi ne, %32, %33 : vector<256x1xi32>
    %c1_i32_21 = arith.constant 1 : i32
    %35 = tpu.dynamic_rotate %15 by %c1_i32_21 dim 0 : vector<256x128xf32>, i32 -> vector<256x128xf32>
    %cst_22 = arith.constant 0.000000e+00 : f32
    %36 = vector.shape_cast %34 : vector<256x1xi1> to vector<256x1xi1>
    %37 = vector.broadcast %36 : vector<256x1xi1> to vector<256x128xi1>
    %38 = vector.broadcast %cst_22 : f32 to vector<256x128xf32>
    %39 = arith.select %37, %35, %38 : vector<256x128xi1>, vector<256x128xf32>
    %c15_i32 = arith.constant 15 : i32
    %40 = vector.broadcast %c15_i32 : i32 to vector<256x1xi32>
    %41 = arith.cmpi ne, %32, %40 : vector<256x1xi32>
    %c255_i32 = arith.constant 255 : i32
    %42 = tpu.dynamic_rotate %15 by %c255_i32 dim 0 : vector<256x128xf32>, i32 -> vector<256x128xf32>
    %cst_23 = arith.constant 0.000000e+00 : f32
    %43 = vector.shape_cast %41 : vector<256x1xi1> to vector<256x1xi1>
    %44 = vector.broadcast %43 : vector<256x1xi1> to vector<256x128xi1>
    %45 = vector.broadcast %cst_23 : f32 to vector<256x128xf32>
    %46 = arith.select %44, %42, %45 : vector<256x128xi1>, vector<256x128xf32>
    %c16 = arith.constant 16 : index
    %c0_24 = arith.constant 0 : index
    %47 = vector.load %arg8[%c16, %c0_24] : memref<288x128xf32, #tpu.memory_space<vmem>>, vector<256x128xf32>
    tpu.vector_store %arg8[%c16, %c0_24], %15 {strides = array<i32>} : memref<288x128xf32, #tpu.memory_space<vmem>>, vector<256x128xf32>,
    %c16_25 = arith.constant 16 : index
    %c0_26 = arith.constant 0 : index
    %48 = vector.load %arg9[%c16_25, %c0_26] : memref<288x128xf32, #tpu.memory_space<vmem>>, vector<256x128xf32>
    tpu.vector_store %arg9[%c16_25, %c0_26], %39 {strides = array<i32>} : memref<288x128xf32, #tpu.memory_space<vmem>>, vector<256x128xf32>,
    %c16_27 = arith.constant 16 : index
    %c0_28 = arith.constant 0 : index
    %49 = vector.load %arg10[%c16_27, %c0_28] : memref<288x128xf32, #tpu.memory_space<vmem>>, vector<256x128xf32>
    tpu.vector_store %arg10[%c16_27, %c0_28], %46 {strides = array<i32>} : memref<288x128xf32, #tpu.memory_space<vmem>>, vector<256x128xf32>,
    %cst_29 = arith.constant 0.000000e+00 : f32
    %50 = vector.broadcast %cst_29 : f32 to vector<256x128xf32>
    %c0_30 = arith.constant 0 : index
    %c0_31 = arith.constant 0 : index
    %51 = vector.load %arg9[%c0_30, %c0_31] : memref<288x128xf32, #tpu.memory_space<vmem>>, vector<256x128xf32>
    %c0_32 = arith.constant 0 : index
    %c0_33 = arith.constant 0 : index
    %c0_34 = arith.constant 0 : index
    %52 = vector.load %arg4[%c0_32, %c0_33, %c0_34] : memref<9x128x128xf32, #tpu.memory_space<vmem>>, vector<1x128x128xf32>
    %53 = vector.shape_cast %52 : vector<1x128x128xf32> to vector<128x128xf32>
    %cst_35 = arith.constant dense<0.000000e+00> : vector<256x128xf32>
    %54 = tpu.matmul %51, %53, %cst_35 {dimension_numbers = #tpu.dot_dimension_numbers<[1], [0], [0], [1], [0, 0, 1, 1], [], []>} : vector<256x128xf32>, vector<128x128xf32>, vector<256x128xf32> -> vector<256x128xf32>
    %55 = arith.addf %50, %54 : vector<256x128xf32>
    %c0_36 = arith.constant 0 : index
    %c0_37 = arith.constant 0 : index
    %56 = vector.load %arg8[%c0_36, %c0_37] : memref<288x128xf32, #tpu.memory_space<vmem>>, vector<256x128xf32>
    %c1 = arith.constant 1 : index
    %c0_38 = arith.constant 0 : index
    %c0_39 = arith.constant 0 : index
    %57 = vector.load %arg4[%c1, %c0_38, %c0_39] : memref<9x128x128xf32, #tpu.memory_space<vmem>>, vector<1x128x128xf32>
    %58 = vector.shape_cast %57 : vector<1x128x128xf32> to vector<128x128xf32>
    %cst_40 = arith.constant dense<0.000000e+00> : vector<256x128xf32>
    %59 = tpu.matmul %56, %58, %cst_40 {dimension_numbers = #tpu.dot_dimension_numbers<[1], [0], [0], [1], [0, 0, 1, 1], [], []>} : vector<256x128xf32>, vector<128x128xf32>, vector<256x128xf32> -> vector<256x128xf32>
    %60 = arith.addf %55, %59 : vector<256x128xf32>
    %c0_41 = arith.constant 0 : index
    %c0_42 = arith.constant 0 : index
    %61 = vector.load %arg10[%c0_41, %c0_42] : memref<288x128xf32, #tpu.memory_space<vmem>>, vector<256x128xf32>
    %c2 = arith.constant 2 : index
    %c0_43 = arith.constant 0 : index
    %c0_44 = arith.constant 0 : index
    %62 = vector.load %arg4[%c2, %c0_43, %c0_44] : memref<9x128x128xf32, #tpu.memory_space<vmem>>, vector<1x128x128xf32>
    %63 = vector.shape_cast %62 : vector<1x128x128xf32> to vector<128x128xf32>
    %cst_45 = arith.constant dense<0.000000e+00> : vector<256x128xf32>
    %64 = tpu.matmul %61, %63, %cst_45 {dimension_numbers = #tpu.dot_dimension_numbers<[1], [0], [0], [1], [0, 0, 1, 1], [], []>} : vector<256x128xf32>, vector<128x128xf32>, vector<256x128xf32> -> vector<256x128xf32>
    %65 = arith.addf %60, %64 : vector<256x128xf32>
    %c16_46 = arith.constant 16 : index
    %c0_47 = arith.constant 0 : index
    %66 = vector.load %arg9[%c16_46, %c0_47] : memref<288x128xf32, #tpu.memory_space<vmem>>, vector<256x128xf32>
    %c3 = arith.constant 3 : index
    %c0_48 = arith.constant 0 : index
    %c0_49 = arith.constant 0 : index
    %67 = vector.load %arg4[%c3, %c0_48, %c0_49] : memref<9x128x128xf32, #tpu.memory_space<vmem>>, vector<1x128x128xf32>
    %68 = vector.shape_cast %67 : vector<1x128x128xf32> to vector<128x128xf32>
    %cst_50 = arith.constant dense<0.000000e+00> : vector<256x128xf32>
    %69 = tpu.matmul %66, %68, %cst_50 {dimension_numbers = #tpu.dot_dimension_numbers<[1], [0], [0], [1], [0, 0, 1, 1], [], []>} : vector<256x128xf32>, vector<128x128xf32>, vector<256x128xf32> -> vector<256x128xf32>
    %70 = arith.addf %65, %69 : vector<256x128xf32>
    %c16_51 = arith.constant 16 : index
    %c0_52 = arith.constant 0 : index
    %71 = vector.load %arg8[%c16_51, %c0_52] : memref<288x128xf32, #tpu.memory_space<vmem>>, vector<256x128xf32>
    %c4 = arith.constant 4 : index
    %c0_53 = arith.constant 0 : index
    %c0_54 = arith.constant 0 : index
    %72 = vector.load %arg4[%c4, %c0_53, %c0_54] : memref<9x128x128xf32, #tpu.memory_space<vmem>>, vector<1x128x128xf32>
    %73 = vector.shape_cast %72 : vector<1x128x128xf32> to vector<128x128xf32>
    %cst_55 = arith.constant dense<0.000000e+00> : vector<256x128xf32>
    %74 = tpu.matmul %71, %73, %cst_55 {dimension_numbers = #tpu.dot_dimension_numbers<[1], [0], [0], [1], [0, 0, 1, 1], [], []>} : vector<256x128xf32>, vector<128x128xf32>, vector<256x128xf32> -> vector<256x128xf32>
    %75 = arith.addf %70, %74 : vector<256x128xf32>
    %c16_56 = arith.constant 16 : index
    %c0_57 = arith.constant 0 : index
    %76 = vector.load %arg10[%c16_56, %c0_57] : memref<288x128xf32, #tpu.memory_space<vmem>>, vector<256x128xf32>
    %c5 = arith.constant 5 : index
    %c0_58 = arith.constant 0 : index
    %c0_59 = arith.constant 0 : index
    %77 = vector.load %arg4[%c5, %c0_58, %c0_59] : memref<9x128x128xf32, #tpu.memory_space<vmem>>, vector<1x128x128xf32>
    %78 = vector.shape_cast %77 : vector<1x128x128xf32> to vector<128x128xf32>
    %cst_60 = arith.constant dense<0.000000e+00> : vector<256x128xf32>
    %79 = tpu.matmul %76, %78, %cst_60 {dimension_numbers = #tpu.dot_dimension_numbers<[1], [0], [0], [1], [0, 0, 1, 1], [], []>} : vector<256x128xf32>, vector<128x128xf32>, vector<256x128xf32> -> vector<256x128xf32>
    %80 = arith.addf %75, %79 : vector<256x128xf32>
    %c32 = arith.constant 32 : index
    %c0_61 = arith.constant 0 : index
    %81 = vector.load %arg9[%c32, %c0_61] : memref<288x128xf32, #tpu.memory_space<vmem>>, vector<256x128xf32>
    %c6 = arith.constant 6 : index
    %c0_62 = arith.constant 0 : index
    %c0_63 = arith.constant 0 : index
    %82 = vector.load %arg4[%c6, %c0_62, %c0_63] : memref<9x128x128xf32, #tpu.memory_space<vmem>>, vector<1x128x128xf32>
    %83 = vector.shape_cast %82 : vector<1x128x128xf32> to vector<128x128xf32>
    %cst_64 = arith.constant dense<0.000000e+00> : vector<256x128xf32>
    %84 = tpu.matmul %81, %83, %cst_64 {dimension_numbers = #tpu.dot_dimension_numbers<[1], [0], [0], [1], [0, 0, 1, 1], [], []>} : vector<256x128xf32>, vector<128x128xf32>, vector<256x128xf32> -> vector<256x128xf32>
    %85 = arith.addf %80, %84 : vector<256x128xf32>
    %c32_65 = arith.constant 32 : index
    %c0_66 = arith.constant 0 : index
    %86 = vector.load %arg8[%c32_65, %c0_66] : memref<288x128xf32, #tpu.memory_space<vmem>>, vector<256x128xf32>
    %c7 = arith.constant 7 : index
    %c0_67 = arith.constant 0 : index
    %c0_68 = arith.constant 0 : index
    %87 = vector.load %arg4[%c7, %c0_67, %c0_68] : memref<9x128x128xf32, #tpu.memory_space<vmem>>, vector<1x128x128xf32>
    %88 = vector.shape_cast %87 : vector<1x128x128xf32> to vector<128x128xf32>
    %cst_69 = arith.constant dense<0.000000e+00> : vector<256x128xf32>
    %89 = tpu.matmul %86, %88, %cst_69 {dimension_numbers = #tpu.dot_dimension_numbers<[1], [0], [0], [1], [0, 0, 1, 1], [], []>} : vector<256x128xf32>, vector<128x128xf32>, vector<256x128xf32> -> vector<256x128xf32>
    %90 = arith.addf %85, %89 : vector<256x128xf32>
    %c32_70 = arith.constant 32 : index
    %c0_71 = arith.constant 0 : index
    %91 = vector.load %arg10[%c32_70, %c0_71] : memref<288x128xf32, #tpu.memory_space<vmem>>, vector<256x128xf32>
    %c8 = arith.constant 8 : index
    %c0_72 = arith.constant 0 : index
    %c0_73 = arith.constant 0 : index
    %92 = vector.load %arg4[%c8, %c0_72, %c0_73] : memref<9x128x128xf32, #tpu.memory_space<vmem>>, vector<1x128x128xf32>
    %93 = vector.shape_cast %92 : vector<1x128x128xf32> to vector<128x128xf32>
    %cst_74 = arith.constant dense<0.000000e+00> : vector<256x128xf32>
    %94 = tpu.matmul %91, %93, %cst_74 {dimension_numbers = #tpu.dot_dimension_numbers<[1], [0], [0], [1], [0, 0, 1, 1], [], []>} : vector<256x128xf32>, vector<128x128xf32>, vector<256x128xf32> -> vector<256x128xf32>
    %95 = arith.addf %90, %94 : vector<256x128xf32>
    %cst_75 = arith.constant dense<0.000000e+00> : vector<128xf32>
    %96 = vector.multi_reduction <add>, %95, %cst_75 [0] : vector<256x128xf32> to vector<128xf32>
    %97 = vector.shape_cast %96 : vector<128xf32> to vector<1x128xf32>
    %c0_76 = arith.constant 0 : index
    %c0_77 = arith.constant 0 : index
    %c0_78 = arith.constant 0 : index
    %98 = vector.load %arg6[%c0_76, %c0_77, %c0_78] : memref<1x1x128xf32, #tpu.memory_space<vmem>>, vector<1x1x128xf32>
    %99 = vector.shape_cast %98 : vector<1x1x128xf32> to vector<1x128xf32>
    %100 = vector.shape_cast %97 : vector<1x128xf32> to vector<1x1x128xf32>
    tpu.vector_store %arg6[%c0_76, %c0_77, %c0_78], %100 {strides = array<i32>} : memref<1x1x128xf32, #tpu.memory_space<vmem>>, vector<1x1x128xf32>,
    %101 = arith.mulf %95, %95 : vector<256x128xf32>
    %cst_79 = arith.constant dense<0.000000e+00> : vector<128xf32>
    %102 = vector.multi_reduction <add>, %101, %cst_79 [0] : vector<256x128xf32> to vector<128xf32>
    %103 = vector.shape_cast %102 : vector<128xf32> to vector<1x128xf32>
    %c0_80 = arith.constant 0 : index
    %c0_81 = arith.constant 0 : index
    %c0_82 = arith.constant 0 : index
    %104 = vector.load %arg7[%c0_80, %c0_81, %c0_82] : memref<1x1x128xf32, #tpu.memory_space<vmem>>, vector<1x1x128xf32>
    %105 = vector.shape_cast %104 : vector<1x1x128xf32> to vector<1x128xf32>
    %106 = vector.shape_cast %103 : vector<1x128xf32> to vector<1x1x128xf32>
    tpu.vector_store %arg7[%c0_80, %c0_81, %c0_82], %106 {strides = array<i32>} : memref<1x1x128xf32, #tpu.memory_space<vmem>>, vector<1x1x128xf32>,
    %c0_83 = arith.constant 0 : index
    %c0_84 = arith.constant 0 : index
    %107 = vector.load %arg5[%c0_83, %c0_84] : memref<256x128xf32, #tpu.memory_space<vmem>>, vector<256x128xf32>
    tpu.vector_store %arg5[%c0_83, %c0_84], %95 {strides = array<i32>} : memref<256x128xf32, #tpu.memory_space<vmem>>, vector<256x128xf32>,
    return
  }
  func.func @transform_0(%arg0: i32) -> (i32, i32) {
    %c0_i32 = arith.constant 0 : i32
    %c0_i32_0 = arith.constant 0 : i32
    return %arg0, %c0_i32 : i32, i32
  }
  func.func @transform_1(%arg0: i32) -> (i32, i32) {
    %c0_i32 = arith.constant 0 : i32
    %c0_i32_0 = arith.constant 0 : i32
    %c0_i32_1 = arith.constant 0 : i32
    return %c0_i32, %c0_i32_0 : i32, i32
  }
  func.func @transform_2(%arg0: i32) -> (i32, i32) {
    %c0_i32 = arith.constant 0 : i32
    %c0_i32_0 = arith.constant 0 : i32
    %c0_i32_1 = arith.constant 0 : i32
    return %c0_i32, %c0_i32_0 : i32, i32
  }
  func.func @transform_3(%arg0: i32) -> (i32, i32, i32) {
    %c0_i32 = arith.constant 0 : i32
    %c0_i32_0 = arith.constant 0 : i32
    %c0_i32_1 = arith.constant 0 : i32
    %c0_i32_2 = arith.constant 0 : i32
    return %c0_i32, %c0_i32_0, %c0_i32_1 : i32, i32, i32
  }
  func.func @transform_4(%arg0: i32) -> (i32, i32) {
    %c0_i32 = arith.constant 0 : i32
    %c0_i32_0 = arith.constant 0 : i32
    return %arg0, %c0_i32 : i32, i32
  }
  func.func @transform_5(%arg0: i32) -> (i32, i32, i32) {
    %c0_i32 = arith.constant 0 : i32
    %c0_i32_0 = arith.constant 0 : i32
    %c0_i32_1 = arith.constant 0 : i32
    return %arg0, %c0_i32, %c0_i32_0 : i32, i32, i32
  }
  func.func @transform_6(%arg0: i32) -> (i32, i32, i32) {
    %c0_i32 = arith.constant 0 : i32
    %c0_i32_0 = arith.constant 0 : i32
    %c0_i32_1 = arith.constant 0 : i32
    return %arg0, %c0_i32, %c0_i32_0 : i32, i32, i32
  }
}

</mosaic_0001>

<bundles_post_ra>
// kernel: dense_block_forward.5
= control target key start
LH: loop header
LB: loop body
LE: loop exit
PB: predicated region body
PF: predicated region fallthrough
CT: control target
= control target key end

     0   :  { %vm74_vm0 = vcmask 31744   ;;  %vm208_vm1 = vcmask 24576   ;;  %s1291_s0 = inlined_call_operand.vmem [shape: f32[512,4], index: 0, kind: input, shape index: {}]   ;;  %s1292_s1 = inlined_call_operand.vmem [shape: f32[1,1,4], index: 1, kind: output, shape index: {0}]   ;;  %s1293_s2 = inlined_call_operand.vmem [shape: f32[1,1,4], index: 2, kind: output, shape index: {1}]  }
   0x1   :  { %v434_v0 = vld [vmem:[%s1291_s0] sm:$0xff]  ;;  %v439_v1 = vld [vmem:[%s1291_s0 + $0x8] sm:$0xff]  ;;  %v444_v2 = vld [vmem:[%s1291_s0 + $0x10] sm:$0xff] }
   0x2   :  { %v75_v3 = vsel %vm74_vm0, %v434_v0, 0.0  ;;  %v76_v4 = vsel %vm74_vm0, %v439_v1, 0.0  ;;  %v78_v5 = vsel %vm74_vm0, %v444_v2, 0.0  ;;  %v455_v6 = vld [vmem:[%s1291_s0 + $0x18] sm:$0xff]  ;;  %v462_v9 = vld [vmem:[%s1291_s0 + $0x20] sm:$0xff]  ;;  %v469_v12 = vld [vmem:[%s1291_s0 + $0x28] sm:$0xff] }
   0x3   :  { %v77_v7 = vadd.f32 %v76_v4, %v75_v3  ;;  %v80_v8 = vsel %vm74_vm0, %v455_v6, 0.0  ;;  %v82_v11 = vsel %vm74_vm0, %v462_v9, 0.0  ;;  %v84_v14 = vsel %vm74_vm0, %v469_v12, 0.0  ;;  %v476_v15 = vld [vmem:[%s1291_s0 + $0x30] sm:$0xff]  ;;  %v481_v17 = vld [vmem:[%s1291_s0 + $0x38] sm:$0xff]  ;;  %v486_v18 = vld [vmem:[%s1291_s0 + $0x40] sm:$0xff] }
   0x4   :  { %v86_v19 = vsel %vm74_vm0, %v476_v15, 0.0  ;;  %v493_v20 = vld [vmem:[%s1291_s0 + $0x48] sm:$0xff]  ;;  %v498_v21 = vld [vmem:[%s1291_s0 + $0x50] sm:$0xff]  ;;  %v503_v22 = vld [vmem:[%s1291_s0 + $0x58] sm:$0xff]  ;;  %v88_v24 = vsel %vm74_vm0, %v481_v17, 0.0  ;;  %v90_v25 = vsel %vm74_vm0, %v486_v18, 0.0 }
   0x5   :  { %v79_v10 = vadd.f32 %v78_v5, %v77_v7  ;;  %v512_v26 = vld [vmem:[%s1291_s0 + $0x108] sm:$0xff]  ;;  %v517_v27 = vld [vmem:[%s1291_s0 + $0x110] sm:$0xff]  ;;  %v522_v28 = vld [vmem:[%s1291_s0 + $0x118] sm:$0xff]  ;;  %v92_v29 = vsel %vm74_vm0, %v493_v20, 0.0  ;;  %v94_v30 = vsel %vm74_vm0, %v498_v21, 0.0  ;;  %v530_v31 = vsel %vm74_vm0, %v503_v22, 0.0 }
   0x6   :  { %v535_v32 = vld [vmem:[%s1291_s0 + $0x120] sm:$0xff]  ;;  %v540_v33 = vld [vmem:[%s1291_s0 + $0x128] sm:$0xff]  ;;  %v545_v34 = vld [vmem:[%s1291_s0 + $0x130] sm:$0xff]  ;;  %v549_v36 = vsel %vm74_vm0, %v512_v26, 0.0  ;;  %v553_v37 = vsel %vm74_vm0, %v517_v27, 0.0  ;;  %v557_v38 = vsel %vm74_vm0, %v522_v28, 0.0 }
   0x7   :  { %v81_v13 = vadd.f32 %v80_v8, %v79_v10  ;;  %1312 = vst [vmem:[#allocation2_spill] sm:$0xff] %v549_v36  ;;  %1313 = vst [vmem:[#allocation3_spill] sm:$0xff] %v553_v37  ;;  %v562_v39 = vld [vmem:[%s1291_s0 + $0x138] sm:$0xff]  ;;  %v567_v40 = vld [vmem:[%s1291_s0 + $0x140] sm:$0xff]  ;;  %v576_v42 = vsel %vm74_vm0, %v535_v32, 0.0  ;;  %v580_v43 = vsel %vm74_vm0, %v540_v33, 0.0 }
   0x8   :  { %1314 = vst [vmem:[#allocation4_spill] sm:$0xff] %v557_v38  ;;  %v572_v41 = vld [vmem:[%s1291_s0 + $0x148] sm:$0xff]  ;;  %1315 = vst [vmem:[#allocation5_spill] sm:$0xff] %v576_v42  ;;  %v584_v44 = vsel %vm74_vm0, %v545_v34, 0.0  ;;  %v589_v45 = vld [vmem:[%s1291_s0 + $0x150] sm:$0xff]  ;;  %v603_v49 = vsel %vm74_vm0, %v562_v39, 0.0 }
   0x9   :  { %v83_v16 = vadd.f32 %v82_v11, %v81_v13  ;;  %1316 = vst [vmem:[#allocation6_spill] sm:$0xff] %v580_v43  ;;  %1317 = vst [vmem:[#allocation7_spill] sm:$0xff] %v584_v44  ;;  %v594_v46 = vld [vmem:[%s1291_s0 + $0x158] sm:$0xff]  ;;  %v599_v47 = vld [vmem:[%s1291_s0 + $0x160] sm:$0xff]  ;;  %v607_v50 = vsel %vm74_vm0, %v567_v40, 0.0  ;;  %v611_v51 = vsel %vm74_vm0, %v572_v41, 0.0  ;;  %v212_v44 = vmul.f32 %v444_v2, %v444_v2 }
   0xa   :  { %1318 = vst [vmem:[#allocation8_spill] sm:$0xff] %v603_v49  ;;  %1319 = vst [vmem:[#allocation9_spill] sm:$0xff] %v607_v50  ;;  %v616_v52 = vld [vmem:[%s1291_s0 + $0x168] sm:$0xff]  ;;  %v621_v53 = vld [vmem:[%s1291_s0 + $0x170] sm:$0xff]  ;;  %v630_v55 = vsel %vm74_vm0, %v589_v45, 0.0  ;;  %v634_v56 = vsel %vm74_vm0, %v594_v46, 0.0 }
   0xb   :  { %v85_v23 = vadd.f32 %v84_v14, %v83_v16  ;;  %1320 = vst [vmem:[#allocation10_spill] sm:$0xff] %v611_v51  ;;  %v626_v54 = vld [vmem:[%s1291_s0 + $0x178] sm:$0xff]  ;;  %1321 = vst [vmem:[#allocation11_spill] sm:$0xff] %v630_v55  ;;  %v638_v57 = vsel %vm74_vm0, %v599_v47, 0.0  ;;  %v643_v58 = vld [vmem:[%s1291_s0 + $0x180] sm:$0xff]  ;;  %v657_v62 = vsel %vm74_vm0, %v616_v52, 0.0 }
   0xc   :  { %1322 = vst [vmem:[#allocation12_spill] sm:$0xff] %v634_v56  ;;  %1323 = vst [vmem:[#allocation13_spill] sm:$0xff] %v638_v57  ;;  %v648_v59 = vld [vmem:[%s1291_s0 + $0x188] sm:$0xff]  ;;  %v653_v60 = vld [vmem:[%s1291_s0 + $0x190] sm:$0xff]  ;;  %v661_v63 = vsel %vm74_vm0, %v621_v53, 0.0  ;;  %v665_v3 = vsel %vm74_vm0, %v626_v54, 0.0 }
   0xd   :  { %v87_v35 = vadd.f32 %v86_v19, %v85_v23  ;;  %1324 = vst [vmem:[#allocation14_spill] sm:$0xff] %v657_v62  ;;  %1325 = vst [vmem:[#allocation15_spill] sm:$0xff] %v661_v63  ;;  %v670_v4 = vld [vmem:[%s1291_s0 + $0x198] sm:$0xff]  ;;  %v675_v5 = vld [vmem:[%s1291_s0 + $0x1a0] sm:$0xff]  ;;  %v684_v8 = vsel %vm74_vm0, %v643_v58, 0.0  ;;  %v688_v10 = vsel %vm74_vm0, %v648_v59, 0.0 }
   0xe   :  { %1326 = vst [vmem:[#allocation16_spill] sm:$0xff] %v665_v3  ;;  %v680_v7 = vld [vmem:[%s1291_s0 + $0x1a8] sm:$0xff]  ;;  %1327 = vst [vmem:[#allocation17_spill] sm:$0xff] %v684_v8  ;;  %v692_v11 = vsel %vm74_vm0, %v653_v60, 0.0  ;;  %v697_v13 = vld [vmem:[%s1291_s0 + $0x60] sm:$0xff] }
   0xf   :  { %v89_v48 = vadd.f32 %v88_v24, %v87_v35  ;;  %1328 = vst [vmem:[#allocation18_spill] sm:$0xff] %v688_v10  ;;  %1329 = vst [vmem:[#allocation19_spill] sm:$0xff] %v692_v11  ;;  %v702_v14 = vld [vmem:[%s1291_s0 + $0x1b0] sm:$0xff]  ;;  %v707_v16 = vld [vmem:[%s1291_s0 + $0x1b8] sm:$0xff]  ;;  %v716_v24 = vsel %vm74_vm0, %v670_v4, 0.0  ;;  %v724_v35 = vsel %vm74_vm0, %v680_v7, 0.0 }
  0x10   :  { %v712_v19 = vld [vmem:[%s1291_s0 + $0x1c0] sm:$0xff]  ;;  %1330 = vst [vmem:[#allocation20_spill] sm:$0xff] %v716_v24  ;;  %1332 = vst [vmem:[#allocation22_spill] sm:$0xff] %v724_v35  ;;  %v747_v35 = vsel %vm74_vm0, %v707_v16, 0.0  ;;  %v761_v10 = vld [vmem:[%s1291_s0 + $0x1e8] sm:$0xff] }
  0x11   :  { %v91_v61 = vadd.f32 %v90_v25, %v89_v48  ;;  %v720_v25 = vsel %vm74_vm0, %v675_v5, 0.0  ;;  %v729_v48 = vld [vmem:[%s1291_s0 + $0x1c8] sm:$0xff]  ;;  %1334 = vst [vmem:[#allocation24_spill] sm:$0xff] %v747_v35  ;;  %v751_v24 = vsel %vm74_vm0, %v712_v19, 0.0  ;;  %v756_v11 = vld [vmem:[%s1291_s0 + $0x1e0] sm:$0xff]  ;;  %v783_v63 = vld [vmem:[%s1291_s0 + $0x1f8] sm:$0xff] }
  0x12   :  { %1331 = vst [vmem:[#allocation21_spill] sm:$0xff] %v720_v25  ;;  %v743_v25 = vsel %vm74_vm0, %v702_v14, 0.0  ;;  %1335 = vst [vmem:[#allocation25_spill] sm:$0xff] %v751_v24  ;;  %v770_v8 = vsel %vm74_vm0, %v729_v48, 0.0  ;;  %v805_v57 = vsel %vm74_vm0, %v783_v63, 0.0  ;;  %v837_v55 = vld [vmem:[%s1291_s0 + $0x98] sm:$0xff] }
  0x13   :  { %v93_v23 = vadd.f32 %v92_v29, %v91_v61  ;;  %v734_v29 = vld [vmem:[%s1291_s0 + $0x1d0] sm:$0xff]  ;;  %v739_v61 = vld [vmem:[%s1291_s0 + $0x1d8] sm:$0xff]  ;;  %1333 = vst [vmem:[#allocation23_spill] sm:$0xff] %v743_v25  ;;  %1337 = vst [vmem:[#allocation27_spill] sm:$0xff] %v770_v8  ;;  %v793_v8 = vsel %vm74_vm0, %v761_v10, 0.0  ;;  %v112_v2 = vsel %vm74_vm0, %v837_v55, 0.0 }
  0x14   :  { %v766_v25 = vld [vmem:[%s1291_s0 + $0x1f0] sm:$0xff]  ;;  %v774_v24 = vsel %vm74_vm0, %v734_v29, 0.0  ;;  %v778_v3 = vsel %vm74_vm0, %v739_v61, 0.0  ;;  %1340 = vst [vmem:[#allocation30_spill] sm:$0xff] %v783_v63  ;;  %1342 = vst [vmem:[#allocation32_spill] sm:$0xff] %v793_v8  ;;  %v842_v51 = vld [vmem:[%s1291_s0 + $0xa0] sm:$0xff] }
  0x15   :  { %1336 = vst [vmem:[#allocation26_spill] sm:$0xff] %v766_v25  ;;  %v95_v35 = vadd.f32 %v94_v30, %v93_v23  ;;  %1338 = vst [vmem:[#allocation28_spill] sm:$0xff] %v774_v24  ;;  %v98_v30 = vsel %vm74_vm0, %v697_v13, 0.0  ;;  %v789_v23 = vsel %vm74_vm0, %v756_v11, 0.0  ;;  %v797_v24 = vsel %vm74_vm0, %v766_v25, 0.0  ;;  %v24_v8 = vld [vmem:[%s1291_s0 + $0x70] sm:$0xff] }
  0x16   :  { %1339 = vst [vmem:[#allocation29_spill] sm:$0xff] %v778_v3  ;;  %1341 = vst [vmem:[#allocation31_spill] sm:$0xff] %v789_v23  ;;  %v23_v3 = vld [vmem:[%s1291_s0 + $0x68] sm:$0xff]  ;;  %v858_v42 = vld [vmem:[%s1291_s0 + $0xb0] sm:$0xff] }
  0x17   :  { %1343 = vst [vmem:[#allocation33_spill] sm:$0xff] %v797_v24  ;;  %v97_v62 = vadd.f32 %v530_v31, %v95_v35  ;;  %1344 = vst [vmem:[#allocation34_spill] sm:$0xff] %v805_v57  ;;  %v100_v23 = vsel %vm74_vm0, %v23_v3, 0.0  ;;  %v814_v24 = vld [vmem:[%s1291_s0 + $0x78] sm:$0xff]  ;;  %v819_v31 = vld [vmem:[%s1291_s0 + $0x80] sm:$0xff]  ;;  %v102_v57 = vsel %vm74_vm0, %v24_v8, 0.0 }
  0x18   :  { %1345 = vst [vmem:[#allocation35_spill] sm:$0xff] %v814_v24  ;;  %1346 = vst [vmem:[#allocation36_spill] sm:$0xff] %v819_v31  ;;  %v824_v35 = vld [vmem:[%s1291_s0 + $0x88] sm:$0xff]  ;;  %v104_v49 = vsel %vm74_vm0, %v814_v24, 0.0  ;;  %v871_v38 = vld [vmem:[%s1291_s0 + $0xb8] sm:$0xff] }
  0x19   :  { %v99_v56 = vadd.f32 %v98_v30, %v97_v62  ;;  %1347 = vst [vmem:[#allocation37_spill] sm:$0xff] %v824_v35  ;;  %v210_v62 = vmul.f32 %v434_v0, %v434_v0  ;;  %v832_v30 = vld [vmem:[%s1291_s0 + $0x90] sm:$0xff]  ;;  %1349 = vst [vmem:[#allocation39_spill] sm:$0xff] %v837_v55  ;;  %v211_v0 = vmul.f32 %v439_v1, %v439_v1  ;;  %v853_v43 = vld [vmem:[%s1291_s0 + $0xa8] sm:$0xff] }
  0x1a   :  { %1348 = vst [vmem:[#allocation38_spill] sm:$0xff] %v832_v30  ;;  %1350 = vst [vmem:[#allocation40_spill] sm:$0xff] %v842_v51  ;;  %v110_v1 = vsel %vm74_vm0, %v832_v30, 0.0  ;;  %v876_v37 = vld [vmem:[%s1291_s0 + $0xc0] sm:$0xff]  ;;  %v881_v36 = vld [vmem:[%s1291_s0 + $0xc8] sm:$0xff]  ;;  %v114_v30 = vsel %vm74_vm0, %v842_v51, 0.0 }
  0x1b   :  { %v101_v50 = vadd.f32 %v100_v23, %v99_v56  ;;  %1351 = vst [vmem:[#allocation41_spill] sm:$0xff] %v853_v43  ;;  %1352 = vst [vmem:[#allocation42_spill] sm:$0xff] %v858_v42  ;;  %v106_v56 = vsel %vm74_vm0, %v819_v31, 0.0  ;;  %v108_v23 = vsel %vm74_vm0, %v824_v35, 0.0  ;;  %v116_v55 = vsel %vm74_vm0, %v853_v43, 0.0  ;;  %v892_v24 = vld [vmem:[%s1291_s0 + $0xd0] sm:$0xff] }
  0x1c   :  { %1353 = vst [vmem:[#allocation43_spill] sm:$0xff] %v871_v38  ;;  %1354 = vst [vmem:[#allocation44_spill] sm:$0xff] %v876_v37  ;;  %v213_v31 = vmul.f32 %v455_v6, %v455_v6  ;;  %v897_v63 = vld [vmem:[%s1291_s0 + $0xd8] sm:$0xff]  ;;  %v909_v6 = vsel %vm74_vm0, %v876_v37, 0.0  ;;  %v913_v43 = vsel %vm74_vm0, %v881_v36, 0.0  ;;  %v918_v51 = vld [vmem:[%s1291_s0 + $0xe0] sm:$0xff] }
  0x1d   :  { %1355 = vst [vmem:[#allocation45_spill] sm:$0xff] %v881_v36  ;;  %v103_v35 = vadd.f32 %v102_v57, %v101_v50  ;;  %1356 = vst [vmem:[#allocation46_spill] sm:$0xff] %v892_v24  ;;  %v901_v50 = vsel %vm74_vm0, %v858_v42, 0.0  ;;  %v905_v57 = vsel %vm74_vm0, %v871_v38, 0.0  ;;  %v923_v42 = vld [vmem:[%s1291_s0 + $0xe8] sm:$0xff]  ;;  %v928_v38 = vld [vmem:[%s1291_s0 + $0xf0] sm:$0xff] }
  0x1e   :  { %1357 = vst [vmem:[#allocation47_spill] sm:$0xff] %v897_v63  ;;  %1358 = vst [vmem:[#allocation48_spill] sm:$0xff] %v905_v57  ;;  %v932_v36 = vsel %vm74_vm0, %v892_v24, 0.0  ;;  %v942_v57 = vsel %vm74_vm0, %v918_v51, 0.0  ;;  %v946_v25 = vsel %vm74_vm0, %v923_v42, 0.0  ;;  %v216_v24 = vmul.f32 %v476_v15, %v476_v15 }
  0x1f   :  { %1359 = vst [vmem:[#allocation49_spill] sm:$0xff] %v909_v6  ;;  %1360 = vst [vmem:[#allocation50_spill] sm:$0xff] %v913_v43  ;;  %v105_v37 = vadd.f32 %v104_v49, %v103_v35  ;;  %v936_v43 = vsel %vm74_vm0, %v897_v63, 0.0  ;;  %v214_v6 = vmul.f32 %v462_v9, %v462_v9  ;;  %v950_v49 = vsel %vm74_vm0, %v928_v38, 0.0 }
  0x20   :  { %1361 = vst [vmem:[#allocation51_spill] sm:$0xff] %v918_v51  ;;  %1362 = vst [vmem:[#allocation52_spill] sm:$0xff] %v923_v42  ;;  %v215_v35 = vmul.f32 %v469_v12, %v469_v12  ;;  %v217_v9 = vmul.f32 %v481_v17, %v481_v17  ;;  %v218_v51 = vmul.f32 %v486_v18, %v486_v18 }
  0x21   :  { %1363 = vst [vmem:[#allocation53_spill] sm:$0xff] %v928_v38  ;;  %1364 = vst [vmem:[#allocation54_spill] sm:$0xff] %v950_v49  ;;  %v107_v63 = vadd.f32 %v106_v56, %v105_v37  ;;  %v219_v42 = vmul.f32 %v493_v20, %v493_v20  ;;  %v220_v38 = vmul.f32 %v498_v21, %v498_v21 }
  0x22   :  { %v221_v49 = vmul.f32 %v503_v22, %v503_v22  ;;  %v222_v12 = vmul.f32 %v697_v13, %v697_v13  ;;  %v968_v15 = vmul.f32 %v23_v3, %v23_v3  ;;  %v970_v56 = vmul.f32 %v24_v8, %v24_v8 }
  0x23   :  { %v109_v37 = vadd.f32 %v108_v23, %v107_v63  ;;  %v243_v17 = vmul.f32 %v512_v26, %v512_v26  ;;  %v244_v18 = vmul.f32 %v517_v27, %v517_v27  ;;  %v245_v20 = vmul.f32 %v522_v28, %v522_v28 }
  0x24   :  { %v246_v21 = vmul.f32 %v535_v32, %v535_v32  ;;  %v247_v22 = vmul.f32 %v540_v33, %v540_v33  ;;  %v248_v3 = vmul.f32 %v545_v34, %v545_v34  ;;  %v249_v8 = vmul.f32 %v562_v39, %v562_v39 }
  0x25   :  { %v111_v63 = vadd.f32 %v110_v1, %v109_v37  ;;  %v250_v26 = vmul.f32 %v567_v40, %v567_v40  ;;  %v251_v27 = vmul.f32 %v572_v41, %v572_v41  ;;  %v252_v28 = vmul.f32 %v589_v45, %v589_v45  ;;  %v1365_v37 = vld [vmem:[#allocation26_spill] sm:$0xff] }
  0x26   :  { %v253_v32 = vmul.f32 %v594_v46, %v594_v46  ;;  %v274_v33 = vsel %vm74_vm0, %v210_v62, 0.0  ;;  %v254_v34 = vmul.f32 %v599_v47, %v599_v47  ;;  %v275_v39 = vsel %vm74_vm0, %v211_v0, 0.0 }
  0x27   :  { %v113_v13 = vadd.f32 %v112_v2, %v111_v63  ;;  %v277_v23 = vsel %vm74_vm0, %v212_v44, 0.0  ;;  %v255_v40 = vmul.f32 %v616_v52, %v616_v52  ;;  %v256_v41 = vmul.f32 %v621_v53, %v621_v53 }
  0x28   :  { %v257_v45 = vmul.f32 %v626_v54, %v626_v54  ;;  %v276_v46 = vadd.f32 %v275_v39, %v274_v33  ;;  %v258_v62 = vmul.f32 %v643_v58, %v643_v58  ;;  %v259_v47 = vmul.f32 %v648_v59, %v648_v59  ;;  %v1366_v33 = vld [vmem:[#allocation48_spill] sm:$0xff] }
  0x29   :  { %v115_v1 = vadd.f32 %v114_v30, %v113_v13  ;;  %v279_v0 = vsel %vm74_vm0, %v213_v31, 0.0  ;;  %v260_v44 = vmul.f32 %v653_v60, %v653_v60  ;;  %v261_v52 = vmul.f32 %v670_v4, %v670_v4  ;;  %v1367_v13 = vld [vmem:[#allocation30_spill] sm:$0xff] }
  0x2a   :  { %v262_v53 = vmul.f32 %v675_v5, %v675_v5  ;;  %v278_v54 = vadd.f32 %v277_v23, %v276_v46  ;;  %v263_v30 = vmul.f32 %v680_v7, %v680_v7  ;;  %v264_v58 = vmul.f32 %v702_v14, %v702_v14  ;;  %v1368_v46 = vld [vmem:[#allocation49_spill] sm:$0xff] }
  0x2b   :  { %v117_v2 = vadd.f32 %v116_v55, %v115_v1  ;;  %v281_v59 = vsel %vm74_vm0, %v214_v6, 0.0  ;;  %v265_v31 = vmul.f32 %v707_v16, %v707_v16  ;;  %v266_v60 = vmul.f32 %v712_v19, %v712_v19 }
  0x2c   :  { %v267_v4 = vmul.f32 %v729_v48, %v729_v48  ;;  %v280_v5 = vadd.f32 %v279_v0, %v278_v54  ;;  %v268_v7 = vmul.f32 %v734_v29, %v734_v29  ;;  %v269_v14 = vmul.f32 %v739_v61, %v739_v61 }
  0x2d   :  { %v119_v55 = vadd.f32 %v901_v50, %v117_v2  ;;  %v283_v6 = vsel %vm74_vm0, %v215_v35, 0.0  ;;  %v270_v16 = vmul.f32 %v756_v11, %v756_v11  ;;  %v271_v19 = vmul.f32 %v761_v10, %v761_v10 }
  0x2e   :  { %v272_v48 = vmul.f32 %v1365_v37, %v1365_v37  ;;  %v282_v63 = vadd.f32 %v281_v59, %v280_v5  ;;  %v273_v29 = vmul.f32 %v1367_v13, %v1367_v13  ;;  %v285_v39 = vsel %vm74_vm0, %v216_v24, 0.0  ;;  %v1371_v13 = vld [vmem:[#allocation35_spill] sm:$0xff] }
  0x2f   :  { %v121_v50 = vadd.f32 %v1366_v33, %v119_v55  ;;  %v287_v61 = vsel %vm74_vm0, %v217_v9, 0.0  ;;  %v289_v23 = vsel %vm74_vm0, %v218_v51, 0.0  ;;  %v291_v11 = vsel %vm74_vm0, %v219_v42, 0.0  ;;  %v1158_v33 = vld [vmem:[%s1291_s0 + $0x100] sm:$0xff] }
  0x30   :  { %v284_v35 = vadd.f32 %v283_v6, %v282_v63  ;;  %v293_v10 = vsel %vm74_vm0, %v220_v38, 0.0  ;;  %v295_v0 = vsel %vm74_vm0, %v221_v49, 0.0  ;;  %v297_v54 = vsel %vm74_vm0, %v222_v12, 0.0  ;;  %v1369_v38 = vld [vmem:[#allocation50_spill] sm:$0xff] }
  0x31   :  { %v123_v1 = vadd.f32 %v1368_v46, %v121_v50  ;;  %v1051_v2 = vsel %vm74_vm0, %v243_v17, 0.0  ;;  %v1054_v24 = vsel %vm74_vm0, %v244_v18, 0.0  ;;  %v1057_v9 = vsel %vm74_vm0, %v245_v20, 0.0  ;;  %v1370_v50 = vld [vmem:[#allocation54_spill] sm:$0xff] }
  0x32   :  { %v286_v59 = vadd.f32 %v285_v39, %v284_v35  ;;  %v1060_v42 = vsel %vm74_vm0, %v246_v21, 0.0  ;;  %v1064_v5 = vsel %vm74_vm0, %v247_v22, 0.0  ;;  %v1067_v49 = vsel %vm74_vm0, %v248_v3, 0.0  ;;  %v1372_v35 = vld [vmem:[#allocation36_spill] sm:$0xff] }
  0x33   :  { %v125_v51 = vadd.f32 %v1369_v38, %v123_v1  ;;  %v1070_v12 = vsel %vm74_vm0, %v249_v8, 0.0  ;;  %v1073_v18 = vsel %vm74_vm0, %v250_v26, 0.0  ;;  %v1076_v20 = vsel %vm74_vm0, %v251_v27, 0.0  ;;  %v1373_v1 = vld [vmem:[#allocation37_spill] sm:$0xff] }
  0x34   :  { %v288_v17 = vadd.f32 %v287_v61, %v286_v59  ;;  %v1079_v21 = vsel %vm74_vm0, %v252_v28, 0.0  ;;  %v1083_v22 = vsel %vm74_vm0, %v253_v32, 0.0  ;;  %v1086_v3 = vsel %vm74_vm0, %v254_v34, 0.0 }
  0x35   :  { %v127_v55 = vadd.f32 %v932_v36, %v125_v51  ;;  %v1089_v8 = vsel %vm74_vm0, %v255_v40, 0.0  ;;  %v1092_v26 = vsel %vm74_vm0, %v256_v41, 0.0  ;;  %v1095_v27 = vsel %vm74_vm0, %v257_v45, 0.0 }
  0x36   :  { %v290_v6 = vadd.f32 %v289_v23, %v288_v17  ;;  %v1098_v28 = vsel %vm74_vm0, %v258_v62, 0.0  ;;  %v1102_v32 = vsel %vm74_vm0, %v259_v47, 0.0  ;;  %v1105_v34 = vsel %vm74_vm0, %v260_v44, 0.0  ;;  %v1375_v17 = vld [vmem:[#allocation38_spill] sm:$0xff] }
  0x37   :  { %v129_v36 = vadd.f32 %v936_v43, %v127_v55  ;;  %v1108_v40 = vsel %vm74_vm0, %v261_v52, 0.0  ;;  %v1111_v41 = vsel %vm74_vm0, %v262_v53, 0.0  ;;  %v1114_v45 = vsel %vm74_vm0, %v263_v30, 0.0 }
  0x38   :  { %v292_v37 = vadd.f32 %v291_v11, %v290_v6  ;;  %v1117_v62 = vsel %vm74_vm0, %v264_v58, 0.0  ;;  %v1121_v47 = vsel %vm74_vm0, %v265_v31, 0.0  ;;  %v1124_v44 = vsel %vm74_vm0, %v266_v60, 0.0 }
  0x39   :  { %v131_v43 = vadd.f32 %v942_v57, %v129_v36  ;;  %v1127_v52 = vsel %vm74_vm0, %v267_v4, 0.0  ;;  %v1130_v53 = vsel %vm74_vm0, %v268_v7, 0.0  ;;  %v1133_v30 = vsel %vm74_vm0, %v269_v14, 0.0  ;;  %v1141_v57 = vld [vmem:[%s1291_s0 + $0xf8] sm:$0xff]  ;;  %v1376_v36 = vld [vmem:[#allocation3_spill] sm:$0xff] }
  0x3a   :  { %v294_v63 = vadd.f32 %v293_v10, %v292_v37  ;;  %v1136_v58 = vsel %vm74_vm0, %v270_v16, 0.0  ;;  %v1145_v60 = vsel %vm74_vm0, %v271_v19, 0.0  ;;  %v1148_v4 = vsel %vm74_vm0, %v272_v48, 0.0 }
  0x3b   :  { %v133_v31 = vadd.f32 %v946_v25, %v131_v43  ;;  %v1151_v7 = vsel %vm74_vm0, %v273_v29, 0.0  ;;  %v136_v14 = vsel %vm74_vm0, %v1141_v57, 0.0  ;;  %v225_v19 = vmul.f32 %v1371_v13, %v1371_v13  ;;  %v1377_v43 = vld [vmem:[#allocation39_spill] sm:$0xff] }
  0x3c   :  { %v296_v16 = vadd.f32 %v295_v0, %v294_v63  ;;  %v299_v48 = vsel %vm74_vm0, %v968_v15, 0.0  ;;  %v138_v29 = vsel %vm74_vm0, %v1158_v33, 0.0  ;;  %v226_v23 = vmul.f32 %v1372_v35, %v1372_v35  ;;  %v1374_v15 = vld [vmem:[#allocation2_spill] sm:$0xff] }
  0x3d   :  { %v135_v25 = vadd.f32 %v1370_v50, %v133_v31  ;;  %v301_v11 = vsel %vm74_vm0, %v970_v56, 0.0  ;;  %v227_v0 = vmul.f32 %v1373_v1, %v1373_v1  ;;  %v303_v59 = vsel %vm74_vm0, %v225_v19, 0.0  ;;  %v1379_v50 = vld [vmem:[#allocation40_spill] sm:$0xff] }
  0x3e   :  { %v298_v39 = vadd.f32 %v297_v54, %v296_v16  ;;  %v228_v54 = vmul.f32 %v1375_v17, %v1375_v17  ;;  %v305_v55 = vsel %vm74_vm0, %v226_v23, 0.0  ;;  %v229_v56 = vmul.f32 %v1377_v43, %v1377_v43 }
  0x3f   :  { %v137_v61 = vadd.f32 %v136_v14, %v135_v25  ;;  %v307_v63 = vsel %vm74_vm0, %v227_v0, 0.0  ;;  %v1378_v14 = vld [vmem:[#allocation4_spill] sm:$0xff]  ;;  %v230_v25 = vmul.f32 %v1379_v50, %v1379_v50 }
  0x40   :  { %v300_v10 = vadd.f32 %v299_v48, %v298_v39  ;;  %v309_v13 = vsel %vm74_vm0, %v228_v54, 0.0  ;;  %v1380_v48 = vld [vmem:[#allocation5_spill] sm:$0xff]  ;;  %v311_v35 = vsel %vm74_vm0, %v229_v56, 0.0 }
  0x41   :  { %v139_v46 = vadd.f32 %v138_v29, %v137_v61  ;;  %v1381_v39 = vld [vmem:[#allocation41_spill] sm:$0xff]  ;;  %v313_v0 = vsel %vm74_vm0, %v230_v25, 0.0 }
  0x42   :  { %v302_v38 = vadd.f32 %v301_v11, %v300_v10  ;;  %v231_v61 = vmul.f32 %v1381_v39, %v1381_v39  ;;  %v1382_v11 = vld [vmem:[#allocation6_spill] sm:$0xff] }
  0x43   :  { %v141_v51 = vadd.f32 %v1374_v15, %v139_v46  ;;  %v1383_v46 = vld [vmem:[#allocation42_spill] sm:$0xff] }
  0x44   :  { %v304_v6 = vadd.f32 %v303_v59, %v302_v38  ;;  %v232_v1 = vmul.f32 %v1383_v46, %v1383_v46  ;;  %v1384_v38 = vld [vmem:[#allocation7_spill] sm:$0xff]  ;;  %v315_v54 = vsel %vm74_vm0, %v231_v61, 0.0 }
  0x45   :  { %v143_v37 = vadd.f32 %v1376_v36, %v141_v51  ;;  %v1385_v51 = vld [vmem:[#allocation43_spill] sm:$0xff] }
  0x46   :  { %v306_v31 = vadd.f32 %v305_v55, %v304_v6  ;;  %v233_v17 = vmul.f32 %v1385_v51, %v1385_v51  ;;  %v1386_v6 = vld [vmem:[#allocation8_spill] sm:$0xff]  ;;  %v317_v56 = vsel %vm74_vm0, %v232_v1, 0.0 }
  0x47   :  { %v145_v16 = vadd.f32 %v1378_v14, %v143_v37  ;;  %v1387_v37 = vld [vmem:[#allocation44_spill] sm:$0xff] }
  0x48   :  { %v308_v19 = vadd.f32 %v307_v63, %v306_v31  ;;  %v234_v43 = vmul.f32 %v1387_v37, %v1387_v37  ;;  %v1388_v31 = vld [vmem:[#allocation9_spill] sm:$0xff]  ;;  %v319_v25 = vsel %vm74_vm0, %v233_v17, 0.0 }
  0x49   :  { %v147_v29 = vadd.f32 %v1380_v48, %v145_v16  ;;  %v1389_v16 = vld [vmem:[#allocation45_spill] sm:$0xff] }
  0x4a   :  { %v310_v23 = vadd.f32 %v309_v13, %v308_v19  ;;  %v235_v50 = vmul.f32 %v1389_v16, %v1389_v16  ;;  %v1390_v19 = vld [vmem:[#allocation10_spill] sm:$0xff]  ;;  %v321_v61 = vsel %vm74_vm0, %v234_v43, 0.0 }
  0x4b   :  { %v149_v10 = vadd.f32 %v1382_v11, %v147_v29  ;;  %v1391_v29 = vld [vmem:[#allocation46_spill] sm:$0xff] }
  0x4c   :  { %v312_v59 = vadd.f32 %v311_v35, %v310_v23  ;;  %v236_v39 = vmul.f32 %v1391_v29, %v1391_v29  ;;  %v1392_v23 = vld [vmem:[#allocation11_spill] sm:$0xff]  ;;  %v323_v1 = vsel %vm74_vm0, %v235_v50, 0.0 }
  0x4d   :  { %v151_v15 = vadd.f32 %v1384_v38, %v149_v10  ;;  %v1393_v10 = vld [vmem:[#allocation47_spill] sm:$0xff] }
  0x4e   :  { %v314_v55 = vadd.f32 %v313_v0, %v312_v59  ;;  %v237_v46 = vmul.f32 %v1393_v10, %v1393_v10  ;;  %v1394_v59 = vld [vmem:[#allocation12_spill] sm:$0xff]  ;;  %v325_v17 = vsel %vm74_vm0, %v236_v39, 0.0 }
  0x4f   :  { %v153_v36 = vadd.f32 %v1386_v6, %v151_v15  ;;  %v1395_v15 = vld [vmem:[#allocation51_spill] sm:$0xff] }
  0x50   :  { %v316_v63 = vadd.f32 %v315_v54, %v314_v55  ;;  %v238_v51 = vmul.f32 %v1395_v15, %v1395_v15  ;;  %v1396_v55 = vld [vmem:[#allocation13_spill] sm:$0xff]  ;;  %v327_v43 = vsel %vm74_vm0, %v237_v46, 0.0 }
  0x51   :  { %v155_v14 = vadd.f32 %v1388_v31, %v153_v36  ;;  %v1397_v36 = vld [vmem:[#allocation52_spill] sm:$0xff]  ;;  %v1402_v46 = vld [vmem:[#allocation17_spill] sm:$0xff] }
  0x52   :  { %v318_v13 = vadd.f32 %v317_v56, %v316_v63  ;;  %v239_v37 = vmul.f32 %v1397_v36, %v1397_v36  ;;  %v1398_v63 = vld [vmem:[#allocation14_spill] sm:$0xff]  ;;  %v329_v50 = vsel %vm74_vm0, %v238_v51, 0.0 }
  0x53   :  { %v157_v48 = vadd.f32 %v1390_v19, %v155_v14  ;;  %v1399_v14 = vld [vmem:[#allocation53_spill] sm:$0xff] }
  0x54   :  { %v320_v35 = vadd.f32 %v319_v25, %v318_v13  ;;  %v240_v16 = vmul.f32 %v1399_v14, %v1399_v14  ;;  %v1400_v13 = vld [vmem:[#allocation15_spill] sm:$0xff]  ;;  %v331_v29 = vsel %vm74_vm0, %v239_v37, 0.0  ;;  %v1406_v37 = vld [vmem:[#allocation21_spill] sm:$0xff] }
  0x55   :  { %v159_v11 = vadd.f32 %v1392_v23, %v157_v48  ;;  %v241_v48 = vmul.f32 %v1141_v57, %v1141_v57  ;;  %v242_v23 = vmul.f32 %v1158_v33, %v1158_v33 }
  0x56   :  { %v322_v0 = vadd.f32 %v321_v61, %v320_v35  ;;  %v1401_v61 = vld [vmem:[#allocation16_spill] sm:$0xff] }
  0x57   :  { %v161_v38 = vadd.f32 %v1394_v59, %v159_v11  ;;  %v333_v11 = vsel %vm74_vm0, %v240_v16, 0.0  ;;  %v337_v57 = vsel %vm74_vm0, %v242_v23, 0.0  ;;  %v1408_v16 = vld [vmem:[#allocation23_spill] sm:$0xff]  ;;  %v1412_v23 = vld [vmem:[#allocation28_spill] sm:$0xff] }
  0x58   :  { %v324_v54 = vadd.f32 %v323_v1, %v322_v0  ;;  %v335_v0 = vsel %vm74_vm0, %v241_v48, 0.0 }
  0x59   :  { %v163_v6 = vadd.f32 %v1396_v55, %v161_v38  ;;  %v1403_v38 = vld [vmem:[#allocation18_spill] sm:$0xff] }
  0x5a   :  { %v326_v56 = vadd.f32 %v325_v17, %v324_v54  ;;  %v1404_v17 = vld [vmem:[#allocation19_spill] sm:$0xff] }
  0x5b   :  { %v165_v31 = vadd.f32 %v1398_v63, %v163_v6  ;;  %v1405_v6 = vld [vmem:[#allocation20_spill] sm:$0xff]  ;;  %v1407_v63 = vld [vmem:[#allocation22_spill] sm:$0xff] }
  0x5c   :  { %v328_v25 = vadd.f32 %v327_v43, %v326_v56 }
  0x5d   :  { %v167_v19 = vadd.f32 %v1400_v13, %v165_v31  ;;  %v1409_v13 = vld [vmem:[#allocation24_spill] sm:$0xff] }
  0x5e   :  { %v330_v39 = vadd.f32 %v329_v50, %v328_v25 }
  0x5f   :  { %v169_v35 = vadd.f32 %v1401_v61, %v167_v19  ;;  %v1411_v61 = vld [vmem:[#allocation27_spill] sm:$0xff] }
  0x60   :  { %v332_v10 = vadd.f32 %v331_v29, %v330_v39  ;;  %v1410_v29 = vld [vmem:[#allocation25_spill] sm:$0xff] }
  0x61   :  { %v171_v1 = vadd.f32 %v1402_v46, %v169_v35 }
  0x62   :  { %v334_v59 = vadd.f32 %v333_v11, %v332_v10  ;;  %v1413_v10 = vld [vmem:[#allocation29_spill] sm:$0xff] }
  0x63   :  { %v173_v15 = vadd.f32 %v1403_v38, %v171_v1  ;;  %v1414_v1 = vld [vmem:[#allocation31_spill] sm:$0xff] }
  0x64   :  { %v336_v51 = vadd.f32 %v335_v0, %v334_v59  ;;  %v1415_v59 = vld [vmem:[#allocation32_spill] sm:$0xff] }
  0x65   :  { %v175_v54 = vadd.f32 %v1404_v17, %v173_v15  ;;  %v1416_v15 = vld [vmem:[#allocation33_spill] sm:$0xff] }
  0x66   :  { %v338_v55 = vadd.f32 %v337_v57, %v336_v51  ;;  %v1417_v51 = vld [vmem:[#allocation34_spill] sm:$0xff] }
  0x67   :  { %v177_v36 = vadd.f32 %v1405_v6, %v175_v54 }
  0x68   :  { %v340_v33 = vadd.f32 %v1051_v2, %v338_v55 }
  0x69   :  { %v179_v43 = vadd.f32 %v1406_v37, %v177_v36 }
  0x6a   :  { %v342_v56 = vadd.f32 %v1054_v24, %v340_v33 }
  0x6b   :  { %v181_v31 = vadd.f32 %v1407_v63, %v179_v43 }
  0x6c   :  { %v344_v14 = vadd.f32 %v1057_v9, %v342_v56 }
  0x6d   :  { %v183_v50 = vadd.f32 %v1408_v16, %v181_v31 }
  0x6e   :  { %v346_v25 = vadd.f32 %v1060_v42, %v344_v14 }
  0x6f   :  { %v185_v19 = vadd.f32 %v1409_v13, %v183_v50 }
  0x70   :  { %v348_v48 = vadd.f32 %v1064_v5, %v346_v25 }
  0x71   :  { %v187_v39 = vadd.f32 %v1410_v29, %v185_v19 }
  0x72   :  { %v350_v2 = vadd.f32 %v1067_v49, %v348_v48 }
  0x73   :  { %v189_v35 = vadd.f32 %v1411_v61, %v187_v39 }
  0x74   :  { %v352_v24 = vadd.f32 %v1070_v12, %v350_v2 }
  0x75   :  { %v191_v11 = vadd.f32 %v1412_v23, %v189_v35 }
  0x76   :  { %v354_v9 = vadd.f32 %v1073_v18, %v352_v24 }
  0x77   :  { %v193_v46 = vadd.f32 %v1413_v10, %v191_v11 }
  0x78   :  { %v356_v42 = vadd.f32 %v1076_v20, %v354_v9 }
  0x79   :  { %v195_v0 = vadd.f32 %v1414_v1, %v193_v46 }
  0x7a   :  { %v358_v5 = vadd.f32 %v1079_v21, %v356_v42 }
  0x7b   :  { %v197_v38 = vadd.f32 %v1415_v59, %v195_v0 }
  0x7c   :  { %v360_v49 = vadd.f32 %v1083_v22, %v358_v5 }
  0x7d   :  { %v199_v57 = vadd.f32 %v1416_v15, %v197_v38 }
  0x7e   :  { %v362_v12 = vadd.f32 %v1086_v3, %v360_v49 }
  0x7f   :  { %v201_v17 = vadd.f32 %v1417_v51, %v199_v57 }
  0x80   :  { %v364_v18 = vadd.f32 %v1089_v8, %v362_v12 }
  0x81   :  { %v202_v54 = vrot.slane %v201_v17, 4 }
  0x82   :  { %v366_v55 = vadd.f32 %v1092_v26, %v364_v18 }
  0x83   :  { %v203_v20 = vadd.f32 %v202_v54, %v201_v17 }
  0x84   :  { %v368_v6 = vadd.f32 %v1095_v27, %v366_v55 }
  0x85   :  { %v204_v36 = vrot.slane %v203_v20, 2 }
  0x86   :  { %v370_v21 = vadd.f32 %v1098_v28, %v368_v6 }
  0x87   :  { %v205_v33 = vadd.f32 %v204_v36, %v203_v20 }
  0x88   :  { %v372_v22 = vadd.f32 %v1102_v32, %v370_v21 }
  0x89   :  { %v206_v37 = vrot.slane %v205_v33, 1 }
  0x8a   :  { %v374_v3 = vadd.f32 %v1105_v34, %v372_v22 }
  0x8b   :  { %v207_v43 = vadd.f32 %v206_v37, %v205_v33 }
  0x8c   :  { %v376_v56 = vadd.f32 %v1108_v40, %v374_v3 }
  0x8d   :  { %209 = vst.msk [vmem:[%s1292_s1] sm:$0x1] %vm208_vm1, %v207_v43 }
  0x8e   :  { %v378_v8 = vadd.f32 %v1111_v41, %v376_v56 }
  0x90   :  { %v380_v26 = vadd.f32 %v1114_v45, %v378_v8 }
  0x92   :  { %v382_v27 = vadd.f32 %v1117_v62, %v380_v26 }
  0x94   :  { %v384_v28 = vadd.f32 %v1121_v47, %v382_v27 }
  0x96   :  { %v386_v32 = vadd.f32 %v1124_v44, %v384_v28 }
  0x98   :  { %v388_v34 = vadd.f32 %v1127_v52, %v386_v32 }
  0x9a   :  { %v390_v63 = vadd.f32 %v1130_v53, %v388_v34 }
  0x9c   :  { %v392_v40 = vadd.f32 %v1133_v30, %v390_v63 }
  0x9e   :  { %v394_v31 = vadd.f32 %v1136_v58, %v392_v40 }
  0xa0   :  { %v396_v14 = vadd.f32 %v1145_v60, %v394_v31 }
  0xa2   :  { %v398_v41 = vadd.f32 %v1148_v4, %v396_v14 }
  0xa4   :  { %v400_v45 = vadd.f32 %v1151_v7, %v398_v41 }
  0xa6   :  { %v401_v16 = vrot.slane %v400_v45, 4 }
  0xa8   :  { %v402_v62 = vadd.f32 %v401_v16, %v400_v45 }
  0xaa   :  { %v403_v50 = vrot.slane %v402_v62, 2 }
  0xac   :  { %v404_v47 = vadd.f32 %v403_v50, %v402_v62 }
  0xae   :  { %v405_v25 = vrot.slane %v404_v47, 1 }
  0xb0   :  { %v406_v44 = vadd.f32 %v405_v25, %v404_v47 }
  0xb2   :  { %407 = vst.msk [vmem:[%s1293_s2] sm:$0x1] %vm208_vm1, %v406_v44 }

// kernel: dense_block_forward.6
= control target key start
LH: loop header
LB: loop body
LE: loop exit
PB: predicated region body
PF: predicated region fallthrough
CT: control target
= control target key end

     0   :  { %s2162_s3 = inlined_call_operand.vmem [shape: f32[128,128], index: 3, kind: input, shape index: {}]   ;;  %s2163_s0 = inlined_call_operand.vmem [shape: f32[512,128], index: 0, kind: input, shape index: {}]   ;;  %s2164_s1 = inlined_call_operand.vmem [shape: f32[1,128], index: 1, kind: input, shape index: {}]   ;;  %s2165_s2 = inlined_call_operand.vmem [shape: f32[1,128], index: 2, kind: input, shape index: {}]   ;;  %s2166_s4 = inlined_call_operand.vmem [shape: f32[512,128], index: 4, kind: output, shape index: {0}]   ;;  %s2167_s5 = inlined_call_operand.vmem [shape: f32[1,1,128], index: 5, kind: output, shape index: {1}]   ;;  %s2168_s6 = inlined_call_operand.vmem [shape: f32[1,1,128], index: 6, kind: output, shape index: {2}]  }
   0x1   :  { %v305_v0 = vld [vmem:[%s2162_s3 + $0x78] sm:$0xff]  ;;  %v304_v1 = vld [vmem:[%s2162_s3 + $0x70] sm:$0xff]  ;;  %v303_v2 = vld [vmem:[%s2162_s3 + $0x68] sm:$0xff] }
   0x2   :  { %1053 = vmatprep.subr.mxu0 %v305_v0  ;;  %1181 = vmatprep.subr.mxu1 %v305_v0  ;;  %v302_v3 = vld [vmem:[%s2162_s3 + $0x60] sm:$0xff]  ;;  %v301_v6 = vld [vmem:[%s2162_s3 + $0x58] sm:$0xff]  ;;  %v300_v9 = vld [vmem:[%s2162_s3 + $0x50] sm:$0xff] }
   0x3   :  { %1054 = vmatpush3.msra.mxu0 %v305_v0  ;;  %1197 = vmatpush3.msra.mxu1 %v305_v0  ;;  %v20_v4 = vld [vmem:[%s2163_s0] sm:$0xff]  ;;  %v299_v11 = vld [vmem:[%s2162_s3 + $0x48] sm:$0xff]  ;;  %v297_v14 = vld [vmem:[%s2162_s3 + $0x38] sm:$0xff] }
   0x4   :  { %1055 = vmatprep.subr.mxu0 %v304_v1  ;;  %1182 = vmatprep.subr.mxu1 %v304_v1  ;;  %v1266_v5 = vld [vmem:[%s2164_s1] ss:$0 sm:$0xff]  ;;  %v21_v15 = vld [vmem:[%s2163_s0 + $0x8] sm:$0xff]  ;;  %v22_v16 = vld [vmem:[%s2163_s0 + $0x10] sm:$0xff] }
   0x5   :  { %1056 = vmatpush3.msra.mxu0 %v304_v1  ;;  %1198 = vmatpush3.msra.mxu1 %v304_v1  ;;  %v91_v7 = vmul.f32 %v1266_v5, %v20_v4  ;;  %v1275_v8 = vld [vmem:[%s2165_s2] ss:$0 sm:$0xff]  ;;  %v296_v17 = vld [vmem:[%s2162_s3 + $0x30] sm:$0xff]  ;;  %v23_v18 = vld [vmem:[%s2163_s0 + $0x18] sm:$0xff]  ;;  %v92_v22 = vmul.f32 %v1266_v5, %v21_v15  ;;  %v93_v23 = vmul.f32 %v1266_v5, %v22_v16 }
   0x6   :  { %1057 = vmatprep.subr.mxu0 %v303_v2  ;;  %1183 = vmatprep.subr.mxu1 %v303_v2  ;;  %v298_v13 = vld [vmem:[%s2162_s3 + $0x40] sm:$0xff]  ;;  %v25_v20 = vld [vmem:[%s2163_s0 + $0x28] sm:$0xff]  ;;  %v94_v24 = vmul.f32 %v1266_v5, %v23_v18  ;;  %v26_v25 = vld [vmem:[%s2163_s0 + $0x30] sm:$0xff] }
   0x7   :  { %1058 = vmatpush3.msra.mxu0 %v303_v2  ;;  %1199 = vmatpush3.msra.mxu1 %v303_v2  ;;  %v162_v10 = vadd.f32 %v1275_v8, %v91_v7  ;;  %v24_v19 = vld [vmem:[%s2163_s0 + $0x20] sm:$0xff]  ;;  %v295_v21 = vld [vmem:[%s2162_s3 + $0x28] sm:$0xff]  ;;  %v96_v28 = vmul.f32 %v1266_v5, %v25_v20  ;;  %v27_v29 = vld [vmem:[%s2163_s0 + $0x38] sm:$0xff]  ;;  %v1339_v33 = vadd.f32 %v1275_v8, %v92_v22 }
   0x8   :  { %1059 = vmatprep.subr.mxu0 %v302_v3  ;;  %1184 = vmatprep.subr.mxu1 %v302_v3  ;;  %v1320_v26 = vld [vmem:[%s2162_s3 + $0x20] sm:$0xff]  ;;  %v95_v27 = vmul.f32 %v1266_v5, %v24_v19  ;;  %v43_v30 = vld [vmem:[%s2163_s0 + $0xb8] sm:$0xff]  ;;  %v1342_v34 = vadd.f32 %v1275_v8, %v93_v23  ;;  %v97_v35 = vmul.f32 %v1266_v5, %v26_v25  ;;  %v45_v36 = vld [vmem:[%s2163_s0 + $0xc8] sm:$0xff] }
   0x9   :  { %1060 = vmatpush3.msra.mxu0 %v302_v3  ;;  %v226_v12 = vmax.f32 %v162_v10, 0.0  ;;  %1200 = vmatpush3.msra.mxu1 %v302_v3  ;;  %v44_v31 = vld [vmem:[%s2163_s0 + $0xc0] sm:$0xff]  ;;  %v1336_v32 = vld [vmem:[%s2162_s3 + $0x18] sm:$0xff]  ;;  %v46_v37 = vld [vmem:[%s2163_s0 + $0xd0] sm:$0xff]  ;;  %v1353_v38 = vadd.f32 %v1275_v8, %v94_v24  ;;  %v1356_v39 = vmul.f32 %v1266_v5, %v27_v29  ;;  %v114_v40 = vmul.f32 %v1266_v5, %v43_v30 }
   0xa   :  { %1061 = vmatprep.subr.mxu0 %v301_v6  ;;  %1185 = vmatprep.subr.mxu1 %v301_v6  ;;  %v47_v41 = vld [vmem:[%s2163_s0 + $0xd8] sm:$0xff]  ;;  %v48_v42 = vld [vmem:[%s2163_s0 + $0xe0] sm:$0xff]  ;;  %v1369_v43 = vld [vmem:[%s2162_s3 + $0x10] sm:$0xff]  ;;  %v1372_v44 = vadd.f32 %v1275_v8, %v95_v27  ;;  %v1375_v45 = vadd.f32 %v1275_v8, %v96_v28  ;;  %v115_v46 = vmul.f32 %v1266_v5, %v44_v31  ;;  %v227_v4 = vmax.f32 %v1339_v33, 0.0 }
   0xb   :  { %1062 = vmatpush3.msra.mxu0 %v301_v6  ;;  %1085 = vmatprep.mubr.f32.mxu0 %v226_v12  ;;  %v49_v47 = vld [vmem:[%s2163_s0 + $0xe8] sm:$0xff]  ;;  %v1383_v48 = vadd.f32 %v1275_v8, %v114_v40  ;;  %v116_v49 = vmul.f32 %v1266_v5, %v45_v36  ;;  %v117_v50 = vmul.f32 %v1266_v5, %v46_v37  ;;  %v50_v51 = vld [vmem:[%s2163_s0 + $0xf0] sm:$0xff]  ;;  %v51_v56 = vld [vmem:[%s2163_s0 + $0xf8] sm:$0xff]  ;;  %v228_v12 = vmax.f32 %v1342_v34, 0.0 }
   0xc   :  { %1063 = vmatprep.subr.mxu0 %v300_v9  ;;  %1201 = vmatpush3.msra.mxu1 %v301_v6  ;;  %v1394_v52 = vld [vmem:[%s2162_s3 + $0x8] sm:$0xff]  ;;  %v1397_v53 = vadd.f32 %v1275_v8, %v115_v46  ;;  %v118_v54 = vmul.f32 %v1266_v5, %v47_v41  ;;  %v119_v55 = vmul.f32 %v1266_v5, %v48_v42  ;;  %v28_v57 = vld [vmem:[%s2163_s0 + $0x40] sm:$0xff]  ;;  %v54_v3 = vld [vmem:[%s2163_s0 + $0x110] sm:$0xff]  ;;  %v230_v31 = vmax.f32 %v1372_v44, 0.0 }
   0xd   :  { %1064 = vmatpush3.msra.mxu0 %v300_v9  ;;  %1186 = vmatprep.subr.mxu1 %v300_v9  ;;  %v1409_v58 = vadd.f32 %v1275_v8, %v116_v49  ;;  %v1412_v59 = vadd.f32 %v1275_v8, %v117_v50  ;;  %v120_v60 = vmul.f32 %v1266_v5, %v49_v47  ;;  %v52_v61 = vld [vmem:[%s2163_s0 + $0x100] sm:$0xff]  ;;  %v53_v2 = vld [vmem:[%s2163_s0 + $0x108] sm:$0xff]  ;;  %v55_v10 = vld [vmem:[%s2163_s0 + $0x118] sm:$0xff]  ;;  %v231_v50 = vmax.f32 %v1375_v45, 0.0 }
   0xe   :  { %1065 = vmatprep.subr.mxu0 %v299_v11  ;;  %1202 = vmatpush3.msra.mxu1 %v300_v9  ;;  %v1422_v62 = vld [vmem:[%s2162_s3] sm:$0xff]  ;;  %v1425_v63 = vadd.f32 %v1275_v8, %v118_v54  ;;  %v1428_v0 = vadd.f32 %v1275_v8, %v119_v55  ;;  %v121_v1 = vmul.f32 %v1266_v5, %v50_v51  ;;  %v57_v25 = vld [vmem:[%s2163_s0 + $0x128] sm:$0xff]  ;;  %v58_v30 = vld [vmem:[%s2163_s0 + $0x130] sm:$0xff] }
   0xf   :  { %1066 = vmatpush3.msra.mxu0 %v299_v11  ;;  %1187 = vmatprep.subr.mxu1 %v299_v11  ;;  %v1440_v6 = vadd.f32 %v1275_v8, %v97_v35  ;;  %v1444_v7 = vadd.f32 %v1275_v8, %v120_v60  ;;  %v122_v9 = vmul.f32 %v1266_v5, %v51_v56  ;;  %v32_v34 = vld [vmem:[%s2163_s0 + $0x60] sm:$0xff]  ;;  %v33_v35 = vld [vmem:[%s2163_s0 + $0x68] sm:$0xff]  ;;  %v59_v42 = vld [vmem:[%s2163_s0 + $0x138] sm:$0xff] }
  0x10   :  { %1067 = vmatprep.subr.mxu0 %v298_v13  ;;  %1203 = vmatpush3.msra.mxu1 %v299_v11  ;;  %v56_v11 = vld [vmem:[%s2163_s0 + $0x120] sm:$0xff]  ;;  %v1461_v15 = vadd.f32 %v1275_v8, %v121_v1  ;;  %v123_v16 = vmul.f32 %v1266_v5, %v52_v61  ;;  %v124_v19 = vmul.f32 %v1266_v5, %v53_v2  ;;  %v35_v44 = vld [vmem:[%s2163_s0 + $0x78] sm:$0xff] }
  0x11   :  { %1068 = vmatpush3.msra.mxu0 %v298_v13  ;;  %1188 = vmatprep.subr.mxu1 %v298_v13  ;;  %v1470_v18 = vadd.f32 %v1275_v8, %v122_v9  ;;  %v125_v20 = vmul.f32 %v1266_v5, %v54_v3  ;;  %v126_v23 = vmul.f32 %v1266_v5, %v55_v10  ;;  %v232_v56 = vmax.f32 %v1440_v6, 0.0 }
  0x12   :  { %1069 = vmatprep.subr.mxu0 %v297_v14  ;;  %1204 = vmatpush3.msra.mxu1 %v298_v13  ;;  %v99_v13 = vmul.f32 %v1266_v5, %v28_v57  ;;  %v194_v22 = vadd.f32 %v1275_v8, %v123_v16  ;;  %v127_v24 = vmul.f32 %v1266_v5, %v56_v11  ;;  %v62_v11 = vld [vmem:[%s2163_s0 + $0x150] sm:$0xff] }
  0x13   :  { %1070 = vmatpush3.msra.mxu0 %v297_v14  ;;  %1189 = vmatprep.subr.mxu1 %v297_v14  ;;  %v195_v28 = vadd.f32 %v1275_v8, %v124_v19  ;;  %v196_v29 = vadd.f32 %v1275_v8, %v125_v20  ;;  %v197_v40 = vadd.f32 %v1275_v8, %v126_v23  ;;  %v72_v19 = vld [vmem:[%s2163_s0 + $0x1a0] sm:$0xff] }
  0x14   :  { %1071 = vmatprep.subr.mxu0 %v296_v17  ;;  %1205 = vmatpush3.msra.mxu1 %v297_v14  ;;  %v29_v14 = vld [vmem:[%s2163_s0 + $0x48] sm:$0xff]  ;;  %v258_v36 = vmax.f32 %v194_v22, 0.0  ;;  %v128_v41 = vmul.f32 %v1266_v5, %v57_v25  ;;  %v198_v47 = vadd.f32 %v1275_v8, %v127_v24  ;;  %v129_v49 = vmul.f32 %v1266_v5, %v58_v30  ;;  %v36_v22 = vld [vmem:[%s2163_s0 + $0x80] sm:$0xff] }
  0x15   :  { %1072 = vmatpush3.msra.mxu0 %v296_v17  ;;  %1190 = vmatprep.subr.mxu1 %v296_v17  ;;  %v100_v27 = vmul.f32 %v1266_v5, %v29_v14  ;;  %v260_v46 = vmax.f32 %v196_v29, 0.0  ;;  %v103_v54 = vmul.f32 %v1266_v5, %v32_v34  ;;  %v104_v55 = vmul.f32 %v1266_v5, %v33_v35  ;;  %v64_v25 = vld [vmem:[%s2163_s0 + $0x160] sm:$0xff]  ;;  %v65_v35 = vld [vmem:[%s2163_s0 + $0x168] sm:$0xff] }
  0x16   :  { %1073 = vmatprep.subr.mxu0 %v295_v21  ;;  %1206 = vmatpush3.msra.mxu1 %v296_v17  ;;  %v30_v17 = vld [vmem:[%s2163_s0 + $0x50] sm:$0xff]  ;;  %v130_v60 = vmul.f32 %v1266_v5, %v59_v42  ;;  %v106_v1 = vmul.f32 %v1266_v5, %v35_v44  ;;  %v261_v2 = vmax.f32 %v197_v40, 0.0  ;;  %v199_v3 = vadd.f32 %v1275_v8, %v128_v41  ;;  %v76_v42 = vld [vmem:[%s2163_s0 + $0x1c0] sm:$0xff] }
  0x17   :  { %1074 = vmatpush3.msra.mxu0 %v295_v21  ;;  %1191 = vmatprep.subr.mxu1 %v295_v21  ;;  %v101_v33 = vmul.f32 %v1266_v5, %v30_v17  ;;  %v1527_v51 = vadd.f32 %v1275_v8, %v100_v27  ;;  %v262_v9 = vmax.f32 %v198_v47, 0.0  ;;  %v1559_v14 = vadd.f32 %v1275_v8, %v103_v54  ;;  %v63_v17 = vld [vmem:[%s2163_s0 + $0x158] sm:$0xff] }
  0x18   :  { %1075 = vmatprep.subr.mxu0 %v1320_v26  ;;  %1207 = vmatpush3.msra.mxu1 %v295_v21  ;;  %v31_v21 = vld [vmem:[%s2163_s0 + $0x58] sm:$0xff]  ;;  %v1562_v16 = vadd.f32 %v1275_v8, %v104_v55  ;;  %v201_v23 = vadd.f32 %v1275_v8, %v130_v60  ;;  %v263_v29 = vmax.f32 %v199_v3, 0.0  ;;  %v133_v30 = vmul.f32 %v1266_v5, %v62_v11  ;;  %v66_v55 = vld [vmem:[%s2163_s0 + $0x170] sm:$0xff] }
  0x19   :  { %1076 = vmatpush3.msra.mxu0 %v1320_v26  ;;  %1192 = vmatprep.subr.mxu1 %v1320_v26  ;;  %v102_v37 = vmul.f32 %v1266_v5, %v31_v21  ;;  %v1537_v57 = vadd.f32 %v1275_v8, %v101_v33  ;;  %v134_v34 = vmul.f32 %v1266_v5, %v63_v17  ;;  %v82_v11 = vld [vmem:[%s2163_s0 + $0x1f0] sm:$0xff] }
  0x1a   :  { %1077 = vmatprep.subr.mxu0 %v1336_v32  ;;  %1208 = vmatpush3.msra.mxu1 %v1320_v26  ;;  %v229_v26 = vmax.f32 %v1353_v38, 0.0  ;;  %v34_v38 = vld [vmem:[%s2163_s0 + $0x70] sm:$0xff]  ;;  %v135_v40 = vmul.f32 %v1266_v5, %v64_v25  ;;  %v136_v54 = vmul.f32 %v1266_v5, %v65_v35  ;;  %v147_v3 = vmul.f32 %v1266_v5, %v76_v42 }
  0x1b   :  { %1078 = vmatpush3.msra.mxu0 %v1336_v32  ;;  %1193 = vmatprep.subr.mxu1 %v1336_v32  ;;  %v105_v45 = vmul.f32 %v1266_v5, %v34_v38  ;;  %v1543_v61 = vadd.f32 %v1275_v8, %v102_v37  ;;  %v236_v20 = vmax.f32 %v1537_v57, 0.0  ;;  %v75_v37 = vld [vmem:[%s2163_s0 + $0x1b8] sm:$0xff]  ;;  %v238_v38 = vmax.f32 %v1559_v14, 0.0 }
  0x1c   :  { %1079 = vmatprep.subr.mxu0 %v1369_v43  ;;  %1209 = vmatpush3.msra.mxu1 %v1336_v32  ;;  %v1496_v32 = vadd.f32 %v1275_v8, %v1356_v39  ;;  %v259_v39 = vmax.f32 %v195_v28, 0.0  ;;  %v1587_v28 = vadd.f32 %v1275_v8, %v106_v1  ;;  %v79_v57 = vld [vmem:[%s2163_s0 + $0x1d8] sm:$0xff]  ;;  %v1636_v1 = vadd.f32 %v1275_v8, %v134_v34 }
  0x1d   :  { %1080 = vmatpush3.msra.mxu0 %v1369_v43  ;;  %1194 = vmatprep.subr.mxu1 %v1369_v43  ;;  %v1572_v21 = vadd.f32 %v1275_v8, %v105_v45  ;;  %v237_v27 = vmax.f32 %v1543_v61, 0.0  ;;  %v80_v45 = vld [vmem:[%s2163_s0 + $0x1e0] sm:$0xff]  ;;  %v1659_v14 = vadd.f32 %v1275_v8, %v147_v3  ;;  %v150_v17 = vmul.f32 %v1266_v5, %v79_v57  ;;  %v70_v57 = vld [vmem:[%s2163_s0 + $0x190] sm:$0xff]  ;;  %v41_v3 = vld [vmem:[%s2163_s0 + $0xa8] sm:$0xff] }
  0x1e   :  { %1081 = vmatprep.subr.mxu0 %v1394_v52  ;;  %1210 = vmatpush3.msra.mxu1 %v1369_v43  ;;  %v1517_v43 = vadd.f32 %v1275_v8, %v99_v13  ;;  %v233_v6 = vmax.f32 %v1496_v32, 0.0  ;;  %v235_v13 = vmax.f32 %v1527_v51, 0.0  ;;  %v204_v51 = vadd.f32 %v1275_v8, %v133_v30  ;;  %v67_v30 = vld [vmem:[%s2163_s0 + $0x178] sm:$0xff] }
  0x1f   :  { %1082 = vmatpush3.msra.mxu0 %v1394_v52  ;;  %1195 = vmatprep.subr.mxu1 %v1394_v52  ;;  %v239_v34 = vmax.f32 %v1562_v16, 0.0  ;;  %v39_v16 = vld [vmem:[%s2163_s0 + $0x98] sm:$0xff] }
  0x20   :  { %1083 = vmatprep.subr.mxu0 %v1422_v62  ;;  %1211 = vmatpush3.msra.mxu1 %v1394_v52  ;;  %v60_v52 = vld [vmem:[%s2163_s0 + $0x140] sm:$0xff] }
  0x21   :  { %1084 = vmatpush3.msra.mxu0 %v1422_v62  ;;  %1133 = vmatprep.mubr.f32.mxu1 %v258_v36  ;;  %v131_v10 = vmul.f32 %v1266_v5, %v60_v52  ;;  %v143_v36 = vmul.f32 %v1266_v5, %v72_v19  ;;  %v151_v19 = vmul.f32 %v1266_v5, %v80_v45 }
  0x22   :  { %1086 = vmatmul.mubr.f32.vlgmr.msra.gmra.mxu0 %v227_v4  ;;  %1196 = vmatprep.subr.mxu1 %v1422_v62  ;;  %v61_v4 = vld [vmem:[%s2163_s0 + $0x148] sm:$0xff] }
  0x23   :  { %1088 = vmatprep.mubr.f32.mxu0 %v228_v12  ;;  %1212 = vmatpush3.msra.mxu1 %v1422_v62  ;;  %v200_v62 = vadd.f32 %v1275_v8, %v129_v49  ;;  %v234_v12 = vmax.f32 %v1517_v43, 0.0  ;;  %v132_v24 = vmul.f32 %v1266_v5, %v61_v4  ;;  %v202_v33 = vadd.f32 %v1275_v8, %v131_v10  ;;  %v77_v49 = vld [vmem:[%s2163_s0 + $0x1c8] sm:$0xff] }
  0x24   :  { %1134 = vmatmul.mubr.f32.vlgmr.msra.gmra.mxu1 %v259_v39  ;;  %v107_v39 = vmul.f32 %v1266_v5, %v36_v22  ;;  %v265_v43 = vmax.f32 %v201_v23, 0.0  ;;  %v81_v4 = vld [vmem:[%s2163_s0 + $0x1e8] sm:$0xff]  ;;  %v83_v22 = vld [vmem:[%s2163_s0 + $0x1f8] sm:$0xff] }
  0x25   :  { %1136 = vmatprep.mubr.f32.mxu1 %v260_v46  ;;  %v264_v32 = vmax.f32 %v200_v62, 0.0  ;;  %v203_v44 = vadd.f32 %v1275_v8, %v132_v24  ;;  %v1611_v46 = vadd.f32 %v1275_v8, %v143_v36  ;;  %v266_v60 = vmax.f32 %v202_v33, 0.0  ;;  %v68_v36 = vld [vmem:[%s2163_s0 + $0x180] sm:$0xff] }
  0x26   :  { %1089 = vmatmul.mubr.f32.gmra.mxu0 %v229_v26  ;;  %v73_v26 = vld [vmem:[%s2163_s0 + $0x1a8] sm:$0xff]  ;;  %v148_v62 = vmul.f32 %v1266_v5, %v77_v49  ;;  %v153_v33 = vmul.f32 %v1266_v5, %v82_v11  ;;  %v178_v42 = vadd.f32 %v1275_v8, %v107_v39  ;;  %v138_v39 = vmul.f32 %v1266_v5, %v67_v30 }
  0x27   :  { %1091 = vmatprep.mubr.f32.mxu0 %v230_v31  ;;  %v74_v31 = vld [vmem:[%s2163_s0 + $0x1b0] sm:$0xff]  ;;  %v144_v41 = vmul.f32 %v1266_v5, %v73_v26  ;;  %v267_v23 = vmax.f32 %v203_v44, 0.0  ;;  %v152_v26 = vmul.f32 %v1266_v5, %v81_v4 }
  0x28   :  { %1137 = vmatmul.mubr.f32.gmra.mxu1 %v261_v2  ;;  %v145_v47 = vmul.f32 %v1266_v5, %v74_v31  ;;  %v1670_v24 = vadd.f32 %v1275_v8, %v148_v62  ;;  %v1680_v31 = vadd.f32 %v1275_v8, %v150_v17  ;;  %v242_v45 = vmax.f32 %v178_v42, 0.0 }
  0x29   :  { %1139 = vmatprep.mubr.f32.mxu1 %v262_v9  ;;  %v1626_v52 = vadd.f32 %v1275_v8, %v144_v41  ;;  %v240_v41 = vmax.f32 %v1572_v21, 0.0  ;;  %v207_v21 = vadd.f32 %v1275_v8, %v136_v54 }
  0x2a   :  { %1092 = vmatmul.mubr.f32.gmra.mxu0 %v231_v50  ;;  %v78_v50 = vld [vmem:[%s2163_s0 + $0x1d0] sm:$0xff]  ;;  %v1639_v2 = vadd.f32 %v1275_v8, %v145_v47 }
  0x2b   :  { %1094 = vmatprep.mubr.f32.mxu0 %v232_v56  ;;  %v146_v56 = vmul.f32 %v1266_v5, %v75_v37  ;;  %v149_v10 = vmul.f32 %v1266_v5, %v78_v50  ;;  %v1694_v37 = vadd.f32 %v1275_v8, %v152_v26  ;;  %v139_v50 = vmul.f32 %v1266_v5, %v68_v36 }
  0x2c   :  { %1140 = vmatmul.mubr.f32.gmra.mxu1 %v263_v29  ;;  %v268_v29 = vmax.f32 %v204_v51, 0.0  ;;  %v69_v51 = vld [vmem:[%s2163_s0 + $0x188] sm:$0xff]  ;;  %v271_v4 = vmax.f32 %v207_v21, 0.0 }
  0x2d   :  { %1142 = vmatprep.mubr.f32.mxu1 %v264_v32  ;;  %v1647_v9 = vadd.f32 %v1275_v8, %v146_v56  ;;  %v1673_v25 = vadd.f32 %v1275_v8, %v149_v10  ;;  %v1683_v32 = vadd.f32 %v1275_v8, %v151_v19  ;;  %v110_v56 = vmul.f32 %v1266_v5, %v39_v16 }
  0x2e   :  { %1095 = vmatmul.mubr.f32.gmra.mxu0 %v233_v6  ;;  %v206_v6 = vadd.f32 %v1275_v8, %v135_v40  ;;  %v154_v40 = vmul.f32 %v1266_v5, %v83_v22  ;;  %v140_v62 = vmul.f32 %v1266_v5, %v69_v51  ;;  %v210_v11 = vadd.f32 %v1275_v8, %v139_v50 }
  0x2f   :  { %1097 = vmatprep.mubr.f32.mxu0 %v234_v12  ;;  %v37_v12 = vld [vmem:[%s2163_s0 + $0x88] sm:$0xff]  ;;  %v181_v19 = vadd.f32 %v1275_v8, %v110_v56  ;;  %v112_v22 = vmul.f32 %v1266_v5, %v41_v3  ;;  %v280_v50 = vmax.f32 %v1639_v2, 0.0  ;;  %v251_v51 = vmax.f32 %v1409_v58, 0.0 }
  0x30   :  { %1143 = vmatmul.mubr.f32.gmra.mxu1 %v265_v43  ;;  %v108_v35 = vmul.f32 %v1266_v5, %v37_v12  ;;  %v40_v43 = vld [vmem:[%s2163_s0 + $0xa0] sm:$0xff]  ;;  %v1713_v44 = vadd.f32 %v1275_v8, %v154_v40  ;;  %v270_v47 = vmax.f32 %v206_v6, 0.0  ;;  %v209_v6 = vadd.f32 %v1275_v8, %v138_v39 }
  0x31   :  { %1145 = vmatprep.mubr.f32.mxu1 %v266_v60  ;;  %v141_v12 = vmul.f32 %v1266_v5, %v70_v57  ;;  %v211_v30 = vadd.f32 %v1275_v8, %v140_v62  ;;  %v245_v36 = vmax.f32 %v181_v19, 0.0  ;;  %v183_v40 = vadd.f32 %v1275_v8, %v112_v22 }
  0x32   :  { %1098 = vmatmul.mubr.f32.gmra.mxu0 %v235_v13  ;;  %v137_v13 = vmul.f32 %v1266_v5, %v66_v55  ;;  %v241_v55 = vmax.f32 %v1587_v28, 0.0  ;;  %v179_v54 = vadd.f32 %v1275_v8, %v108_v35  ;;  %v42_v28 = vld [vmem:[%s2163_s0 + $0xb0] sm:$0xff]  ;;  %v278_v39 = vmax.f32 %v1611_v46, 0.0 }
  0x33   :  { %1100 = vmatprep.mubr.f32.mxu0 %v236_v20  ;;  %v38_v20 = vld [vmem:[%s2163_s0 + $0x90] sm:$0xff]  ;;  %v113_v26 = vmul.f32 %v1266_v5, %v42_v28  ;;  %v212_v35 = vadd.f32 %v1275_v8, %v141_v12  ;;  %v281_v46 = vmax.f32 %v1647_v9, 0.0  ;;  %v283_v2 = vmax.f32 %v1670_v24, 0.0 }
  0x34   :  { %v109_v61 = vmul.f32 %v1266_v5, %v38_v20  ;;  %1146 = vmatmul.mubr.f32.gmra.mxu1 %v267_v23  ;;  %v208_v49 = vadd.f32 %v1275_v8, %v137_v13  ;;  %v71_v13 = vld [vmem:[%s2163_s0 + $0x198] sm:$0xff]  ;;  %v243_v17 = vmax.f32 %v179_v54, 0.0  ;;  %v284_v58 = vmax.f32 %v1673_v25, 0.0 }
  0x35   :  { %1148 = vmatprep.mubr.f32.mxu1 %v268_v29  ;;  %v273_v29 = vmax.f32 %v209_v6, 0.0  ;;  %v184_v42 = vadd.f32 %v1275_v8, %v113_v26  ;;  %v256_v9 = vmax.f32 %v1461_v15, 0.0  ;;  %v287_v24 = vmax.f32 %v1694_v37, 0.0 }
  0x36   :  { %1101 = vmatmul.mubr.f32.gmra.mxu0 %v237_v27  ;;  %v1704_v27 = vadd.f32 %v1275_v8, %v153_v33  ;;  %v180_v60 = vadd.f32 %v1275_v8, %v109_v61  ;;  %v272_v10 = vmax.f32 %v208_v49, 0.0  ;;  %v142_v33 = vmul.f32 %v1266_v5, %v71_v13 }
  0x37   :  { %1103 = vmatprep.mubr.f32.mxu0 %v238_v38  ;;  %v269_v38 = vmax.f32 %v1636_v1, 0.0  ;;  %v111_v1 = vmul.f32 %v1266_v5, %v40_v43  ;;  %v275_v61 = vmax.f32 %v211_v30, 0.0  ;;  %v276_v43 = vmax.f32 %v212_v35, 0.0 }
  0x38   :  { %v244_v20 = vmax.f32 %v180_v60, 0.0  ;;  %v213_v16 = vadd.f32 %v1275_v8, %v142_v33  ;;  %v247_v5 = vmax.f32 %v183_v40, 0.0  ;;  %v250_v49 = vmax.f32 %v1397_v53, 0.0 }
  0x39   :  { %1149 = vmatmul.mubr.f32.gmra.mxu1 %v269_v38  ;;  %v182_v23 = vadd.f32 %v1275_v8, %v111_v1  ;;  %v248_v38 = vmax.f32 %v184_v42, 0.0  ;;  %v279_v8 = vmax.f32 %v1626_v52, 0.0  ;;  %v253_v53 = vmax.f32 %v1425_v63, 0.0 }
  0x3a   :  { %1104 = vmatmul.mubr.f32.gmra.mxu0 %v239_v34  ;;  %1151 = vmatprep.mubr.f32.mxu1 %v270_v47  ;;  %v274_v34 = vmax.f32 %v210_v11, 0.0  ;;  %v277_v21 = vmax.f32 %v213_v16, 0.0  ;;  %v249_v47 = vmax.f32 %v1383_v48, 0.0  ;;  %v282_v48 = vmax.f32 %v1659_v14, 0.0 }
  0x3b   :  { %1106 = vmatprep.mubr.f32.mxu0 %v240_v41  ;;  %v246_v41 = vmax.f32 %v182_v23, 0.0  ;;  %v254_v52 = vmax.f32 %v1428_v0, 0.0  ;;  %v285_v14 = vmax.f32 %v1680_v31, 0.0  ;;  %v286_v63 = vmax.f32 %v1683_v32, 0.0 }
  0x3c   :  { %v257_v0 = vmax.f32 %v1470_v18, 0.0  ;;  %v288_v25 = vmax.f32 %v1704_v27, 0.0 }
  0x3d   :  { %1152 = vmatmul.mubr.f32.gmra.mxu1 %v271_v4 }
  0x3e   :  { %1107 = vmatmul.mubr.f32.gmra.mxu0 %v241_v55  ;;  %1154 = vmatprep.mubr.f32.mxu1 %v272_v10  ;;  %v252_v55 = vmax.f32 %v1412_v59, 0.0  ;;  %v255_v59 = vmax.f32 %v1444_v7, 0.0  ;;  %v289_v7 = vmax.f32 %v1713_v44, 0.0 }
  0x3f   :  { %1109 = vmatprep.mubr.f32.mxu0 %v242_v45 }
  0x41   :  { %1155 = vmatmul.mubr.f32.gmra.mxu1 %v273_v29 }
  0x42   :  { %1110 = vmatmul.mubr.f32.gmra.mxu0 %v243_v17  ;;  %1157 = vmatprep.mubr.f32.mxu1 %v274_v34 }
  0x43   :  { %1112 = vmatprep.mubr.f32.mxu0 %v244_v20 }
  0x45   :  { %1158 = vmatmul.mubr.f32.gmra.mxu1 %v275_v61 }
  0x46   :  { %1113 = vmatmul.mubr.f32.gmra.mxu0 %v245_v36  ;;  %1160 = vmatprep.mubr.f32.mxu1 %v276_v43 }
  0x47   :  { %1115 = vmatprep.mubr.f32.mxu0 %v246_v41 }
  0x49   :  { %1161 = vmatmul.mubr.f32.gmra.mxu1 %v277_v21 }
  0x4a   :  { %1116 = vmatmul.mubr.f32.gmra.mxu0 %v247_v5  ;;  %1163 = vmatprep.mubr.f32.mxu1 %v278_v39 }
  0x4b   :  { %1118 = vmatprep.mubr.f32.mxu0 %v248_v38 }
  0x4d   :  { %1164 = vmatmul.mubr.f32.gmra.mxu1 %v279_v8 }
  0x4e   :  { %1119 = vmatmul.mubr.f32.gmra.mxu0 %v249_v47  ;;  %1166 = vmatprep.mubr.f32.mxu1 %v280_v50 }
  0x4f   :  { %1121 = vmatprep.mubr.f32.mxu0 %v250_v49 }
  0x51   :  { %1167 = vmatmul.mubr.f32.gmra.mxu1 %v281_v46 }
  0x52   :  { %1122 = vmatmul.mubr.f32.gmra.mxu0 %v251_v51  ;;  %1169 = vmatprep.mubr.f32.mxu1 %v282_v48 }
  0x53   :  { %1124 = vmatprep.mubr.f32.mxu0 %v252_v55 }
  0x55   :  { %1170 = vmatmul.mubr.f32.gmra.mxu1 %v283_v2 }
  0x56   :  { %1125 = vmatmul.mubr.f32.gmra.mxu0 %v253_v53  ;;  %1172 = vmatprep.mubr.f32.mxu1 %v284_v58 }
  0x57   :  { %1127 = vmatprep.mubr.f32.mxu0 %v254_v52 }
  0x59   :  { %1173 = vmatmul.mubr.f32.gmra.mxu1 %v285_v14 }
  0x5a   :  { %1128 = vmatmul.mubr.f32.gmra.mxu0 %v255_v59  ;;  %1175 = vmatprep.mubr.f32.mxu1 %v286_v63 }
  0x5b   :  { %1130 = vmatprep.mubr.f32.mxu0 %v256_v9 }
  0x5d   :  { %1176 = vmatmul.mubr.f32.gmra.mxu1 %v287_v24 }
  0x5e   :  { %1131 = vmatmul.mubr.f32.gmra.mxu0 %v257_v0  ;;  %1178 = vmatprep.mubr.f32.mxu1 %v288_v25 }
  0x61   :  { %1179 = vmatmul.mubr.f32.gmra.mxu1 %v289_v7 }
  0xe2   :  { %v1087_v15 = vpop.f32.mrf.mxu0 }
  0xe3   :  { %896 = vst [vmem:[%s2166_s4 + $0x8] sm:$0xff] %v1087_v15  ;;  %v762_v37 = vmul.f32 %v1087_v15, %v1087_v15 }
  0xe4   :  { %v372_v31 = vpop.f32.mrf.mxu0  ;;  %v1781_v54 = vpop.f32.mrf.mxu1 }
  0xe5   :  { %v761_v18 = vmul.f32 %v372_v31, %v372_v31  ;;  %895 = vst [vmem:[%s2166_s4] sm:$0xff] %v372_v31  ;;  %v691_v27 = vadd.f32 %v1087_v15, %v372_v31  ;;  %928 = vst [vmem:[%s2166_s4 + $0x108] sm:$0xff] %v1781_v54 }
  0xe6   :  { %v1090_v32 = vpop.f32.mrf.mxu0  ;;  %v1790_v1 = vpop.f32.mrf.mxu1 }
  0xe7   :  { %898 = vst [vmem:[%s2166_s4 + $0x18] sm:$0xff] %v1090_v32  ;;  %v825_v56 = vadd.f32 %v762_v37, %v761_v18  ;;  %v764_v3 = vmul.f32 %v1090_v32, %v1090_v32  ;;  %927 = vst [vmem:[%s2166_s4 + $0x100] sm:$0xff] %v1790_v1 }
  0xe8   :  { %v382_v44 = vpop.f32.mrf.mxu0  ;;  %v1799_v62 = vpop.f32.mrf.mxu1 }
  0xe9   :  { %v692_v57 = vadd.f32 %v691_v27, %v382_v44  ;;  %v763_v45 = vmul.f32 %v382_v44, %v382_v44  ;;  %897 = vst [vmem:[%s2166_s4 + $0x10] sm:$0xff] %v382_v44  ;;  %930 = vst [vmem:[%s2166_s4 + $0x118] sm:$0xff] %v1799_v62 }
  0xea   :  { %v1093_v60 = vpop.f32.mrf.mxu0  ;;  %v1808_v17 = vpop.f32.mrf.mxu1 }
  0xeb   :  { %v826_v28 = vadd.f32 %v825_v56, %v763_v45  ;;  %900 = vst [vmem:[%s2166_s4 + $0x28] sm:$0xff] %v1093_v60  ;;  %v693_v4 = vadd.f32 %v1090_v32, %v692_v57  ;;  %v766_v19 = vmul.f32 %v1093_v60, %v1093_v60  ;;  %929 = vst [vmem:[%s2166_s4 + $0x110] sm:$0xff] %v1808_v17 }
  0xec   :  { %v392_v6 = vpop.f32.mrf.mxu0  ;;  %v1817_v26 = vpop.f32.mrf.mxu1 }
  0xed   :  { %v694_v10 = vadd.f32 %v693_v4, %v392_v6  ;;  %v765_v11 = vmul.f32 %v392_v6, %v392_v6  ;;  %v827_v12 = vadd.f32 %v826_v28, %v764_v3  ;;  %899 = vst [vmem:[%s2166_s4 + $0x20] sm:$0xff] %v392_v6  ;;  %932 = vst [vmem:[%s2166_s4 + $0x128] sm:$0xff] %v1817_v26 }
  0xee   :  { %v1096_v13 = vpop.f32.mrf.mxu0  ;;  %v1826_v35 = vpop.f32.mrf.mxu1 }
  0xef   :  { %v828_v22 = vadd.f32 %v827_v12, %v765_v11  ;;  %902 = vst [vmem:[%s2166_s4 + $0x38] sm:$0xff] %v1096_v13  ;;  %v695_v20 = vadd.f32 %v1093_v60, %v694_v10  ;;  %v768_v36 = vmul.f32 %v1096_v13, %v1096_v13  ;;  %931 = vst [vmem:[%s2166_s4 + $0x120] sm:$0xff] %v1826_v35 }
  0xf0   :  { %v402_v23 = vpop.f32.mrf.mxu0  ;;  %v1835_v61 = vpop.f32.mrf.mxu1 }
  0xf1   :  { %v696_v29 = vadd.f32 %v695_v20, %v402_v23  ;;  %v767_v30 = vmul.f32 %v402_v23, %v402_v23  ;;  %v829_v33 = vadd.f32 %v828_v22, %v766_v19  ;;  %901 = vst [vmem:[%s2166_s4 + $0x30] sm:$0xff] %v402_v23  ;;  %934 = vst [vmem:[%s2166_s4 + $0x138] sm:$0xff] %v1835_v61 }
  0xf2   :  { %v1099_v34 = vpop.f32.mrf.mxu0  ;;  %v1844_v21 = vpop.f32.mrf.mxu1 }
  0xf3   :  { %v830_v40 = vadd.f32 %v829_v33, %v767_v30  ;;  %904 = vst [vmem:[%s2166_s4 + $0x48] sm:$0xff] %v1099_v34  ;;  %v697_v41 = vadd.f32 %v1096_v13, %v696_v29  ;;  %v770_v39 = vmul.f32 %v1099_v34, %v1099_v34  ;;  %933 = vst [vmem:[%s2166_s4 + $0x130] sm:$0xff] %v1844_v21 }
  0xf4   :  { %v412_v42 = vpop.f32.mrf.mxu0  ;;  %v1853_v50 = vpop.f32.mrf.mxu1 }
  0xf5   :  { %v698_v16 = vadd.f32 %v697_v41, %v412_v42  ;;  %v769_v43 = vmul.f32 %v412_v42, %v412_v42  ;;  %v831_v5 = vadd.f32 %v830_v40, %v768_v36  ;;  %903 = vst [vmem:[%s2166_s4 + $0x40] sm:$0xff] %v412_v42  ;;  %936 = vst [vmem:[%s2166_s4 + $0x148] sm:$0xff] %v1853_v50 }
  0xf6   :  { %v1102_v38 = vpop.f32.mrf.mxu0  ;;  %v1862_v53 = vpop.f32.mrf.mxu1 }
  0xf7   :  { %v832_v47 = vadd.f32 %v831_v5, %v769_v43  ;;  %906 = vst [vmem:[%s2166_s4 + $0x58] sm:$0xff] %v1102_v38  ;;  %v699_v49 = vadd.f32 %v1099_v34, %v698_v16  ;;  %v772_v52 = vmul.f32 %v1102_v38, %v1102_v38  ;;  %935 = vst [vmem:[%s2166_s4 + $0x140] sm:$0xff] %v1862_v53 }
  0xf8   :  { %v422_v8 = vpop.f32.mrf.mxu0 }
  0xf9   :  { %v700_v51 = vadd.f32 %v699_v49, %v422_v8  ;;  %v771_v55 = vmul.f32 %v422_v8, %v422_v8  ;;  %v833_v46 = vadd.f32 %v832_v47, %v770_v39  ;;  %905 = vst [vmem:[%s2166_s4 + $0x50] sm:$0xff] %v422_v8  ;;  %v1871_v9 = vpop.f32.mrf.mxu1 }
  0xfa   :  { %v1105_v48 = vpop.f32.mrf.mxu0  ;;  %938 = vst [vmem:[%s2166_s4 + $0x158] sm:$0xff] %v1871_v9 }
  0xfb   :  { %v834_v2 = vadd.f32 %v833_v46, %v771_v55  ;;  %908 = vst [vmem:[%s2166_s4 + $0x68] sm:$0xff] %v1105_v48  ;;  %v701_v58 = vadd.f32 %v1102_v38, %v700_v51  ;;  %v1880_v25 = vpop.f32.mrf.mxu1  ;;  %v774_v7 = vmul.f32 %v1105_v48, %v1105_v48 }
  0xfc   :  { %v432_v59 = vpop.f32.mrf.mxu0  ;;  %937 = vst [vmem:[%s2166_s4 + $0x150] sm:$0xff] %v1880_v25 }
  0xfd   :  { %v702_v14 = vadd.f32 %v701_v58, %v432_v59  ;;  %v773_v63 = vmul.f32 %v432_v59, %v432_v59  ;;  %v835_v0 = vadd.f32 %v834_v2, %v772_v52  ;;  %907 = vst [vmem:[%s2166_s4 + $0x60] sm:$0xff] %v432_v59  ;;  %v1889_v32 = vpop.f32.mrf.mxu1 }
  0xfe   :  { %v1108_v24 = vpop.f32.mrf.mxu0  ;;  %940 = vst [vmem:[%s2166_s4 + $0x168] sm:$0xff] %v1889_v32 }
  0xff   :  { %v836_v15 = vadd.f32 %v835_v0, %v773_v63  ;;  %910 = vst [vmem:[%s2166_s4 + $0x78] sm:$0xff] %v1108_v24  ;;  %v703_v31 = vadd.f32 %v1105_v48, %v702_v14  ;;  %v1898_v57 = vpop.f32.mrf.mxu1  ;;  %v776_v45 = vmul.f32 %v1108_v24, %v1108_v24 }
 0x100   :  { %v442_v18 = vpop.f32.mrf.mxu0  ;;  %939 = vst [vmem:[%s2166_s4 + $0x160] sm:$0xff] %v1898_v57 }
 0x101   :  { %v704_v37 = vadd.f32 %v703_v31, %v442_v18  ;;  %v775_v27 = vmul.f32 %v442_v18, %v442_v18  ;;  %v837_v44 = vadd.f32 %v836_v15, %v774_v7  ;;  %909 = vst [vmem:[%s2166_s4 + $0x70] sm:$0xff] %v442_v18  ;;  %v1907_v4 = vpop.f32.mrf.mxu1 }
 0x102   :  { %v1111_v56 = vpop.f32.mrf.mxu0  ;;  %942 = vst [vmem:[%s2166_s4 + $0x178] sm:$0xff] %v1907_v4 }
 0x103   :  { %v838_v60 = vadd.f32 %v837_v44, %v775_v27  ;;  %912 = vst [vmem:[%s2166_s4 + $0x88] sm:$0xff] %v1111_v56  ;;  %v705_v3 = vadd.f32 %v1108_v24, %v704_v37  ;;  %v1916_v13 = vpop.f32.mrf.mxu1  ;;  %v778_v19 = vmul.f32 %v1111_v56, %v1111_v56 }
 0x104   :  { %v452_v28 = vpop.f32.mrf.mxu0  ;;  %941 = vst [vmem:[%s2166_s4 + $0x170] sm:$0xff] %v1916_v13 }
 0x105   :  { %v706_v6 = vadd.f32 %v705_v3, %v452_v28  ;;  %v777_v10 = vmul.f32 %v452_v28, %v452_v28  ;;  %v839_v11 = vadd.f32 %v838_v60, %v776_v45  ;;  %911 = vst [vmem:[%s2166_s4 + $0x80] sm:$0xff] %v452_v28  ;;  %v1925_v29 = vpop.f32.mrf.mxu1 }
 0x106   :  { %v1114_v12 = vpop.f32.mrf.mxu0  ;;  %944 = vst [vmem:[%s2166_s4 + $0x188] sm:$0xff] %v1925_v29 }
 0x107   :  { %v840_v22 = vadd.f32 %v839_v11, %v777_v10  ;;  %914 = vst [vmem:[%s2166_s4 + $0x98] sm:$0xff] %v1114_v12  ;;  %v707_v20 = vadd.f32 %v1111_v56, %v706_v6  ;;  %v1934_v40 = vpop.f32.mrf.mxu1  ;;  %v780_v41 = vmul.f32 %v1114_v12, %v1114_v12 }
 0x108   :  { %v462_v23 = vpop.f32.mrf.mxu0  ;;  %943 = vst [vmem:[%s2166_s4 + $0x180] sm:$0xff] %v1934_v40 }
 0x109   :  { %v708_v30 = vadd.f32 %v707_v20, %v462_v23  ;;  %v779_v33 = vmul.f32 %v462_v23, %v462_v23  ;;  %v841_v34 = vadd.f32 %v840_v22, %v778_v19  ;;  %913 = vst [vmem:[%s2166_s4 + $0x90] sm:$0xff] %v462_v23  ;;  %v1943_v5 = vpop.f32.mrf.mxu1 }
 0x10a   :  { %v1117_v36 = vpop.f32.mrf.mxu0  ;;  %946 = vst [vmem:[%s2166_s4 + $0x198] sm:$0xff] %v1943_v5 }
 0x10b   :  { %v842_v42 = vadd.f32 %v841_v34, %v779_v33  ;;  %916 = vst [vmem:[%s2166_s4 + $0xa8] sm:$0xff] %v1117_v36  ;;  %v709_v16 = vadd.f32 %v1114_v12, %v708_v30  ;;  %v1952_v8 = vpop.f32.mrf.mxu1  ;;  %v782_v51 = vmul.f32 %v1117_v36, %v1117_v36 }
 0x10c   :  { %v472_v43 = vpop.f32.mrf.mxu0  ;;  %945 = vst [vmem:[%s2166_s4 + $0x190] sm:$0xff] %v1952_v8 }
 0x10d   :  { %v710_v38 = vadd.f32 %v709_v16, %v472_v43  ;;  %v781_v39 = vmul.f32 %v472_v43, %v472_v43  ;;  %v843_v47 = vadd.f32 %v842_v42, %v780_v41  ;;  %915 = vst [vmem:[%s2166_s4 + $0xa0] sm:$0xff] %v472_v43  ;;  %v1961_v52 = vpop.f32.mrf.mxu1 }
 0x10e   :  { %v1120_v49 = vpop.f32.mrf.mxu0  ;;  %948 = vst [vmem:[%s2166_s4 + $0x1a8] sm:$0xff] %v1961_v52 }
 0x10f   :  { %v844_v55 = vadd.f32 %v843_v47, %v781_v39  ;;  %918 = vst [vmem:[%s2166_s4 + $0xb8] sm:$0xff] %v1120_v49  ;;  %v711_v46 = vadd.f32 %v1117_v36, %v710_v38  ;;  %v1970_v63 = vpop.f32.mrf.mxu1  ;;  %v784_v0 = vmul.f32 %v1120_v49, %v1120_v49 }
 0x110   :  { %v482_v48 = vpop.f32.mrf.mxu0  ;;  %947 = vst [vmem:[%s2166_s4 + $0x1a0] sm:$0xff] %v1970_v63 }
 0x111   :  { %v712_v2 = vadd.f32 %v711_v46, %v482_v48  ;;  %v783_v58 = vmul.f32 %v482_v48, %v482_v48  ;;  %v845_v59 = vadd.f32 %v844_v55, %v782_v51  ;;  %917 = vst [vmem:[%s2166_s4 + $0xb0] sm:$0xff] %v482_v48  ;;  %v1979_v31 = vpop.f32.mrf.mxu1 }
 0x112   :  { %v1123_v14 = vpop.f32.mrf.mxu0  ;;  %950 = vst [vmem:[%s2166_s4 + $0x1b8] sm:$0xff] %v1979_v31 }
 0x113   :  { %v846_v24 = vadd.f32 %v845_v59, %v783_v58  ;;  %920 = vst [vmem:[%s2166_s4 + $0xc8] sm:$0xff] %v1123_v14  ;;  %v713_v7 = vadd.f32 %v1120_v49, %v712_v2  ;;  %v1988_v56 = vpop.f32.mrf.mxu1  ;;  %v786_v45 = vmul.f32 %v1123_v14, %v1123_v14 }
 0x114   :  { %v492_v15 = vpop.f32.mrf.mxu0  ;;  %949 = vst [vmem:[%s2166_s4 + $0x1b0] sm:$0xff] %v1988_v56 }
 0x115   :  { %v714_v18 = vadd.f32 %v713_v7, %v492_v15  ;;  %v785_v37 = vmul.f32 %v492_v15, %v492_v15  ;;  %v847_v27 = vadd.f32 %v846_v24, %v784_v0  ;;  %919 = vst [vmem:[%s2166_s4 + $0xc0] sm:$0xff] %v492_v15  ;;  %v1997_v6 = vpop.f32.mrf.mxu1  ;;  %v793_v15 = vmul.f32 %v1790_v1, %v1790_v1 }
 0x116   :  { %v1126_v44 = vpop.f32.mrf.mxu0  ;;  %952 = vst [vmem:[%s2166_s4 + $0x1c8] sm:$0xff] %v1997_v6 }
 0x117   :  { %v848_v60 = vadd.f32 %v847_v27, %v785_v37  ;;  %922 = vst [vmem:[%s2166_s4 + $0xd8] sm:$0xff] %v1126_v44  ;;  %v715_v3 = vadd.f32 %v1123_v14, %v714_v18  ;;  %v2006_v22 = vpop.f32.mrf.mxu1  ;;  %v788_v20 = vmul.f32 %v1126_v44, %v1126_v44  ;;  %v794_v37 = vmul.f32 %v1781_v54, %v1781_v54 }
 0x118   :  { %v502_v28 = vpop.f32.mrf.mxu0  ;;  %951 = vst [vmem:[%s2166_s4 + $0x1c0] sm:$0xff] %v2006_v22 }
 0x119   :  { %v716_v10 = vadd.f32 %v715_v3, %v502_v28  ;;  %v787_v11 = vmul.f32 %v502_v28, %v502_v28  ;;  %v849_v12 = vadd.f32 %v848_v60, %v786_v45  ;;  %921 = vst [vmem:[%s2166_s4 + $0xd0] sm:$0xff] %v502_v28  ;;  %v2015_v34 = vpop.f32.mrf.mxu1  ;;  %v795_v45 = vmul.f32 %v1808_v17, %v1808_v17 }
 0x11a   :  { %v1129_v19 = vpop.f32.mrf.mxu0  ;;  %954 = vst [vmem:[%s2166_s4 + $0x1d8] sm:$0xff] %v2015_v34  ;;  %v796_v3 = vmul.f32 %v1799_v62, %v1799_v62 }
 0x11b   :  { %v850_v23 = vadd.f32 %v849_v12, %v787_v11  ;;  %924 = vst [vmem:[%s2166_s4 + $0xe8] sm:$0xff] %v1129_v19  ;;  %v717_v30 = vadd.f32 %v1126_v44, %v716_v10  ;;  %v2024_v43 = vpop.f32.mrf.mxu1  ;;  %v790_v38 = vmul.f32 %v1129_v19, %v1129_v19 }
 0x11c   :  { %v512_v33 = vpop.f32.mrf.mxu0  ;;  %953 = vst [vmem:[%s2166_s4 + $0x1d0] sm:$0xff] %v2024_v43 }
 0x11d   :  { %v718_v36 = vadd.f32 %v717_v30, %v512_v33  ;;  %v789_v41 = vmul.f32 %v512_v33, %v512_v33  ;;  %v851_v42 = vadd.f32 %v850_v23, %v788_v20  ;;  %923 = vst [vmem:[%s2166_s4 + $0xe0] sm:$0xff] %v512_v33  ;;  %v2033_v51 = vpop.f32.mrf.mxu1  ;;  %v799_v30 = vmul.f32 %v1844_v21, %v1844_v21 }
 0x11e   :  { %v1132_v16 = vpop.f32.mrf.mxu0  ;;  %956 = vst [vmem:[%s2166_s4 + $0x1e8] sm:$0xff] %v2033_v51 }
 0x11f   :  { %v852_v39 = vadd.f32 %v851_v42, %v789_v41  ;;  %926 = vst [vmem:[%s2166_s4 + $0xf8] sm:$0xff] %v1132_v16  ;;  %v719_v47 = vadd.f32 %v1129_v19, %v718_v36  ;;  %v2042_v2 = vpop.f32.mrf.mxu1  ;;  %v792_v58 = vmul.f32 %v1132_v16, %v1132_v16  ;;  %v798_v19 = vmul.f32 %v1817_v26, %v1817_v26 }
 0x120   :  { %v522_v49 = vpop.f32.mrf.mxu0  ;;  %955 = vst [vmem:[%s2166_s4 + $0x1e0] sm:$0xff] %v2042_v2  ;;  %v801_v42 = vmul.f32 %v1862_v53, %v1862_v53 }
 0x121   :  { %v720_v55 = vadd.f32 %v719_v47, %v522_v49  ;;  %v791_v46 = vmul.f32 %v522_v49, %v522_v49  ;;  %v853_v48 = vadd.f32 %v852_v39, %v790_v38  ;;  %925 = vst [vmem:[%s2166_s4 + $0xf0] sm:$0xff] %v522_v49  ;;  %v2048_v0 = vpop.f32.mrf.mxu1  ;;  %v803_v47 = vmul.f32 %v1880_v25, %v1880_v25 }
 0x122   :  { %958 = vst [vmem:[%s2166_s4 + $0x1f8] sm:$0xff] %v2048_v0 }
 0x123   :  { %v721_v59 = vadd.f32 %v1132_v16, %v720_v55  ;;  %v854_v14 = vadd.f32 %v853_v48, %v791_v46  ;;  %v2057_v18 = vpop.f32.mrf.mxu1  ;;  %v805_v48 = vmul.f32 %v1898_v57, %v1898_v57 }
 0x124   :  { %957 = vst [vmem:[%s2166_s4 + $0x1f0] sm:$0xff] %v2057_v18 }
 0x125   :  { %v855_v24 = vadd.f32 %v854_v14, %v792_v58  ;;  %v722_v7 = vadd.f32 %v721_v59, %v1790_v1 }
 0x127   :  { %v856_v27 = vadd.f32 %v855_v24, %v793_v15  ;;  %v723_v44 = vadd.f32 %v1781_v54, %v722_v7  ;;  %v797_v54 = vmul.f32 %v1826_v35, %v1826_v35  ;;  %v807_v24 = vmul.f32 %v1916_v13, %v1916_v13 }
 0x129   :  { %v724_v1 = vadd.f32 %v723_v44, %v1808_v17  ;;  %v857_v60 = vadd.f32 %v856_v27, %v794_v37  ;;  %v809_v27 = vmul.f32 %v1934_v40, %v1934_v40 }
 0x12b   :  { %v858_v28 = vadd.f32 %v857_v60, %v795_v45  ;;  %v725_v10 = vadd.f32 %v1799_v62, %v724_v1  ;;  %v800_v62 = vmul.f32 %v1835_v61, %v1835_v61  ;;  %v811_v60 = vmul.f32 %v1952_v8, %v1952_v8 }
 0x12d   :  { %v726_v11 = vadd.f32 %v725_v10, %v1826_v35  ;;  %v859_v12 = vadd.f32 %v858_v28, %v796_v3 }
 0x12f   :  { %v860_v20 = vadd.f32 %v859_v12, %v797_v54  ;;  %v727_v23 = vadd.f32 %v1817_v26, %v726_v11  ;;  %v802_v26 = vmul.f32 %v1853_v50, %v1853_v50  ;;  %v813_v11 = vmul.f32 %v1970_v63, %v1970_v63 }
 0x131   :  { %v728_v17 = vadd.f32 %v727_v23, %v1844_v21  ;;  %v861_v33 = vadd.f32 %v860_v20, %v798_v19  ;;  %v815_v20 = vmul.f32 %v1988_v56, %v1988_v56 }
 0x133   :  { %v862_v36 = vadd.f32 %v861_v33, %v799_v30  ;;  %v729_v41 = vadd.f32 %v1835_v61, %v728_v17  ;;  %v804_v61 = vmul.f32 %v1871_v9, %v1871_v9  ;;  %v817_v33 = vmul.f32 %v2006_v22, %v2006_v22 }
 0x135   :  { %v730_v35 = vadd.f32 %v729_v41, %v1862_v53  ;;  %v863_v16 = vadd.f32 %v862_v36, %v800_v62 }
 0x137   :  { %v864_v38 = vadd.f32 %v863_v16, %v801_v42  ;;  %v731_v39 = vadd.f32 %v1853_v50, %v730_v35  ;;  %v806_v50 = vmul.f32 %v1889_v32, %v1889_v32  ;;  %v819_v35 = vmul.f32 %v2024_v43, %v2024_v43 }
 0x139   :  { %v732_v21 = vadd.f32 %v731_v39, %v1880_v25  ;;  %v865_v49 = vadd.f32 %v864_v38, %v802_v26  ;;  %v821_v38 = vmul.f32 %v2042_v2, %v2042_v2 }
 0x13b   :  { %v866_v55 = vadd.f32 %v865_v49, %v803_v47  ;;  %v733_v46 = vadd.f32 %v1871_v9, %v732_v21  ;;  %v808_v9 = vmul.f32 %v1907_v4, %v1907_v4  ;;  %v823_v49 = vmul.f32 %v2057_v18, %v2057_v18 }
 0x13d   :  { %v734_v53 = vadd.f32 %v733_v46, %v1898_v57  ;;  %v867_v58 = vadd.f32 %v866_v55, %v804_v61 }
 0x13f   :  { %v868_v59 = vadd.f32 %v867_v58, %v805_v48  ;;  %v735_v14 = vadd.f32 %v1889_v32, %v734_v53  ;;  %v810_v32 = vmul.f32 %v1925_v29, %v1925_v29 }
 0x141   :  { %v736_v25 = vadd.f32 %v735_v14, %v1916_v13  ;;  %v869_v7 = vadd.f32 %v868_v59, %v806_v50 }
 0x143   :  { %v870_v15 = vadd.f32 %v869_v7, %v807_v24  ;;  %v737_v37 = vadd.f32 %v1907_v4, %v736_v25  ;;  %v812_v4 = vmul.f32 %v1943_v5, %v1943_v5 }
 0x145   :  { %v738_v57 = vadd.f32 %v737_v37, %v1934_v40  ;;  %v871_v44 = vadd.f32 %v870_v15, %v808_v9 }
 0x147   :  { %v872_v1 = vadd.f32 %v871_v44, %v809_v27  ;;  %v739_v45 = vadd.f32 %v1925_v29, %v738_v57  ;;  %v814_v29 = vmul.f32 %v1961_v52, %v1961_v52 }
 0x149   :  { %v740_v13 = vadd.f32 %v739_v45, %v1952_v8  ;;  %v873_v3 = vadd.f32 %v872_v1, %v810_v32 }
 0x14b   :  { %v874_v28 = vadd.f32 %v873_v3, %v811_v60  ;;  %v741_v10 = vadd.f32 %v1943_v5, %v740_v13  ;;  %v816_v5 = vmul.f32 %v1979_v31, %v1979_v31 }
 0x14d   :  { %v742_v40 = vadd.f32 %v741_v10, %v1970_v63  ;;  %v875_v54 = vadd.f32 %v874_v28, %v812_v4 }
 0x14f   :  { %v876_v12 = vadd.f32 %v875_v54, %v813_v11  ;;  %v743_v19 = vadd.f32 %v1961_v52, %v742_v40  ;;  %v818_v52 = vmul.f32 %v1997_v6, %v1997_v6 }
 0x151   :  { %v744_v8 = vadd.f32 %v743_v19, %v1988_v56  ;;  %v877_v23 = vadd.f32 %v876_v12, %v814_v29 }
 0x153   :  { %v878_v17 = vadd.f32 %v877_v23, %v815_v20  ;;  %v745_v30 = vadd.f32 %v1979_v31, %v744_v8  ;;  %v820_v31 = vmul.f32 %v2015_v34, %v2015_v34 }
 0x155   :  { %v746_v63 = vadd.f32 %v745_v30, %v2006_v22  ;;  %v879_v62 = vadd.f32 %v878_v17, %v816_v5 }
 0x157   :  { %v880_v36 = vadd.f32 %v879_v62, %v817_v33  ;;  %v747_v41 = vadd.f32 %v1997_v6, %v746_v63  ;;  %v822_v6 = vmul.f32 %v2033_v51, %v2033_v51 }
 0x159   :  { %v748_v56 = vadd.f32 %v747_v41, %v2024_v43  ;;  %v881_v42 = vadd.f32 %v880_v36, %v818_v52 }
 0x15b   :  { %v882_v16 = vadd.f32 %v881_v42, %v819_v35  ;;  %v749_v26 = vadd.f32 %v2015_v34, %v748_v56  ;;  %v824_v34 = vmul.f32 %v2048_v0, %v2048_v0 }
 0x15d   :  { %v750_v22 = vadd.f32 %v749_v26, %v2042_v2  ;;  %v883_v39 = vadd.f32 %v882_v16, %v820_v31 }
 0x15f   :  { %v884_v21 = vadd.f32 %v883_v39, %v821_v38  ;;  %v751_v47 = vadd.f32 %v2033_v51, %v750_v22 }
 0x161   :  { %v752_v43 = vadd.f32 %v751_v47, %v2057_v18  ;;  %v885_v61 = vadd.f32 %v884_v21, %v822_v6 }
 0x163   :  { %v753_v55 = vadd.f32 %v2048_v0, %v752_v43  ;;  %v886_v46 = vadd.f32 %v885_v61, %v823_v49 }
 0x165   :  { %v754_v2 = vrot.slane %v753_v55, 4  ;;  %v887_v53 = vadd.f32 %v886_v46, %v824_v34 }
 0x167   :  { %v755_v48 = vadd.f32 %v754_v2, %v753_v55  ;;  %v888_v58 = vrot.slane %v887_v53, 4 }
 0x169   :  { %v756_v50 = vrot.slane %v755_v48, 2  ;;  %v889_v59 = vadd.f32 %v888_v58, %v887_v53 }
 0x16b   :  { %v757_v14 = vadd.f32 %v756_v50, %v755_v48  ;;  %v890_v51 = vrot.slane %v889_v59, 2 }
 0x16d   :  { %v758_v25 = vrot.slane %v757_v14, 1  ;;  %v891_v24 = vadd.f32 %v890_v51, %v889_v59 }
 0x16f   :  { %v759_v7 = vadd.f32 %v758_v25, %v757_v14  ;;  %v892_v9 = vrot.slane %v891_v24, 1 }
 0x171   :  { %760 = vst [vmem:[%s2167_s5] sm:$0x1] %v759_v7  ;;  %v893_v18 = vadd.f32 %v892_v9, %v891_v24 }
 0x173   :  { %894 = vst [vmem:[%s2168_s6] sm:$0x1] %v893_v18 }

// kernel: dense_block_forward.7
= control target key start
LH: loop header
LB: loop body
LE: loop exit
PB: predicated region body
PF: predicated region fallthrough
CT: control target
= control target key end

     0   :  { %s5730_s21 = smov 0   ;;  %s7846_s0 = inlined_call_operand.vmem [shape: f32[512,128], index: 0, kind: input, shape index: {}]   ;;  %s7847_s1 = inlined_call_operand.vmem [shape: f32[1,128], index: 1, kind: input, shape index: {}]   ;;  %s7848_s2 = inlined_call_operand.vmem [shape: f32[1,128], index: 2, kind: input, shape index: {}]   ;;  %s7849_s3 = inlined_call_operand.vmem [shape: f32[9,128,128], index: 3, kind: input, shape index: {}]   ;;  %s7850_s4 = inlined_call_operand.vmem [shape: f32[512,128], index: 4, kind: output, shape index: {0}]   ;;  %s7851_s5 = inlined_call_operand.vmem [shape: f32[2,1,128], index: 5, kind: output, shape index: {1}]   ;;  %s7852_s6 = inlined_call_operand.vmem [shape: f32[2,1,128], index: 6, kind: output, shape index: {2}]  }
   0x1 LB: > { %s5736_s22 = sadd.s32 4294967295, %s5692_s21   ;;  %p4264_p0 = scmp.ge.s32.totalorder %s5692_s21, 1  ;;  %s5692_s21 = sphi %s5730_s21, %s17_s21  }
   0x2   : > { %p218_p1 = scmp.lt.s32.totalorder %s5692_s21, 3 }
   0x4   : > { %p219_p2 = pnand %p4264_p0, %p218_p1 }
   0x6   : > { %222 = sbr.rel (%p219_p2) target bundleno = 565 (0x235), region = 36 }
   0xb   : > { %v4286_v0 = vld [vmem:[%s7849_s3 + $0xf8] sm:$0xff]  ;;  %v4285_v1 = vld [vmem:[%s7849_s3 + $0xf0] sm:$0xff]  ;;  %s4265_s27 = sshll.u32 %s5736_s22, 5  ;;  %v4284_v2 = vld [vmem:[%s7849_s3 + $0xe8] sm:$0xff]  ;;  %v7853_v43 = vmov 0.0   ;;  %p266_p4 = scmp.lt.s32.totalorder %s5736_s22, 1 }
   0xc   : > { %5645 = vmatprep.subr.mxu1 %v4286_v0  ;;  %4925 = vmatprep.subr.mxu0 %v4286_v0  ;;  %p255_p3 = scmp.lt.s32.totalorder %s4265_s27, 63  ;;  %v4283_v3 = vld [vmem:[%s7849_s3 + $0xe0] sm:$0xff]  ;;  %v4282_v4 = vld [vmem:[%s7849_s3 + $0xd8] sm:$0xff]  ;;  %v4281_v5 = vld [vmem:[%s7849_s3 + $0xd0] sm:$0xff] }
   0xd   : > { %5661 = vmatpush3.msra.mxu1 %v4286_v0  ;;  %4926 = vmatpush3.msra.mxu0 %v4286_v0  ;;  %v4280_v6 = vld [vmem:[%s7849_s3 + $0xc8] sm:$0xff]  ;;  %v4279_v7 = vld [vmem:[%s7849_s3 + $0xc0] sm:$0xff]  ;;  %v4278_v8 = vld [vmem:[%s7849_s3 + $0xb8] sm:$0xff]  ;;  %s8447_s22 = smov (!%p266_p4, %s5736_s22), 1 }
   0xe   : > { %5646 = vmatprep.subr.mxu1 %v4285_v1  ;;  %4927 = vmatprep.subr.mxu0 %v4285_v1  ;;  %s8445_s27 = smov (!%p255_p3, %s4265_s27), 63  ;;  %v4277_v9 = vld [vmem:[%s7849_s3 + $0xb0] sm:$0xff]  ;;  %v5785_v11 = vld [vmem:[%s7847_s1] ss:$0 sm:$0xff]  ;;  %v4276_v12 = vld [vmem:[%s7849_s3 + $0xa8] sm:$0xff]  ;;  %s268_s25 = scalar_lea.vmem %s7851_s5, %s8447_s22 }
   0xf   : > { %5662 = vmatpush3.msra.mxu1 %v4285_v1  ;;  %4928 = vmatpush3.msra.mxu0 %v4285_v1  ;;  %s4266_s14 = sshll.u32 %s8445_s27, 3  ;;  %v4275_v14 = vld [vmem:[%s7849_s3 + $0xa0] sm:$0xff]  ;;  %v4274_v17 = vld [vmem:[%s7849_s3 + $0x98] sm:$0xff]  ;;  %v4273_v20 = vld [vmem:[%s7849_s3 + $0x90] sm:$0xff]  ;;  %s271_s29 = scalar_lea.vmem %s7852_s6, %s8447_s22 }
  0x10   : > { %5647 = vmatprep.subr.mxu1 %v4284_v2  ;;  %4929 = vmatprep.subr.mxu0 %v4284_v2  ;;  %s5776_s23 = scalar_lea.vmem %s7846_s0, %s4266_s14  ;;  %v5798_v16 = vld [vmem:[%s7848_s2] ss:$0 sm:$0xff]  ;;  %v4272_v25 = vld [vmem:[%s7849_s3 + $0x88] sm:$0xff]  ;;  %v1372_v38 = vld [vmem:[%s7849_s3 + $0x78] sm:$0xff]  ;;  %s7717_s24 = scalar_lea.vmem %s7850_s4, %s4266_s14 }
  0x11   : > { %5663 = vmatpush3.msra.mxu1 %v4284_v2  ;;  %4930 = vmatpush3.msra.mxu0 %v4284_v2  ;;  %v298_v10 = vld [vmem:[%s5776_s23 + $0x70] sm:$0xff]  ;;  %v299_v13 = vld [vmem:[%s5776_s23 + $0x78] sm:$0xff]  ;;  %v300_v19 = vld [vmem:[%s5776_s23 + $0x80] sm:$0xff] }
  0x12   : > { %5648 = vmatprep.subr.mxu1 %v4283_v3  ;;  %4931 = vmatprep.subr.mxu0 %v4283_v3  ;;  %v337_v15 = vmul.f32 %v5785_v11, %v298_v10  ;;  %v338_v18 = vmul.f32 %v5785_v11, %v299_v13  ;;  %v284_v22 = vld [vmem:[%s5776_s23] sm:$0xff]  ;;  %v301_v23 = vld [vmem:[%s5776_s23 + $0x88] sm:$0xff]  ;;  %v339_v24 = vmul.f32 %v5785_v11, %v300_v19  ;;  %v302_v32 = vld [vmem:[%s5776_s23 + $0x90] sm:$0xff] }
  0x13   : > { %5664 = vmatpush3.msra.mxu1 %v4283_v3  ;;  %4932 = vmatpush3.msra.mxu0 %v4283_v3  ;;  %v285_v27 = vld [vmem:[%s5776_s23 + $0x8] sm:$0xff]  ;;  %v323_v28 = vmul.f32 %v5785_v11, %v284_v22  ;;  %v340_v29 = vmul.f32 %v5785_v11, %v301_v23  ;;  %v4271_v30 = vld [vmem:[%s7849_s3 + $0x80] sm:$0xff]  ;;  %v286_v36 = vld [vmem:[%s5776_s23 + $0x10] sm:$0xff]  ;;  %v341_v41 = vmul.f32 %v5785_v11, %v302_v32 }
  0x14   : > { %5649 = vmatprep.subr.mxu1 %v4282_v4  ;;  %4933 = vmatprep.subr.mxu0 %v4282_v4  ;;  %v376_v21 = vadd.f32 %v5798_v16, %v337_v15  ;;  %v377_v26 = vadd.f32 %v5798_v16, %v338_v18  ;;  %v378_v33 = vadd.f32 %v5798_v16, %v339_v24  ;;  %v303_v37 = vld [vmem:[%s5776_s23 + $0x98] sm:$0xff]  ;;  %v1371_v45 = vld [vmem:[%s7849_s3 + $0x70] sm:$0xff]  ;;  %v304_v50 = vld [vmem:[%s5776_s23 + $0xa0] sm:$0xff] }
  0x15   : > { %5665 = vmatpush3.msra.mxu1 %v4282_v4  ;;  %4934 = vmatpush3.msra.mxu0 %v4282_v4  ;;  %v324_v34 = vmul.f32 %v5785_v11, %v285_v27  ;;  %v362_v39 = vadd.f32 %v5798_v16, %v323_v28  ;;  %v379_v40 = vadd.f32 %v5798_v16, %v340_v29  ;;  %v287_v42 = vld [vmem:[%s5776_s23 + $0x18] sm:$0xff]  ;;  %v4301_v51 = vld [vmem:[%s7849_s3 + $0x170] sm:$0xff]  ;;  %v288_v56 = vld [vmem:[%s5776_s23 + $0x20] sm:$0xff] }
  0x16   : > { %5650 = vmatprep.subr.mxu1 %v4281_v5  ;;  %4935 = vmatprep.subr.mxu0 %v4281_v5  ;;  %v5822_v31 = vmax.f32 %v376_v21, 0.0  ;;  %v5827_v35 = vmax.f32 %v377_v26, 0.0  ;;  %v4302_v44 = vld [vmem:[%s7849_s3 + $0x178] sm:$0xff]  ;;  %v5846_v46 = vmax.f32 %v378_v33, 0.0  ;;  %v325_v48 = vmul.f32 %v5785_v11, %v286_v36  ;;  %v305_v57 = vld [vmem:[%s5776_s23 + $0xa8] sm:$0xff]  ;;  %v1369_v1 = vld [vmem:[%s7849_s3 + $0x60] sm:$0xff] }
  0x17   : > { %5666 = vmatpush3.msra.mxu1 %v4281_v5  ;;  %4936 = vmatpush3.msra.mxu0 %v4281_v5  ;;  %v363_v47 = vadd.f32 %v5798_v16, %v324_v34  ;;  %v342_v49 = vmul.f32 %v5785_v11, %v303_v37  ;;  %v5857_v52 = vmax.f32 %v362_v39, 0.0  ;;  %v5859_v53 = vmax.f32 %v379_v40, 0.0  ;;  %v1370_v58 = vld [vmem:[%s7849_s3 + $0x68] sm:$0xff]  ;;  %v290_v13 = vld [vmem:[%s5776_s23 + $0x30] sm:$0xff]  ;;  %v1368_v15 = vld [vmem:[%s7849_s3 + $0x58] sm:$0xff] }
  0x18   : > { %5651 = vmatprep.subr.mxu1 %v4280_v6  ;;  %4937 = vmatprep.subr.mxu0 %v4280_v6  ;;  %8035 = vst [vmem:[#allocation5_spill] sm:$0xff] %v5822_v31  ;;  %8036 = vst [vmem:[#allocation6_spill] sm:$0xff] %v5827_v35  ;;  %v380_v54 = vadd.f32 %v5798_v16, %v341_v41  ;;  %v326_v55 = vmul.f32 %v5785_v11, %v287_v42  ;;  %v289_v63 = vld [vmem:[%s5776_s23 + $0x28] sm:$0xff]  ;;  %v291_v21 = vld [vmem:[%s5776_s23 + $0x38] sm:$0xff] }
  0x19   : > { %5667 = vmatpush3.msra.mxu1 %v4280_v6  ;;  %4938 = vmatpush3.msra.mxu0 %v4280_v6  ;;  %8037 = vst [vmem:[#allocation7_spill] sm:$0xff] %v5846_v46  ;;  %8038 = vst [vmem:[#allocation8_spill] sm:$0xff] %v5859_v53  ;;  %v5869_v59 = vmax.f32 %v363_v47, 0.0  ;;  %v364_v60 = vadd.f32 %v5798_v16, %v325_v48  ;;  %v381_v61 = vadd.f32 %v5798_v16, %v342_v49  ;;  %v4300_v0 = vld [vmem:[%s7849_s3 + $0x168] sm:$0xff]  ;;  %v306_v6 = vld [vmem:[%s5776_s23 + $0xb0] sm:$0xff] }
  0x1a   : > { %5652 = vmatprep.subr.mxu1 %v4279_v7  ;;  %4939 = vmatprep.subr.mxu0 %v4279_v7  ;;  %v343_v62 = vmul.f32 %v5785_v11, %v304_v50  ;;  %v5883_v2 = vmax.f32 %v380_v54, 0.0  ;;  %v365_v3 = vadd.f32 %v5798_v16, %v326_v55  ;;  %v327_v4 = vmul.f32 %v5785_v11, %v288_v56  ;;  %v4298_v22 = vld [vmem:[%s7849_s3 + $0x158] sm:$0xff]  ;;  %v1367_v23 = vld [vmem:[%s7849_s3 + $0x50] sm:$0xff]  ;;  %v308_v28 = vld [vmem:[%s5776_s23 + $0xc0] sm:$0xff] }
  0x1b   : > { %5668 = vmatpush3.msra.mxu1 %v4279_v7  ;;  %4940 = vmatpush3.msra.mxu0 %v4279_v7  ;;  %v344_v5 = vmul.f32 %v5785_v11, %v305_v57  ;;  %v4299_v7 = vld [vmem:[%s7849_s3 + $0x160] sm:$0xff]  ;;  %v329_v26 = vmul.f32 %v5785_v11, %v290_v13  ;;  %v4297_v29 = vld [vmem:[%s7849_s3 + $0x150] sm:$0xff]  ;;  %v330_v34 = vmul.f32 %v5785_v11, %v291_v21  ;;  %v309_v37 = vld [vmem:[%s5776_s23 + $0xc8] sm:$0xff] }
  0x1c   : > { %5653 = vmatprep.subr.mxu1 %v4278_v8  ;;  %4941 = vmatprep.subr.mxu0 %v4278_v8  ;;  %8039 = vst [vmem:[#allocation9_spill] sm:$0xff] %v5883_v2  ;;  %v382_v10 = vadd.f32 %v5798_v16, %v343_v62  ;;  %v366_v18 = vadd.f32 %v5798_v16, %v327_v4  ;;  %v292_v36 = vld [vmem:[%s5776_s23 + $0x40] sm:$0xff]  ;;  %v310_v54 = vld [vmem:[%s5776_s23 + $0xd0] sm:$0xff]  ;;  %v311_v62 = vld [vmem:[%s5776_s23 + $0xd8] sm:$0xff] }
  0x1d   : > { %5669 = vmatpush3.msra.mxu1 %v4278_v8  ;;  %4942 = vmatpush3.msra.mxu0 %v4278_v8  ;;  %v5893_v8 = vmax.f32 %v364_v60, 0.0  ;;  %v383_v19 = vadd.f32 %v5798_v16, %v344_v5  ;;  %v368_v40 = vadd.f32 %v5798_v16, %v329_v26  ;;  %v347_v42 = vmul.f32 %v5785_v11, %v308_v28  ;;  %v1365_v47 = vld [vmem:[%s7849_s3 + $0x40] sm:$0xff]  ;;  %v313_v26 = vld [vmem:[%s5776_s23 + $0xe8] sm:$0xff] }
  0x1e   : > { %5654 = vmatprep.subr.mxu1 %v4277_v9  ;;  %4943 = vmatprep.subr.mxu0 %v4277_v9  ;;  %v5919_v24 = vmax.f32 %v382_v10, 0.0  ;;  %v369_v49 = vadd.f32 %v5798_v16, %v330_v34  ;;  %v331_v50 = vmul.f32 %v5785_v11, %v292_v36  ;;  %v4295_v55 = vld [vmem:[%s7849_s3 + $0x140] sm:$0xff]  ;;  %v349_v4 = vmul.f32 %v5785_v11, %v310_v54  ;;  %v1363_v10 = vld [vmem:[%s7849_s3 + $0x30] sm:$0xff]  ;;  %v297_v34 = vld [vmem:[%s5776_s23 + $0x68] sm:$0xff] }
  0x1f   : > { %5670 = vmatpush3.msra.mxu1 %v4277_v9  ;;  %4944 = vmatpush3.msra.mxu0 %v4277_v9  ;;  %v5895_v9 = vmax.f32 %v381_v61, 0.0  ;;  %v5931_v32 = vmax.f32 %v383_v19, 0.0  ;;  %v5965_v56 = vmax.f32 %v368_v40, 0.0  ;;  %v294_v61 = vld [vmem:[%s5776_s23 + $0x50] sm:$0xff]  ;;  %v315_v36 = vld [vmem:[%s5776_s23 + $0xf8] sm:$0xff] }
  0x20   : > { %5655 = vmatprep.subr.mxu1 %v4276_v12  ;;  %4945 = vmatprep.subr.mxu0 %v4276_v12  ;;  %8041 = vst [vmem:[#allocation11_spill] sm:$0xff] %v5919_v24  ;;  %v333_v5 = vmul.f32 %v5785_v11, %v294_v61  ;;  %v388_v21 = vadd.f32 %v5798_v16, %v349_v4 }
  0x21   : > { %5671 = vmatpush3.msra.mxu1 %v4276_v12  ;;  %4946 = vmatpush3.msra.mxu0 %v4276_v12  ;;  %8040 = vst [vmem:[#allocation10_spill] sm:$0xff] %v5895_v9  ;;  %v328_v12 = vmul.f32 %v5785_v11, %v289_v63  ;;  %8043 = vst [vmem:[#allocation13_spill] sm:$0xff] %v5931_v32  ;;  %v1364_v63 = vld [vmem:[%s7849_s3 + $0x38] sm:$0xff]  ;;  %v354_v54 = vmul.f32 %v5785_v11, %v315_v36  ;;  %v876_v36 = vrot.slane %v5869_v59, 7 }
  0x22   : > { %5656 = vmatprep.subr.mxu1 %v4275_v14  ;;  %4947 = vmatprep.subr.mxu0 %v4275_v14  ;;  %8046 = vst [vmem:[#allocation16_spill] sm:$0xff] %v5965_v56  ;;  %v6028_v40 = vmax.f32 %v388_v21, 0.0 }
  0x23   : > { %5672 = vmatpush3.msra.mxu1 %v4275_v14  ;;  %4948 = vmatpush3.msra.mxu0 %v4275_v14  ;;  %v307_v14 = vld [vmem:[%s5776_s23 + $0xb8] sm:$0xff] }
  0x24   : > { %5657 = vmatprep.subr.mxu1 %v4274_v17  ;;  %4949 = vmatprep.subr.mxu0 %v4274_v17  ;;  %v346_v27 = vmul.f32 %v5785_v11, %v307_v14  ;;  %v350_v14 = vmul.f32 %v5785_v11, %v311_v62  ;;  %8053 = vst [vmem:[#allocation23_spill] sm:$0xff] %v6028_v40 }
  0x25   : > { %5673 = vmatpush3.msra.mxu1 %v4274_v17  ;;  %4950 = vmatpush3.msra.mxu0 %v4274_v17  ;;  %v5905_v17 = vmax.f32 %v365_v3, 0.0 }
  0x26   : > { %5658 = vmatprep.subr.mxu1 %v4273_v20  ;;  %4951 = vmatprep.subr.mxu0 %v4273_v20  ;;  %v385_v41 = vadd.f32 %v5798_v16, %v346_v27  ;;  %v1362_v27 = vld [vmem:[%s7849_s3 + $0x28] sm:$0xff] }
  0x27   : > { %5674 = vmatpush3.msra.mxu1 %v4273_v20  ;;  %4952 = vmatpush3.msra.mxu0 %v4273_v20  ;;  %v345_v20 = vmul.f32 %v5785_v11, %v306_v6  ;;  %v295_v6 = vld [vmem:[%s5776_s23 + $0x58] sm:$0xff] }
  0x28   : > { %5659 = vmatprep.subr.mxu1 %v4272_v25  ;;  %4953 = vmatprep.subr.mxu0 %v4272_v25  ;;  %v5967_v57 = vmax.f32 %v385_v41, 0.0 }
  0x29   : > { %5675 = vmatpush3.msra.mxu1 %v4272_v25  ;;  %4954 = vmatpush3.msra.mxu0 %v4272_v25  ;;  %v367_v25 = vadd.f32 %v5798_v16, %v328_v12  ;;  %v384_v33 = vadd.f32 %v5798_v16, %v345_v20 }
  0x2a   : > { %5660 = vmatprep.subr.mxu1 %v4271_v30  ;;  %4955 = vmatprep.subr.mxu0 %v4271_v30  ;;  %8047 = vst [vmem:[#allocation17_spill] sm:$0xff] %v5967_v57 }
  0x2b   : > { %5676 = vmatpush3.msra.mxu1 %v4271_v30  ;;  %4981 = vmatprep.mubr.f32.mxu1 %v5822_v31  ;;  %v5941_v39 = vmax.f32 %v367_v25, 0.0  ;;  %v5955_v48 = vmax.f32 %v384_v33, 0.0  ;;  %v296_v25 = vld [vmem:[%s5776_s23 + $0x60] sm:$0xff] }
  0x2c   : > { %4956 = vmatpush3.msra.mxu0 %v4271_v30  ;;  %4957 = vmatprep.mubr.f32.mxu0 %v7853_v43  ;;  %v5929_v30 = vmax.f32 %v366_v18, 0.0  ;;  %v4293_v18 = vld [vmem:[%s7849_s3 + $0x130] sm:$0xff] }
  0x2d   : > { %4982 = vmatmul.mubr.f32.vlgmr.msra.gmra.mxu1 %v5827_v35  ;;  %5005 = vmatprep.subr.mxu1 %v1372_v38  ;;  %8044 = vst [vmem:[#allocation14_spill] sm:$0xff] %v5941_v39  ;;  %8045 = vst [vmem:[#allocation15_spill] sm:$0xff] %v5955_v48 }
  0x2e   : > { %4958 = vmatmul.mubr.f32.vlgmr.msra.gmra.mxu0 %v7853_v43  ;;  %5006 = vmatpush3.msra.mxu1 %v1372_v38  ;;  %8042 = vst [vmem:[#allocation12_spill] sm:$0xff] %v5929_v30  ;;  %v1366_v38 = vld [vmem:[%s7849_s3 + $0x48] sm:$0xff] }
  0x2f   : > { %5085 = vmatprep.subr.mxu0 %v4302_v44  ;;  %5007 = vmatprep.subr.mxu1 %v1371_v45 }
  0x30   : > { %5086 = vmatpush3.msra.mxu0 %v4302_v44  ;;  %4984 = vmatprep.mubr.f32.mxu1 %v5846_v46  ;;  %v293_v44 = vld [vmem:[%s5776_s23 + $0x48] sm:$0xff] }
  0x31   : > { %5008 = vmatpush3.msra.mxu1 %v1371_v45  ;;  %5087 = vmatprep.subr.mxu0 %v4301_v51  ;;  %v4296_v45 = vld [vmem:[%s7849_s3 + $0x148] sm:$0xff]  ;;  %v332_v60 = vmul.f32 %v5785_v11, %v293_v44  ;;  %v352_v44 = vmul.f32 %v5785_v11, %v313_v26  ;;  %v314_v26 = vld [vmem:[%s5776_s23 + $0xf0] sm:$0xff] }
  0x32   : > { %4960 = vmatprep.mubr.f32.mxu0 %v5857_v52  ;;  %4985 = vmatmul.mubr.f32.gmra.mxu1 %v5859_v53 }
  0x33   : > { %5009 = vmatprep.subr.mxu1 %v1370_v58  ;;  %5088 = vmatpush3.msra.mxu0 %v4301_v51  ;;  %v348_v51 = vmul.f32 %v5785_v11, %v309_v37  ;;  %v371_v13 = vadd.f32 %v5798_v16, %v332_v60  ;;  %v4292_v37 = vld [vmem:[%s7849_s3 + $0x128] sm:$0xff]  ;;  %v391_v62 = vadd.f32 %v5798_v16, %v352_v44  ;;  %v1069_v44 = vrot.slane %v5869_v59, 1 }
  0x34   : > { %4961 = vmatmul.mubr.f32.gmra.mxu0 %v5869_v59  ;;  %5010 = vmatpush3.msra.mxu1 %v1370_v58  ;;  %v386_v58 = vadd.f32 %v5798_v16, %v347_v42  ;;  %v335_v42 = vmul.f32 %v5785_v11, %v296_v25 }
  0x35   : > { %5089 = vmatprep.subr.mxu0 %v4300_v0  ;;  %5011 = vmatprep.subr.mxu1 %v1369_v1  ;;  %v387_v3 = vadd.f32 %v5798_v16, %v348_v51  ;;  %v6014_v28 = vmax.f32 %v371_v13, 0.0  ;;  %v336_v51 = vmul.f32 %v5785_v11, %v297_v34  ;;  %v6072_v13 = vmax.f32 %v391_v62, 0.0 }
  0x36   : > { %5090 = vmatpush3.msra.mxu0 %v4300_v0  ;;  %4987 = vmatprep.mubr.f32.mxu1 %v5883_v2  ;;  %v5977_v0 = vmax.f32 %v369_v49, 0.0  ;;  %v5992_v12 = vmax.f32 %v386_v58, 0.0  ;;  %v1360_v58 = vld [vmem:[%s7849_s3 + $0x18] sm:$0xff]  ;;  %v374_v61 = vadd.f32 %v5798_v16, %v335_v42  ;;  %v7855_v42 = vrot.slane %v5857_v52, 1 }
  0x37   : > { %5012 = vmatpush3.msra.mxu1 %v1369_v1  ;;  %5091 = vmatprep.subr.mxu0 %v4299_v7  ;;  %v370_v1 = vadd.f32 %v5798_v16, %v331_v50  ;;  %v6003_v20 = vmax.f32 %v387_v3, 0.0  ;;  %8052 = vst [vmem:[#allocation22_spill] sm:$0xff] %v6014_v28  ;;  %v375_v4 = vadd.f32 %v5798_v16, %v336_v51  ;;  %8059 = vst [vmem:[#allocation29_spill] sm:$0xff] %v6072_v13 }
  0x38   : > { %4963 = vmatprep.mubr.f32.mxu0 %v5893_v8  ;;  %4988 = vmatmul.mubr.f32.gmra.mxu1 %v5895_v9  ;;  %8048 = vst [vmem:[#allocation18_spill] sm:$0xff] %v5977_v0  ;;  %8049 = vst [vmem:[#allocation19_spill] sm:$0xff] %v5992_v12  ;;  %v1070_v51 = vrot.slane %v5893_v8, 1 }
  0x39   : > { %5013 = vmatprep.subr.mxu1 %v1368_v15  ;;  %5092 = vmatpush3.msra.mxu0 %v4299_v7  ;;  %v4294_v7 = vld [vmem:[%s7849_s3 + $0x138] sm:$0xff]  ;;  %v6001_v19 = vmax.f32 %v370_v1, 0.0  ;;  %8051 = vst [vmem:[#allocation21_spill] sm:$0xff] %v6003_v20  ;;  %v1359_v1 = vld [vmem:[%s7849_s3 + $0x10] sm:$0xff] }
  0x3a   : > { %4964 = vmatmul.mubr.f32.gmra.mxu0 %v5905_v17  ;;  %5014 = vmatpush3.msra.mxu1 %v1368_v15  ;;  %v312_v15 = vld [vmem:[%s5776_s23 + $0xe0] sm:$0xff] }
  0x3b   : > { %5093 = vmatprep.subr.mxu0 %v4298_v22  ;;  %5015 = vmatprep.subr.mxu1 %v1367_v23  ;;  %8050 = vst [vmem:[#allocation20_spill] sm:$0xff] %v6001_v19  ;;  %v351_v33 = vmul.f32 %v5785_v11, %v312_v15  ;;  %v6078_v15 = vmax.f32 %v375_v4, 0.0  ;;  %v878_v4 = vrot.slane %v5905_v17, 7 }
  0x3c   : > { %5094 = vmatpush3.msra.mxu0 %v4298_v22  ;;  %4990 = vmatprep.mubr.f32.mxu1 %v5919_v24  ;;  %v334_v22 = vmul.f32 %v5785_v11, %v295_v6 }
  0x3d   : > { %5016 = vmatpush3.msra.mxu1 %v1367_v23  ;;  %5095 = vmatprep.subr.mxu0 %v4297_v29  ;;  %v372_v23 = vadd.f32 %v5798_v16, %v333_v5  ;;  %v390_v50 = vadd.f32 %v5798_v16, %v351_v33  ;;  %v393_v5 = vadd.f32 %v5798_v16, %v354_v54  ;;  %v875_v33 = vrot.slane %v5857_v52, 7 }
  0x3e   : > { %4966 = vmatprep.mubr.f32.mxu0 %v5929_v30  ;;  %4991 = vmatmul.mubr.f32.gmra.mxu1 %v5931_v32  ;;  %v373_v41 = vadd.f32 %v5798_v16, %v334_v22  ;;  %8060 = vst [vmem:[#allocation30_spill] sm:$0xff] %v6078_v15  ;;  %v4288_v22 = vld [vmem:[%s7849_s3 + $0x108] sm:$0xff]  ;;  %v877_v54 = vrot.slane %v5893_v8, 7 }
  0x3f   : > { %5017 = vmatprep.subr.mxu1 %v1366_v38  ;;  %5096 = vmatpush3.msra.mxu0 %v4297_v29  ;;  %v389_v29 = vadd.f32 %v5798_v16, %v350_v14  ;;  %v6060_v3 = vmax.f32 %v390_v50, 0.0  ;;  %v1358_v14 = vld [vmem:[%s7849_s3 + $0x8] sm:$0xff]  ;;  %v353_v50 = vmul.f32 %v5785_v11, %v314_v26  ;;  %v4365_v11 = vld [vmem:[%s7849_s3 + $0x370] sm:$0xff] }
  0x40   : > { %4967 = vmatmul.mubr.f32.gmra.mxu0 %v5941_v39  ;;  %5018 = vmatpush3.msra.mxu1 %v1366_v38  ;;  %v1361_v38 = vld [vmem:[%s7849_s3 + $0x20] sm:$0xff]  ;;  %v6048_v60 = vmax.f32 %v373_v41, 0.0  ;;  %v4318_v41 = vld [vmem:[%s7849_s3 + $0x1f8] sm:$0xff] }
  0x41   : > { %5097 = vmatprep.subr.mxu0 %v4296_v45  ;;  %5019 = vmatprep.subr.mxu1 %v1365_v47  ;;  %v6039_v49 = vmax.f32 %v389_v29, 0.0  ;;  %8057 = vst [vmem:[#allocation27_spill] sm:$0xff] %v6060_v3 }
  0x42   : > { %5098 = vmatpush3.msra.mxu0 %v4296_v45  ;;  %4993 = vmatprep.mubr.f32.mxu1 %v5955_v48  ;;  %v6033_v45 = vmax.f32 %v372_v23, 0.0  ;;  %8056 = vst [vmem:[#allocation26_spill] sm:$0xff] %v6048_v60  ;;  %v1357_v23 = vld [vmem:[%s7849_s3] sm:$0xff] }
  0x43   : > { %5020 = vmatpush3.msra.mxu1 %v1365_v47  ;;  %5099 = vmatprep.subr.mxu0 %v4295_v55  ;;  %v4291_v47 = vld [vmem:[%s7849_s3 + $0x120] sm:$0xff]  ;;  %8055 = vst [vmem:[#allocation25_spill] sm:$0xff] %v6039_v49 }
  0x44   : > { %4969 = vmatprep.mubr.f32.mxu0 %v5965_v56  ;;  %4994 = vmatmul.mubr.f32.gmra.mxu1 %v5967_v57  ;;  %8054 = vst [vmem:[#allocation24_spill] sm:$0xff] %v6033_v45 }
  0x45   : > { %5021 = vmatprep.subr.mxu1 %v1364_v63  ;;  %5100 = vmatpush3.msra.mxu0 %v4295_v55  ;;  %v426_v55 = vlaneseq }
  0x46   : > { %4970 = vmatmul.mubr.f32.gmra.mxu0 %v5977_v0  ;;  %5022 = vmatpush3.msra.mxu1 %v1364_v63  ;;  %v4290_v63 = vld [vmem:[%s7849_s3 + $0x118] sm:$0xff] }
  0x47   : > { %5101 = vmatprep.subr.mxu0 %v4294_v7  ;;  %5023 = vmatprep.subr.mxu1 %v1363_v10  ;;  %v6064_v6 = vshrl.u32 %v426_v55, 7 }
  0x48   : > { %5102 = vmatpush3.msra.mxu0 %v4294_v7  ;;  %4996 = vmatprep.mubr.f32.mxu1 %v5992_v12  ;;  %v4289_v7 = vld [vmem:[%s7849_s3 + $0x110] sm:$0xff] }
  0x49   : > { %5024 = vmatpush3.msra.mxu1 %v1363_v10  ;;  %5103 = vmatprep.subr.mxu0 %v4293_v18  ;;  %v6070_v10 = vmax.f32 %v374_v61, 0.0  ;;  %v428_v21 = vadd.s32 8, %v6064_v6  ;;  %v429_v25 = vadd.s32 16, %v6064_v6  ;;  %v463_v29 = vand.u32 15, %v6064_v6 }
  0x4a   : > { %4972 = vmatprep.mubr.f32.mxu0 %v6001_v19  ;;  %4997 = vmatmul.mubr.f32.gmra.mxu1 %v6003_v20  ;;  %vm7923_vm0 = vcmp.lt.s32.totalorder %v6064_v6, 1  ;;  %vm7910_vm1 = vcmp.lt.s32.totalorder %v6064_v6, 7  ;;  %v431_v55 = vadd.s32 32, %v6064_v6  ;;  %v432_v62 = vadd.s32 40, %v6064_v6 }
  0x4b   : > { %5025 = vmatprep.subr.mxu1 %v1362_v27  ;;  %5104 = vmatpush3.msra.mxu0 %v4293_v18  ;;  %8058 = vst [vmem:[#allocation28_spill] sm:$0xff] %v6070_v10  ;;  %v6080_v18 = vmax.f32 %v393_v5, 0.0  ;;  %vm6118_vm2 = vcmp.ne.s32.totalorder %v463_v29, 0  ;;  %v1071_v5 = vrot.slane %v5905_v17, 1  ;;  %v6166_v26 = vsel %vm7923_vm0, %v876_v36, %v877_v54 }
  0x4c   : > { %4973 = vmatmul.mubr.f32.gmra.mxu0 %v6014_v28  ;;  %5026 = vmatpush3.msra.mxu1 %v1362_v27  ;;  %v4287_v27 = vld [vmem:[%s7849_s3 + $0x100] sm:$0xff]  ;;  %v491_v29 = vand.u32 15, %v431_v55  ;;  %v880_v55 = vrot.slane %v5941_v39, 7 }
  0x4d   : > { %5105 = vmatprep.subr.mxu0 %v4292_v37  ;;  %5027 = vmatprep.subr.mxu1 %v1361_v38  ;;  %8061 = vst [vmem:[#allocation31_spill] sm:$0xff] %v6080_v18  ;;  %v906_v34 = vrot.slane %v6080_v18, 7  ;;  %v437_v18 = vadd.s32 80, %v6064_v6 }
  0x4e   : > { %5106 = vmatpush3.msra.mxu0 %v4292_v37  ;;  %4999 = vmatprep.mubr.f32.mxu1 %v6028_v40  ;;  %v470_v37 = vand.u32 15, %v428_v21  ;;  %v8065_v21 = vmov 0  ;;  %vm6217_vm6 = vcmp.ne.s32.totalorder %v491_v29, 0  ;;  %v881_v29 = vrot.slane %v5965_v56, 7 }
  0x4f   : > { %5028 = vmatpush3.msra.mxu1 %v1361_v38  ;;  %5107 = vmatprep.subr.mxu0 %v4291_v47  ;;  %v430_v38 = vadd.s32 24, %v6064_v6  ;;  %v6126_v61 = vsel %vm7923_vm0, %v906_v34, %v875_v33 }
  0x50   : > { %4975 = vmatprep.mubr.f32.mxu0 %v6033_v45  ;;  %5000 = vmatmul.mubr.f32.gmra.mxu1 %v6039_v49  ;;  %vm6147_vm3 = vcmp.ne.s32.totalorder %v470_v37, 15  ;;  %v879_v37 = vrot.slane %v5929_v30, 7 }
  0x51   : > { %5029 = vmatprep.subr.mxu1 %v1360_v58  ;;  %5108 = vmatpush3.msra.mxu0 %v4291_v47  ;;  %v477_v47 = vand.u32 15, %v429_v25  ;;  %v8066_v21 = vsel %vm6147_vm3, 4294967295, %v8065_v21  ;;  %v6162_v25 = vsel %vm7910_vm1, %v1069_v44, %v1070_v51 }
  0x52   : > { %4976 = vmatmul.mubr.f32.gmra.mxu0 %v6048_v60  ;;  %5030 = vmatpush3.msra.mxu1 %v1360_v58  ;;  %v4334_v58 = vld [vmem:[%s7849_s3 + $0x278] sm:$0xff]  ;;  %8067 = vst [vmem:[#allocation33_spill] sm:$0xff] %v8066_v21  ;;  %8070 = vst [vmem:[#allocation34_spill] sm:$0xff] %v6162_v25  ;;  %v882_v21 = vrot.slane %v5977_v0, 7 }
  0x53   : > { %5109 = vmatprep.subr.mxu0 %v4290_v63  ;;  %5031 = vmatprep.subr.mxu1 %v1359_v1  ;;  %vm6151_vm4 = vcmp.ne.s32.totalorder %v477_v47, 0  ;;  %v6184_v47 = vsel %vm7910_vm1, %v1070_v51, %v1071_v5 }
  0x54   : > { %5110 = vmatpush3.msra.mxu0 %v4290_v63  ;;  %5002 = vmatprep.mubr.f32.mxu1 %v6060_v3  ;;  %v392_v63 = vadd.f32 %v5798_v16, %v353_v50  ;;  %v6142_v16 = vsel %vm7910_vm1, %v7855_v42, %v1069_v44  ;;  %8071 = vst [vmem:[#allocation35_spill] sm:$0xff] %v6184_v47  ;;  %v8072_v50 = vmov 0  ;;  %v434_v42 = vadd.s32 56, %v6064_v6 }
  0x55   : > { %5032 = vmatpush3.msra.mxu1 %v1359_v1  ;;  %5111 = vmatprep.subr.mxu0 %v4289_v7  ;;  %v6133_v1 = vsel %vm7923_vm0, %v875_v33, %v876_v36  ;;  %8064 = vst [vmem:[#allocation32_spill] sm:$0xff] %v6142_v16  ;;  %v4333_v33 = vld [vmem:[%s7849_s3 + $0x270] sm:$0xff]  ;;  %v6180_v36 = vsel %vm7923_vm0, %v877_v54, %v878_v4  ;;  %v4316_v54 = vld [vmem:[%s7849_s3 + $0x1e8] sm:$0xff] }
  0x56   : > { %4978 = vmatprep.mubr.f32.mxu0 %v6070_v10  ;;  %5003 = vmatmul.mubr.f32.gmra.mxu1 %v6072_v13 }
  0x57   : > { %5033 = vmatprep.subr.mxu1 %v1358_v14  ;;  %5112 = vmatpush3.msra.mxu0 %v4289_v7  ;;  %v484_v7 = vand.u32 15, %v430_v38  ;;  %v433_v38 = vadd.s32 48, %v6064_v6 }
  0x58   : > { %4979 = vmatmul.mubr.f32.gmra.mxu0 %v6078_v15  ;;  %5034 = vmatpush3.msra.mxu1 %v1358_v14  ;;  %v4317_v14 = vld [vmem:[%s7849_s3 + $0x1f0] sm:$0xff] }
  0x59   : > { %5113 = vmatprep.subr.mxu0 %v4288_v22  ;;  %5035 = vmatprep.subr.mxu1 %v1357_v23  ;;  %vm6186_vm5 = vcmp.ne.s32.totalorder %v484_v7, 15 }
  0x5a   : > { %5114 = vmatpush3.msra.mxu0 %v4288_v22  ;;  %5036 = vmatpush3.msra.mxu1 %v1357_v23  ;;  %v6155_v23 = vmax.f32 %v392_v63, 0.0  ;;  %v8073_v50 = vsel %vm6186_vm5, 4294967295, %v8072_v50  ;;  %v498_v63 = vand.u32 15, %v432_v62  ;;  %v4397_v22 = vld [vmem:[%s7849_s3 + $0x470] sm:$0xff] }
  0x5b   : > { %5037 = vmatprep.mubr.f32.mxu1 %v7853_v43  ;;  %5115 = vmatprep.subr.mxu0 %v4287_v27  ;;  %8074 = vst [vmem:[#allocation36_spill] sm:$0xff] %v8073_v50  ;;  %v883_v50 = vrot.slane %v6001_v19, 7 }
  0x5c   : > { %5038 = vmatmul.mubr.f32.vlgmr.msra.gmra.mxu1 %v7853_v43  ;;  %5116 = vmatpush3.msra.mxu0 %v4287_v27  ;;  %v1072_v27 = vrot.slane %v5929_v30, 1  ;;  %v905_v44 = vrot.slane %v6155_v23, 7  ;;  %vm6249_vm7 = vcmp.ne.s32.totalorder %v498_v63, 15  ;;  %v436_v63 = vadd.s32 72, %v6064_v6 }
  0x5d   : > { %5117 = vmatprep.mubr.f32.mxu0 %v7853_v43  ;;  %5165 = vmatprep.subr.mxu1 %v4318_v41 }
  0x5e   : > { %5118 = vmatmul.mubr.f32.vlgmr.msra.gmra.mxu0 %v7853_v43  ;;  %5166 = vmatpush3.msra.mxu1 %v4318_v41  ;;  %v7856_v41 = vrot.slane %v6072_v13, 7  ;;  %v6208_v7 = vsel %vm7923_vm0, %v905_v44, %v906_v34  ;;  %v6215_v62 = vsel %vm7910_vm1, %v1071_v5, %v1072_v27  ;;  %v1074_v43 = vrot.slane %v5965_v56, 1  ;;  %v4332_v34 = vld [vmem:[%s7849_s3 + $0x268] sm:$0xff] }
  0x5f   : > { %5245 = vmatprep.subr.mxu0 %v4334_v58  ;;  %5040 = vmatprep.mubr.msk.f32.mxu1 %vm6118_vm2, %v6126_v61  ;;  %8076 = vst [vmem:[#allocation38_spill] sm:$0xff] %v6208_v7  ;;  %8077 = vst [vmem:[#allocation39_spill] sm:$0xff] %v6215_v62  ;;  %v505_v5 = vand.u32 15, %v433_v38  ;;  %v4315_v38 = vld [vmem:[%s7849_s3 + $0x1e0] sm:$0xff]  ;;  %v884_v7 = vrot.slane %v6014_v28, 7 }
  0x60   : > { %5246 = vmatpush3.msra.mxu0 %v4334_v58  ;;  %5041 = vmatmul.mubr.f32.gmra.mxu1 %v6133_v1  ;;  %v1073_v58 = vrot.slane %v5941_v39, 1  ;;  %v6202_v51 = vsel %vm7923_vm0, %v7856_v41, %v905_v44  ;;  %v6229_v44 = vsel %vm7923_vm0, %v878_v4, %v879_v37  ;;  %v435_v41 = vadd.s32 64, %v6064_v6 }
  0x61   : > { %5120 = vmatprep.mubr.f32.mxu0 %v6142_v16  ;;  %5167 = vmatprep.subr.mxu1 %v4317_v14  ;;  %8075 = vst [vmem:[#allocation37_spill] sm:$0xff] %v6202_v51  ;;  %vm6268_vm8 = vcmp.ne.s32.totalorder %v505_v5, 0  ;;  %v4395_v16 = vld [vmem:[%s7849_s3 + $0x460] sm:$0xff]  ;;  %v4394_v51 = vld [vmem:[%s7849_s3 + $0x458] sm:$0xff] }
  0x62   : > { %5121 = vmatmul.mubr.msk.f32.gmra.mxu0 %vm6147_vm3, %v6162_v25  ;;  %5168 = vmatpush3.msra.mxu1 %v4317_v14  ;;  %v6244_v4 = vsel %vm7910_vm1, %v1072_v27, %v1073_v58  ;;  %v1076_v25 = vrot.slane %v6001_v19, 1  ;;  %v6260_v27 = vsel %vm7910_vm1, %v1073_v58, %v1074_v43  ;;  %v6274_v58 = vsel %vm7923_vm0, %v880_v55, %v881_v29  ;;  %v4396_v14 = vld [vmem:[%s7849_s3 + $0x468] sm:$0xff] }
  0x63   : > { %5247 = vmatprep.subr.mxu0 %v4333_v33  ;;  %5043 = vmatprep.mubr.msk.f32.mxu1 %vm6151_vm4, %v6166_v26  ;;  %8080 = vst [vmem:[#allocation40_spill] sm:$0xff] %v6244_v4  ;;  %8084 = vst [vmem:[#allocation42_spill] sm:$0xff] %v6260_v27  ;;  %v888_v19 = vrot.slane %v6078_v15, 7 }
  0x64   : > { %5248 = vmatpush3.msra.mxu0 %v4333_v33  ;;  %5044 = vmatmul.mubr.f32.gmra.mxu1 %v6180_v36  ;;  %v6236_v33 = vsel %vm7923_vm0, %v879_v37, %v880_v55  ;;  %v1075_v37 = vrot.slane %v5977_v0, 1 }
  0x65   : > { %5123 = vmatprep.mubr.f32.mxu0 %v6184_v47  ;;  %5169 = vmatprep.subr.mxu1 %v4316_v54  ;;  %v8081_v47 = vmov 0 }
  0x66   : > { %5124 = vmatmul.mubr.msk.f32.gmra.mxu0 %vm6186_vm5, %v6215_v62  ;;  %5170 = vmatpush3.msra.mxu1 %v4316_v54  ;;  %v8082_v47 = vsel %vm6249_vm7, 4294967295, %v8081_v47  ;;  %v512_v54 = vand.u32 15, %v434_v42  ;;  %v4331_v62 = vld [vmem:[%s7849_s3 + $0x260] sm:$0xff]  ;;  %v519_v42 = vand.u32 15, %v435_v41  ;;  %v6288_v55 = vsel %vm7910_vm1, %v1074_v43, %v1075_v37  ;;  %v4314_v41 = vld [vmem:[%s7849_s3 + $0x1d8] sm:$0xff] }
  0x67   : > { %8083 = vst [vmem:[#allocation41_spill] sm:$0xff] %v8082_v47  ;;  %5249 = vmatprep.subr.mxu0 %v4332_v34  ;;  %5046 = vmatprep.mubr.msk.f32.mxu1 %vm6217_vm6, %v6229_v44  ;;  %8087 = vst [vmem:[#allocation43_spill] sm:$0xff] %v6288_v55  ;;  %v6295_v5 = vsel %vm7910_vm1, %v1075_v37, %v1076_v25  ;;  %v8089_v43 = vmov 0  ;;  %v526_v47 = vand.u32 15, %v436_v63  ;;  %v438_v37 = vadd.s32 88, %v6064_v6 }
  0x68   : > { %5250 = vmatpush3.msra.mxu0 %v4332_v34  ;;  %5047 = vmatmul.mubr.f32.gmra.mxu1 %v6236_v33  ;;  %v6280_v34 = vsel %vm7923_vm0, %v881_v29, %v882_v21  ;;  %8088 = vst [vmem:[#allocation44_spill] sm:$0xff] %v6295_v5  ;;  %v1077_v29 = vrot.slane %v6014_v28, 1  ;;  %vm6302_vm9 = vcmp.ne.s32.totalorder %v512_v54, 15  ;;  %vm6315_vm10 = vcmp.ne.s32.totalorder %v519_v42, 0  ;;  %v4313_v42 = vld [vmem:[%s7849_s3 + $0x1d0] sm:$0xff] }
  0x69   : > { %5126 = vmatprep.mubr.f32.mxu0 %v6244_v4  ;;  %5171 = vmatprep.subr.mxu1 %v4315_v38  ;;  %v1078_v4 = vrot.slane %v6033_v45, 1  ;;  %v8090_v43 = vsel %vm6302_vm9, 4294967295, %v8089_v43  ;;  %v533_v54 = vand.u32 15, %v437_v18  ;;  %v885_v28 = vrot.slane %v6033_v45, 7 }
  0x6a   : > { %5127 = vmatmul.mubr.msk.f32.gmra.mxu0 %vm6249_vm7, %v6260_v27  ;;  %5172 = vmatpush3.msra.mxu1 %v4315_v38  ;;  %8091 = vst [vmem:[#allocation45_spill] sm:$0xff] %v8090_v43  ;;  %v6308_v38 = vsel %vm7923_vm0, %v882_v21, %v883_v50  ;;  %v4330_v27 = vld [vmem:[%s7849_s3 + $0x258] sm:$0xff]  ;;  %v439_v21 = vadd.s32 96, %v6064_v6  ;;  %v886_v63 = vrot.slane %v6048_v60, 7  ;;  %v6332_v18 = vsel %vm7910_vm1, %v1076_v25, %v1077_v29 }
  0x6b   : > { %5251 = vmatprep.subr.mxu0 %v4331_v62  ;;  %5049 = vmatprep.mubr.msk.f32.mxu1 %vm6268_vm8, %v6274_v58  ;;  %8094 = vst [vmem:[#allocation46_spill] sm:$0xff] %v6332_v18  ;;  %v1080_v45 = vrot.slane %v6070_v10, 1  ;;  %vm6346_vm11 = vcmp.ne.s32.totalorder %v526_v47, 15  ;;  %v8096_v25 = vmov 0  ;;  %v887_v43 = vrot.slane %v6070_v10, 7 }
  0x6c   : > { %5252 = vmatpush3.msra.mxu0 %v4331_v62  ;;  %5050 = vmatmul.mubr.f32.gmra.mxu1 %v6280_v34  ;;  %v6324_v62 = vsel %vm7923_vm0, %v883_v50, %v884_v7  ;;  %v1079_v50 = vrot.slane %v6048_v60, 1  ;;  %v8097_v25 = vsel %vm6346_vm11, 4294967295, %v8096_v25  ;;  %vm6356_vm12 = vcmp.ne.s32.totalorder %v533_v54, 0  ;;  %v4312_v54 = vld [vmem:[%s7849_s3 + $0x1c8] sm:$0xff] }
  0x6d   : > { %5129 = vmatprep.mubr.f32.mxu0 %v6288_v55  ;;  %5173 = vmatprep.subr.mxu1 %v4314_v41  ;;  %v6339_v55 = vsel %vm7910_vm1, %v1077_v29, %v1078_v4  ;;  %8098 = vst [vmem:[#allocation48_spill] sm:$0xff] %v8097_v25  ;;  %v4329_v29 = vld [vmem:[%s7849_s3 + $0x250] sm:$0xff]  ;;  %v8099_v60 = vmov 0  ;;  %v6362_v47 = vsel %vm7923_vm0, %v884_v7, %v885_v28  ;;  %v441_v10 = vadd.s32 112, %v6064_v6 }
  0x6e   : > { %5130 = vmatmul.mubr.msk.f32.gmra.mxu0 %vm6302_vm9, %v6295_v5  ;;  %5174 = vmatpush3.msra.mxu1 %v4314_v41  ;;  %8095 = vst [vmem:[#allocation47_spill] sm:$0xff] %v6339_v55  ;;  %v540_v41 = vand.u32 15, %v438_v37  ;;  %v440_v5 = vadd.s32 104, %v6064_v6  ;;  %v8100_v60 = vsel %vm6356_vm12, 4294967295, %v8099_v60  ;;  %v547_v37 = vand.u32 15, %v439_v21 }
  0x6f   : > { %5253 = vmatprep.subr.mxu0 %v4330_v27  ;;  %5052 = vmatprep.mubr.msk.f32.mxu1 %vm6315_vm10, %v6308_v38  ;;  %8101 = vst [vmem:[#allocation49_spill] sm:$0xff] %v8100_v60  ;;  %v6376_v7 = vsel %vm7910_vm1, %v1078_v4, %v1079_v50  ;;  %v6383_v21 = vsel %vm7910_vm1, %v1079_v50, %v1080_v45  ;;  %v8104_v4 = vmov 0  ;;  %v442_v50 = vadd.s32 120, %v6064_v6 }
  0x70   : > { %5254 = vmatpush3.msra.mxu0 %v4330_v27  ;;  %5053 = vmatmul.mubr.f32.gmra.mxu1 %v6324_v62  ;;  %v6368_v27 = vsel %vm7923_vm0, %v885_v28, %v886_v63  ;;  %8102 = vst [vmem:[#allocation50_spill] sm:$0xff] %v6376_v7  ;;  %8103 = vst [vmem:[#allocation51_spill] sm:$0xff] %v6383_v21  ;;  %v1081_v28 = vrot.slane %v6078_v15, 1  ;;  %vm6390_vm13 = vcmp.ne.s32.totalorder %v540_v41, 15  ;;  %v554_v25 = vand.u32 15, %v440_v5  ;;  %v4392_v15 = vld [vmem:[%s7849_s3 + $0x448] sm:$0xff] }
  0x71   : > { %5132 = vmatprep.mubr.f32.mxu0 %v6332_v18  ;;  %5175 = vmatprep.subr.mxu1 %v4313_v42  ;;  %v1082_v18 = vrot.slane %v5822_v31, 1  ;;  %v8105_v4 = vsel %vm6390_vm13, 4294967295, %v8104_v4  ;;  %vm6403_vm14 = vcmp.ne.s32.totalorder %v547_v37, 0  ;;  %v561_v41 = vand.u32 15, %v441_v10  ;;  %v4311_v37 = vld [vmem:[%s7849_s3 + $0x1c0] sm:$0xff] }
  0x72   : > { %5133 = vmatmul.mubr.msk.f32.gmra.mxu0 %vm6346_vm11, %v6339_v55  ;;  %5176 = vmatpush3.msra.mxu1 %v4313_v42  ;;  %8106 = vst [vmem:[#allocation52_spill] sm:$0xff] %v8105_v4  ;;  %v6396_v42 = vsel %vm7923_vm0, %v886_v63, %v887_v43  ;;  %v4328_v55 = vld [vmem:[%s7849_s3 + $0x248] sm:$0xff]  ;;  %v889_v60 = vrot.slane %v5822_v31, 7  ;;  %v443_v63 = vadd.s32 128, %v6064_v6  ;;  %v6412_v5 = vsel %vm7923_vm0, %v887_v43, %v888_v19 }
  0x73   : > { %5255 = vmatprep.subr.mxu0 %v4329_v29  ;;  %5055 = vmatprep.mubr.msk.f32.mxu1 %vm6356_vm12, %v6362_v47  ;;  %8109 = vst [vmem:[#allocation53_spill] sm:$0xff] %v6412_v5  ;;  %v6420_v10 = vsel %vm7910_vm1, %v1080_v45, %v1081_v28  ;;  %v1083_v43 = vrot.slane %v5827_v35, 1  ;;  %v1084_v31 = vrot.slane %v5846_v46, 1  ;;  %vm6434_vm15 = vcmp.ne.s32.totalorder %v554_v25, 15 }
  0x74   : > { %5256 = vmatpush3.msra.mxu0 %v4329_v29  ;;  %5056 = vmatmul.mubr.f32.gmra.mxu1 %v6368_v27  ;;  %v890_v29 = vrot.slane %v5827_v35, 7  ;;  %8110 = vst [vmem:[#allocation54_spill] sm:$0xff] %v6420_v10  ;;  %v8112_v45 = vmov 0  ;;  %v891_v4 = vrot.slane %v5846_v46, 7  ;;  %v8115_v35 = vmov 0 }
  0x75   : > { %5135 = vmatprep.mubr.f32.mxu0 %v6376_v7  ;;  %5177 = vmatprep.subr.mxu1 %v4312_v54  ;;  %v6427_v7 = vsel %vm7910_vm1, %v1081_v28, %v1082_v18  ;;  %v8113_v45 = vsel %vm6434_vm15, 4294967295, %v8112_v45  ;;  %v4327_v28 = vld [vmem:[%s7849_s3 + $0x240] sm:$0xff]  ;;  %vm6444_vm1 = vcmp.ne.s32.totalorder %v561_v41, 0  ;;  %v6450_v25 = vsel %vm7923_vm0, %v888_v19, %v889_v60  ;;  %v4310_v41 = vld [vmem:[%s7849_s3 + $0x1b8] sm:$0xff] }
  0x76   : > { %5136 = vmatmul.mubr.msk.f32.gmra.mxu0 %vm6390_vm13, %v6383_v21  ;;  %5178 = vmatpush3.msra.mxu1 %v4312_v54  ;;  %8111 = vst [vmem:[#allocation55_spill] sm:$0xff] %v6427_v7  ;;  %8114 = vst [vmem:[#allocation56_spill] sm:$0xff] %v8113_v45  ;;  %v568_v54 = vand.u32 15, %v442_v50  ;;  %v444_v21 = vadd.s32 136, %v6064_v6  ;;  %v8116_v35 = vsel %vm6444_vm1, 4294967295, %v8115_v35  ;;  %v575_v50 = vand.u32 15, %v443_v63 }
  0x77   : > { %5257 = vmatprep.subr.mxu0 %v4328_v55  ;;  %5058 = vmatprep.mubr.msk.f32.mxu1 %vm6403_vm14, %v6396_v42  ;;  %8117 = vst [vmem:[#allocation57_spill] sm:$0xff] %v8116_v35  ;;  %v445_v46 = vadd.s32 144, %v6064_v6  ;;  %vm8118_vm13 = vcmp.lt.s32.totalorder %v6064_v6, 7  ;;  %v893_v35 = vrot.slane %v5883_v2, 7 }
  0x78   : > { %5258 = vmatpush3.msra.mxu0 %v4328_v55  ;;  %5059 = vmatmul.mubr.f32.gmra.mxu1 %v6412_v5  ;;  %v6456_v55 = vsel %vm7923_vm0, %v889_v60, %v890_v29  ;;  %v892_v5 = vrot.slane %v5859_v53, 7  ;;  %v6464_v19 = vsel %vm8118_vm13, %v1082_v18, %v1083_v43  ;;  %vm8120_vm11 = vmmov %vm8118_vm13  ;;  %v1085_v60 = vrot.slane %v5859_v53, 1  ;;  %v4390_v53 = vld [vmem:[%s7849_s3 + $0x438] sm:$0xff] }
  0x79   : > { %5138 = vmatprep.mubr.f32.mxu0 %v6420_v10  ;;  %5179 = vmatprep.subr.mxu1 %v4311_v37  ;;  %8119 = vst [vmem:[#allocation58_spill] sm:$0xff] %v6464_v19  ;;  %v6471_v63 = vsel %vm8120_vm11, %v1083_v43, %v1084_v31  ;;  %v1086_v10 = vrot.slane %v5883_v2, 1  ;;  %vm6478_vm0 = vcmp.ne.s32.totalorder %v568_v54, 15  ;;  %v8122_v18 = vmov 0 }
  0x7a   : > { %5139 = vmatmul.mubr.msk.f32.gmra.mxu0 %vm6434_vm15, %v6427_v7  ;;  %5180 = vmatpush3.msra.mxu1 %v4311_v37  ;;  %8121 = vst [vmem:[#allocation59_spill] sm:$0xff] %v6471_v63  ;;  %v8123_v18 = vsel %vm6478_vm0, 4294967295, %v8122_v18  ;;  %vm8125_vm13 = vcmp.lt.s32.totalorder %v6064_v6, 1  ;;  %v582_v45 = vand.u32 15, %v444_v21  ;;  %v446_v43 = vadd.s32 152, %v6064_v6  ;;  %v4326_v7 = vld [vmem:[%s7849_s3 + $0x238] sm:$0xff] }
  0x7b   : > { %5259 = vmatprep.subr.mxu0 %v4327_v28  ;;  %5061 = vmatprep.mubr.msk.f32.mxu1 %vm6444_vm1, %v6450_v25  ;;  %8124 = vst [vmem:[#allocation60_spill] sm:$0xff] %v8123_v18  ;;  %v6484_v37 = vsel %vm8125_vm13, %v890_v29, %v891_v4  ;;  %vm6491_vm11 = vcmp.ne.s32.totalorder %v575_v50, 0  ;;  %v589_v54 = vand.u32 15, %v445_v46  ;;  %v447_v29 = vadd.s32 160, %v6064_v6  ;;  %v4309_v50 = vld [vmem:[%s7849_s3 + $0x1b0] sm:$0xff] }
  0x7c   : > { %5260 = vmatpush3.msra.mxu0 %v4327_v28  ;;  %5062 = vmatmul.mubr.f32.gmra.mxu1 %v6456_v55  ;;  %v6500_v21 = vsel %vm8125_vm13, %v891_v4, %v892_v5  ;;  %v894_v28 = vrot.slane %v5895_v9, 7  ;;  %vm8129_vm15 = vcmp.lt.s32.totalorder %v6064_v6, 7  ;;  %v1087_v4 = vrot.slane %v5895_v9, 1 }
  0x7d   : > { %5141 = vmatprep.mubr.f32.mxu0 %v6464_v19  ;;  %5181 = vmatprep.subr.mxu1 %v4310_v41  ;;  %8128 = vst [vmem:[#allocation61_spill] sm:$0xff] %v6500_v21  ;;  %v6508_v46 = vsel %vm8129_vm15, %v1084_v31, %v1085_v60  ;;  %vm8131_vm9 = vmmov %vm8129_vm15  ;;  %v1088_v2 = vrot.slane %v5919_v24, 1  ;;  %vm6522_vm13 = vcmp.ne.s32.totalorder %v582_v45, 15  ;;  %v8133_v31 = vmov 0 }
  0x7e   : > { %5142 = vmatmul.mubr.msk.f32.gmra.mxu0 %vm6478_vm0, %v6471_v63  ;;  %5182 = vmatpush3.msra.mxu1 %v4310_v41  ;;  %8130 = vst [vmem:[#allocation62_spill] sm:$0xff] %v6508_v46  ;;  %v6515_v19 = vsel %vm8131_vm9, %v1085_v60, %v1086_v10  ;;  %v8134_v31 = vsel %vm6522_vm13, 4294967295, %v8133_v31  ;;  %v596_v41 = vand.u32 15, %v446_v43  ;;  %v895_v18 = vrot.slane %v5919_v24, 7  ;;  %v4325_v60 = vld [vmem:[%s7849_s3 + $0x230] sm:$0xff] }
  0x7f   : > { %8132 = vst [vmem:[#allocation63_spill] sm:$0xff] %v6515_v19  ;;  %5261 = vmatprep.subr.mxu0 %v4326_v7  ;;  %5064 = vmatprep.mubr.msk.f32.mxu1 %vm6491_vm11, %v6484_v37  ;;  %8135 = vst [vmem:[#allocation64_spill] sm:$0xff] %v8134_v31  ;;  %v448_v63 = vadd.s32 168, %v6064_v6  ;;  %vm6532_vm9 = vcmp.ne.s32.totalorder %v589_v54, 0  ;;  %v8136_v9 = vmov 0  ;;  %vm8139_vm15 = vcmp.lt.s32.totalorder %v6064_v6, 1 }
  0x80   : > { %5262 = vmatpush3.msra.mxu0 %v4326_v7  ;;  %5065 = vmatmul.mubr.f32.gmra.mxu1 %v6500_v21  ;;  %v8137_v9 = vsel %vm6532_vm9, 4294967295, %v8136_v9  ;;  %v6538_v45 = vsel %vm8139_vm15, %v892_v5, %v893_v35  ;;  %v603_v43 = vand.u32 15, %v447_v29  ;;  %v449_v24 = vadd.s32 176, %v6064_v6  ;;  %vm8140_vm0 = vmmov %vm8139_vm15  ;;  %v4308_v54 = vld [vmem:[%s7849_s3 + $0x1a8] sm:$0xff] }
  0x81   : > { %8138 = vst [vmem:[#allocation65_spill] sm:$0xff] %v8137_v9  ;;  %5144 = vmatprep.mubr.f32.mxu0 %v6508_v46  ;;  %5183 = vmatprep.subr.mxu1 %v4309_v50  ;;  %v6544_v7 = vsel %vm8140_vm0, %v893_v35, %v894_v28  ;;  %v896_v21 = vrot.slane %v5931_v32, 7  ;;  %vm8141_vm15 = vcmp.lt.s32.totalorder %v6064_v6, 7  ;;  %v1089_v35 = vrot.slane %v5931_v32, 1  ;;  %v4388_v32 = vld [vmem:[%s7849_s3 + $0x428] sm:$0xff] }
  0x82   : > { %5145 = vmatmul.mubr.msk.f32.gmra.mxu0 %vm6522_vm13, %v6515_v19  ;;  %5184 = vmatpush3.msra.mxu1 %v4309_v50  ;;  %v6552_v5 = vsel %vm8141_vm15, %v1086_v10, %v1087_v4  ;;  %vm8143_vm7 = vmmov %vm8141_vm15  ;;  %v1090_v46 = vrot.slane %v5955_v48, 1  ;;  %vm6566_vm0 = vcmp.ne.s32.totalorder %v596_v41, 15  ;;  %v8145_v10 = vmov 0  ;;  %v4324_v19 = vld [vmem:[%s7849_s3 + $0x228] sm:$0xff] }
  0x83   : > { %8142 = vst [vmem:[#allocation66_spill] sm:$0xff] %v6552_v5  ;;  %v6559_v29 = vsel %vm8143_vm7, %v1087_v4, %v1088_v2  ;;  %5263 = vmatprep.subr.mxu0 %v4325_v60  ;;  %5067 = vmatprep.mubr.msk.f32.mxu1 %vm6532_vm9, %v6538_v45  ;;  %v8146_v10 = vsel %vm6566_vm0, 4294967295, %v8145_v10  ;;  %vm8148_vm15 = vcmp.lt.s32.totalorder %v6064_v6, 1  ;;  %v610_v31 = vand.u32 15, %v448_v63 }
  0x84   : > { %8144 = vst [vmem:[#allocation67_spill] sm:$0xff] %v6559_v29  ;;  %8147 = vst [vmem:[#allocation68_spill] sm:$0xff] %v8146_v10  ;;  %v6572_v50 = vsel %vm8148_vm15, %v894_v28, %v895_v18  ;;  %v450_v4 = vadd.s32 184, %v6064_v6  ;;  %5264 = vmatpush3.msra.mxu0 %v4325_v60  ;;  %5068 = vmatmul.mubr.f32.gmra.mxu1 %v6544_v7  ;;  %vm6579_vm7 = vcmp.ne.s32.totalorder %v603_v43, 0  ;;  %v617_v41 = vand.u32 15, %v449_v24  ;;  %v4307_v43 = vld [vmem:[%s7849_s3 + $0x1a0] sm:$0xff] }
  0x85   : > { %v897_v9 = vrot.slane %v5955_v48, 7  ;;  %v451_v28 = vadd.s32 192, %v6064_v6  ;;  %5147 = vmatprep.mubr.f32.mxu0 %v6552_v5  ;;  %5185 = vmatprep.subr.mxu1 %v4308_v54  ;;  %v6588_v63 = vsel %vm8148_vm15, %v895_v18, %v896_v21  ;;  %v898_v60 = vrot.slane %v5967_v57, 7 }
  0x86   : > { %8151 = vst [vmem:[#allocation69_spill] sm:$0xff] %v6588_v63  ;;  %5148 = vmatmul.mubr.msk.f32.gmra.mxu0 %vm6566_vm0, %v6559_v29  ;;  %5186 = vmatpush3.msra.mxu1 %v4308_v54  ;;  %vm8152_vm13 = vcmp.lt.s32.totalorder %v6064_v6, 7  ;;  %v1091_v18 = vrot.slane %v5967_v57, 1  ;;  %v1092_v48 = vrot.slane %v5992_v12, 1  ;;  %vm6610_vm15 = vcmp.ne.s32.totalorder %v610_v31, 15 }
  0x87   : > { %v6596_v24 = vsel %vm8152_vm13, %v1088_v2, %v1089_v35  ;;  %vm8154_vm5 = vmmov %vm8152_vm13  ;;  %5265 = vmatprep.subr.mxu0 %v4324_v19  ;;  %5070 = vmatprep.mubr.msk.f32.mxu1 %vm6579_vm7, %v6572_v50  ;;  %v8156_v2 = vmov 0  ;;  %v624_v54 = vand.u32 15, %v450_v4  ;;  %v899_v10 = vrot.slane %v5992_v12, 7 }
  0x88   : > { %8153 = vst [vmem:[#allocation70_spill] sm:$0xff] %v6596_v24  ;;  %v6603_v5 = vsel %vm8154_vm5, %v1089_v35, %v1090_v46  ;;  %v8157_v2 = vsel %vm6610_vm15, 4294967295, %v8156_v2  ;;  %v452_v29 = vadd.s32 200, %v6064_v6  ;;  %5266 = vmatpush3.msra.mxu0 %v4324_v19  ;;  %5071 = vmatmul.mubr.f32.gmra.mxu1 %v6588_v63  ;;  %v4323_v35 = vld [vmem:[%s7849_s3 + $0x220] sm:$0xff]  ;;  %vm6620_vm5 = vcmp.ne.s32.totalorder %v617_v41, 0  ;;  %v4306_v41 = vld [vmem:[%s7849_s3 + $0x198] sm:$0xff] }
  0x89   : > { %8155 = vst [vmem:[#allocation71_spill] sm:$0xff] %v6603_v5  ;;  %8158 = vst [vmem:[#allocation72_spill] sm:$0xff] %v8157_v2  ;;  %v8159_v57 = vmov 0  ;;  %vm8162_vm13 = vcmp.lt.s32.totalorder %v6064_v6, 1  ;;  %v631_v4 = vand.u32 15, %v451_v28  ;;  %v453_v12 = vadd.s32 208, %v6064_v6  ;;  %5150 = vmatprep.mubr.f32.mxu0 %v6596_v24  ;;  %5187 = vmatprep.subr.mxu1 %v4307_v43 }
  0x8a   : > { %v8160_v57 = vsel %vm6620_vm5, 4294967295, %v8159_v57  ;;  %v6626_v31 = vsel %vm8162_vm13, %v896_v21, %v897_v9  ;;  %vm8163_vm0 = vmmov %vm8162_vm13  ;;  %v900_v63 = vrot.slane %v6003_v20, 7  ;;  %5151 = vmatmul.mubr.msk.f32.gmra.mxu0 %vm6610_vm15, %v6603_v5  ;;  %5188 = vmatpush3.msra.mxu1 %v4307_v43  ;;  %vm8164_vm13 = vcmp.lt.s32.totalorder %v6064_v6, 7  ;;  %v4322_v5 = vld [vmem:[%s7849_s3 + $0x218] sm:$0xff] }
  0x8b   : > { %8161 = vst [vmem:[#allocation73_spill] sm:$0xff] %v8160_v57  ;;  %v6632_v19 = vsel %vm8163_vm0, %v897_v9, %v898_v60  ;;  %v6640_v21 = vsel %vm8164_vm13, %v1090_v46, %v1091_v18  ;;  %vm8166_vm3 = vmmov %vm8164_vm13  ;;  %v1093_v9 = vrot.slane %v6003_v20, 1  ;;  %v1094_v24 = vrot.slane %v6028_v40, 1  ;;  %5267 = vmatprep.subr.mxu0 %v4323_v35  ;;  %5073 = vmatprep.mubr.msk.f32.mxu1 %vm6620_vm5, %v6626_v31 }
  0x8c   : > { %8165 = vst [vmem:[#allocation74_spill] sm:$0xff] %v6640_v21  ;;  %v6647_v28 = vsel %vm8166_vm3, %v1091_v18, %v1092_v48  ;;  %vm6654_vm0 = vcmp.ne.s32.totalorder %v624_v54, 15  ;;  %v8168_v46 = vmov 0  ;;  %vm8171_vm13 = vcmp.lt.s32.totalorder %v6064_v6, 1  ;;  %5268 = vmatpush3.msra.mxu0 %v4323_v35  ;;  %5074 = vmatmul.mubr.f32.gmra.mxu1 %v6632_v19 }
  0x8d   : > { %8167 = vst [vmem:[#allocation75_spill] sm:$0xff] %v6647_v28  ;;  %v8169_v46 = vsel %vm6654_vm0, 4294967295, %v8168_v46  ;;  %v6660_v43 = vsel %vm8171_vm13, %v898_v60, %v899_v10  ;;  %v638_v2 = vand.u32 15, %v452_v29  ;;  %v454_v18 = vadd.s32 216, %v6064_v6  ;;  %5153 = vmatprep.mubr.f32.mxu0 %v6640_v21  ;;  %5189 = vmatprep.subr.mxu1 %v4306_v41 }
  0x8e   : > { %8170 = vst [vmem:[#allocation76_spill] sm:$0xff] %v8169_v46  ;;  %vm6667_vm3 = vcmp.ne.s32.totalorder %v631_v4, 0  ;;  %v8172_v20 = vmov 0  ;;  %v645_v54 = vand.u32 15, %v453_v12  ;;  %v901_v57 = vrot.slane %v6028_v40, 7  ;;  %5154 = vmatmul.mubr.msk.f32.gmra.mxu0 %vm6654_vm0, %v6647_v28  ;;  %5190 = vmatpush3.msra.mxu1 %v4306_v41  ;;  %v4305_v4 = vld [vmem:[%s7849_s3 + $0x190] sm:$0xff] }
  0x8f   : > { %v8173_v20 = vsel %vm6667_vm3, 4294967295, %v8172_v20  ;;  %v455_v60 = vadd.s32 224, %v6064_v6  ;;  %v6676_v29 = vsel %vm8171_vm13, %v899_v10, %v900_v63  ;;  %v902_v35 = vrot.slane %v6039_v49, 7  ;;  %5269 = vmatprep.subr.mxu0 %v4322_v5  ;;  %5076 = vmatprep.mubr.msk.f32.mxu1 %vm6667_vm3, %v6660_v43 }
  0x90   : > { %vm8174_vm15 = vcmp.lt.s32.totalorder %v6064_v6, 7  ;;  %v1095_v10 = vrot.slane %v6039_v49, 1  ;;  %vm6697_vm13 = vcmp.ne.s32.totalorder %v638_v2, 15  ;;  %v8178_v41 = vmov 0  ;;  %5270 = vmatpush3.msra.mxu0 %v4322_v5  ;;  %5077 = vmatmul.mubr.f32.gmra.mxu1 %v6676_v29 }
  0x91   : > { %v6684_v12 = vsel %vm8174_vm15, %v1092_v48, %v1093_v9  ;;  %vm8176_vm5 = vmmov %vm8174_vm15  ;;  %v8179_v41 = vsel %vm6697_vm13, 4294967295, %v8178_v41  ;;  %v652_v48 = vand.u32 15, %v454_v18  ;;  %v1096_v46 = vrot.slane %v6060_v3, 1  ;;  %5191 = vmatprep.subr.mxu1 %v4305_v4 }
  0x92   : > { %8175 = vst [vmem:[#allocation77_spill] sm:$0xff] %v6684_v12  ;;  %v6691_v21 = vsel %vm8176_vm5, %v1093_v9, %v1094_v24  ;;  %8180 = vst [vmem:[#allocation79_spill] sm:$0xff] %v8179_v41  ;;  %v456_v28 = vadd.s32 232, %v6064_v6  ;;  %v4321_v9 = vld [vmem:[%s7849_s3 + $0x210] sm:$0xff]  ;;  %vm6707_vm15 = vcmp.ne.s32.totalorder %v645_v54, 0  ;;  %v8181_v49 = vmov 0  ;;  %5156 = vmatprep.mubr.f32.mxu0 %v6684_v12  ;;  %5192 = vmatpush3.msra.mxu1 %v4305_v4 }
  0x93   : > { %8177 = vst [vmem:[#allocation78_spill] sm:$0xff] %v6691_v21  ;;  %v8182_v49 = vsel %vm6707_vm15, 4294967295, %v8181_v49  ;;  %vm8183_vm5 = vcmp.lt.s32.totalorder %v6064_v6, 1  ;;  %v659_v18 = vand.u32 15, %v455_v60  ;;  %v903_v40 = vrot.slane %v6060_v3, 7  ;;  %5157 = vmatmul.mubr.msk.f32.gmra.mxu0 %vm6697_vm13, %v6691_v21  ;;  %5271 = vmatprep.subr.mxu0 %v4321_v9  ;;  %v4320_v21 = vld [vmem:[%s7849_s3 + $0x208] sm:$0xff] }
  0x94   : > { %v6713_v2 = vsel %vm8183_vm5, %v900_v63, %v901_v57  ;;  %vm8184_vm0 = vmmov %vm8183_vm5  ;;  %vm8185_vm3 = vcmp.lt.s32.totalorder %v6064_v6, 7  ;;  %v4304_v63 = vld [vmem:[%s7849_s3 + $0x188] sm:$0xff]  ;;  %v1097_v60 = vrot.slane %v6072_v13, 1  ;;  %v8023_v41 = vrot.slane %v6155_v23, 1  ;;  %5272 = vmatpush3.msra.mxu0 %v4321_v9 }
  0x95   : > { %v6719_v5 = vsel %vm8184_vm0, %v901_v57, %v902_v35  ;;  %v6726_v54 = vsel %vm8185_vm3, %v1094_v24, %v1095_v10  ;;  %5079 = vmatprep.mubr.msk.f32.mxu1 %vm6707_vm15, %v6713_v2  ;;  %vm6735_vm0 = vcmp.ne.s32.totalorder %v652_v48, 15  ;;  %v8186_v57 = vmov 0  ;;  %vm8189_vm5 = vmmov %vm8185_vm3  ;;  %5193 = vmatprep.subr.mxu1 %v4304_v63  ;;  %v4384_v12 = vld [vmem:[%s7849_s3 + $0x408] sm:$0xff] }
  0x96   : > { %v8187_v57 = vsel %vm6735_vm0, 4294967295, %v8186_v57  ;;  %v6741_v4 = vsel %vm8189_vm5, %v1095_v10, %v1096_v46  ;;  %v666_v24 = vand.u32 15, %v456_v28  ;;  %5080 = vmatmul.mubr.f32.gmra.mxu1 %v6719_v5  ;;  %vm6748_vm3 = vcmp.ne.s32.totalorder %v659_v18, 0  ;;  %5159 = vmatprep.mubr.f32.mxu0 %v6726_v54 }
  0x97   : > { %8188 = vst [vmem:[#allocation80_spill] sm:$0xff] %v8187_v57  ;;  %vm8192_vm13 = vcmp.lt.s32.totalorder %v6064_v6, 1  ;;  %v8193_v28 = vrot.slane %v6072_v13, 7  ;;  %5160 = vmatmul.mubr.msk.f32.gmra.mxu0 %vm6735_vm0, %v6741_v4  ;;  %5194 = vmatpush3.msra.mxu1 %v4304_v63  ;;  %vm8195_vm15 = vcmp.lt.s32.totalorder %v6064_v6, 7  ;;  %v4350_v63 = vld [vmem:[%s7849_s3 + $0x2f8] sm:$0xff] }
  0x98   : > { %v6754_v48 = vsel %vm8192_vm13, %v902_v35, %v903_v40  ;;  %vm8194_vm5 = vmmov %vm8192_vm13  ;;  %v6768_v9 = vsel %vm8195_vm15, %v1096_v46, %v1097_v60  ;;  %v4303_v35 = vld [vmem:[%s7849_s3 + $0x180] sm:$0xff]  ;;  %5273 = vmatprep.subr.mxu0 %v4320_v21  ;;  %vm6776_vm13 = vcmp.ne.s32.totalorder %v666_v24, 15 }
  0x99   : > { %v6761_v10 = vsel %vm8194_vm5, %v903_v40, %v8193_v28  ;;  %5082 = vmatprep.mubr.msk.f32.mxu1 %vm6748_vm3, %v6754_v48  ;;  %v8196_v40 = vmov 0  ;;  %vm8198_vm5 = vmmov %vm8195_vm15  ;;  %5274 = vmatpush3.msra.mxu0 %v4320_v21  ;;  %v4319_v46 = vld [vmem:[%s7849_s3 + $0x200] sm:$0xff]  ;;  %v4366_v21 = vld [vmem:[%s7849_s3 + $0x378] sm:$0xff]  ;;  %vm8223_vm15 = vnez %v8173_v20 }
  0x9a   : > { %v8197_v40 = vsel %vm6776_vm13, 4294967295, %v8196_v40  ;;  %v6784_v18 = vsel %vm8198_vm5, %v1097_v60, %v8023_v41  ;;  %5083 = vmatmul.mubr.f32.gmra.mxu1 %v6761_v10  ;;  %5162 = vmatprep.mubr.f32.mxu0 %v6768_v9  ;;  %v4349_v60 = vld [vmem:[%s7849_s3 + $0x2f0] sm:$0xff]  ;;  %v4363_v24 = vld [vmem:[%s7849_s3 + $0x360] sm:$0xff]  ;;  %v4346_v28 = vld [vmem:[%s7849_s3 + $0x2d8] sm:$0xff]  ;;  %vm8226_vm5 = vnez %v8182_v49 }
  0x9b   : > { %5195 = vmatprep.subr.mxu1 %v4303_v35  ;;  %5163 = vmatmul.mubr.msk.f32.gmra.mxu0 %vm6776_vm13, %v6784_v18  ;;  %v4343_v41 = vld [vmem:[%s7849_s3 + $0x2c0] sm:$0xff]  ;;  %v4386_v20 = vld [vmem:[%s7849_s3 + $0x418] sm:$0xff]  ;;  %v4385_v49 = vld [vmem:[%s7849_s3 + $0x410] sm:$0xff] }
  0x9c   : > { %5196 = vmatpush3.msra.mxu1 %v4303_v35  ;;  %5275 = vmatprep.subr.mxu0 %v4319_v46  ;;  %v4362_v35 = vld [vmem:[%s7849_s3 + $0x358] sm:$0xff] }
  0x9d   : > { %5197 = vmatprep.mubr.msk.f32.mxu1 %vm6118_vm2, %v6126_v61  ;;  %5276 = vmatpush3.msra.mxu0 %v4319_v46  ;;  %v4364_v61 = vld [vmem:[%s7849_s3 + $0x368] sm:$0xff]  ;;  %v8199_v46 = vld [vmem:[#allocation20_spill] sm:$0xff] }
  0x9e   : > { %5198 = vmatmul.mubr.f32.vlgmr.msra.gmra.mxu1 %v6133_v1  ;;  %5277 = vmatprep.mubr.f32.mxu0 %v5857_v52  ;;  %v4347_v1 = vld [vmem:[%s7849_s3 + $0x2e0] sm:$0xff] }
  0x9f   : > { %5325 = vmatprep.subr.mxu1 %v4350_v63  ;;  %5278 = vmatmul.mubr.f32.vlgmr.msra.gmra.mxu0 %v5869_v59  ;;  %v4348_v59 = vld [vmem:[%s7849_s3 + $0x2e8] sm:$0xff] }
  0xa0   : > { %5326 = vmatpush3.msra.mxu1 %v4350_v63  ;;  %5405 = vmatprep.subr.mxu0 %v4366_v21  ;;  %v8200_v63 = vld [vmem:[#allocation22_spill] sm:$0xff] }
  0xa1   : > { %5200 = vmatprep.mubr.msk.f32.mxu1 %vm6151_vm4, %v6166_v26  ;;  %5406 = vmatpush3.msra.mxu0 %v4366_v21  ;;  %v4345_v21 = vld [vmem:[%s7849_s3 + $0x2d0] sm:$0xff] }
  0xa2   : > { %5201 = vmatmul.mubr.f32.gmra.mxu1 %v6180_v36  ;;  %5280 = vmatprep.mubr.f32.mxu0 %v5893_v8 }
  0xa3   : > { %5327 = vmatprep.subr.mxu1 %v4349_v60  ;;  %5281 = vmatmul.mubr.f32.gmra.mxu0 %v5905_v17 }
  0xa4   : > { %5328 = vmatpush3.msra.mxu1 %v4349_v60  ;;  %5407 = vmatprep.subr.mxu0 %v4365_v11  ;;  %v8257_v60 = vld [vmem:[#allocation51_spill] sm:$0xff] }
  0xa5   : > { %5203 = vmatprep.mubr.msk.f32.mxu1 %vm6217_vm6, %v6229_v44  ;;  %5408 = vmatpush3.msra.mxu0 %v4365_v11  ;;  %v4361_v11 = vld [vmem:[%s7849_s3 + $0x350] sm:$0xff] }
  0xa6   : > { %5204 = vmatmul.mubr.f32.gmra.mxu1 %v6236_v33  ;;  %5283 = vmatprep.mubr.f32.mxu0 %v5929_v30  ;;  %v4398_v30 = vld [vmem:[%s7849_s3 + $0x478] sm:$0xff] }
  0xa7   : > { %5329 = vmatprep.subr.mxu1 %v4348_v59  ;;  %5284 = vmatmul.mubr.f32.gmra.mxu0 %v5941_v39  ;;  %v8227_v39 = vld [vmem:[#allocation23_spill] sm:$0xff] }
  0xa8   : > { %5330 = vmatpush3.msra.mxu1 %v4348_v59  ;;  %5409 = vmatprep.subr.mxu0 %v4364_v61  ;;  %v8202_v59 = vld [vmem:[#allocation24_spill] sm:$0xff] }
  0xa9   : > { %5206 = vmatprep.mubr.msk.f32.mxu1 %vm6268_vm8, %v6274_v58  ;;  %5410 = vmatpush3.msra.mxu0 %v4364_v61  ;;  %v8203_v61 = vld [vmem:[#allocation26_spill] sm:$0xff] }
  0xaa   : > { %5207 = vmatmul.mubr.f32.gmra.mxu1 %v6280_v34  ;;  %5286 = vmatprep.mubr.f32.mxu0 %v5965_v56  ;;  %v4337_v56 = vld [vmem:[%s7849_s3 + $0x290] sm:$0xff] }
  0xab   : > { %5331 = vmatprep.subr.mxu1 %v4347_v1  ;;  %5287 = vmatmul.mubr.f32.gmra.mxu0 %v5977_v0  ;;  %v8219_v0 = vld [vmem:[#allocation73_spill] sm:$0xff] }
  0xac   : > { %5332 = vmatpush3.msra.mxu1 %v4347_v1  ;;  %5411 = vmatprep.subr.mxu0 %v4363_v24  ;;  %v4344_v1 = vld [vmem:[%s7849_s3 + $0x2c8] sm:$0xff]  ;;  %vm8220_vm2 = vnez %v8219_v0  ;;  %v4387_v0 = vld [vmem:[%s7849_s3 + $0x420] sm:$0xff] }
  0xad   : > { %5209 = vmatprep.mubr.msk.f32.mxu1 %vm6315_vm10, %v6308_v38  ;;  %5412 = vmatpush3.msra.mxu0 %v4363_v24  ;;  %v8204_v24 = vld [vmem:[#allocation53_spill] sm:$0xff] }
  0xae   : > { %5210 = vmatmul.mubr.f32.gmra.mxu1 %v6324_v62  ;;  %5289 = vmatprep.mubr.f32.mxu0 %v8199_v46  ;;  %v8217_v46 = vld [vmem:[#allocation11_spill] sm:$0xff] }
  0xaf   : > { %5333 = vmatprep.subr.mxu1 %v4346_v28  ;;  %5290 = vmatmul.mubr.f32.gmra.mxu0 %v8200_v63 }
  0xb0   : > { %5334 = vmatpush3.msra.mxu1 %v4346_v28  ;;  %5413 = vmatprep.subr.mxu0 %v4362_v35  ;;  %v4360_v28 = vld [vmem:[%s7849_s3 + $0x348] sm:$0xff] }
  0xb1   : > { %5212 = vmatprep.mubr.msk.f32.mxu1 %vm6356_vm12, %v6362_v47  ;;  %5414 = vmatpush3.msra.mxu0 %v4362_v35  ;;  %v8205_v35 = vld [vmem:[#allocation28_spill] sm:$0xff] }
  0xb2   : > { %5213 = vmatmul.mubr.f32.gmra.mxu1 %v6368_v27  ;;  %5292 = vmatprep.mubr.f32.mxu0 %v8202_v59  ;;  %v8211_v59 = vld [vmem:[#allocation7_spill] sm:$0xff] }
  0xb3   : > { %5335 = vmatprep.subr.mxu1 %v4345_v21  ;;  %5293 = vmatmul.mubr.f32.gmra.mxu0 %v8203_v61  ;;  %v4374_v61 = vld [vmem:[%s7849_s3 + $0x3b8] sm:$0xff] }
  0xb4   : > { %5336 = vmatpush3.msra.mxu1 %v4345_v21  ;;  %5415 = vmatprep.subr.mxu0 %v4361_v11  ;;  %v8206_v21 = vld [vmem:[#allocation30_spill] sm:$0xff] }
  0xb5   : > { %5215 = vmatprep.mubr.msk.f32.mxu1 %vm6403_vm14, %v6396_v42  ;;  %5416 = vmatpush3.msra.mxu0 %v4361_v11  ;;  %v4359_v11 = vld [vmem:[%s7849_s3 + $0x340] sm:$0xff] }
  0xb6   : > { %5216 = vmatmul.mubr.f32.gmra.mxu1 %v8204_v24  ;;  %5295 = vmatprep.mubr.f32.mxu0 %v8205_v35  ;;  %v8208_v35 = vld [vmem:[#allocation5_spill] sm:$0xff] }
  0xb7   : > { %5337 = vmatprep.subr.mxu1 %v4344_v1  ;;  %5296 = vmatmul.mubr.f32.gmra.mxu0 %v8206_v21  ;;  %v4342_v21 = vld [vmem:[%s7849_s3 + $0x2b8] sm:$0xff] }
  0xb8   : > { %5338 = vmatpush3.msra.mxu1 %v4344_v1  ;;  %5417 = vmatprep.subr.mxu0 %v4360_v28  ;;  %v8209_v1 = vld [vmem:[#allocation6_spill] sm:$0xff] }
  0xb9   : > { %5218 = vmatprep.mubr.msk.f32.mxu1 %vm6444_vm1, %v6450_v25  ;;  %5418 = vmatpush3.msra.mxu0 %v4360_v28  ;;  %v8210_v28 = vld [vmem:[#allocation61_spill] sm:$0xff] }
  0xba   : > { %5219 = vmatmul.mubr.f32.gmra.mxu1 %v6456_v55  ;;  %5298 = vmatprep.mubr.f32.mxu0 %v8208_v35  ;;  %v4358_v35 = vld [vmem:[%s7849_s3 + $0x338] sm:$0xff] }
  0xbb   : > { %5339 = vmatprep.subr.mxu1 %v4343_v41  ;;  %5299 = vmatmul.mubr.f32.gmra.mxu0 %v8209_v1  ;;  %v4341_v1 = vld [vmem:[%s7849_s3 + $0x2b0] sm:$0xff] }
  0xbc   : > { %5340 = vmatpush3.msra.mxu1 %v4343_v41  ;;  %5419 = vmatprep.subr.mxu0 %v4359_v11  ;;  %v8212_v41 = vld [vmem:[#allocation8_spill] sm:$0xff] }
  0xbd   : > { %5221 = vmatprep.mubr.msk.f32.mxu1 %vm6491_vm11, %v6484_v37  ;;  %5420 = vmatpush3.msra.mxu0 %v4359_v11  ;;  %v4357_v11 = vld [vmem:[%s7849_s3 + $0x330] sm:$0xff] }
  0xbe   : > { %5222 = vmatmul.mubr.f32.gmra.mxu1 %v8210_v28  ;;  %5301 = vmatprep.mubr.f32.mxu0 %v8211_v59  ;;  %v8214_v59 = vld [vmem:[#allocation9_spill] sm:$0xff] }
  0xbf   : > { %5341 = vmatprep.subr.mxu1 %v4342_v21  ;;  %5302 = vmatmul.mubr.f32.gmra.mxu0 %v8212_v41  ;;  %v4340_v41 = vld [vmem:[%s7849_s3 + $0x2a8] sm:$0xff] }
  0xc0   : > { %5342 = vmatpush3.msra.mxu1 %v4342_v21  ;;  %5421 = vmatprep.subr.mxu0 %v4358_v35  ;;  %v8215_v21 = vld [vmem:[#allocation10_spill] sm:$0xff] }
  0xc1   : > { %5224 = vmatprep.mubr.msk.f32.mxu1 %vm6532_vm9, %v6538_v45  ;;  %5422 = vmatpush3.msra.mxu0 %v4358_v35  ;;  %v8216_v35 = vld [vmem:[#allocation69_spill] sm:$0xff] }
  0xc2   : > { %5225 = vmatmul.mubr.f32.gmra.mxu1 %v6544_v7  ;;  %5304 = vmatprep.mubr.f32.mxu0 %v8214_v59  ;;  %v4356_v59 = vld [vmem:[%s7849_s3 + $0x328] sm:$0xff] }
  0xc3   : > { %5343 = vmatprep.subr.mxu1 %v4341_v1  ;;  %5305 = vmatmul.mubr.f32.gmra.mxu0 %v8215_v21  ;;  %v4339_v21 = vld [vmem:[%s7849_s3 + $0x2a0] sm:$0xff] }
  0xc4   : > { %5344 = vmatpush3.msra.mxu1 %v4341_v1  ;;  %5423 = vmatprep.subr.mxu0 %v4357_v11  ;;  %v8218_v1 = vld [vmem:[#allocation13_spill] sm:$0xff] }
  0xc5   : > { %5227 = vmatprep.mubr.msk.f32.mxu1 %vm6579_vm7, %v6572_v50  ;;  %5424 = vmatpush3.msra.mxu0 %v4357_v11  ;;  %v4355_v11 = vld [vmem:[%s7849_s3 + $0x320] sm:$0xff] }
  0xc6   : > { %5228 = vmatmul.mubr.f32.gmra.mxu1 %v8216_v35  ;;  %5307 = vmatprep.mubr.f32.mxu0 %v8217_v46  ;;  %v8221_v46 = vld [vmem:[#allocation15_spill] sm:$0xff] }
  0xc7   : > { %5345 = vmatprep.subr.mxu1 %v4340_v41  ;;  %5308 = vmatmul.mubr.f32.gmra.mxu0 %v8218_v1  ;;  %v4338_v1 = vld [vmem:[%s7849_s3 + $0x298] sm:$0xff] }
  0xc8   : > { %5346 = vmatpush3.msra.mxu1 %v4340_v41  ;;  %5425 = vmatprep.subr.mxu0 %v4356_v59  ;;  %v8222_v41 = vld [vmem:[#allocation17_spill] sm:$0xff] }
  0xc9   : > { %5230 = vmatprep.mubr.msk.f32.mxu1 %vm8220_vm2, %v6626_v31  ;;  %5426 = vmatpush3.msra.mxu0 %v4356_v59  ;;  %v4354_v59 = vld [vmem:[%s7849_s3 + $0x318] sm:$0xff] }
  0xca   : > { %5231 = vmatmul.mubr.f32.gmra.mxu1 %v6632_v19  ;;  %5310 = vmatprep.mubr.f32.mxu0 %v8221_v46  ;;  %v457_v46 = vadd.s32 240, %v6064_v6 }
  0xcb   : > { %5347 = vmatprep.subr.mxu1 %v4339_v21  ;;  %5311 = vmatmul.mubr.f32.gmra.mxu0 %v8222_v41  ;;  %v8224_v41 = vld [vmem:[#allocation19_spill] sm:$0xff] }
  0xcc   : > { %5348 = vmatpush3.msra.mxu1 %v4339_v21  ;;  %5427 = vmatprep.subr.mxu0 %v4355_v11  ;;  %v8225_v21 = vld [vmem:[#allocation21_spill] sm:$0xff] }
  0xcd   : > { %5233 = vmatprep.mubr.msk.f32.mxu1 %vm8223_vm15, %v6660_v43  ;;  %5428 = vmatpush3.msra.mxu0 %v4355_v11  ;;  %v4353_v11 = vld [vmem:[%s7849_s3 + $0x310] sm:$0xff] }
  0xce   : > { %5234 = vmatmul.mubr.f32.gmra.mxu1 %v6676_v29  ;;  %5313 = vmatprep.mubr.f32.mxu0 %v8224_v41  ;;  %v673_v41 = vand.u32 15, %v457_v46  ;;  %v4352_v46 = vld [vmem:[%s7849_s3 + $0x308] sm:$0xff] }
  0xcf   : > { %5349 = vmatprep.subr.mxu1 %v4338_v1  ;;  %5314 = vmatmul.mubr.f32.gmra.mxu0 %v8225_v21  ;;  %v4336_v21 = vld [vmem:[%s7849_s3 + $0x288] sm:$0xff] }
  0xd0   : > { %5350 = vmatpush3.msra.mxu1 %v4338_v1  ;;  %5429 = vmatprep.subr.mxu0 %v4354_v59  ;;  %v8228_v1 = vld [vmem:[#allocation25_spill] sm:$0xff]  ;;  %vm6973_vm13 = vcmp.ne.s32.totalorder %v673_v41, 0  ;;  %v8232_v41 = vld [vmem:[#allocation38_spill] sm:$0xff] }
  0xd1   : > { %5236 = vmatprep.mubr.msk.f32.mxu1 %vm8226_vm5, %v6713_v2  ;;  %5430 = vmatpush3.msra.mxu0 %v4354_v59  ;;  %v8229_v59 = vmov 0 }
  0xd2   : > { %5237 = vmatmul.mubr.f32.gmra.mxu1 %v6719_v5  ;;  %5316 = vmatprep.mubr.f32.mxu0 %v8227_v39  ;;  %v8230_v59 = vsel %vm6973_vm13, 4294967295, %v8229_v59  ;;  %v8236_v39 = vld [vmem:[#allocation33_spill] sm:$0xff] }
  0xd3   : > { %5351 = vmatprep.subr.mxu1 %v4337_v56  ;;  %5317 = vmatmul.mubr.f32.gmra.mxu0 %v8228_v1  ;;  %v8234_v1 = vld [vmem:[#allocation32_spill] sm:$0xff] }
  0xd4   : > { %5352 = vmatpush3.msra.mxu1 %v4337_v56  ;;  %5431 = vmatprep.subr.mxu0 %v4353_v11  ;;  %v4335_v56 = vld [vmem:[%s7849_s3 + $0x280] sm:$0xff] }
  0xd5   : > { %5239 = vmatprep.mubr.msk.f32.mxu1 %vm6748_vm3, %v6754_v48  ;;  %5432 = vmatpush3.msra.mxu0 %v4353_v11  ;;  %v8231_v11 = vld [vmem:[#allocation37_spill] sm:$0xff] }
  0xd6   : > { %5240 = vmatmul.mubr.f32.gmra.mxu1 %v6761_v10  ;;  %5319 = vmatprep.mubr.f32.mxu0 %v6060_v3  ;;  %v4351_v3 = vld [vmem:[%s7849_s3 + $0x300] sm:$0xff] }
  0xd7   : > { %5353 = vmatprep.subr.mxu1 %v4336_v21  ;;  %5320 = vmatmul.mubr.f32.gmra.mxu0 %v6072_v13  ;;  %v4382_v13 = vld [vmem:[%s7849_s3 + $0x3f8] sm:$0xff] }
  0xd8   : > { %5354 = vmatpush3.msra.mxu1 %v4336_v21  ;;  %5433 = vmatprep.subr.mxu0 %v4352_v46  ;;  %v8233_v21 = vld [vmem:[#allocation31_spill] sm:$0xff] }
  0xd9   : > { %5242 = vmatprep.mubr.msk.f32.mxu1 %vm6973_vm13, %v8231_v11  ;;  %5434 = vmatpush3.msra.mxu0 %v4352_v46  ;;  %v8235_v46 = vld [vmem:[#allocation34_spill] sm:$0xff]  ;;  %vm8237_vm13 = vnez %v8236_v39  ;;  %v8239_v39 = vld [vmem:[#allocation39_spill] sm:$0xff] }
  0xda   : > { %5243 = vmatmul.mubr.f32.gmra.mxu1 %v8232_v41  ;;  %5322 = vmatprep.mubr.f32.mxu0 %v6155_v23 }
  0xdb   : > { %5355 = vmatprep.subr.mxu1 %v4335_v56  ;;  %5323 = vmatmul.mubr.f32.gmra.mxu0 %v8233_v21 }
  0xdc   : > { %5356 = vmatpush3.msra.mxu1 %v4335_v56  ;;  %5435 = vmatprep.subr.mxu0 %v4351_v3  ;;  %v8240_v56 = vld [vmem:[#allocation36_spill] sm:$0xff] }
  0xdd   : > { %5357 = vmatprep.mubr.f32.mxu1 %v8234_v1  ;;  %5436 = vmatpush3.msra.mxu0 %v4351_v3  ;;  %v4381_v3 = vld [vmem:[%s7849_s3 + $0x3f0] sm:$0xff] }
  0xde   : > { %5358 = vmatmul.mubr.msk.f32.vlgmr.msra.gmra.mxu1 %vm8237_vm13, %v8235_v46  ;;  %5437 = vmatprep.mubr.msk.f32.mxu0 %vm6151_vm4, %v6166_v26  ;;  %v8238_v1 = vld [vmem:[#allocation35_spill] sm:$0xff]  ;;  %vm8241_vm13 = vnez %v8240_v56  ;;  %v8243_v26 = vld [vmem:[#allocation42_spill] sm:$0xff]  ;;  %v8247_v46 = vld [vmem:[#allocation44_spill] sm:$0xff] }
  0xdf   : > { %5485 = vmatprep.subr.mxu1 %v4382_v13  ;;  %5438 = vmatmul.mubr.f32.vlgmr.msra.gmra.mxu0 %v6180_v36  ;;  %v8244_v36 = vld [vmem:[#allocation41_spill] sm:$0xff] }
  0xe0   : > { %5486 = vmatpush3.msra.mxu1 %v4382_v13  ;;  %5565 = vmatprep.subr.mxu0 %v4398_v30  ;;  %v8242_v13 = vld [vmem:[#allocation40_spill] sm:$0xff]  ;;  %vm8245_vm4 = vnez %v8244_v36 }
  0xe1   : > { %5360 = vmatprep.mubr.f32.mxu1 %v8238_v1  ;;  %5566 = vmatpush3.msra.mxu0 %v4398_v30  ;;  %v4380_v30 = vld [vmem:[%s7849_s3 + $0x3e8] sm:$0xff] }
  0xe2   : > { %5361 = vmatmul.mubr.msk.f32.gmra.mxu1 %vm8241_vm13, %v8239_v39  ;;  %5440 = vmatprep.mubr.msk.f32.mxu0 %vm6217_vm6, %v6229_v44  ;;  %v4379_v44 = vld [vmem:[%s7849_s3 + $0x3e0] sm:$0xff] }
  0xe3   : > { %5487 = vmatprep.subr.mxu1 %v4381_v3  ;;  %5441 = vmatmul.mubr.f32.gmra.mxu0 %v6236_v33  ;;  %v8246_v33 = vld [vmem:[#allocation43_spill] sm:$0xff] }
  0xe4   : > { %5488 = vmatpush3.msra.mxu1 %v4381_v3  ;;  %5567 = vmatprep.subr.mxu0 %v4397_v22  ;;  %v8248_v3 = vld [vmem:[#allocation45_spill] sm:$0xff] }
  0xe5   : > { %5363 = vmatprep.mubr.f32.mxu1 %v8242_v13  ;;  %5568 = vmatpush3.msra.mxu0 %v4397_v22  ;;  %vm8249_vm6 = vnez %v8248_v3  ;;  %v8251_v22 = vld [vmem:[#allocation47_spill] sm:$0xff] }
  0xe6   : > { %5364 = vmatmul.mubr.msk.f32.gmra.mxu1 %vm8245_vm4, %v8243_v26  ;;  %5443 = vmatprep.mubr.msk.f32.mxu0 %vm6268_vm8, %v6274_v58  ;;  %v4378_v58 = vld [vmem:[%s7849_s3 + $0x3d8] sm:$0xff] }
  0xe7   : > { %5489 = vmatprep.subr.mxu1 %v4380_v30  ;;  %5444 = vmatmul.mubr.f32.gmra.mxu0 %v6280_v34  ;;  %v8250_v34 = vld [vmem:[#allocation46_spill] sm:$0xff] }
  0xe8   : > { %5490 = vmatpush3.msra.mxu1 %v4380_v30  ;;  %5569 = vmatprep.subr.mxu0 %v4396_v14  ;;  %v8252_v30 = vld [vmem:[#allocation48_spill] sm:$0xff] }
  0xe9   : > { %5366 = vmatprep.mubr.f32.mxu1 %v8246_v33  ;;  %5570 = vmatpush3.msra.mxu0 %v4396_v14  ;;  %vm8253_vm8 = vnez %v8252_v30  ;;  %v8319_v30 = vld [vmem:[#allocation51_spill] sm:$0xff] }
  0xea   : > { %5367 = vmatmul.mubr.msk.f32.gmra.mxu1 %vm8249_vm6, %v8247_v46  ;;  %5446 = vmatprep.mubr.msk.f32.mxu0 %vm6315_vm10, %v6308_v38 }
  0xeb   : > { %5491 = vmatprep.subr.mxu1 %v4379_v44  ;;  %5447 = vmatmul.mubr.f32.gmra.mxu0 %v6324_v62  ;;  %v4377_v62 = vld [vmem:[%s7849_s3 + $0x3d0] sm:$0xff] }
  0xec   : > { %5492 = vmatpush3.msra.mxu1 %v4379_v44  ;;  %5571 = vmatprep.subr.mxu0 %v4395_v16  ;;  %v8255_v44 = vld [vmem:[#allocation50_spill] sm:$0xff] }
  0xed   : > { %5369 = vmatprep.mubr.f32.mxu1 %v8250_v34  ;;  %5572 = vmatpush3.msra.mxu0 %v4395_v16  ;;  %v7060_v38 = vpop.f32.mrf.mxu1 }
  0xee   : > { %5370 = vmatmul.mubr.msk.f32.gmra.mxu1 %vm8253_vm8, %v8251_v22  ;;  %5449 = vmatprep.mubr.msk.f32.mxu0 %vm6356_vm12, %v6362_v47  ;;  %8254 = vst [vmem:[#allocation49_spill] sm:$0xff] %v7060_v38  ;;  %v7066_v14 = vpop.f32.mrf.mxu0  ;;  %v8258_v47 = vld [vmem:[#allocation52_spill] sm:$0xff]  ;;  %v8261_v38 = vld [vmem:[#allocation54_spill] sm:$0xff] }
  0xef   : > { %5493 = vmatprep.subr.mxu1 %v4378_v58  ;;  %5450 = vmatmul.mubr.f32.gmra.mxu0 %v6368_v27  ;;  %v7069_v16 = vpop.f32.mrf.mxu1  ;;  %vm8259_vm10 = vnez %v8258_v47  ;;  %v4393_v27 = vld [vmem:[%s7849_s3 + $0x450] sm:$0xff] }
  0xf0   : > { %5494 = vmatpush3.msra.mxu1 %v4378_v58  ;;  %5573 = vmatprep.subr.mxu0 %v4394_v51  ;;  %8256 = vst [vmem:[#allocation53_spill] sm:$0xff] %v7069_v16  ;;  %v7077_v58 = vpop.f32.mrf.mxu0  ;;  %v8262_v47 = vld [vmem:[#allocation55_spill] sm:$0xff] }
  0xf1   : > { %5372 = vmatprep.mubr.f32.mxu1 %v8255_v44  ;;  %5574 = vmatpush3.msra.mxu0 %v4394_v51  ;;  %v4376_v51 = vld [vmem:[%s7849_s3 + $0x3c8] sm:$0xff] }
  0xf2   : > { %5373 = vmatmul.mubr.msk.f32.gmra.mxu1 %vm8259_vm10, %v8257_v60  ;;  %5452 = vmatprep.mubr.msk.f32.mxu0 %vm6403_vm14, %v6396_v42  ;;  %v7086_v16 = vpop.f32.mrf.mxu1  ;;  %v8263_v60 = vld [vmem:[#allocation56_spill] sm:$0xff] }
  0xf3   : > { %5495 = vmatprep.subr.mxu1 %v4377_v62  ;;  %5453 = vmatmul.mubr.f32.gmra.mxu0 %v8204_v24  ;;  %8260 = vst [vmem:[#allocation57_spill] sm:$0xff] %v7086_v16  ;;  %vm8264_vm12 = vnez %v8263_v60  ;;  %v8266_v16 = vld [vmem:[#allocation58_spill] sm:$0xff]  ;;  %v8267_v60 = vld [vmem:[#allocation59_spill] sm:$0xff] }
  0xf4   : > { %5496 = vmatpush3.msra.mxu1 %v4377_v62  ;;  %5575 = vmatprep.subr.mxu0 %v4393_v27  ;;  %v7095_v42 = vpop.f32.mrf.mxu0  ;;  %v7097_v24 = vpop.f32.mrf.mxu1  ;;  %v4375_v62 = vld [vmem:[%s7849_s3 + $0x3c0] sm:$0xff] }
  0xf5   : > { %5375 = vmatprep.mubr.f32.mxu1 %v8261_v38  ;;  %5576 = vmatpush3.msra.mxu0 %v4393_v27  ;;  %8265 = vst [vmem:[#allocation61_spill] sm:$0xff] %v7097_v24  ;;  %v8268_v24 = vld [vmem:[#allocation60_spill] sm:$0xff] }
  0xf6   : > { %5376 = vmatmul.mubr.msk.f32.gmra.mxu1 %vm8264_vm12, %v8262_v47  ;;  %5455 = vmatprep.mubr.msk.f32.mxu0 %vm6444_vm1, %v6450_v25  ;;  %v7106_v27 = vpop.f32.mrf.mxu0  ;;  %vm8269_vm14 = vnez %v8268_v24  ;;  %v4391_v25 = vld [vmem:[%s7849_s3 + $0x440] sm:$0xff]  ;;  %v8272_v24 = vld [vmem:[#allocation62_spill] sm:$0xff] }
  0xf7   : > { %5497 = vmatprep.subr.mxu1 %v4376_v51  ;;  %5456 = vmatmul.mubr.f32.gmra.mxu0 %v6456_v55 }
  0xf8   : > { %5498 = vmatpush3.msra.mxu1 %v4376_v51  ;;  %5577 = vmatprep.subr.mxu0 %v4392_v15  ;;  %v7115_v55 = vpop.f32.mrf.mxu1 }
  0xf9   : > { %5378 = vmatprep.mubr.f32.mxu1 %v8266_v16  ;;  %5578 = vmatpush3.msra.mxu0 %v4392_v15  ;;  %8270 = vst [vmem:[#allocation65_spill] sm:$0xff] %v7115_v55  ;;  %v8273_v55 = vld [vmem:[#allocation63_spill] sm:$0xff] }
  0xfa   : > { %5379 = vmatmul.mubr.msk.f32.gmra.mxu1 %vm8269_vm14, %v8267_v60  ;;  %5458 = vmatprep.mubr.msk.f32.mxu0 %vm6491_vm11, %v6484_v37  ;;  %v7124_v51 = vpop.f32.mrf.mxu0  ;;  %v7126_v15 = vpop.f32.mrf.mxu1  ;;  %v8274_v60 = vld [vmem:[#allocation64_spill] sm:$0xff] }
  0xfb   : > { %5499 = vmatprep.subr.mxu1 %v4375_v62  ;;  %5459 = vmatmul.mubr.f32.gmra.mxu0 %v8210_v28  ;;  %8271 = vst [vmem:[#allocation69_spill] sm:$0xff] %v7126_v15  ;;  %vm8275_vm1 = vnez %v8274_v60  ;;  %v4373_v28 = vld [vmem:[%s7849_s3 + $0x3b0] sm:$0xff]  ;;  %v8279_v60 = vld [vmem:[#allocation68_spill] sm:$0xff] }
  0xfc   : > { %5500 = vmatpush3.msra.mxu1 %v4375_v62  ;;  %5579 = vmatprep.subr.mxu0 %v4391_v25  ;;  %v7135_v37 = vpop.f32.mrf.mxu0  ;;  %v8278_v15 = vld [vmem:[#allocation67_spill] sm:$0xff]  ;;  %vm8280_vm11 = vnez %v8279_v60 }
  0xfd   : > { %5381 = vmatprep.mubr.f32.mxu1 %v8272_v24  ;;  %5580 = vmatpush3.msra.mxu0 %v4391_v25  ;;  %v8277_v25 = vld [vmem:[#allocation66_spill] sm:$0xff]  ;;  %v8283_v60 = vld [vmem:[#allocation71_spill] sm:$0xff] }
  0xfe   : > { %5382 = vmatmul.mubr.msk.f32.gmra.mxu1 %vm8275_vm1, %v8273_v55  ;;  %5461 = vmatprep.mubr.msk.f32.mxu0 %vm6532_vm9, %v6538_v45  ;;  %v7144_v62 = vpop.f32.mrf.mxu1  ;;  %v4389_v45 = vld [vmem:[%s7849_s3 + $0x430] sm:$0xff] }
  0xff   : > { %5501 = vmatprep.subr.mxu1 %v4374_v61  ;;  %5462 = vmatmul.mubr.f32.gmra.mxu0 %v6544_v7  ;;  %8276 = vst [vmem:[#allocation73_spill] sm:$0xff] %v7144_v62  ;;  %v8282_v62 = vld [vmem:[#allocation70_spill] sm:$0xff] }
 0x100   : > { %5502 = vmatpush3.msra.mxu1 %v4374_v61  ;;  %5581 = vmatprep.subr.mxu0 %v4390_v53  ;;  %v7153_v7 = vpop.f32.mrf.mxu0  ;;  %v7155_v63 = vpop.f32.mrf.mxu1  ;;  %v4372_v61 = vld [vmem:[%s7849_s3 + $0x3a8] sm:$0xff] }
 0x101   : > { %5384 = vmatprep.mubr.f32.mxu1 %v8277_v25  ;;  %5582 = vmatpush3.msra.mxu0 %v4390_v53  ;;  %8281 = vst [vmem:[#allocation37_spill] sm:$0xff] %v7155_v63  ;;  %v8284_v63 = vld [vmem:[#allocation72_spill] sm:$0xff] }
 0x102   : > { %5385 = vmatmul.mubr.msk.f32.gmra.mxu1 %vm8280_vm11, %v8278_v15  ;;  %5464 = vmatprep.mubr.msk.f32.mxu0 %vm6579_vm7, %v6572_v50  ;;  %v7164_v53 = vpop.f32.mrf.mxu0  ;;  %vm8285_vm9 = vnez %v8284_v63  ;;  %v8288_v63 = vld [vmem:[#allocation74_spill] sm:$0xff] }
 0x103   : > { %5503 = vmatprep.subr.mxu1 %v4373_v28  ;;  %5465 = vmatmul.mubr.f32.gmra.mxu0 %v8216_v35  ;;  %v4371_v35 = vld [vmem:[%s7849_s3 + $0x3a0] sm:$0xff] }
 0x104   : > { %5504 = vmatpush3.msra.mxu1 %v4373_v28  ;;  %5583 = vmatprep.subr.mxu0 %v4389_v45  ;;  %v7173_v50 = vpop.f32.mrf.mxu1 }
 0x105   : > { %5387 = vmatprep.mubr.f32.mxu1 %v8282_v62  ;;  %5584 = vmatpush3.msra.mxu0 %v4389_v45  ;;  %8286 = vst [vmem:[#allocation38_spill] sm:$0xff] %v7173_v50  ;;  %v8289_v50 = vld [vmem:[#allocation75_spill] sm:$0xff] }
 0x106   : > { %5388 = vmatmul.mubr.msk.f32.gmra.mxu1 %vm8285_vm9, %v8283_v60  ;;  %5467 = vmatprep.mubr.msk.f32.mxu0 %vm8220_vm2, %v6626_v31  ;;  %v7182_v28 = vpop.f32.mrf.mxu0  ;;  %v7184_v45 = vpop.f32.mrf.mxu1  ;;  %v8290_v60 = vld [vmem:[#allocation76_spill] sm:$0xff] }
 0x107   : > { %5505 = vmatprep.subr.mxu1 %v4372_v61  ;;  %5468 = vmatmul.mubr.f32.gmra.mxu0 %v6632_v19  ;;  %8287 = vst [vmem:[#allocation31_spill] sm:$0xff] %v7184_v45  ;;  %vm8291_vm7 = vnez %v8290_v60  ;;  %v4370_v19 = vld [vmem:[%s7849_s3 + $0x398] sm:$0xff]  ;;  %v8294_v45 = vld [vmem:[#allocation78_spill] sm:$0xff]  ;;  %v8295_v60 = vld [vmem:[#allocation79_spill] sm:$0xff] }
 0x108   : > { %5506 = vmatpush3.msra.mxu1 %v4372_v61  ;;  %5585 = vmatprep.subr.mxu0 %v4388_v32  ;;  %v7193_v31 = vpop.f32.mrf.mxu0  ;;  %vm8296_vm2 = vnez %v8295_v60  ;;  %v8354_v60 = vld [vmem:[#allocation80_spill] sm:$0xff] }
 0x109   : > { %5390 = vmatprep.mubr.f32.mxu1 %v8288_v63  ;;  %5586 = vmatpush3.msra.mxu0 %v4388_v32  ;;  %v8293_v32 = vld [vmem:[#allocation77_spill] sm:$0xff] }
 0x10a   : > { %5391 = vmatmul.mubr.msk.f32.gmra.mxu1 %vm8291_vm7, %v8289_v50  ;;  %5470 = vmatprep.mubr.msk.f32.mxu0 %vm8223_vm15, %v6660_v43  ;;  %v7202_v61 = vpop.f32.mrf.mxu1  ;;  %vm8301_vm15 = vcmp.lt.s32.totalorder %v6064_v6, 7 }
 0x10b   : > { %5507 = vmatprep.subr.mxu1 %v4371_v35  ;;  %5471 = vmatmul.mubr.f32.gmra.mxu0 %v6676_v29  ;;  %8292 = vst [vmem:[#allocation32_spill] sm:$0xff] %v7202_v61 }
 0x10c   : > { %5508 = vmatpush3.msra.mxu1 %v4371_v35  ;;  %5587 = vmatprep.subr.mxu0 %v4387_v0  ;;  %v7211_v43 = vpop.f32.mrf.mxu0  ;;  %v7213_v29 = vpop.f32.mrf.mxu1  ;;  %v458_v35 = vadd.s32 248, %v6064_v6 }
 0x10d   : > { %5393 = vmatprep.mubr.f32.mxu1 %v8293_v32  ;;  %5588 = vmatpush3.msra.mxu0 %v4387_v0  ;;  %8297 = vst [vmem:[#allocation34_spill] sm:$0xff] %v7213_v29  ;;  %v4369_v0 = vld [vmem:[%s7849_s3 + $0x390] sm:$0xff] }
 0x10e   : > { %5394 = vmatmul.mubr.msk.f32.gmra.mxu1 %vm8296_vm2, %v8294_v45  ;;  %5473 = vmatprep.mubr.msk.f32.mxu0 %vm8226_vm5, %v6713_v2  ;;  %v7223_v61 = vpop.f32.mrf.mxu0  ;;  %vm8302_vm5 = vnez %v8230_v59  ;;  %v4367_v59 = vld [vmem:[%s7849_s3 + $0x380] sm:$0xff] }
 0x10f   : > { %5509 = vmatprep.subr.mxu1 %v4370_v19  ;;  %5474 = vmatmul.mubr.f32.gmra.mxu0 %v6719_v5  ;;  %v1099_v5 = vrot.slane %v8233_v21, 1 }
 0x110   : > { %5510 = vmatpush3.msra.mxu1 %v4370_v19  ;;  %5589 = vmatprep.subr.mxu0 %v4386_v20  ;;  %v7232_v2 = vpop.f32.mrf.mxu1  ;;  %v680_v19 = vand.u32 15, %v458_v35 }
 0x111   : > { %5396 = vmatprep.mubr.f32.mxu1 %v6726_v54  ;;  %5590 = vmatpush3.msra.mxu0 %v4386_v20  ;;  %v4368_v20 = vld [vmem:[%s7849_s3 + $0x388] sm:$0xff] }
 0x112   : > { %5397 = vmatmul.mubr.msk.f32.gmra.mxu1 %vm6735_vm0, %v6741_v4  ;;  %5476 = vmatprep.mubr.msk.f32.mxu0 %vm6748_vm3, %v6754_v48  ;;  %v7242_v29 = vpop.f32.mrf.mxu0  ;;  %v7244_v57 = vpop.f32.mrf.mxu1  ;;  %vm8299_vm3 = vnez %v8197_v40  ;;  %vm7264_vm0 = vcmp.ne.s32.totalorder %v680_v19, 15 }
 0x113   : > { %5511 = vmatprep.subr.mxu1 %v4369_v0  ;;  %5477 = vmatmul.mubr.f32.gmra.mxu0 %v6761_v10  ;;  %8298 = vst [vmem:[#allocation33_spill] sm:$0xff] %v7244_v57  ;;  %v8300_v10 = vrot.slane %v6155_v23, 1 }
 0x114   : > { %5512 = vmatpush3.msra.mxu1 %v4369_v0  ;;  %5591 = vmatprep.subr.mxu0 %v4385_v49  ;;  %v7253_v48 = vpop.f32.mrf.mxu0 }
 0x115   : > { %5399 = vmatprep.mubr.f32.mxu1 %v6768_v9  ;;  %5592 = vmatpush3.msra.mxu0 %v4385_v49  ;;  %v7259_v35 = vsel %vm8301_vm15, %v8300_v10, %v1099_v5  ;;  %v8305_v49 = vrot.slane %v5857_v52, 1 }
 0x116   : > { %5400 = vmatmul.mubr.msk.f32.gmra.mxu1 %vm8299_vm3, %v6784_v18  ;;  %5479 = vmatprep.mubr.msk.f32.mxu0 %vm8302_vm5, %v8231_v11  ;;  %vm8306_vm3 = vmmov %vm8301_vm15  ;;  %v7275_v10 = vpop.f32.mrf.mxu1  ;;  %v4383_v11 = vld [vmem:[%s7849_s3 + $0x400] sm:$0xff] }
 0x117   : > { %5513 = vmatprep.subr.mxu1 %v4368_v20  ;;  %v7272_v57 = vsel %vm8306_vm3, %v1099_v5, %v8305_v49  ;;  %5480 = vmatmul.mubr.f32.gmra.mxu0 %v8232_v41  ;;  %8307 = vst [vmem:[#allocation35_spill] sm:$0xff] %v7275_v10  ;;  %v8309_v41 = vmov 0.0   ;;  %v8311_v10 = vld [vmem:[#allocation14_spill] sm:$0xff] }
 0x118   : > { %5514 = vmatpush3.msra.mxu1 %v4368_v20  ;;  %5593 = vmatprep.subr.mxu0 %v4384_v12  ;;  %v7284_v52 = vpop.f32.mrf.mxu0  ;;  %v7286_v6 = vpop.f32.mrf.mxu1 }
 0x119   : > { %5402 = vmatprep.mubr.f32.mxu1 %v7259_v35  ;;  %5594 = vmatpush3.msra.mxu0 %v4384_v12  ;;  %8308 = vst [vmem:[#allocation39_spill] sm:$0xff] %v7286_v6  ;;  %v8310_v12 = vld [vmem:[#allocation12_spill] sm:$0xff] }
 0x11a   : > { %5403 = vmatmul.mubr.msk.f32.gmra.mxu1 %vm7264_vm0, %v7272_v57  ;;  %5482 = vmatprep.mubr.f32.mxu0 %v8309_v41  ;;  %v7293_v5 = vpop.f32.mrf.mxu0 }
 0x11b   : > { %5515 = vmatprep.subr.mxu1 %v4367_v59  ;;  %5483 = vmatmul.mubr.f32.gmra.mxu0 %v8309_v41 }
 0x11c   : > { %5516 = vmatpush3.msra.mxu1 %v4367_v59  ;;  %5595 = vmatprep.subr.mxu0 %v4383_v11  ;;  %v5039_v19 = vpop.f32.mrf.mxu1 }
 0x11d   : > { %5517 = vmatprep.mubr.f32.mxu1 %v5893_v8  ;;  %5596 = vmatpush3.msra.mxu0 %v4383_v11  ;;  %v1719_v20 = vadd.f32 %v5039_v19, %v7066_v14  ;;  %v8312_v19 = vld [vmem:[#allocation16_spill] sm:$0xff] }
 0x11e   : > { %5518 = vmatmul.mubr.f32.vlgmr.msra.gmra.mxu1 %v5905_v17  ;;  %5597 = vmatprep.mubr.f32.mxu0 %v8238_v1  ;;  %v5119_v49 = vpop.f32.mrf.mxu0  ;;  %v1713_v59 = vpop.f32.mrf.mxu1 }
 0x11f   : > { %5520 = vmatprep.mubr.f32.mxu1 %v8310_v12  ;;  %5598 = vmatmul.mubr.msk.f32.vlgmr.msra.gmra.mxu0 %vm8241_vm13, %v8239_v39  ;;  %v7303_v6 = vadd.f32 %v5119_v49, %v1719_v20  ;;  %v1714_v8 = vadd.f32 %v1713_v59, %v7077_v58  ;;  %v8313_v20 = vld [vmem:[#allocation18_spill] sm:$0xff]  ;;  %v8314_v59 = vld [vmem:[#allocation20_spill] sm:$0xff]  ;;  %vm8355_vm13 = vnez %v8354_v60 }
 0x120   : > { %5600 = vmatprep.mubr.f32.mxu0 %v8242_v13  ;;  %v1987_v11 = vpop.f32.mrf.mxu0  ;;  %v5042_v17 = vpop.f32.mrf.mxu1 }
 0x121   : > { %v7308_v14 = vadd.f32 %v1987_v11, %v1714_v8  ;;  %v1729_v1 = vadd.f32 %v5042_v17, %v7095_v42  ;;  %v8315_v17 = vld [vmem:[#allocation22_spill] sm:$0xff] }
 0x122   : > { %5521 = vmatmul.mubr.f32.gmra.mxu1 %v8311_v10  ;;  %v5122_v12 = vpop.f32.mrf.mxu0  ;;  %v1723_v39 = vpop.f32.mrf.mxu1 }
 0x123   : > { %5523 = vmatprep.mubr.f32.mxu1 %v8312_v19  ;;  %5601 = vmatmul.mubr.msk.f32.gmra.mxu0 %vm8245_vm4, %v8243_v26  ;;  %v7315_v56 = vadd.f32 %v5122_v12, %v1729_v1  ;;  %v1724_v13 = vadd.f32 %v1723_v39, %v7106_v27  ;;  %v8316_v19 = vld [vmem:[#allocation24_spill] sm:$0xff]  ;;  %vm8359_vm4 = vnez %v8197_v40 }
 0x124   : > { %5603 = vmatprep.mubr.f32.mxu0 %v8246_v33  ;;  %v1997_v58 = vpop.f32.mrf.mxu0  ;;  %v5045_v10 = vpop.f32.mrf.mxu1 }
 0x125   : > { %v7320_v49 = vadd.f32 %v1997_v58, %v1724_v13  ;;  %v1739_v42 = vadd.f32 %v5045_v10, %v7124_v51  ;;  %v8317_v13 = vld [vmem:[#allocation26_spill] sm:$0xff]  ;;  %v8318_v10 = vld [vmem:[#allocation28_spill] sm:$0xff] }
 0x126   : > { %5524 = vmatmul.mubr.f32.gmra.mxu1 %v8313_v20  ;;  %v5125_v8 = vpop.f32.mrf.mxu0  ;;  %v1733_v26 = vpop.f32.mrf.mxu1 }
 0x127   : > { %5526 = vmatprep.mubr.f32.mxu1 %v8314_v59  ;;  %5604 = vmatmul.mubr.msk.f32.gmra.mxu0 %vm8249_vm6, %v8247_v46  ;;  %v7327_v36 = vadd.f32 %v5125_v8, %v1739_v42  ;;  %v1734_v33 = vadd.f32 %v1733_v26, %v7135_v37  ;;  %v8321_v26 = vld [vmem:[#allocation30_spill] sm:$0xff] }
 0x128   : > { %5606 = vmatprep.mubr.f32.mxu0 %v8250_v34  ;;  %v2007_v27 = vpop.f32.mrf.mxu0  ;;  %v5048_v11 = vpop.f32.mrf.mxu1 }
 0x129   : > { %v7332_v1 = vadd.f32 %v2007_v27, %v1734_v33  ;;  %v1749_v51 = vadd.f32 %v5048_v11, %v7153_v7  ;;  %v8322_v27 = vld [vmem:[#allocation5_spill] sm:$0xff] }
 0x12a   : > { %5527 = vmatmul.mubr.f32.gmra.mxu1 %v8315_v17  ;;  %v5128_v12 = vpop.f32.mrf.mxu0  ;;  %v1743_v46 = vpop.f32.mrf.mxu1 }
 0x12b   : > { %5529 = vmatprep.mubr.f32.mxu1 %v8316_v19  ;;  %5607 = vmatmul.mubr.msk.f32.gmra.mxu0 %vm8253_vm8, %v8251_v22  ;;  %v7339_v3 = vadd.f32 %v5128_v12, %v1749_v51  ;;  %v1744_v34 = vadd.f32 %v1743_v46, %v7164_v53  ;;  %v8324_v46 = vld [vmem:[#allocation6_spill] sm:$0xff] }
 0x12c   : > { %5609 = vmatprep.mubr.f32.mxu0 %v8255_v44  ;;  %v2017_v37 = vpop.f32.mrf.mxu0  ;;  %v5051_v39 = vpop.f32.mrf.mxu1 }
 0x12d   : > { %v7344_v58 = vadd.f32 %v2017_v37, %v1744_v34  ;;  %v1759_v7 = vadd.f32 %v5051_v39, %v7182_v28  ;;  %v8325_v37 = vld [vmem:[#allocation7_spill] sm:$0xff] }
 0x12e   : > { %5530 = vmatmul.mubr.f32.gmra.mxu1 %v8317_v13  ;;  %v5131_v20 = vpop.f32.mrf.mxu0  ;;  %v1753_v42 = vpop.f32.mrf.mxu1  ;;  %v8326_v13 = vld [vmem:[#allocation59_spill] sm:$0xff] }
 0x12f   : > { %5532 = vmatprep.mubr.f32.mxu1 %v8318_v10  ;;  %5610 = vmatmul.mubr.msk.f32.gmra.mxu0 %vm8259_vm10, %v8319_v30  ;;  %v7351_v59 = vadd.f32 %v5131_v20, %v1759_v7  ;;  %v1754_v44 = vadd.f32 %v1753_v42, %v7193_v31  ;;  %v8328_v30 = vld [vmem:[#allocation8_spill] sm:$0xff]  ;;  %v8329_v42 = vld [vmem:[#allocation9_spill] sm:$0xff] }
 0x130   : > { %5612 = vmatprep.mubr.f32.mxu0 %v8261_v38  ;;  %v2027_v53 = vpop.f32.mrf.mxu0  ;;  %v5054_v8 = vpop.f32.mrf.mxu1 }
 0x131   : > { %v7356_v33 = vadd.f32 %v2027_v53, %v1754_v44  ;;  %v1769_v28 = vadd.f32 %v5054_v8, %v7211_v43  ;;  %v8342_v53 = vld [vmem:[#allocation17_spill] sm:$0xff] }
 0x132   : > { %5533 = vmatmul.mubr.f32.gmra.mxu1 %v8321_v26  ;;  %v5134_v11 = vpop.f32.mrf.mxu0  ;;  %v1763_v51 = vpop.f32.mrf.mxu1 }
 0x133   : > { %5535 = vmatprep.mubr.f32.mxu1 %v8322_v27  ;;  %5613 = vmatmul.mubr.msk.f32.gmra.mxu0 %vm8264_vm12, %v8262_v47  ;;  %v7363_v19 = vadd.f32 %v5134_v11, %v1769_v28  ;;  %v1764_v38 = vadd.f32 %v1763_v51, %v7223_v61  ;;  %v8331_v27 = vld [vmem:[#allocation10_spill] sm:$0xff]  ;;  %v8333_v51 = vld [vmem:[#allocation11_spill] sm:$0xff] }
 0x134   : > { %5615 = vmatprep.mubr.f32.mxu0 %v8266_v16  ;;  %v2037_v31 = vpop.f32.mrf.mxu0  ;;  %v5057_v12 = vpop.f32.mrf.mxu1 }
 0x135   : > { %v7368_v34 = vadd.f32 %v2037_v31, %v1764_v38  ;;  %v1779_v43 = vadd.f32 %v5057_v12, %v7242_v29 }
 0x136   : > { %5536 = vmatmul.mubr.f32.gmra.mxu1 %v8324_v46  ;;  %v5137_v39 = vpop.f32.mrf.mxu0  ;;  %v1773_v7 = vpop.f32.mrf.mxu1 }
 0x137   : > { %5538 = vmatprep.mubr.f32.mxu1 %v8325_v37  ;;  %5616 = vmatmul.mubr.msk.f32.gmra.mxu0 %vm8269_vm14, %v8326_v13  ;;  %v7375_v10 = vadd.f32 %v5137_v39, %v1779_v43  ;;  %v1774_v16 = vadd.f32 %v1773_v7, %v7253_v48  ;;  %v8336_v37 = vld [vmem:[#allocation13_spill] sm:$0xff]  ;;  %v8338_v7 = vld [vmem:[#allocation15_spill] sm:$0xff] }
 0x138   : > { %5618 = vmatprep.mubr.f32.mxu0 %v8272_v24  ;;  %v2047_v61 = vpop.f32.mrf.mxu0  ;;  %v5060_v20 = vpop.f32.mrf.mxu1  ;;  %v8337_v13 = vld [vmem:[#allocation57_spill] sm:$0xff] }
 0x139   : > { %v7380_v22 = vadd.f32 %v2047_v61, %v1774_v16  ;;  %v1789_v29 = vadd.f32 %v5060_v20, %v7284_v52  ;;  %v8332_v52 = vld [vmem:[#allocation49_spill] sm:$0xff]  ;;  %v8339_v61 = vld [vmem:[#allocation71_spill] sm:$0xff] }
 0x13a   : > { %5539 = vmatmul.mubr.f32.gmra.mxu1 %v8328_v30  ;;  %v5140_v44 = vpop.f32.mrf.mxu0  ;;  %v1783_v8 = vpop.f32.mrf.mxu1 }
 0x13b   : > { %5541 = vmatprep.mubr.f32.mxu1 %v8329_v42  ;;  %5619 = vmatmul.mubr.msk.f32.gmra.mxu0 %vm8275_vm1, %v8273_v55  ;;  %v7387_v26 = vadd.f32 %v5140_v44, %v1789_v29  ;;  %v1784_v24 = vadd.f32 %v1783_v8, %v7293_v5  ;;  %v8335_v5 = vld [vmem:[#allocation53_spill] sm:$0xff] }
 0x13c   : > { %5621 = vmatprep.mubr.f32.mxu0 %v8277_v25  ;;  %v2057_v48 = vpop.f32.mrf.mxu0  ;;  %v5063_v28 = vpop.f32.mrf.mxu1  ;;  %v8341_v29 = vld [vmem:[#allocation61_spill] sm:$0xff] }
 0x13d   : > { %v7392_v11 = vadd.f32 %v2057_v48, %v1784_v24  ;;  %v1799_v17 = vadd.f32 %v5063_v28, %v8332_v52  ;;  %v8343_v24 = vld [vmem:[#allocation65_spill] sm:$0xff]  ;;  %v8344_v28 = vld [vmem:[#allocation19_spill] sm:$0xff] }
 0x13e   : > { %5542 = vmatmul.mubr.f32.gmra.mxu1 %v8331_v27  ;;  %v5143_v38 = vpop.f32.mrf.mxu0  ;;  %v1793_v31 = vpop.f32.mrf.mxu1 }
 0x13f   : > { %5544 = vmatprep.mubr.f32.mxu1 %v8333_v51  ;;  %5622 = vmatmul.mubr.msk.f32.gmra.mxu0 %vm8280_vm11, %v8278_v15  ;;  %v7399_v12 = vadd.f32 %v5143_v38, %v1799_v17  ;;  %v1794_v25 = vadd.f32 %v1793_v31, %v8335_v5  ;;  %v8346_v38 = vld [vmem:[#allocation69_spill] sm:$0xff] }
 0x140   : > { %5624 = vmatprep.mubr.f32.mxu0 %v8282_v62  ;;  %v2067_v46 = vpop.f32.mrf.mxu0  ;;  %v5066_v43 = vpop.f32.mrf.mxu1  ;;  %v8347_v5 = vld [vmem:[#allocation21_spill] sm:$0xff] }
 0x141   : > { %v7404_v39 = vadd.f32 %v2067_v46, %v1794_v25  ;;  %v1809_v47 = vadd.f32 %v5066_v43, %v8337_v13  ;;  %v8348_v46 = vld [vmem:[#allocation73_spill] sm:$0xff] }
 0x142   : > { %5545 = vmatmul.mubr.f32.gmra.mxu1 %v8336_v37  ;;  %v5146_v16 = vpop.f32.mrf.mxu0  ;;  %v1803_v20 = vpop.f32.mrf.mxu1  ;;  %v8349_v37 = vld [vmem:[#allocation23_spill] sm:$0xff]  ;;  %v8351_v15 = vld [vmem:[#allocation25_spill] sm:$0xff] }
 0x143   : > { %5547 = vmatprep.mubr.f32.mxu1 %v8338_v7  ;;  %5625 = vmatmul.mubr.msk.f32.gmra.mxu0 %vm8285_vm9, %v8339_v61  ;;  %v7411_v30 = vadd.f32 %v5146_v16, %v1809_v47  ;;  %v1804_v62 = vadd.f32 %v1803_v20, %v8341_v29  ;;  %v8350_v7 = vld [vmem:[#allocation37_spill] sm:$0xff]  ;;  %v8352_v29 = vld [vmem:[#allocation38_spill] sm:$0xff] }
 0x144   : > { %5627 = vmatprep.mubr.f32.mxu0 %v8288_v63  ;;  %v2077_v42 = vpop.f32.mrf.mxu0  ;;  %v5069_v44 = vpop.f32.mrf.mxu1 }
 0x145   : > { %v7416_v8 = vadd.f32 %v2077_v42, %v1804_v62  ;;  %v1819_v48 = vadd.f32 %v5069_v44, %v8343_v24  ;;  %v8353_v42 = vld [vmem:[#allocation27_spill] sm:$0xff] }
 0x146   : > { %5548 = vmatmul.mubr.f32.gmra.mxu1 %v8342_v53  ;;  %v5149_v27 = vpop.f32.mrf.mxu0  ;;  %v1813_v17 = vpop.f32.mrf.mxu1  ;;  %v8356_v24 = vld [vmem:[#allocation31_spill] sm:$0xff] }
 0x147   : > { %5550 = vmatprep.mubr.f32.mxu1 %v8344_v28  ;;  %5628 = vmatmul.mubr.msk.f32.gmra.mxu0 %vm8291_vm7, %v8289_v50  ;;  %v7423_v51 = vadd.f32 %v5149_v27, %v1819_v48  ;;  %v1814_v63 = vadd.f32 %v1813_v17, %v8346_v38  ;;  %v8357_v27 = vld [vmem:[#allocation29_spill] sm:$0xff]  ;;  %v8358_v17 = vld [vmem:[#allocation32_spill] sm:$0xff] }
 0x148   : > { %5630 = vmatprep.mubr.f32.mxu0 %v8293_v32  ;;  %v2087_v55 = vpop.f32.mrf.mxu0  ;;  %v5072_v31 = vpop.f32.mrf.mxu1 }
 0x149   : > { %v7428_v25 = vadd.f32 %v2087_v55, %v1814_v63  ;;  %v1829_v43 = vadd.f32 %v5072_v31, %v8348_v46  ;;  %v8360_v31 = vld [vmem:[#allocation34_spill] sm:$0xff] }
 0x14a   : > { %5551 = vmatmul.mubr.f32.gmra.mxu1 %v8347_v5  ;;  %v5152_v13 = vpop.f32.mrf.mxu0  ;;  %v1823_v50 = vpop.f32.mrf.mxu1 }
 0x14b   : > { %5553 = vmatprep.mubr.f32.mxu1 %v8349_v37  ;;  %5631 = vmatmul.mubr.msk.f32.gmra.mxu0 %vm8296_vm2, %v8294_v45  ;;  %v7435_v47 = vadd.f32 %v5152_v13, %v1829_v43  ;;  %v1824_v32 = vadd.f32 %v1823_v50, %v8350_v7  ;;  %v8361_v13 = vld [vmem:[#allocation33_spill] sm:$0xff] }
 0x14c   : > { %5633 = vmatprep.mubr.f32.mxu0 %v6726_v54  ;;  %v2097_v16 = vpop.f32.mrf.mxu0  ;;  %v5075_v61 = vpop.f32.mrf.mxu1 }
 0x14d   : > { %v7440_v20 = vadd.f32 %v2097_v16, %v1824_v32  ;;  %v1839_v62 = vadd.f32 %v5075_v61, %v8352_v29  ;;  %v8363_v61 = vld [vmem:[#allocation39_spill] sm:$0xff] }
 0x14e   : > { %5554 = vmatmul.mubr.f32.gmra.mxu1 %v8351_v15  ;;  %v5155_v44 = vpop.f32.mrf.mxu0  ;;  %v1833_v45 = vpop.f32.mrf.mxu1 }
 0x14f   : > { %5556 = vmatprep.mubr.f32.mxu1 %v8353_v42  ;;  %5634 = vmatmul.mubr.msk.f32.gmra.mxu0 %vm8355_vm13, %v6741_v4  ;;  %v7447_v53 = vadd.f32 %v5155_v44, %v1839_v62  ;;  %v1834_v54 = vadd.f32 %v1833_v45, %v8356_v24 }
 0x150   : > { %5636 = vmatprep.mubr.f32.mxu0 %v6768_v9  ;;  %v2107_v48 = vpop.f32.mrf.mxu0  ;;  %v5078_v28 = vpop.f32.mrf.mxu1 }
 0x151   : > { %v7452_v52 = vadd.f32 %v2107_v48, %v1834_v54  ;;  %v1849_v38 = vadd.f32 %v5078_v28, %v8358_v17 }
 0x152   : > { %5557 = vmatmul.mubr.f32.gmra.mxu1 %v8357_v27  ;;  %v1843_v4 = vpop.f32.mrf.mxu1 }
 0x153   : > { %5559 = vmatprep.mubr.f32.mxu1 %v6155_v23  ;;  %v5158_v63 = vpop.f32.mrf.mxu0  ;;  %5637 = vmatmul.mubr.msk.f32.gmra.mxu0 %vm8359_vm4, %v6784_v18  ;;  %v1844_v9 = vadd.f32 %v1843_v4, %v8360_v31 }
 0x154   : > { %v7459_v55 = vadd.f32 %v5158_v63, %v1849_v38  ;;  %5639 = vmatprep.mubr.f32.mxu0 %v7259_v35 }
 0x155   : > { %v2117_v5 = vpop.f32.mrf.mxu0 }
 0x156   : > { %v5081_v46 = vpop.f32.mrf.mxu1  ;;  %5560 = vmatmul.mubr.f32.gmra.mxu1 %v8233_v21  ;;  %v7464_v43 = vadd.f32 %v2117_v5, %v1844_v9 }
 0x157   : > { %v1859_v23 = vadd.f32 %v5081_v46, %v7232_v2  ;;  %5562 = vmatprep.mubr.f32.mxu1 %v8309_v41  ;;  %v5161_v37 = vpop.f32.mrf.mxu0  ;;  %5640 = vmatmul.mubr.msk.f32.gmra.mxu0 %vm7264_vm0, %v7272_v57  ;;  %v8362_v2 = vld [vmem:[#allocation35_spill] sm:$0xff] }
 0x158   : > { %v1853_v40 = vpop.f32.mrf.mxu1  ;;  %5642 = vmatprep.mubr.f32.mxu0 %v8309_v41 }
 0x159   : > { %v7471_v18 = vadd.f32 %v5161_v37, %v1859_v23  ;;  %v1854_v35 = vadd.f32 %v1853_v40, %v8361_v13  ;;  %v2127_v50 = vpop.f32.mrf.mxu0 }
 0x15a   : > { %v5084_v21 = vpop.f32.mrf.mxu1  ;;  %5563 = vmatmul.mubr.f32.gmra.mxu1 %v8309_v41 }
 0x15b   : > { %v7476_v7 = vadd.f32 %v2127_v50, %v1854_v35  ;;  %v1869_v32 = vadd.f32 %v5084_v21, %v8362_v2  ;;  %v5164_v16 = vpop.f32.mrf.mxu0  ;;  %5643 = vmatmul.mubr.f32.gmra.mxu0 %v8309_v41 }
 0x15c   : > { %v1863_v0 = vpop.f32.mrf.mxu1 }
 0x15d   : > { %v7480_v57 = vadd.f32 %v5164_v16, %v1869_v32  ;;  %v1864_v15 = vadd.f32 %v1863_v0, %v8363_v61  ;;  %v2137_v29 = vpop.f32.mrf.mxu0 }
 0x15e   : > { %v5199_v62 = vpop.f32.mrf.mxu1 }
 0x15f   : > { %v7483_v42 = vadd.f32 %v2137_v29, %v1864_v15  ;;  %v2453_v44 = vadd.f32 %v5199_v62, %v7303_v6  ;;  %v5279_v60 = vpop.f32.mrf.mxu0 }
 0x160   : > { %v2293_v45 = vpop.f32.mrf.mxu1 }
 0x161   : > { %v7486_v24 = vadd.f32 %v5279_v60, %v2453_v44  ;;  %v2452_v54 = vadd.f32 %v2293_v45, %v7308_v14  ;;  %v2599_v48 = vpop.f32.mrf.mxu0 }
 0x162   : > { %v5202_v28 = vpop.f32.mrf.mxu1 }
 0x163   : > { %v7489_v41 = vadd.f32 %v2599_v48, %v2452_v54  ;;  %v2455_v27 = vadd.f32 %v5202_v28, %v7315_v56  ;;  %v5282_v17 = vpop.f32.mrf.mxu0 }
 0x164   : > { %v2303_v38 = vpop.f32.mrf.mxu1 }
 0x165   : > { %v7492_v63 = vadd.f32 %v5282_v17, %v2455_v27  ;;  %v2454_v4 = vadd.f32 %v2303_v38, %v7320_v49  ;;  %v2609_v31 = vpop.f32.mrf.mxu0 }
 0x166   : > { %v5205_v6 = vpop.f32.mrf.mxu1 }
 0x167   : > { %v7495_v9 = vadd.f32 %v2609_v31, %v2454_v4  ;;  %v2457_v5 = vadd.f32 %v5205_v6, %v7327_v36  ;;  %v5285_v46 = vpop.f32.mrf.mxu0 }
 0x168   : > { %v2313_v14 = vpop.f32.mrf.mxu1 }
 0x169   : > { %v7498_v23 = vadd.f32 %v5285_v46, %v2457_v5  ;;  %v2456_v37 = vadd.f32 %v2313_v14, %v7332_v1  ;;  %v2619_v40 = vpop.f32.mrf.mxu0 }
 0x16a   : > { %v5208_v56 = vpop.f32.mrf.mxu1 }
 0x16b   : > { %v7501_v13 = vadd.f32 %v2619_v40, %v2456_v37  ;;  %v2459_v35 = vadd.f32 %v5208_v56, %v7339_v3  ;;  %v5288_v50 = vpop.f32.mrf.mxu0 }
 0x16c   : > { %v2323_v49 = vpop.f32.mrf.mxu1 }
 0x16d   : > { %v7504_v21 = vadd.f32 %v5288_v50, %v2459_v35  ;;  %v2458_v2 = vadd.f32 %v2323_v49, %v7344_v58  ;;  %v2629_v32 = vpop.f32.mrf.mxu0 }
 0x16e   : > { %v5211_v36 = vpop.f32.mrf.mxu1 }
 0x16f   : > { %v7507_v16 = vadd.f32 %v2629_v32, %v2458_v2  ;;  %v2461_v0 = vadd.f32 %v5211_v36, %v7351_v59  ;;  %v5291_v61 = vpop.f32.mrf.mxu0 }
 0x170   : > { %v2333_v1 = vpop.f32.mrf.mxu1 }
 0x171   : > { %v7510_v15 = vadd.f32 %v5291_v61, %v2461_v0  ;;  %v2460_v29 = vadd.f32 %v2333_v1, %v7356_v33  ;;  %v2639_v62 = vpop.f32.mrf.mxu0 }
 0x172   : > { %v5214_v3 = vpop.f32.mrf.mxu1 }
 0x173   : > { %v7513_v44 = vadd.f32 %v2639_v62, %v2460_v29  ;;  %v2463_v60 = vadd.f32 %v5214_v3, %v7363_v19  ;;  %v5294_v45 = vpop.f32.mrf.mxu0 }
 0x174   : > { %v2343_v58 = vpop.f32.mrf.mxu1 }
 0x175   : > { %v7516_v54 = vadd.f32 %v5294_v45, %v2463_v60  ;;  %v2462_v48 = vadd.f32 %v2343_v58, %v7368_v34  ;;  %v2649_v28 = vpop.f32.mrf.mxu0 }
 0x176   : > { %v5217_v59 = vpop.f32.mrf.mxu1 }
 0x177   : > { %v7519_v27 = vadd.f32 %v2649_v28, %v2462_v48  ;;  %v2465_v17 = vadd.f32 %v5217_v59, %v7375_v10  ;;  %v5297_v38 = vpop.f32.mrf.mxu0 }
 0x178   : > { %v2353_v33 = vpop.f32.mrf.mxu1 }
 0x179   : > { %v7522_v4 = vadd.f32 %v5297_v38, %v2465_v17  ;;  %v2464_v31 = vadd.f32 %v2353_v33, %v7380_v22  ;;  %v2659_v6 = vpop.f32.mrf.mxu0 }
 0x17a   : > { %v5220_v19 = vpop.f32.mrf.mxu1 }
 0x17b   : > { %v7525_v5 = vadd.f32 %v2659_v6, %v2464_v31  ;;  %v2467_v46 = vadd.f32 %v5220_v19, %v7387_v26  ;;  %v5300_v14 = vpop.f32.mrf.mxu0 }
 0x17c   : > { %v2363_v34 = vpop.f32.mrf.mxu1 }
 0x17d   : > { %v7528_v37 = vadd.f32 %v5300_v14, %v2467_v46  ;;  %v2466_v40 = vadd.f32 %v2363_v34, %v7392_v11  ;;  %v2669_v56 = vpop.f32.mrf.mxu0 }
 0x17e   : > { %v5223_v10 = vpop.f32.mrf.mxu1 }
 0x17f   : > { %v7531_v35 = vadd.f32 %v2669_v56, %v2466_v40  ;;  %v2469_v50 = vadd.f32 %v5223_v10, %v7399_v12  ;;  %v5303_v49 = vpop.f32.mrf.mxu0 }
 0x180   : > { %v2373_v22 = vpop.f32.mrf.mxu1 }
 0x181   : > { %v7534_v2 = vadd.f32 %v5303_v49, %v2469_v50  ;;  %v2468_v32 = vadd.f32 %v2373_v22, %v7404_v39  ;;  %v2679_v36 = vpop.f32.mrf.mxu0 }
 0x182   : > { %v5226_v26 = vpop.f32.mrf.mxu1 }
 0x183   : > { %v7537_v0 = vadd.f32 %v2679_v36, %v2468_v32  ;;  %v2471_v61 = vadd.f32 %v5226_v26, %v7411_v30  ;;  %v5306_v1 = vpop.f32.mrf.mxu0 }
 0x184   : > { %v2383_v11 = vpop.f32.mrf.mxu1 }
 0x185   : > { %v7540_v29 = vadd.f32 %v5306_v1, %v2471_v61  ;;  %v2470_v62 = vadd.f32 %v2383_v11, %v7416_v8  ;;  %v2689_v3 = vpop.f32.mrf.mxu0 }
 0x186   : > { %v5229_v12 = vpop.f32.mrf.mxu1 }
 0x187   : > { %8364 = vst [vmem:[#allocation36_spill] sm:$0xff] %v7540_v29  ;;  %v7543_v60 = vadd.f32 %v2689_v3, %v2470_v62  ;;  %v2473_v45 = vadd.f32 %v5229_v12, %v7423_v51  ;;  %v5309_v58 = vpop.f32.mrf.mxu0 }
 0x188   : > { %v2393_v39 = vpop.f32.mrf.mxu1 }
 0x189   : > { %8365 = vst [vmem:[#allocation40_spill] sm:$0xff] %v7543_v60  ;;  %v7546_v48 = vadd.f32 %v5309_v58, %v2473_v45  ;;  %v2472_v28 = vadd.f32 %v2393_v39, %v7428_v25  ;;  %v2699_v59 = vpop.f32.mrf.mxu0 }
 0x18a   : > { %v5232_v30 = vpop.f32.mrf.mxu1 }
 0x18b   : > { %8366 = vst [vmem:[#allocation42_spill] sm:$0xff] %v7546_v48  ;;  %v7549_v17 = vadd.f32 %v2699_v59, %v2472_v28  ;;  %v2475_v38 = vadd.f32 %v5232_v30, %v7435_v47  ;;  %v5312_v33 = vpop.f32.mrf.mxu0 }
 0x18c   : > { %v2403_v8 = vpop.f32.mrf.mxu1 }
 0x18d   : > { %8367 = vst [vmem:[#allocation41_spill] sm:$0xff] %v7549_v17  ;;  %v7552_v31 = vadd.f32 %v5312_v33, %v2475_v38  ;;  %v2474_v6 = vadd.f32 %v2403_v8, %v7440_v20  ;;  %v2709_v19 = vpop.f32.mrf.mxu0 }
 0x18e   : > { %v5235_v51 = vpop.f32.mrf.mxu1 }
 0x18f   : > { %8368 = vst [vmem:[#allocation43_spill] sm:$0xff] %v7552_v31  ;;  %v7555_v46 = vadd.f32 %v2709_v19, %v2474_v6  ;;  %v2477_v14 = vadd.f32 %v5235_v51, %v7447_v53  ;;  %v5315_v34 = vpop.f32.mrf.mxu0 }
 0x190   : > { %v2413_v25 = vpop.f32.mrf.mxu1 }
 0x191   : > { %8369 = vst [vmem:[#allocation44_spill] sm:$0xff] %v7555_v46  ;;  %v7558_v40 = vadd.f32 %v5315_v34, %v2477_v14  ;;  %v2476_v56 = vadd.f32 %v2413_v25, %v7452_v52  ;;  %v2719_v10 = vpop.f32.mrf.mxu0 }
 0x192   : > { %v5238_v47 = vpop.f32.mrf.mxu1 }
 0x193   : > { %8370 = vst [vmem:[#allocation45_spill] sm:$0xff] %v7558_v40  ;;  %v7561_v50 = vadd.f32 %v2719_v10, %v2476_v56  ;;  %v2479_v49 = vadd.f32 %v5238_v47, %v7459_v55  ;;  %v5318_v22 = vpop.f32.mrf.mxu0 }
 0x194   : > { %v2423_v20 = vpop.f32.mrf.mxu1 }
 0x195   : > { %8371 = vst [vmem:[#allocation46_spill] sm:$0xff] %v7561_v50  ;;  %v7564_v32 = vadd.f32 %v5318_v22, %v2479_v49  ;;  %v2478_v36 = vadd.f32 %v2423_v20, %v7464_v43  ;;  %v2729_v26 = vpop.f32.mrf.mxu0 }
 0x196   : > { %v5241_v53 = vpop.f32.mrf.mxu1 }
 0x197   : > { %8372 = vst [vmem:[#allocation47_spill] sm:$0xff] %v7564_v32  ;;  %v7567_v61 = vadd.f32 %v2729_v26, %v2478_v36  ;;  %v2481_v1 = vadd.f32 %v5241_v53, %v7471_v18  ;;  %v5321_v11 = vpop.f32.mrf.mxu0 }
 0x198   : > { %v2433_v52 = vpop.f32.mrf.mxu1 }
 0x199   : > { %8373 = vst [vmem:[#allocation48_spill] sm:$0xff] %v7567_v61  ;;  %v7570_v62 = vadd.f32 %v5321_v11, %v2481_v1  ;;  %v2480_v3 = vadd.f32 %v2433_v52, %v7476_v7  ;;  %v2739_v12 = vpop.f32.mrf.mxu0 }
 0x19a   : > { %v5244_v55 = vpop.f32.mrf.mxu1 }
 0x19b   : > { %8374 = vst [vmem:[#allocation50_spill] sm:$0xff] %v7570_v62  ;;  %v7573_v45 = vadd.f32 %v2739_v12, %v2480_v3  ;;  %v2483_v58 = vadd.f32 %v5244_v55, %v7480_v57  ;;  %v5324_v39 = vpop.f32.mrf.mxu0 }
 0x19c   : > { %v2443_v43 = vpop.f32.mrf.mxu1 }
 0x19d   : > { %8375 = vst [vmem:[#allocation54_spill] sm:$0xff] %v7573_v45  ;;  %v7576_v28 = vadd.f32 %v5324_v39, %v2483_v58  ;;  %v2482_v59 = vadd.f32 %v2443_v43, %v7483_v42  ;;  %v2749_v30 = vpop.f32.mrf.mxu0 }
 0x19e   : > { %v5359_v18 = vpop.f32.mrf.mxu1 }
 0x19f   : > { %8376 = vst [vmem:[#allocation55_spill] sm:$0xff] %v7576_v28  ;;  %v7579_v38 = vadd.f32 %v2749_v30, %v2482_v59  ;;  %v7581_v33 = vpop.f32.mrf.mxu0 }
 0x1a0   : > { %v2905_v8 = vpop.f32.mrf.mxu1 }
 0x1a1   : > { %8377 = vst [vmem:[#allocation58_spill] sm:$0xff] %v7579_v38  ;;  %v7583_v7 = vpop.f32.mrf.mxu0 }
 0x1a2   : > { %v5362_v6 = vpop.f32.mrf.mxu1 }
 0x1a3   : > { %v7585_v19 = vpop.f32.mrf.mxu0 }
 0x1a4   : > { %v7587_v51 = vpop.f32.mrf.mxu1 }
 0x1a5   : > { %v7589_v57 = vpop.f32.mrf.mxu0 }
 0x1a6   : > { %v7591_v14 = vpop.f32.mrf.mxu1 }
 0x1a7   : > { %v7593_v34 = vpop.f32.mrf.mxu0 }
 0x1a8   : > { %v7595_v42 = vpop.f32.mrf.mxu1 }
 0x1a9   : > { %v7597_v25 = vpop.f32.mrf.mxu0 }
 0x1aa   : > { %v7599_v56 = vpop.f32.mrf.mxu1 }
 0x1ab   : > { %v7601_v10 = vpop.f32.mrf.mxu0 }
 0x1ac   : > { %v7603_v47 = vpop.f32.mrf.mxu1 }
 0x1ad   : > { %v7605_v49 = vpop.f32.mrf.mxu0 }
 0x1ae   : > { %v7607_v22 = vpop.f32.mrf.mxu1 }
 0x1af   : > { %v7609_v20 = vpop.f32.mrf.mxu0 }
 0x1b0   : > { %v7611_v36 = vpop.f32.mrf.mxu1 }
 0x1b1   : > { %v7613_v26 = vpop.f32.mrf.mxu0 }
 0x1b2   : > { %v7615_v53 = vpop.f32.mrf.mxu1 }
 0x1b3   : > { %v7617_v1 = vpop.f32.mrf.mxu0 }
 0x1b4   : > { %v7619_v11 = vpop.f32.mrf.mxu1 }
 0x1b5   : > { %v7621_v52 = vpop.f32.mrf.mxu0 }
 0x1b6   : > { %v7623_v3 = vpop.f32.mrf.mxu1 }
 0x1b7   : > { %v7625_v12 = vpop.f32.mrf.mxu0 }
 0x1b8   : > { %v7627_v55 = vpop.f32.mrf.mxu1 }
 0x1b9   : > { %v7629_v58 = vpop.f32.mrf.mxu0 }
 0x1ba   : > { %v7631_v39 = vpop.f32.mrf.mxu1 }
 0x1bb   : > { %v7633_v43 = vpop.f32.mrf.mxu0 }
 0x1bc   : > { %v7635_v59 = vpop.f32.mrf.mxu1 }
 0x1bd   : > { %v7637_v30 = vpop.f32.mrf.mxu0 }
 0x1be   : > { %v7639_v38 = vpop.f32.mrf.mxu1 }
 0x1bf   : > { %v7641_v28 = vpop.f32.mrf.mxu0 }
 0x1c0   : > { %v7643_v45 = vpop.f32.mrf.mxu1 }
 0x1c1   : > { %v7645_v62 = vpop.f32.mrf.mxu0 }
 0x1c2   : > { %8378 = vst [vmem:[#allocation62_spill] sm:$0xff] %v7645_v62  ;;  %v7647_v61 = vpop.f32.mrf.mxu1 }
 0x1c3   : > { %8379 = vst [vmem:[#allocation63_spill] sm:$0xff] %v7647_v61  ;;  %v7649_v32 = vpop.f32.mrf.mxu0 }
 0x1c4   : > { %8380 = vst [vmem:[#allocation66_spill] sm:$0xff] %v7649_v32  ;;  %v7651_v50 = vpop.f32.mrf.mxu1 }
 0x1c5   : > { %8381 = vst [vmem:[#allocation67_spill] sm:$0xff] %v7651_v50  ;;  %v7653_v40 = vpop.f32.mrf.mxu0 }
 0x1c6   : > { %8382 = vst [vmem:[#allocation70_spill] sm:$0xff] %v7653_v40  ;;  %v7655_v46 = vpop.f32.mrf.mxu1 }
 0x1c7   : > { %8383 = vst [vmem:[#allocation74_spill] sm:$0xff] %v7655_v46  ;;  %v7657_v31 = vpop.f32.mrf.mxu0 }
 0x1c8   : > { %8384 = vst [vmem:[#allocation75_spill] sm:$0xff] %v7657_v31  ;;  %v7659_v17 = vpop.f32.mrf.mxu1 }
 0x1c9   : > { %8385 = vst [vmem:[#allocation77_spill] sm:$0xff] %v7659_v17  ;;  %v7661_v48 = vpop.f32.mrf.mxu0 }
 0x1ca   : > { %8386 = vst [vmem:[#allocation78_spill] sm:$0xff] %v7661_v48  ;;  %v7663_v60 = vpop.f32.mrf.mxu1 }
 0x1cb   : > { %8387 = vst [vmem:[#allocation79_spill] sm:$0xff] %v7663_v60  ;;  %v7665_v29 = vpop.f32.mrf.mxu0 }
 0x1cc   : > { %8388 = vst [vmem:[#allocation12_spill] sm:$0xff] %v7665_v29  ;;  %v7667_v62 = vpop.f32.mrf.mxu1 }
 0x1cd   : > { %8389 = vst [vmem:[#allocation14_spill] sm:$0xff] %v7667_v62  ;;  %v7669_v61 = vpop.f32.mrf.mxu0 }
 0x1ce   : > { %8390 = vst [vmem:[#allocation16_spill] sm:$0xff] %v7669_v61  ;;  %v7671_v32 = vpop.f32.mrf.mxu1 }
 0x1cf   : > { %8391 = vst [vmem:[#allocation18_spill] sm:$0xff] %v7671_v32  ;;  %v7673_v50 = vpop.f32.mrf.mxu0 }
 0x1d0   : > { %8392 = vst [vmem:[#allocation20_spill] sm:$0xff] %v7673_v50  ;;  %v7675_v40 = vpop.f32.mrf.mxu1  ;;  %v3065_v50 = vadd.f32 %v5359_v18, %v7486_v24  ;;  %v3066_v24 = vadd.f32 %v7587_v51, %v7495_v9 }
 0x1d1   : > { %8393 = vst [vmem:[#allocation22_spill] sm:$0xff] %v7675_v40  ;;  %v7677_v46 = vpop.f32.mrf.mxu0 }
 0x1d2   : > { %8394 = vst [vmem:[#allocation24_spill] sm:$0xff] %v7677_v46  ;;  %v7679_v31 = vpop.f32.mrf.mxu1 }
 0x1d3   : > { %8395 = vst [vmem:[#allocation26_spill] sm:$0xff] %v7679_v31  ;;  %v7681_v17 = vpop.f32.mrf.mxu0  ;;  %v3064_v31 = vadd.f32 %v2905_v8, %v7489_v41  ;;  %v3069_v41 = vadd.f32 %v7591_v14, %v7498_v23  ;;  %v3068_v23 = vadd.f32 %v7595_v42, %v7501_v13  ;;  %v3070_v13 = vadd.f32 %v7603_v47, %v7507_v16 }
 0x1d4   : > { %8396 = vst [vmem:[#allocation28_spill] sm:$0xff] %v7681_v17  ;;  %v7683_v48 = vpop.f32.mrf.mxu1 }
 0x1d5   : > { %8397 = vst [vmem:[#allocation51_spill] sm:$0xff] %v7683_v48  ;;  %v7685_v60 = vpop.f32.mrf.mxu0  ;;  %v3375_v51 = vadd.f32 %v7593_v34, %v3069_v41  ;;  %v3376_v47 = vadd.f32 %v7605_v49, %v3070_v13 }
 0x1d6   : > { %8398 = vst [vmem:[#allocation52_spill] sm:$0xff] %v7685_v60  ;;  %v7687_v29 = vpop.f32.mrf.mxu1  ;;  %v3371_v60 = vadd.f32 %v7581_v33, %v3065_v50 }
 0x1d7   : > { %8399 = vst [vmem:[#allocation30_spill] sm:$0xff] %v7687_v29  ;;  %v7689_v62 = vpop.f32.mrf.mxu0  ;;  %v3067_v29 = vadd.f32 %v5362_v6, %v7492_v63 }
 0x1d8   : > { %8400 = vst [vmem:[#allocation5_spill] sm:$0xff] %v7689_v62  ;;  %v7691_v61 = vpop.f32.mrf.mxu1 }
 0x1d9   : > { %8401 = vst [vmem:[#allocation56_spill] sm:$0xff] %v7691_v61  ;;  %v7694_v40 = vpop.f32.mrf.mxu0  ;;  %v3370_v61 = vadd.f32 %v7583_v7, %v3064_v31  ;;  %v3373_v33 = vadd.f32 %v7585_v19, %v3067_v29 }
 0x1da   : > { %v7696_v46 = vpop.f32.mrf.mxu1 }
 0x1db   : > { %v7699_v17 = vpop.f32.mrf.mxu0 }
 0x1dc   : > { %8402 = vst [vmem:[#allocation6_spill] sm:$0xff] %v7699_v17  ;;  %v7701_v48 = vpop.f32.mrf.mxu1 }
 0x1dd   : > { %v7705_v62 = vpop.f32.mrf.mxu0 }
 0x1de   : > { %8403 = vst [vmem:[#allocation7_spill] sm:$0xff] %v7705_v62  ;;  %v5519_v32 = vpop.f32.mrf.mxu1 }
 0x1df   : > { %v3677_v18 = vadd.f32 %v5519_v32, %v3371_v60  ;;  %v5599_v63 = vpop.f32.mrf.mxu0  ;;  %v3372_v60 = vadd.f32 %v7589_v57, %v3066_v24  ;;  %v3071_v57 = vadd.f32 %v7599_v56, %v7504_v21 }
 0x1e0   : > { %v3517_v50 = vpop.f32.mrf.mxu1 }
 0x1e1   : > { %v3983_v31 = vadd.f32 %v5599_v63, %v3677_v18  ;;  %v3676_v8 = vadd.f32 %v3517_v50, %v3370_v61  ;;  %v3823_v7 = vpop.f32.mrf.mxu0  ;;  %v3374_v63 = vadd.f32 %v7597_v25, %v3068_v23  ;;  %v3377_v16 = vadd.f32 %v7601_v10, %v3071_v57 }
 0x1e2   : > { %v5522_v9 = vpop.f32.mrf.mxu1 }
 0x1e3   : > { %4123 = vst [vmem:[%s7717_s24 + $0x8] sm:$0xff] %v3983_v31  ;;  %v3982_v32 = vadd.f32 %v3823_v7, %v3676_v8  ;;  %v3679_v6 = vadd.f32 %v5522_v9, %v3373_v33  ;;  %v4053_v14 = vmul.f32 %v3983_v31, %v3983_v31  ;;  %v5602_v62 = vpop.f32.mrf.mxu0 }
 0x1e4   : > { %v3527_v17 = vpop.f32.mrf.mxu1 }
 0x1e5   : > { %v4014_v29 = vadd.f32 %v3983_v31, %v3982_v32  ;;  %v4052_v19 = vmul.f32 %v3982_v32, %v3982_v32  ;;  %4122 = vst [vmem:[%s7717_s24] sm:$0xff] %v3982_v32  ;;  %v3985_v61 = vadd.f32 %v5602_v62, %v3679_v6  ;;  %v3678_v18 = vadd.f32 %v3527_v17, %v3372_v60  ;;  %v3833_v42 = vpop.f32.mrf.mxu0 }
 0x1e6   : > { %v5525_v24 = vpop.f32.mrf.mxu1  ;;  %v3073_v62 = vadd.f32 %v7607_v22, %v7510_v15  ;;  %v3072_v22 = vadd.f32 %v7611_v36, %v7513_v44  ;;  %v3075_v6 = vadd.f32 %v7615_v53, %v7516_v54 }
 0x1e7   : > { %v4084_v34 = vadd.f32 %v4053_v14, %v4052_v19  ;;  %4125 = vst [vmem:[%s7717_s24 + $0x18] sm:$0xff] %v3985_v61  ;;  %v3984_v41 = vadd.f32 %v3833_v42, %v3678_v18  ;;  %v3681_v50 = vadd.f32 %v5525_v24, %v3375_v51  ;;  %v5605_v33 = vpop.f32.mrf.mxu0  ;;  %v4055_v9 = vmul.f32 %v3985_v61, %v3985_v61 }
 0x1e8   : > { %v3537_v17 = vpop.f32.mrf.mxu1  ;;  %v3379_v15 = vadd.f32 %v7609_v20, %v3073_v62  ;;  %v3378_v24 = vadd.f32 %v7613_v26, %v3072_v22 }
 0x1e9   : > { %v4015_v31 = vadd.f32 %v4014_v29, %v3984_v41  ;;  %v4054_v8 = vmul.f32 %v3984_v41, %v3984_v41  ;;  %4124 = vst [vmem:[%s7717_s24 + $0x10] sm:$0xff] %v3984_v41  ;;  %v3987_v21 = vadd.f32 %v5605_v33, %v3681_v50  ;;  %v3680_v56 = vadd.f32 %v3537_v17, %v3374_v63  ;;  %v3843_v25 = vpop.f32.mrf.mxu0 }
 0x1ea   : > { %v5528_v7 = vpop.f32.mrf.mxu1  ;;  %v3381_v63 = vadd.f32 %v7617_v1, %v3075_v6 }
 0x1eb   : > { %v4085_v60 = vadd.f32 %v4084_v34, %v4054_v8  ;;  %4127 = vst [vmem:[%s7717_s24 + $0x28] sm:$0xff] %v3987_v21  ;;  %v3986_v23 = vadd.f32 %v3843_v25, %v3680_v56  ;;  %v4016_v32 = vadd.f32 %v4015_v31, %v3985_v61  ;;  %v3683_v51 = vadd.f32 %v5528_v7, %v3377_v16  ;;  %v5608_v10 = vpop.f32.mrf.mxu0 }
 0x1ec   : > { %v3547_v14 = vpop.f32.mrf.mxu1  ;;  %v3074_v61 = vadd.f32 %v7619_v11, %v7519_v27  ;;  %v4057_v57 = vmul.f32 %v3987_v21, %v3987_v21  ;;  %v3077_v34 = vadd.f32 %v7623_v3, %v7522_v4  ;;  %v3076_v31 = vadd.f32 %v7627_v55, %v7525_v5 }
 0x1ed   : > { %v4017_v49 = vadd.f32 %v4016_v32, %v3986_v23  ;;  %v4056_v29 = vmul.f32 %v3986_v23, %v3986_v23  ;;  %v4086_v19 = vadd.f32 %v4085_v60, %v4055_v9  ;;  %4126 = vst [vmem:[%s7717_s24 + $0x20] sm:$0xff] %v3986_v23  ;;  %v3682_v18 = vadd.f32 %v3547_v14, %v3376_v47  ;;  %v3853_v13 = vpop.f32.mrf.mxu0 }
 0x1ee   : > { %v3989_v20 = vadd.f32 %v5608_v10, %v3683_v51  ;;  %v5531_v44 = vpop.f32.mrf.mxu1  ;;  %v3380_v17 = vadd.f32 %v7621_v52, %v3074_v61  ;;  %v3383_v16 = vadd.f32 %v7625_v12, %v3077_v34  ;;  %v3079_v52 = vadd.f32 %v7631_v39, %v7528_v37  ;;  %v8405_v34 = vld [vmem:[#allocation63_spill] sm:$0xff] }
 0x1ef   : > { %v4087_v36 = vadd.f32 %v4086_v19, %v4056_v29  ;;  %v3988_v42 = vadd.f32 %v3853_v13, %v3682_v18  ;;  %v4018_v54 = vadd.f32 %v4017_v49, %v3987_v21  ;;  %v3685_v53 = vadd.f32 %v5531_v44, %v3379_v15  ;;  %v5611_v41 = vpop.f32.mrf.mxu0 }
 0x1f0   : > { %4129 = vst [vmem:[%s7717_s24 + $0x38] sm:$0xff] %v3989_v20  ;;  %v3557_v27 = vpop.f32.mrf.mxu1  ;;  %v4059_v21 = vmul.f32 %v3989_v20, %v3989_v20  ;;  %v3382_v22 = vadd.f32 %v7629_v58, %v3076_v31  ;;  %v3078_v12 = vadd.f32 %v7635_v59, %v7531_v35  ;;  %v3081_v37 = vadd.f32 %v7639_v38, %v7534_v2  ;;  %v8408_v31 = vld [vmem:[#allocation67_spill] sm:$0xff] }
 0x1f1   : > { %v4019_v11 = vadd.f32 %v4018_v54, %v3988_v42  ;;  %v4058_v50 = vmul.f32 %v3988_v42, %v3988_v42  ;;  %v4088_v62 = vadd.f32 %v4087_v36, %v4057_v57  ;;  %4128 = vst [vmem:[%s7717_s24 + $0x30] sm:$0xff] %v3988_v42  ;;  %v3991_v33 = vadd.f32 %v5611_v41, %v3685_v53  ;;  %v3863_v8 = vpop.f32.mrf.mxu0 }
 0x1f2   : > { %v3684_v26 = vadd.f32 %v3557_v27, %v3378_v24  ;;  %v5534_v1 = vpop.f32.mrf.mxu1  ;;  %v3385_v19 = vadd.f32 %v7633_v43, %v3079_v52  ;;  %v3384_v13 = vadd.f32 %v7637_v30, %v3078_v12  ;;  %v3080_v2 = vadd.f32 %v7643_v45, %v7537_v0  ;;  %v8411_v52 = vld [vmem:[#allocation66_spill] sm:$0xff] }
 0x1f3   : > { %v4089_v4 = vadd.f32 %v4088_v62, %v4058_v50  ;;  %4131 = vst [vmem:[%s7717_s24 + $0x48] sm:$0xff] %v3991_v33  ;;  %v4020_v3 = vadd.f32 %v4019_v11, %v3989_v20  ;;  %v3687_v56 = vadd.f32 %v5534_v1, %v3381_v63  ;;  %v5614_v25 = vpop.f32.mrf.mxu0  ;;  %v4061_v39 = vmul.f32 %v3991_v33, %v3991_v33  ;;  %v8404_v63 = vld [vmem:[#allocation36_spill] sm:$0xff]  ;;  %v8412_v12 = vld [vmem:[#allocation70_spill] sm:$0xff] }
 0x1f4   : > { %v3990_v47 = vadd.f32 %v3863_v8, %v3684_v26  ;;  %v3567_v7 = vpop.f32.mrf.mxu1  ;;  %v3387_v36 = vadd.f32 %v7641_v28, %v3081_v37  ;;  %v3083_v41 = vadd.f32 %v8405_v34, %v8404_v63  ;;  %v8414_v37 = vld [vmem:[#allocation77_spill] sm:$0xff]  ;;  %v8420_v63 = vld [vmem:[#allocation14_spill] sm:$0xff] }
 0x1f5   : > { %v4090_v9 = vadd.f32 %v4089_v4, %v4059_v21  ;;  %v3993_v5 = vadd.f32 %v5614_v25, %v3687_v56  ;;  %v3686_v55 = vadd.f32 %v3567_v7, %v3380_v17  ;;  %v3873_v32 = vpop.f32.mrf.mxu0  ;;  %v8407_v17 = vld [vmem:[#allocation40_spill] sm:$0xff]  ;;  %v8409_v21 = vld [vmem:[#allocation42_spill] sm:$0xff] }
 0x1f6   : > { %v4021_v60 = vadd.f32 %v4020_v3, %v3990_v47  ;;  %v4060_v23 = vmul.f32 %v3990_v47, %v3990_v47  ;;  %4130 = vst [vmem:[%s7717_s24 + $0x40] sm:$0xff] %v3990_v47  ;;  %v5537_v15 = vpop.f32.mrf.mxu1  ;;  %v3082_v26 = vadd.f32 %v8408_v31, %v8407_v17  ;;  %v8410_v4 = vld [vmem:[#allocation74_spill] sm:$0xff]  ;;  %v8423_v17 = vld [vmem:[#allocation12_spill] sm:$0xff] }
 0x1f7   : > { %4133 = vst [vmem:[%s7717_s24 + $0x58] sm:$0xff] %v3993_v5  ;;  %v3992_v6 = vadd.f32 %v3873_v32, %v3686_v55  ;;  %v3689_v51 = vadd.f32 %v5537_v15, %v3383_v16  ;;  %v5617_v49 = vpop.f32.mrf.mxu0  ;;  %v4063_v43 = vmul.f32 %v3993_v5, %v3993_v5  ;;  %v3085_v3 = vadd.f32 %v8410_v4, %v8409_v21 }
 0x1f8   : > { %v4091_v10 = vadd.f32 %v4090_v9, %v4060_v23  ;;  %v4022_v14 = vadd.f32 %v4021_v60, %v3991_v33  ;;  %v3577_v29 = vpop.f32.mrf.mxu1  ;;  %v8406_v33 = vld [vmem:[#allocation62_spill] sm:$0xff]  ;;  %v3389_v9 = vadd.f32 %v8411_v52, %v3083_v41 }
 0x1f9   : > { %v4062_v18 = vmul.f32 %v3992_v6, %v3992_v6  ;;  %4132 = vst [vmem:[%s7717_s24 + $0x50] sm:$0xff] %v3992_v6  ;;  %v3995_v58 = vadd.f32 %v5617_v49, %v3689_v51  ;;  %v3688_v61 = vadd.f32 %v3577_v29, %v3382_v22  ;;  %v3883_v59 = vpop.f32.mrf.mxu0  ;;  %v3386_v28 = vadd.f32 %v8406_v33, %v3080_v2  ;;  %v8413_v51 = vld [vmem:[#allocation41_spill] sm:$0xff]  ;;  %v8415_v49 = vld [vmem:[#allocation75_spill] sm:$0xff] }
 0x1fa   : > { %v4023_v57 = vadd.f32 %v4022_v14, %v3992_v6  ;;  %v4092_v35 = vadd.f32 %v4091_v10, %v4061_v39  ;;  %v5540_v20 = vpop.f32.mrf.mxu1  ;;  %v3388_v6 = vadd.f32 %v8412_v12, %v3082_v26  ;;  %v3084_v39 = vadd.f32 %v8414_v37, %v8413_v51  ;;  %v8429_v51 = vld [vmem:[#allocation26_spill] sm:$0xff] }
 0x1fb   : > { %4135 = vst [vmem:[%s7717_s24 + $0x68] sm:$0xff] %v3995_v58  ;;  %v3994_v38 = vadd.f32 %v3883_v59, %v3688_v61  ;;  %v3691_v44 = vadd.f32 %v5540_v20, %v3385_v19  ;;  %v5620_v53 = vpop.f32.mrf.mxu0  ;;  %v4065_v56 = vmul.f32 %v3995_v58, %v3995_v58  ;;  %v3391_v29 = vadd.f32 %v8415_v49, %v3085_v3  ;;  %v8417_v59 = vld [vmem:[#allocation79_spill] sm:$0xff] }
 0x1fc   : > { %v4093_v42 = vadd.f32 %v4092_v35, %v4062_v18  ;;  %v4024_v54 = vadd.f32 %v4023_v57, %v3993_v5  ;;  %v3587_v24 = vpop.f32.mrf.mxu1  ;;  %v8416_v35 = vld [vmem:[#allocation43_spill] sm:$0xff] }
 0x1fd   : > { %v4064_v27 = vmul.f32 %v3994_v38, %v3994_v38  ;;  %4134 = vst [vmem:[%s7717_s24 + $0x60] sm:$0xff] %v3994_v38  ;;  %v3997_v30 = vadd.f32 %v5620_v53, %v3691_v44  ;;  %v3690_v11 = vadd.f32 %v3587_v24, %v3384_v13  ;;  %v3893_v45 = vpop.f32.mrf.mxu0  ;;  %v3087_v20 = vadd.f32 %v8417_v59, %v8416_v35  ;;  %v8419_v24 = vld [vmem:[#allocation44_spill] sm:$0xff]  ;;  %v8432_v35 = vld [vmem:[#allocation51_spill] sm:$0xff] }
 0x1fe   : > { %v4025_v50 = vadd.f32 %v4024_v54, %v3994_v38  ;;  %v4094_v0 = vadd.f32 %v4093_v42, %v4063_v43  ;;  %v5543_v62 = vpop.f32.mrf.mxu1  ;;  %v8418_v54 = vld [vmem:[#allocation78_spill] sm:$0xff]  ;;  %v3086_v34 = vadd.f32 %v8420_v63, %v8419_v24  ;;  %v8435_v24 = vld [vmem:[#allocation28_spill] sm:$0xff] }
 0x1ff   : > { %4137 = vst [vmem:[%s7717_s24 + $0x78] sm:$0xff] %v3997_v30  ;;  %v3996_v8 = vadd.f32 %v3893_v45, %v3690_v11  ;;  %v3693_v1 = vadd.f32 %v5543_v62, %v3387_v36  ;;  %v5623_v25 = vpop.f32.mrf.mxu0  ;;  %v4067_v19 = vmul.f32 %v3997_v30, %v3997_v30  ;;  %v3390_v53 = vadd.f32 %v8418_v54, %v3084_v39  ;;  %v8422_v11 = vld [vmem:[#allocation18_spill] sm:$0xff] }
 0x200   : > { %v4095_v16 = vadd.f32 %v4094_v0, %v4064_v27  ;;  %v4026_v47 = vadd.f32 %v4025_v50, %v3995_v58  ;;  %v3597_v7 = vpop.f32.mrf.mxu1  ;;  %v3393_v31 = vadd.f32 %v8423_v17, %v3087_v20 }
 0x201   : > { %v4066_v5 = vmul.f32 %v3996_v8, %v3996_v8  ;;  %4136 = vst [vmem:[%s7717_s24 + $0x70] sm:$0xff] %v3996_v8  ;;  %v3999_v55 = vadd.f32 %v5623_v25, %v3693_v1  ;;  %v3692_v60 = vadd.f32 %v3597_v7, %v3386_v28  ;;  %v3903_v15 = vpop.f32.mrf.mxu0  ;;  %v8425_v25 = vld [vmem:[#allocation46_spill] sm:$0xff] }
 0x202   : > { %v4027_v23 = vadd.f32 %v4026_v47, %v3996_v8  ;;  %v4096_v32 = vadd.f32 %v4095_v16, %v4065_v56  ;;  %v5546_v22 = vpop.f32.mrf.mxu1  ;;  %v8424_v16 = vld [vmem:[#allocation16_spill] sm:$0xff]  ;;  %v8426_v7 = vld [vmem:[#allocation22_spill] sm:$0xff] }
 0x203   : > { %4139 = vst [vmem:[%s7717_s24 + $0x88] sm:$0xff] %v3999_v55  ;;  %v3998_v10 = vadd.f32 %v3903_v15, %v3692_v60  ;;  %v3695_v14 = vadd.f32 %v5546_v22, %v3389_v9  ;;  %v5626_v61 = vpop.f32.mrf.mxu0  ;;  %v4069_v0 = vmul.f32 %v3999_v55, %v3999_v55  ;;  %v3392_v47 = vadd.f32 %v8424_v16, %v3086_v34 }
 0x204   : > { %v4097_v18 = vadd.f32 %v4096_v32, %v4066_v5  ;;  %v4028_v58 = vadd.f32 %v4027_v23, %v3997_v30  ;;  %v3607_v57 = vpop.f32.mrf.mxu1  ;;  %v8421_v30 = vld [vmem:[#allocation45_spill] sm:$0xff]  ;;  %v3088_v52 = vadd.f32 %v8426_v7, %v8425_v25 }
 0x205   : > { %v4068_v13 = vmul.f32 %v3998_v10, %v3998_v10  ;;  %4138 = vst [vmem:[%s7717_s24 + $0x80] sm:$0xff] %v3998_v10  ;;  %v4001_v2 = vadd.f32 %v5626_v61, %v3695_v14  ;;  %v3694_v38 = vadd.f32 %v3607_v57, %v3388_v6  ;;  %v3913_v43 = vpop.f32.mrf.mxu0  ;;  %v3089_v50 = vadd.f32 %v8422_v11, %v8421_v30  ;;  %v8428_v6 = vld [vmem:[#allocation47_spill] sm:$0xff]  ;;  %v8431_v57 = vld [vmem:[#allocation48_spill] sm:$0xff] }
 0x206   : > { %v4029_v44 = vadd.f32 %v4028_v58, %v3998_v10  ;;  %v4098_v36 = vadd.f32 %v4097_v18, %v4067_v19  ;;  %v5549_v42 = vpop.f32.mrf.mxu1  ;;  %v3091_v37 = vadd.f32 %v8429_v51, %v8428_v6  ;;  %v8430_v58 = vld [vmem:[#allocation24_spill] sm:$0xff]  ;;  %v3090_v59 = vadd.f32 %v8432_v35, %v8431_v57  ;;  %v8443_v57 = vld [vmem:[#allocation7_spill] sm:$0xff] }
 0x207   : > { %4141 = vst [vmem:[%s7717_s24 + $0x98] sm:$0xff] %v4001_v2  ;;  %v4000_v41 = vadd.f32 %v3913_v43, %v3694_v38  ;;  %v3697_v27 = vadd.f32 %v5549_v42, %v3391_v29  ;;  %v5629_v33 = vpop.f32.mrf.mxu0  ;;  %v4071_v23 = vmul.f32 %v4001_v2, %v4001_v2  ;;  %v3394_v61 = vadd.f32 %v8430_v58, %v3088_v52  ;;  %v8434_v38 = vld [vmem:[#allocation30_spill] sm:$0xff] }
 0x208   : > { %v4099_v45 = vadd.f32 %v4098_v36, %v4068_v13  ;;  %v4030_v62 = vadd.f32 %v4029_v44, %v3999_v55  ;;  %v3617_v28 = vpop.f32.mrf.mxu1  ;;  %v8427_v55 = vld [vmem:[#allocation20_spill] sm:$0xff]  ;;  %v3397_v63 = vadd.f32 %v8435_v24, %v3091_v37 }
 0x209   : > { %v4070_v26 = vmul.f32 %v4000_v41, %v4000_v41  ;;  %4140 = vst [vmem:[%s7717_s24 + $0x90] sm:$0xff] %v4000_v41  ;;  %v4003_v8 = vadd.f32 %v5629_v33, %v3697_v27  ;;  %v3696_v1 = vadd.f32 %v3617_v28, %v3390_v53  ;;  %v3923_v3 = vpop.f32.mrf.mxu0  ;;  %v3395_v60 = vadd.f32 %v8427_v55, %v3089_v50  ;;  %v8437_v33 = vld [vmem:[#allocation54_spill] sm:$0xff]  ;;  %v8438_v28 = vld [vmem:[#allocation56_spill] sm:$0xff] }
 0x20a   : > { %v4031_v21 = vadd.f32 %v4030_v62, %v4000_v41  ;;  %v4100_v4 = vadd.f32 %v4099_v45, %v4069_v0  ;;  %v5552_v56 = vpop.f32.mrf.mxu1  ;;  %v8436_v45 = vld [vmem:[#allocation52_spill] sm:$0xff]  ;;  %v3092_v17 = vadd.f32 %v8438_v28, %v8437_v33 }
 0x20b   : > { %4143 = vst [vmem:[%s7717_s24 + $0xa8] sm:$0xff] %v4003_v8  ;;  %v4002_v9 = vadd.f32 %v3923_v3, %v3696_v1  ;;  %v3699_v5 = vadd.f32 %v5552_v56, %v3393_v31  ;;  %v5632_v22 = vpop.f32.mrf.mxu0  ;;  %v4073_v36 = vmul.f32 %v4003_v8, %v4003_v8  ;;  %v3396_v62 = vadd.f32 %v8436_v45, %v3090_v59 }
 0x20c   : > { %v4101_v32 = vadd.f32 %v4100_v4, %v4070_v26  ;;  %v4032_v15 = vadd.f32 %v4031_v21, %v4001_v2  ;;  %v3627_v12 = vpop.f32.mrf.mxu1  ;;  %v8433_v2 = vld [vmem:[#allocation50_spill] sm:$0xff] }
 0x20d   : > { %v4072_v39 = vmul.f32 %v4002_v9, %v4002_v9  ;;  %4142 = vst [vmem:[%s7717_s24 + $0xa0] sm:$0xff] %v4002_v9  ;;  %v4005_v10 = vadd.f32 %v5632_v22, %v3699_v5  ;;  %v3698_v14 = vadd.f32 %v3627_v12, %v3392_v47  ;;  %v3933_v19 = vpop.f32.mrf.mxu0  ;;  %v3093_v44 = vadd.f32 %v8434_v38, %v8433_v2  ;;  %v8440_v47 = vld [vmem:[#allocation55_spill] sm:$0xff] }
 0x20e   : > { %v4033_v49 = vadd.f32 %v4032_v15, %v4002_v9  ;;  %v4102_v29 = vadd.f32 %v4101_v32, %v4071_v23  ;;  %v5555_v18 = vpop.f32.mrf.mxu1  ;;  %v3095_v25 = vadd.f32 %v7696_v46, %v8440_v47  ;;  %v3398_v32 = vadd.f32 %v7694_v40, %v3092_v17  ;;  %v8441_v15 = vld [vmem:[#allocation58_spill] sm:$0xff] }
 0x20f   : > { %4145 = vst [vmem:[%s7717_s24 + $0xb8] sm:$0xff] %v4005_v10  ;;  %v4004_v20 = vadd.f32 %v3933_v19, %v3698_v14  ;;  %v3701_v13 = vadd.f32 %v5555_v18, %v3395_v60  ;;  %v5635_v54 = vpop.f32.mrf.mxu0  ;;  %v4075_v21 = vmul.f32 %v4005_v10, %v4005_v10  ;;  %v3094_v22 = vadd.f32 %v7701_v48, %v8441_v15  ;;  %v8442_v14 = vld [vmem:[#allocation6_spill] sm:$0xff] }
 0x210   : > { %v4103_v43 = vadd.f32 %v4102_v29, %v4072_v39  ;;  %v4034_v42 = vadd.f32 %v4033_v49, %v4003_v8  ;;  %v3637_v53 = vpop.f32.mrf.mxu1  ;;  %v8439_v8 = vld [vmem:[#allocation5_spill] sm:$0xff]  ;;  %v3401_v49 = vadd.f32 %v8442_v14, %v3095_v25 }
 0x211   : > { %v4074_v34 = vmul.f32 %v4004_v20, %v4004_v20  ;;  %4144 = vst [vmem:[%s7717_s24 + $0xb0] sm:$0xff] %v4004_v20  ;;  %v4007_v41 = vadd.f32 %v5635_v54, %v3701_v13  ;;  %v3700_v27 = vadd.f32 %v3637_v53, %v3394_v61  ;;  %v3943_v50 = vpop.f32.mrf.mxu0  ;;  %v3399_v1 = vadd.f32 %v8439_v8, %v3093_v44 }
 0x212   : > { %v4035_v30 = vadd.f32 %v4034_v42, %v4004_v20  ;;  %v4104_v11 = vadd.f32 %v4103_v43, %v4073_v36  ;;  %v5558_v0 = vpop.f32.mrf.mxu1  ;;  %v3400_v35 = vadd.f32 %v8443_v57, %v3094_v22 }
 0x213   : > { %4147 = vst [vmem:[%s7717_s24 + $0xc8] sm:$0xff] %v4007_v41  ;;  %v4006_v31 = vadd.f32 %v3943_v50, %v3700_v27  ;;  %v3703_v26 = vadd.f32 %v5558_v0, %v3397_v63  ;;  %v5638_v56 = vpop.f32.mrf.mxu0  ;;  %v4077_v51 = vmul.f32 %v4007_v41, %v4007_v41 }
 0x214   : > { %v4105_v4 = vadd.f32 %v4104_v11, %v4074_v34  ;;  %v4036_v3 = vadd.f32 %v4035_v30, %v4005_v10  ;;  %v3647_v16 = vpop.f32.mrf.mxu1 }
 0x215   : > { %v4076_v7 = vmul.f32 %v4006_v31, %v4006_v31  ;;  %4146 = vst [vmem:[%s7717_s24 + $0xc0] sm:$0xff] %v4006_v31  ;;  %v4009_v52 = vadd.f32 %v5638_v56, %v3703_v26  ;;  %v3702_v9 = vadd.f32 %v3647_v16, %v3396_v62  ;;  %v3953_v60 = vpop.f32.mrf.mxu0 }
 0x216   : > { %v4037_v5 = vadd.f32 %v4036_v3, %v4006_v31  ;;  %v4106_v55 = vadd.f32 %v4105_v4, %v4075_v21  ;;  %v5561_v23 = vpop.f32.mrf.mxu1 }
 0x217   : > { %4149 = vst [vmem:[%s7717_s24 + $0xd8] sm:$0xff] %v4009_v52  ;;  %v4008_v12 = vadd.f32 %v3953_v60, %v3702_v9  ;;  %v3705_v6 = vadd.f32 %v5561_v23, %v3399_v1  ;;  %v5641_v39 = vpop.f32.mrf.mxu0  ;;  %v4079_v13 = vmul.f32 %v4009_v52, %v4009_v52 }
 0x218   : > { %v4107_v46 = vadd.f32 %v4106_v55, %v4076_v7  ;;  %v4038_v37 = vadd.f32 %v4037_v5, %v4007_v41  ;;  %v3657_v10 = vpop.f32.mrf.mxu1 }
 0x219   : > { %v4078_v29 = vmul.f32 %v4008_v12, %v4008_v12  ;;  %4148 = vst [vmem:[%s7717_s24 + $0xd0] sm:$0xff] %v4008_v12  ;;  %v4011_v19 = vadd.f32 %v5641_v39, %v3705_v6  ;;  %v3704_v18 = vadd.f32 %v3657_v10, %v3398_v32  ;;  %v3963_v61 = vpop.f32.mrf.mxu0 }
 0x21a   : > { %v4039_v40 = vadd.f32 %v4038_v37, %v4008_v12  ;;  %v4108_v58 = vadd.f32 %v4107_v46, %v4077_v51  ;;  %v5564_v48 = vpop.f32.mrf.mxu1 }
 0x21b   : > { %4151 = vst [vmem:[%s7717_s24 + $0xe8] sm:$0xff] %v4011_v19  ;;  %v4010_v59 = vadd.f32 %v3963_v61, %v3704_v18  ;;  %v3707_v20 = vadd.f32 %v5564_v48, %v3401_v49  ;;  %v5644_v44 = vpop.f32.mrf.mxu0  ;;  %v4081_v41 = vmul.f32 %v4011_v19, %v4011_v19 }
 0x21c   : > { %v4109_v2 = vadd.f32 %v4108_v58, %v4078_v29  ;;  %v4040_v38 = vadd.f32 %v4039_v40, %v4009_v52  ;;  %v3667_v36 = vpop.f32.mrf.mxu1 }
 0x21d   : > { %v4080_v43 = vmul.f32 %v4010_v59, %v4010_v59  ;;  %4150 = vst [vmem:[%s7717_s24 + $0xe0] sm:$0xff] %v4010_v59  ;;  %v4013_v42 = vadd.f32 %v5644_v44, %v3707_v20  ;;  %v3706_v54 = vadd.f32 %v3667_v36, %v3400_v35  ;;  %v3973_v63 = vpop.f32.mrf.mxu0 }
 0x21e   : > { %v4041_v53 = vadd.f32 %v4040_v38, %v4010_v59  ;;  %v4110_v24 = vadd.f32 %v4109_v2, %v4079_v13 }
 0x21f   : > { %4153 = vst [vmem:[%s7717_s24 + $0xf8] sm:$0xff] %v4013_v42  ;;  %v4012_v34 = vadd.f32 %v3973_v63, %v3706_v54  ;;  %v4083_v45 = vmul.f32 %v4013_v42, %v4013_v42 }
 0x220   : > { %v4111_v27 = vadd.f32 %v4110_v24, %v4080_v43  ;;  %v4042_v30 = vadd.f32 %v4041_v53, %v4011_v19 }
 0x221   : > { %v4082_v11 = vmul.f32 %v4012_v34, %v4012_v34  ;;  %4152 = vst [vmem:[%s7717_s24 + $0xf0] sm:$0xff] %v4012_v34 }
 0x222   : > { %v4043_v50 = vadd.f32 %v4042_v30, %v4012_v34  ;;  %v4112_v0 = vadd.f32 %v4111_v27, %v4081_v41 }
 0x224   : > { %v4044_v62 = vadd.f32 %v4043_v50, %v4013_v42  ;;  %v4113_v33 = vadd.f32 %v4112_v0, %v4082_v11 }
 0x226   : > { %v4045_v28 = vrot.slane %v4044_v62, 4  ;;  %v4114_v17 = vadd.f32 %v4113_v33, %v4083_v45 }
 0x228   : > { %v4046_v31 = vadd.f32 %v4045_v28, %v4044_v62  ;;  %v4115_v26 = vrot.slane %v4114_v17, 4 }
 0x22a   : > { %v4047_v8 = vrot.slane %v4046_v31, 2  ;;  %v4116_v1 = vadd.f32 %v4115_v26, %v4114_v17 }
 0x22c   : > { %v4048_v21 = vadd.f32 %v4047_v8, %v4046_v31  ;;  %v4117_v4 = vrot.slane %v4116_v1, 2 }
 0x22e   : > { %v4049_v3 = vrot.slane %v4048_v21, 1  ;;  %v4118_v56 = vadd.f32 %v4117_v4, %v4116_v1 }
 0x230   : > { %v4050_v16 = vadd.f32 %v4049_v3, %v4048_v21  ;;  %v4119_v47 = vrot.slane %v4118_v56, 1 }
 0x232   : > { %4051 = vst [vmem:[%s268_s25] sm:$0x1] %v4050_v16  ;;  %v4120_v25 = vadd.f32 %v4119_v47, %v4118_v56 }
 0x234   : > { %4121 = vst [vmem:[%s271_s29] sm:$0x1] %v4120_v25 }
 0x235 PF: > { %s17_s21 = sadd.s32 1, %s5692_s21  }
 0x236   : > { %p14_p5 = scmp.ge.s32.totalorder %s17_s21, 4  }
 0x238   :  { %16 = sbr.rel (!%p14_p5) target bundleno = 1 (0x1), region = 98 }

// kernel: dense_block_forward.9
= control target key start
LH: loop header
LB: loop body
LE: loop exit
PB: predicated region body
PF: predicated region fallthrough
CT: control target
= control target key end

     0   :  { %12 = vsyncpa [#allocation6], 0  ;;  %s8122_s0 = inlined_call_operand.vmem [shape: f32[512,128], index: 0, kind: input, shape index: {}]   ;;  %s8123_s1 = inlined_call_operand.vmem [shape: f32[1,128], index: 1, kind: input, shape index: {}]   ;;  %s8124_s2 = inlined_call_operand.vmem [shape: f32[1,128], index: 2, kind: input, shape index: {}]   ;;  %s8125_s3 = inlined_call_operand.vmem [shape: f32[9,128,128], index: 3, kind: input, shape index: {}]   ;;  %s8126_s4 = inlined_call_operand.vmem [shape: f32[512,128], index: 4, kind: output, shape index: {0}]   ;;  %s8127_s5 = inlined_call_operand.hbm [shape: f32[2,1,128], index: 5, kind: output, shape index: {1}]   ;;  %s8128_s6 = inlined_call_operand.hbm [shape: f32[2,1,128], index: 6, kind: output, shape index: {2}]  }
   0x1   :  { %14 = vsyncpa [#allocation6 + $0x1], 0 }
   0x2   :  { %15 = vsyncpa [#allocation8], 0 }
   0x3   :  { %17 = vsyncpa [#allocation8 + $0x1], 0  ;;  %s5896_s21 = smov 0   ;;  %s5898_s22 = smov 0  }
   0x4   :  { %s5900_s23 = smov 0   ;;  %s5902_s24 = smov 0  }
   0x5 LB: > { %s5917_s25 = sadd.s32 4294967295, %s5856_s24   ;;  %s4303_s26 = sadd.s32 4294967294, %s5856_s24   ;;  %s5856_s24 = sphi %s5902_s24, %s8725_s24   ;;  %s5852_s23 = sphi %s5900_s23, %s8724_s23   ;;  %s5848_s22 = sphi %s5898_s22, %s8723_s22   ;;  %s5844_s21 = sphi %s5896_s21, %s8722_s21  }
   0x6   : > { %s5921_s27 = sadd.s32 1, %s5856_s24   ;;  %s145_s28 = sadd.s32 1, %s5852_s23 }
   0x7   : > { %s142_s29 = ssub.s32 %s5856_s24, %s5921_s27  ;;  %p155_p0 = scmp.ne.s32.totalorder %s5852_s23, %s5848_s22 }
   0x8   : > { %p143_p1 = scmp.eq.s32.totalorder %s142_s29, 0  ;;  %p156_p2 = scmp.eq.s32.totalorder %s5917_s25, 1 }
   0x9   : > { %p161_p3 = scmp.ne.s32.totalorder %s5848_s22, %s5844_s21  ;;  %p162_p4 = scmp.eq.s32.totalorder %s4303_s26, 1 }
   0xa   : > { %s5932_s30 = scalar_select %p143_p1, %s5852_s23, %s145_s28  }
   0xb   : > { %p5934_p5 = por %p156_p2, %p155_p0  ;;  %p5938_p6 = por %p162_p4, %p161_p3 }
   0xc   : > { %p4306_p7 = scmp.ge.s32.totalorder %s5856_s24, 1  ;;  %p224_p8 = scmp.lt.s32.totalorder %s5856_s24, 3 }
   0xe   : > { %p225_p9 = pnand %p4306_p7, %p224_p8 }
  0x10   : > { %228 = sbr.rel (%p225_p9) target bundleno = 607 (0x25f), region = 36 }
  0x15   : > { %v4328_v0 = vld [vmem:[%s8125_s3 + $0xf8] sm:$0xff]  ;;  %v4327_v1 = vld [vmem:[%s8125_s3 + $0xf0] sm:$0xff]  ;;  %s4307_s13 = sshll.u32 %s5917_s25, 5  ;;  %v4326_v2 = vld [vmem:[%s8125_s3 + $0xe8] sm:$0xff]  ;;  %v8129_v43 = vmov 0.0   ;;  %s5859_s12 = smov [#allocation5]  }
  0x16   : > { %5689 = vmatprep.subr.mxu1 %v4328_v0  ;;  %4969 = vmatprep.subr.mxu0 %v4328_v0  ;;  %p263_p10 = scmp.lt.s32.totalorder %s4307_s13, 63  ;;  %v4325_v3 = vld [vmem:[%s8125_s3 + $0xe0] sm:$0xff]  ;;  %v4324_v4 = vld [vmem:[%s8125_s3 + $0xd8] sm:$0xff]  ;;  %v4323_v5 = vld [vmem:[%s8125_s3 + $0xd0] sm:$0xff] }
  0x17   : > { %5705 = vmatpush3.msra.mxu1 %v4328_v0  ;;  %4970 = vmatpush3.msra.mxu0 %v4328_v0  ;;  %v4322_v6 = vld [vmem:[%s8125_s3 + $0xc8] sm:$0xff]  ;;  %v4321_v7 = vld [vmem:[%s8125_s3 + $0xc0] sm:$0xff]  ;;  %v4320_v8 = vld [vmem:[%s8125_s3 + $0xb8] sm:$0xff] }
  0x18   : > { %5690 = vmatprep.subr.mxu1 %v4327_v1  ;;  %4971 = vmatprep.subr.mxu0 %v4327_v1  ;;  %s8727_s13 = smov (!%p263_p10, %s4307_s13), 63  ;;  %v4319_v9 = vld [vmem:[%s8125_s3 + $0xb0] sm:$0xff]  ;;  %v5989_v11 = vld [vmem:[%s8123_s1] ss:$0 sm:$0xff]  ;;  %v4318_v12 = vld [vmem:[%s8125_s3 + $0xa8] sm:$0xff] }
  0x19   : > { %5706 = vmatpush3.msra.mxu1 %v4327_v1  ;;  %4972 = vmatpush3.msra.mxu0 %v4327_v1  ;;  %s4308_s9 = sshll.u32 %s8727_s13, 3  ;;  %v4317_v14 = vld [vmem:[%s8125_s3 + $0xa0] sm:$0xff]  ;;  %v4316_v17 = vld [vmem:[%s8125_s3 + $0x98] sm:$0xff]  ;;  %v4315_v20 = vld [vmem:[%s8125_s3 + $0x90] sm:$0xff]  ;;  %s8040_s13 = sand.u32 1, %s5848_s22  }
  0x1a   : > { %5691 = vmatprep.subr.mxu1 %v4326_v2  ;;  %4973 = vmatprep.subr.mxu0 %v4326_v2  ;;  %s5980_s17 = scalar_lea.vmem %s8122_s0, %s4308_s9  ;;  %v6002_v16 = vld [vmem:[%s8124_s2] ss:$0 sm:$0xff]  ;;  %v4314_v25 = vld [vmem:[%s8125_s3 + $0x88] sm:$0xff]  ;;  %v1374_v38 = vld [vmem:[%s8125_s3 + $0x78] sm:$0xff]  ;;  %s7921_s14 = scalar_lea.vmem %s8126_s4, %s4308_s9 }
  0x1b   : > { %5707 = vmatpush3.msra.mxu1 %v4326_v2  ;;  %4974 = vmatpush3.msra.mxu0 %v4326_v2  ;;  %v300_v10 = vld [vmem:[%s5980_s17 + $0x70] sm:$0xff]  ;;  %v301_v13 = vld [vmem:[%s5980_s17 + $0x78] sm:$0xff]  ;;  %v302_v19 = vld [vmem:[%s5980_s17 + $0x80] sm:$0xff]  ;;  %s4441_s9 = sshll.u32 %s5917_s25, 4  ;;  %s261_s16 = scalar_lea.vmem [#allocation7], %s8040_s13 }
  0x1c   : > { %5692 = vmatprep.subr.mxu1 %v4325_v3  ;;  %4975 = vmatprep.subr.mxu0 %v4325_v3  ;;  %v339_v15 = vmul.f32 %v5989_v11, %v300_v10  ;;  %v340_v18 = vmul.f32 %v5989_v11, %v301_v13  ;;  %v286_v22 = vld [vmem:[%s5980_s17] sm:$0xff]  ;;  %v303_v23 = vld [vmem:[%s5980_s17 + $0x88] sm:$0xff]  ;;  %v341_v24 = vmul.f32 %v5989_v11, %v302_v19  ;;  %v304_v32 = vld [vmem:[%s5980_s17 + $0x90] sm:$0xff]  ;;  %s4195_s18 = sshll.u32 %s261_s16, 4  ;;  %s8050_s26 = scalar_lea.hbm %s8127_s5, %s4441_s9  ;;  %s8059_s18 = int_to_ptr.vmem [resolvable:$true] %s4195_s18 }
  0x1d   : > { %5708 = vmatpush3.msra.mxu1 %v4325_v3  ;;  %4976 = vmatpush3.msra.mxu0 %v4325_v3  ;;  %v287_v27 = vld [vmem:[%s5980_s17 + $0x8] sm:$0xff]  ;;  %v325_v28 = vmul.f32 %v5989_v11, %v286_v22  ;;  %v342_v29 = vmul.f32 %v5989_v11, %v303_v23  ;;  %v4313_v30 = vld [vmem:[%s8125_s3 + $0x80] sm:$0xff]  ;;  %v288_v36 = vld [vmem:[%s5980_s17 + $0x10] sm:$0xff]  ;;  %v343_v41 = vmul.f32 %v5989_v11, %v304_v32  ;;  %s8057_s29 = scalar_lea.hbm %s8128_s6, %s4441_s9  ;;  %s4162_s10 = scalar_lea.sflag [#allocation6], %s8040_s13 }
  0x1e   : > { %5693 = vmatprep.subr.mxu1 %v4324_v4  ;;  %4977 = vmatprep.subr.mxu0 %v4324_v4  ;;  %v378_v21 = vadd.f32 %v6002_v16, %v339_v15  ;;  %v379_v26 = vadd.f32 %v6002_v16, %v340_v18  ;;  %v380_v33 = vadd.f32 %v6002_v16, %v341_v24  ;;  %v305_v37 = vld [vmem:[%s5980_s17 + $0x98] sm:$0xff]  ;;  %v1373_v45 = vld [vmem:[%s8125_s3 + $0x70] sm:$0xff]  ;;  %v306_v50 = vld [vmem:[%s5980_s17 + $0xa0] sm:$0xff] }
  0x1f   : > { %5709 = vmatpush3.msra.mxu1 %v4324_v4  ;;  %4978 = vmatpush3.msra.mxu0 %v4324_v4  ;;  %v326_v34 = vmul.f32 %v5989_v11, %v287_v27  ;;  %v364_v39 = vadd.f32 %v6002_v16, %v325_v28  ;;  %v381_v40 = vadd.f32 %v6002_v16, %v342_v29  ;;  %v289_v42 = vld [vmem:[%s5980_s17 + $0x18] sm:$0xff]  ;;  %v4343_v51 = vld [vmem:[%s8125_s3 + $0x170] sm:$0xff]  ;;  %v290_v56 = vld [vmem:[%s5980_s17 + $0x20] sm:$0xff] }
  0x20   : > { %5694 = vmatprep.subr.mxu1 %v4323_v5  ;;  %4979 = vmatprep.subr.mxu0 %v4323_v5  ;;  %v6026_v31 = vmax.f32 %v378_v21, 0.0  ;;  %v6031_v35 = vmax.f32 %v379_v26, 0.0  ;;  %v4344_v44 = vld [vmem:[%s8125_s3 + $0x178] sm:$0xff]  ;;  %v6050_v46 = vmax.f32 %v380_v33, 0.0  ;;  %v327_v48 = vmul.f32 %v5989_v11, %v288_v36  ;;  %v307_v57 = vld [vmem:[%s5980_s17 + $0xa8] sm:$0xff]  ;;  %v1371_v1 = vld [vmem:[%s8125_s3 + $0x60] sm:$0xff] }
  0x21   : > { %5710 = vmatpush3.msra.mxu1 %v4323_v5  ;;  %4980 = vmatpush3.msra.mxu0 %v4323_v5  ;;  %v365_v47 = vadd.f32 %v6002_v16, %v326_v34  ;;  %v344_v49 = vmul.f32 %v5989_v11, %v305_v37  ;;  %v6061_v52 = vmax.f32 %v364_v39, 0.0  ;;  %v6063_v53 = vmax.f32 %v381_v40, 0.0  ;;  %v1372_v58 = vld [vmem:[%s8125_s3 + $0x68] sm:$0xff]  ;;  %v292_v13 = vld [vmem:[%s5980_s17 + $0x30] sm:$0xff]  ;;  %v1370_v15 = vld [vmem:[%s8125_s3 + $0x58] sm:$0xff] }
  0x22   : > { %5695 = vmatprep.subr.mxu1 %v4322_v6  ;;  %4981 = vmatprep.subr.mxu0 %v4322_v6  ;;  %8313 = vst [vmem:[#allocation11_spill] sm:$0xff] %v6026_v31  ;;  %8314 = vst [vmem:[#allocation12_spill] sm:$0xff] %v6031_v35  ;;  %v382_v54 = vadd.f32 %v6002_v16, %v343_v41  ;;  %v328_v55 = vmul.f32 %v5989_v11, %v289_v42  ;;  %v291_v63 = vld [vmem:[%s5980_s17 + $0x28] sm:$0xff]  ;;  %v293_v21 = vld [vmem:[%s5980_s17 + $0x38] sm:$0xff] }
  0x23   : > { %5711 = vmatpush3.msra.mxu1 %v4322_v6  ;;  %4982 = vmatpush3.msra.mxu0 %v4322_v6  ;;  %8315 = vst [vmem:[#allocation13_spill] sm:$0xff] %v6050_v46  ;;  %8316 = vst [vmem:[#allocation14_spill] sm:$0xff] %v6063_v53  ;;  %v6073_v59 = vmax.f32 %v365_v47, 0.0  ;;  %v366_v60 = vadd.f32 %v6002_v16, %v327_v48  ;;  %v383_v61 = vadd.f32 %v6002_v16, %v344_v49  ;;  %v4342_v0 = vld [vmem:[%s8125_s3 + $0x168] sm:$0xff]  ;;  %v308_v6 = vld [vmem:[%s5980_s17 + $0xb0] sm:$0xff] }
  0x24   : > { %5696 = vmatprep.subr.mxu1 %v4321_v7  ;;  %4983 = vmatprep.subr.mxu0 %v4321_v7  ;;  %v345_v62 = vmul.f32 %v5989_v11, %v306_v50  ;;  %v6087_v2 = vmax.f32 %v382_v54, 0.0  ;;  %v367_v3 = vadd.f32 %v6002_v16, %v328_v55  ;;  %v329_v4 = vmul.f32 %v5989_v11, %v290_v56  ;;  %v4340_v22 = vld [vmem:[%s8125_s3 + $0x158] sm:$0xff]  ;;  %v1369_v23 = vld [vmem:[%s8125_s3 + $0x50] sm:$0xff]  ;;  %v310_v28 = vld [vmem:[%s5980_s17 + $0xc0] sm:$0xff] }
  0x25   : > { %5712 = vmatpush3.msra.mxu1 %v4321_v7  ;;  %4984 = vmatpush3.msra.mxu0 %v4321_v7  ;;  %v346_v5 = vmul.f32 %v5989_v11, %v307_v57  ;;  %v4341_v7 = vld [vmem:[%s8125_s3 + $0x160] sm:$0xff]  ;;  %v331_v26 = vmul.f32 %v5989_v11, %v292_v13  ;;  %v4339_v29 = vld [vmem:[%s8125_s3 + $0x150] sm:$0xff]  ;;  %v332_v34 = vmul.f32 %v5989_v11, %v293_v21  ;;  %v311_v37 = vld [vmem:[%s5980_s17 + $0xc8] sm:$0xff] }
  0x26   : > { %5697 = vmatprep.subr.mxu1 %v4320_v8  ;;  %4985 = vmatprep.subr.mxu0 %v4320_v8  ;;  %8317 = vst [vmem:[#allocation15_spill] sm:$0xff] %v6087_v2  ;;  %v384_v10 = vadd.f32 %v6002_v16, %v345_v62  ;;  %v368_v18 = vadd.f32 %v6002_v16, %v329_v4  ;;  %v294_v36 = vld [vmem:[%s5980_s17 + $0x40] sm:$0xff]  ;;  %v312_v54 = vld [vmem:[%s5980_s17 + $0xd0] sm:$0xff]  ;;  %v313_v62 = vld [vmem:[%s5980_s17 + $0xd8] sm:$0xff] }
  0x27   : > { %5713 = vmatpush3.msra.mxu1 %v4320_v8  ;;  %4986 = vmatpush3.msra.mxu0 %v4320_v8  ;;  %v6097_v8 = vmax.f32 %v366_v60, 0.0  ;;  %v385_v19 = vadd.f32 %v6002_v16, %v346_v5  ;;  %v370_v40 = vadd.f32 %v6002_v16, %v331_v26  ;;  %v349_v42 = vmul.f32 %v5989_v11, %v310_v28  ;;  %v1367_v47 = vld [vmem:[%s8125_s3 + $0x40] sm:$0xff]  ;;  %v315_v26 = vld [vmem:[%s5980_s17 + $0xe8] sm:$0xff] }
  0x28   : > { %5698 = vmatprep.subr.mxu1 %v4319_v9  ;;  %4987 = vmatprep.subr.mxu0 %v4319_v9  ;;  %v6123_v24 = vmax.f32 %v384_v10, 0.0  ;;  %v371_v49 = vadd.f32 %v6002_v16, %v332_v34  ;;  %v333_v50 = vmul.f32 %v5989_v11, %v294_v36  ;;  %v4337_v55 = vld [vmem:[%s8125_s3 + $0x140] sm:$0xff]  ;;  %v351_v4 = vmul.f32 %v5989_v11, %v312_v54  ;;  %v1365_v10 = vld [vmem:[%s8125_s3 + $0x30] sm:$0xff]  ;;  %v299_v34 = vld [vmem:[%s5980_s17 + $0x68] sm:$0xff] }
  0x29   : > { %5714 = vmatpush3.msra.mxu1 %v4319_v9  ;;  %4988 = vmatpush3.msra.mxu0 %v4319_v9  ;;  %v6099_v9 = vmax.f32 %v383_v61, 0.0  ;;  %v6135_v32 = vmax.f32 %v385_v19, 0.0  ;;  %v6169_v56 = vmax.f32 %v370_v40, 0.0  ;;  %v296_v61 = vld [vmem:[%s5980_s17 + $0x50] sm:$0xff]  ;;  %v317_v36 = vld [vmem:[%s5980_s17 + $0xf8] sm:$0xff] }
  0x2a   : > { %5699 = vmatprep.subr.mxu1 %v4318_v12  ;;  %4989 = vmatprep.subr.mxu0 %v4318_v12  ;;  %8319 = vst [vmem:[#allocation17_spill] sm:$0xff] %v6123_v24  ;;  %v335_v5 = vmul.f32 %v5989_v11, %v296_v61  ;;  %v390_v21 = vadd.f32 %v6002_v16, %v351_v4 }
  0x2b   : > { %5715 = vmatpush3.msra.mxu1 %v4318_v12  ;;  %4990 = vmatpush3.msra.mxu0 %v4318_v12  ;;  %8318 = vst [vmem:[#allocation16_spill] sm:$0xff] %v6099_v9  ;;  %v330_v12 = vmul.f32 %v5989_v11, %v291_v63  ;;  %8321 = vst [vmem:[#allocation19_spill] sm:$0xff] %v6135_v32  ;;  %v1366_v63 = vld [vmem:[%s8125_s3 + $0x38] sm:$0xff]  ;;  %v356_v54 = vmul.f32 %v5989_v11, %v317_v36  ;;  %v878_v36 = vrot.slane %v6073_v59, 7 }
  0x2c   : > { %5700 = vmatprep.subr.mxu1 %v4317_v14  ;;  %4991 = vmatprep.subr.mxu0 %v4317_v14  ;;  %8324 = vst [vmem:[#allocation22_spill] sm:$0xff] %v6169_v56  ;;  %v6232_v40 = vmax.f32 %v390_v21, 0.0 }
  0x2d   : > { %5716 = vmatpush3.msra.mxu1 %v4317_v14  ;;  %4992 = vmatpush3.msra.mxu0 %v4317_v14  ;;  %v309_v14 = vld [vmem:[%s5980_s17 + $0xb8] sm:$0xff] }
  0x2e   : > { %5701 = vmatprep.subr.mxu1 %v4316_v17  ;;  %4993 = vmatprep.subr.mxu0 %v4316_v17  ;;  %v348_v27 = vmul.f32 %v5989_v11, %v309_v14  ;;  %v352_v14 = vmul.f32 %v5989_v11, %v313_v62  ;;  %8331 = vst [vmem:[#allocation29_spill] sm:$0xff] %v6232_v40 }
  0x2f   : > { %5717 = vmatpush3.msra.mxu1 %v4316_v17  ;;  %4994 = vmatpush3.msra.mxu0 %v4316_v17  ;;  %v6109_v17 = vmax.f32 %v367_v3, 0.0 }
  0x30   : > { %5702 = vmatprep.subr.mxu1 %v4315_v20  ;;  %4995 = vmatprep.subr.mxu0 %v4315_v20  ;;  %v387_v41 = vadd.f32 %v6002_v16, %v348_v27  ;;  %v1364_v27 = vld [vmem:[%s8125_s3 + $0x28] sm:$0xff] }
  0x31   : > { %5718 = vmatpush3.msra.mxu1 %v4315_v20  ;;  %4996 = vmatpush3.msra.mxu0 %v4315_v20  ;;  %v347_v20 = vmul.f32 %v5989_v11, %v308_v6  ;;  %v297_v6 = vld [vmem:[%s5980_s17 + $0x58] sm:$0xff] }
  0x32   : > { %5703 = vmatprep.subr.mxu1 %v4314_v25  ;;  %4997 = vmatprep.subr.mxu0 %v4314_v25  ;;  %v6171_v57 = vmax.f32 %v387_v41, 0.0 }
  0x33   : > { %5719 = vmatpush3.msra.mxu1 %v4314_v25  ;;  %4998 = vmatpush3.msra.mxu0 %v4314_v25  ;;  %v369_v25 = vadd.f32 %v6002_v16, %v330_v12  ;;  %v386_v33 = vadd.f32 %v6002_v16, %v347_v20 }
  0x34   : > { %5704 = vmatprep.subr.mxu1 %v4313_v30  ;;  %4999 = vmatprep.subr.mxu0 %v4313_v30  ;;  %8325 = vst [vmem:[#allocation23_spill] sm:$0xff] %v6171_v57 }
  0x35   : > { %5720 = vmatpush3.msra.mxu1 %v4313_v30  ;;  %5025 = vmatprep.mubr.f32.mxu1 %v6026_v31  ;;  %v6145_v39 = vmax.f32 %v369_v25, 0.0  ;;  %v6159_v48 = vmax.f32 %v386_v33, 0.0  ;;  %v298_v25 = vld [vmem:[%s5980_s17 + $0x60] sm:$0xff] }
  0x36   : > { %5000 = vmatpush3.msra.mxu0 %v4313_v30  ;;  %5001 = vmatprep.mubr.f32.mxu0 %v8129_v43  ;;  %v6133_v30 = vmax.f32 %v368_v18, 0.0  ;;  %v4335_v18 = vld [vmem:[%s8125_s3 + $0x130] sm:$0xff] }
  0x37   : > { %5026 = vmatmul.mubr.f32.vlgmr.msra.gmra.mxu1 %v6031_v35  ;;  %5049 = vmatprep.subr.mxu1 %v1374_v38  ;;  %8322 = vst [vmem:[#allocation20_spill] sm:$0xff] %v6145_v39  ;;  %8323 = vst [vmem:[#allocation21_spill] sm:$0xff] %v6159_v48 }
  0x38   : > { %5002 = vmatmul.mubr.f32.vlgmr.msra.gmra.mxu0 %v8129_v43  ;;  %5050 = vmatpush3.msra.mxu1 %v1374_v38  ;;  %8320 = vst [vmem:[#allocation18_spill] sm:$0xff] %v6133_v30  ;;  %v1368_v38 = vld [vmem:[%s8125_s3 + $0x48] sm:$0xff] }
  0x39   : > { %5129 = vmatprep.subr.mxu0 %v4344_v44  ;;  %5051 = vmatprep.subr.mxu1 %v1373_v45 }
  0x3a   : > { %5130 = vmatpush3.msra.mxu0 %v4344_v44  ;;  %5028 = vmatprep.mubr.f32.mxu1 %v6050_v46  ;;  %v295_v44 = vld [vmem:[%s5980_s17 + $0x48] sm:$0xff] }
  0x3b   : > { %5052 = vmatpush3.msra.mxu1 %v1373_v45  ;;  %5131 = vmatprep.subr.mxu0 %v4343_v51  ;;  %v4338_v45 = vld [vmem:[%s8125_s3 + $0x148] sm:$0xff]  ;;  %v334_v60 = vmul.f32 %v5989_v11, %v295_v44  ;;  %v354_v44 = vmul.f32 %v5989_v11, %v315_v26  ;;  %v316_v26 = vld [vmem:[%s5980_s17 + $0xf0] sm:$0xff] }
  0x3c   : > { %5004 = vmatprep.mubr.f32.mxu0 %v6061_v52  ;;  %5029 = vmatmul.mubr.f32.gmra.mxu1 %v6063_v53 }
  0x3d   : > { %5053 = vmatprep.subr.mxu1 %v1372_v58  ;;  %5132 = vmatpush3.msra.mxu0 %v4343_v51  ;;  %v350_v51 = vmul.f32 %v5989_v11, %v311_v37  ;;  %v373_v13 = vadd.f32 %v6002_v16, %v334_v60  ;;  %v4334_v37 = vld [vmem:[%s8125_s3 + $0x128] sm:$0xff]  ;;  %v393_v62 = vadd.f32 %v6002_v16, %v354_v44  ;;  %v1071_v44 = vrot.slane %v6073_v59, 1 }
  0x3e   : > { %5005 = vmatmul.mubr.f32.gmra.mxu0 %v6073_v59  ;;  %5054 = vmatpush3.msra.mxu1 %v1372_v58  ;;  %v388_v58 = vadd.f32 %v6002_v16, %v349_v42  ;;  %v337_v42 = vmul.f32 %v5989_v11, %v298_v25 }
  0x3f   : > { %5133 = vmatprep.subr.mxu0 %v4342_v0  ;;  %5055 = vmatprep.subr.mxu1 %v1371_v1  ;;  %v389_v3 = vadd.f32 %v6002_v16, %v350_v51  ;;  %v6218_v28 = vmax.f32 %v373_v13, 0.0  ;;  %v338_v51 = vmul.f32 %v5989_v11, %v299_v34  ;;  %v6276_v13 = vmax.f32 %v393_v62, 0.0 }
  0x40   : > { %5134 = vmatpush3.msra.mxu0 %v4342_v0  ;;  %5031 = vmatprep.mubr.f32.mxu1 %v6087_v2  ;;  %v6181_v0 = vmax.f32 %v371_v49, 0.0  ;;  %v6196_v12 = vmax.f32 %v388_v58, 0.0  ;;  %v1362_v58 = vld [vmem:[%s8125_s3 + $0x18] sm:$0xff]  ;;  %v376_v61 = vadd.f32 %v6002_v16, %v337_v42  ;;  %v8131_v42 = vrot.slane %v6061_v52, 1 }
  0x41   : > { %5056 = vmatpush3.msra.mxu1 %v1371_v1  ;;  %5135 = vmatprep.subr.mxu0 %v4341_v7  ;;  %v372_v1 = vadd.f32 %v6002_v16, %v333_v50  ;;  %v6207_v20 = vmax.f32 %v389_v3, 0.0  ;;  %8330 = vst [vmem:[#allocation28_spill] sm:$0xff] %v6218_v28  ;;  %v377_v4 = vadd.f32 %v6002_v16, %v338_v51  ;;  %8337 = vst [vmem:[#allocation35_spill] sm:$0xff] %v6276_v13 }
  0x42   : > { %5007 = vmatprep.mubr.f32.mxu0 %v6097_v8  ;;  %5032 = vmatmul.mubr.f32.gmra.mxu1 %v6099_v9  ;;  %8326 = vst [vmem:[#allocation24_spill] sm:$0xff] %v6181_v0  ;;  %8327 = vst [vmem:[#allocation25_spill] sm:$0xff] %v6196_v12  ;;  %v1072_v51 = vrot.slane %v6097_v8, 1 }
  0x43   : > { %5057 = vmatprep.subr.mxu1 %v1370_v15  ;;  %5136 = vmatpush3.msra.mxu0 %v4341_v7  ;;  %v4336_v7 = vld [vmem:[%s8125_s3 + $0x138] sm:$0xff]  ;;  %v6205_v19 = vmax.f32 %v372_v1, 0.0  ;;  %8329 = vst [vmem:[#allocation27_spill] sm:$0xff] %v6207_v20  ;;  %v1361_v1 = vld [vmem:[%s8125_s3 + $0x10] sm:$0xff] }
  0x44   : > { %5008 = vmatmul.mubr.f32.gmra.mxu0 %v6109_v17  ;;  %5058 = vmatpush3.msra.mxu1 %v1370_v15  ;;  %v314_v15 = vld [vmem:[%s5980_s17 + $0xe0] sm:$0xff]  ;;  %s255_s17 = scalar_lea.vmem [#allocation5], %s8040_s13 }
  0x45   : > { %5137 = vmatprep.subr.mxu0 %v4340_v22  ;;  %5059 = vmatprep.subr.mxu1 %v1369_v23  ;;  %8328 = vst [vmem:[#allocation26_spill] sm:$0xff] %v6205_v19  ;;  %v353_v33 = vmul.f32 %v5989_v11, %v314_v15  ;;  %v6282_v15 = vmax.f32 %v377_v4, 0.0  ;;  %v880_v4 = vrot.slane %v6109_v17, 7  ;;  %s4182_s15 = sshll.u32 %s255_s17, 4  ;;  %s8052_s15 = int_to_ptr.vmem [resolvable:$true] %s4182_s15 }
  0x46   : > { %5138 = vmatpush3.msra.mxu0 %v4340_v22  ;;  %5034 = vmatprep.mubr.f32.mxu1 %v6123_v24  ;;  %v336_v22 = vmul.f32 %v5989_v11, %v297_v6  ;;  %s5766_s11 = scalar_lea.vmem %s8052_s15, 16 }
  0x47   : > { %5060 = vmatpush3.msra.mxu1 %v1369_v23  ;;  %5139 = vmatprep.subr.mxu0 %v4339_v29  ;;  %v374_v23 = vadd.f32 %v6002_v16, %v335_v5  ;;  %v392_v50 = vadd.f32 %v6002_v16, %v353_v33  ;;  %v395_v5 = vadd.f32 %v6002_v16, %v356_v54  ;;  %v877_v33 = vrot.slane %v6061_v52, 7  ;;  %p5767_p11 = scmp.ne.s32.totalorder %s8052_s15, %s5766_s11 }
  0x48   : > { %5010 = vmatprep.mubr.f32.mxu0 %v6133_v30  ;;  %5035 = vmatmul.mubr.f32.gmra.mxu1 %v6135_v32  ;;  %v375_v41 = vadd.f32 %v6002_v16, %v336_v22  ;;  %8338 = vst [vmem:[#allocation36_spill] sm:$0xff] %v6282_v15  ;;  %v4330_v22 = vld [vmem:[%s8125_s3 + $0x108] sm:$0xff]  ;;  %v879_v54 = vrot.slane %v6097_v8, 7 }
  0x49   : > { %5061 = vmatprep.subr.mxu1 %v1368_v38  ;;  %5140 = vmatpush3.msra.mxu0 %v4339_v29  ;;  %v391_v29 = vadd.f32 %v6002_v16, %v352_v14  ;;  %v6264_v3 = vmax.f32 %v392_v50, 0.0  ;;  %v1360_v14 = vld [vmem:[%s8125_s3 + $0x8] sm:$0xff]  ;;  %v355_v50 = vmul.f32 %v5989_v11, %v316_v26  ;;  %v4407_v11 = vld [vmem:[%s8125_s3 + $0x370] sm:$0xff]  ;;  %p5768_p12 = pnand %p5767_p11, %p5934_p5 }
  0x4a   : > { %5011 = vmatmul.mubr.f32.gmra.mxu0 %v6145_v39  ;;  %5062 = vmatpush3.msra.mxu1 %v1368_v38  ;;  %v1363_v38 = vld [vmem:[%s8125_s3 + $0x20] sm:$0xff]  ;;  %v6252_v60 = vmax.f32 %v375_v41, 0.0  ;;  %v4360_v41 = vld [vmem:[%s8125_s3 + $0x1f8] sm:$0xff] }
  0x4b   : > { %5141 = vmatprep.subr.mxu0 %v4338_v45  ;;  %5063 = vmatprep.subr.mxu1 %v1367_v47  ;;  %v6243_v49 = vmax.f32 %v391_v29, 0.0  ;;  %8335 = vst [vmem:[#allocation33_spill] sm:$0xff] %v6264_v3  ;;  %p5769_p13 = pneg %p5768_p12 }
  0x4c   : > { %5142 = vmatpush3.msra.mxu0 %v4338_v45  ;;  %5037 = vmatprep.mubr.f32.mxu1 %v6159_v48  ;;  %v6237_v45 = vmax.f32 %v374_v23, 0.0  ;;  %8334 = vst [vmem:[#allocation32_spill] sm:$0xff] %v6252_v60  ;;  %v1359_v23 = vld [vmem:[%s8125_s3] sm:$0xff] }
  0x4d   : > { %5064 = vmatpush3.msra.mxu1 %v1367_v47  ;;  %5143 = vmatprep.subr.mxu0 %v4337_v55  ;;  %v4333_v47 = vld [vmem:[%s8125_s3 + $0x120] sm:$0xff]  ;;  %8333 = vst [vmem:[#allocation31_spill] sm:$0xff] %v6243_v49 }
  0x4e   : > { %5013 = vmatprep.mubr.f32.mxu0 %v6169_v56  ;;  %5038 = vmatmul.mubr.f32.gmra.mxu1 %v6171_v57  ;;  %8332 = vst [vmem:[#allocation30_spill] sm:$0xff] %v6237_v45 }
  0x4f   : > { %5065 = vmatprep.subr.mxu1 %v1366_v63  ;;  %5144 = vmatpush3.msra.mxu0 %v4337_v55  ;;  %v428_v55 = vlaneseq }
  0x50   : > { %5014 = vmatmul.mubr.f32.gmra.mxu0 %v6181_v0  ;;  %5066 = vmatpush3.msra.mxu1 %v1366_v63  ;;  %v4332_v63 = vld [vmem:[%s8125_s3 + $0x118] sm:$0xff] }
  0x51   : > { %5145 = vmatprep.subr.mxu0 %v4336_v7  ;;  %5067 = vmatprep.subr.mxu1 %v1365_v10  ;;  %v6268_v6 = vshrl.u32 %v428_v55, 7 }
  0x52   : > { %5146 = vmatpush3.msra.mxu0 %v4336_v7  ;;  %5040 = vmatprep.mubr.f32.mxu1 %v6196_v12  ;;  %v4331_v7 = vld [vmem:[%s8125_s3 + $0x110] sm:$0xff] }
  0x53   : > { %5068 = vmatpush3.msra.mxu1 %v1365_v10  ;;  %5147 = vmatprep.subr.mxu0 %v4335_v18  ;;  %v6274_v10 = vmax.f32 %v376_v61, 0.0  ;;  %v430_v21 = vadd.s32 8, %v6268_v6  ;;  %v431_v25 = vadd.s32 16, %v6268_v6  ;;  %v465_v29 = vand.u32 15, %v6268_v6 }
  0x54   : > { %5016 = vmatprep.mubr.f32.mxu0 %v6205_v19  ;;  %5041 = vmatmul.mubr.f32.gmra.mxu1 %v6207_v20  ;;  %vm8199_vm0 = vcmp.lt.s32.totalorder %v6268_v6, 1  ;;  %vm8186_vm1 = vcmp.lt.s32.totalorder %v6268_v6, 7  ;;  %v433_v55 = vadd.s32 32, %v6268_v6  ;;  %v434_v62 = vadd.s32 40, %v6268_v6 }
  0x55   : > { %5069 = vmatprep.subr.mxu1 %v1364_v27  ;;  %5148 = vmatpush3.msra.mxu0 %v4335_v18  ;;  %8336 = vst [vmem:[#allocation34_spill] sm:$0xff] %v6274_v10  ;;  %v6284_v18 = vmax.f32 %v395_v5, 0.0  ;;  %vm6322_vm2 = vcmp.ne.s32.totalorder %v465_v29, 0  ;;  %v1073_v5 = vrot.slane %v6109_v17, 1  ;;  %v6370_v26 = vsel %vm8199_vm0, %v878_v36, %v879_v54 }
  0x56   : > { %5017 = vmatmul.mubr.f32.gmra.mxu0 %v6218_v28  ;;  %5070 = vmatpush3.msra.mxu1 %v1364_v27  ;;  %v4329_v27 = vld [vmem:[%s8125_s3 + $0x100] sm:$0xff]  ;;  %v493_v29 = vand.u32 15, %v433_v55  ;;  %v882_v55 = vrot.slane %v6145_v39, 7 }
  0x57   : > { %5149 = vmatprep.subr.mxu0 %v4334_v37  ;;  %5071 = vmatprep.subr.mxu1 %v1363_v38  ;;  %8339 = vst [vmem:[#allocation37_spill] sm:$0xff] %v6284_v18  ;;  %v908_v34 = vrot.slane %v6284_v18, 7  ;;  %v439_v18 = vadd.s32 80, %v6268_v6 }
  0x58   : > { %5150 = vmatpush3.msra.mxu0 %v4334_v37  ;;  %5043 = vmatprep.mubr.f32.mxu1 %v6232_v40  ;;  %v472_v37 = vand.u32 15, %v430_v21  ;;  %v8343_v21 = vmov 0  ;;  %vm6421_vm6 = vcmp.ne.s32.totalorder %v493_v29, 0  ;;  %v883_v29 = vrot.slane %v6169_v56, 7 }
  0x59   : > { %5072 = vmatpush3.msra.mxu1 %v1363_v38  ;;  %5151 = vmatprep.subr.mxu0 %v4333_v47  ;;  %v432_v38 = vadd.s32 24, %v6268_v6  ;;  %v6330_v61 = vsel %vm8199_vm0, %v908_v34, %v877_v33 }
  0x5a   : > { %5019 = vmatprep.mubr.f32.mxu0 %v6237_v45  ;;  %5044 = vmatmul.mubr.f32.gmra.mxu1 %v6243_v49  ;;  %vm6351_vm3 = vcmp.ne.s32.totalorder %v472_v37, 15  ;;  %v881_v37 = vrot.slane %v6133_v30, 7 }
  0x5b   : > { %5073 = vmatprep.subr.mxu1 %v1362_v58  ;;  %5152 = vmatpush3.msra.mxu0 %v4333_v47  ;;  %v479_v47 = vand.u32 15, %v431_v25  ;;  %v8344_v21 = vsel %vm6351_vm3, 4294967295, %v8343_v21  ;;  %v6366_v25 = vsel %vm8186_vm1, %v1071_v44, %v1072_v51 }
  0x5c   : > { %5020 = vmatmul.mubr.f32.gmra.mxu0 %v6252_v60  ;;  %5074 = vmatpush3.msra.mxu1 %v1362_v58  ;;  %v4376_v58 = vld [vmem:[%s8125_s3 + $0x278] sm:$0xff]  ;;  %8345 = vst [vmem:[#allocation39_spill] sm:$0xff] %v8344_v21  ;;  %8348 = vst [vmem:[#allocation40_spill] sm:$0xff] %v6366_v25  ;;  %v884_v21 = vrot.slane %v6181_v0, 7 }
  0x5d   : > { %5153 = vmatprep.subr.mxu0 %v4332_v63  ;;  %5075 = vmatprep.subr.mxu1 %v1361_v1  ;;  %vm6355_vm4 = vcmp.ne.s32.totalorder %v479_v47, 0  ;;  %v6388_v47 = vsel %vm8186_vm1, %v1072_v51, %v1073_v5 }
  0x5e   : > { %5154 = vmatpush3.msra.mxu0 %v4332_v63  ;;  %5046 = vmatprep.mubr.f32.mxu1 %v6264_v3  ;;  %v394_v63 = vadd.f32 %v6002_v16, %v355_v50  ;;  %v6346_v16 = vsel %vm8186_vm1, %v8131_v42, %v1071_v44  ;;  %8349 = vst [vmem:[#allocation41_spill] sm:$0xff] %v6388_v47  ;;  %v8350_v50 = vmov 0  ;;  %v436_v42 = vadd.s32 56, %v6268_v6 }
  0x5f   : > { %5076 = vmatpush3.msra.mxu1 %v1361_v1  ;;  %5155 = vmatprep.subr.mxu0 %v4331_v7  ;;  %v6337_v1 = vsel %vm8199_vm0, %v877_v33, %v878_v36  ;;  %8342 = vst [vmem:[#allocation38_spill] sm:$0xff] %v6346_v16  ;;  %v4375_v33 = vld [vmem:[%s8125_s3 + $0x270] sm:$0xff]  ;;  %v6384_v36 = vsel %vm8199_vm0, %v879_v54, %v880_v4  ;;  %v4358_v54 = vld [vmem:[%s8125_s3 + $0x1e8] sm:$0xff] }
  0x60   : > { %5022 = vmatprep.mubr.f32.mxu0 %v6274_v10  ;;  %5047 = vmatmul.mubr.f32.gmra.mxu1 %v6276_v13 }
  0x61   : > { %5077 = vmatprep.subr.mxu1 %v1360_v14  ;;  %5156 = vmatpush3.msra.mxu0 %v4331_v7  ;;  %v486_v7 = vand.u32 15, %v432_v38  ;;  %v435_v38 = vadd.s32 48, %v6268_v6 }
  0x62   : > { %5023 = vmatmul.mubr.f32.gmra.mxu0 %v6282_v15  ;;  %5078 = vmatpush3.msra.mxu1 %v1360_v14  ;;  %v4359_v14 = vld [vmem:[%s8125_s3 + $0x1f0] sm:$0xff] }
  0x63   : > { %5157 = vmatprep.subr.mxu0 %v4330_v22  ;;  %5079 = vmatprep.subr.mxu1 %v1359_v23  ;;  %vm6390_vm5 = vcmp.ne.s32.totalorder %v486_v7, 15 }
  0x64   : > { %5158 = vmatpush3.msra.mxu0 %v4330_v22  ;;  %5080 = vmatpush3.msra.mxu1 %v1359_v23  ;;  %v6359_v23 = vmax.f32 %v394_v63, 0.0  ;;  %v8351_v50 = vsel %vm6390_vm5, 4294967295, %v8350_v50  ;;  %v500_v63 = vand.u32 15, %v434_v62  ;;  %v4439_v22 = vld [vmem:[%s8125_s3 + $0x470] sm:$0xff] }
  0x65   : > { %5081 = vmatprep.mubr.f32.mxu1 %v8129_v43  ;;  %5159 = vmatprep.subr.mxu0 %v4329_v27  ;;  %8352 = vst [vmem:[#allocation42_spill] sm:$0xff] %v8351_v50  ;;  %v885_v50 = vrot.slane %v6205_v19, 7 }
  0x66   : > { %5082 = vmatmul.mubr.f32.vlgmr.msra.gmra.mxu1 %v8129_v43  ;;  %5160 = vmatpush3.msra.mxu0 %v4329_v27  ;;  %v1074_v27 = vrot.slane %v6133_v30, 1  ;;  %v907_v44 = vrot.slane %v6359_v23, 7  ;;  %vm6453_vm7 = vcmp.ne.s32.totalorder %v500_v63, 15  ;;  %v438_v63 = vadd.s32 72, %v6268_v6 }
  0x67   : > { %5161 = vmatprep.mubr.f32.mxu0 %v8129_v43  ;;  %5209 = vmatprep.subr.mxu1 %v4360_v41 }
  0x68   : > { %5162 = vmatmul.mubr.f32.vlgmr.msra.gmra.mxu0 %v8129_v43  ;;  %5210 = vmatpush3.msra.mxu1 %v4360_v41  ;;  %v8132_v41 = vrot.slane %v6276_v13, 7  ;;  %v6412_v7 = vsel %vm8199_vm0, %v907_v44, %v908_v34  ;;  %v6419_v62 = vsel %vm8186_vm1, %v1073_v5, %v1074_v27  ;;  %v1076_v43 = vrot.slane %v6169_v56, 1  ;;  %v4374_v34 = vld [vmem:[%s8125_s3 + $0x268] sm:$0xff] }
  0x69   : > { %5289 = vmatprep.subr.mxu0 %v4376_v58  ;;  %5084 = vmatprep.mubr.msk.f32.mxu1 %vm6322_vm2, %v6330_v61  ;;  %8354 = vst [vmem:[#allocation44_spill] sm:$0xff] %v6412_v7  ;;  %8355 = vst [vmem:[#allocation45_spill] sm:$0xff] %v6419_v62  ;;  %v507_v5 = vand.u32 15, %v435_v38  ;;  %v4357_v38 = vld [vmem:[%s8125_s3 + $0x1e0] sm:$0xff]  ;;  %v886_v7 = vrot.slane %v6218_v28, 7 }
  0x6a   : > { %5290 = vmatpush3.msra.mxu0 %v4376_v58  ;;  %5085 = vmatmul.mubr.f32.gmra.mxu1 %v6337_v1  ;;  %v1075_v58 = vrot.slane %v6145_v39, 1  ;;  %v6406_v51 = vsel %vm8199_vm0, %v8132_v41, %v907_v44  ;;  %v6433_v44 = vsel %vm8199_vm0, %v880_v4, %v881_v37  ;;  %v437_v41 = vadd.s32 64, %v6268_v6 }
  0x6b   : > { %5164 = vmatprep.mubr.f32.mxu0 %v6346_v16  ;;  %5211 = vmatprep.subr.mxu1 %v4359_v14  ;;  %8353 = vst [vmem:[#allocation43_spill] sm:$0xff] %v6406_v51  ;;  %vm6472_vm8 = vcmp.ne.s32.totalorder %v507_v5, 0  ;;  %v4437_v16 = vld [vmem:[%s8125_s3 + $0x460] sm:$0xff]  ;;  %v4436_v51 = vld [vmem:[%s8125_s3 + $0x458] sm:$0xff] }
  0x6c   : > { %5165 = vmatmul.mubr.msk.f32.gmra.mxu0 %vm6351_vm3, %v6366_v25  ;;  %5212 = vmatpush3.msra.mxu1 %v4359_v14  ;;  %v6448_v4 = vsel %vm8186_vm1, %v1074_v27, %v1075_v58  ;;  %v1078_v25 = vrot.slane %v6205_v19, 1  ;;  %v6464_v27 = vsel %vm8186_vm1, %v1075_v58, %v1076_v43  ;;  %v6478_v58 = vsel %vm8199_vm0, %v882_v55, %v883_v29  ;;  %v4438_v14 = vld [vmem:[%s8125_s3 + $0x468] sm:$0xff] }
  0x6d   : > { %5291 = vmatprep.subr.mxu0 %v4375_v33  ;;  %5087 = vmatprep.mubr.msk.f32.mxu1 %vm6355_vm4, %v6370_v26  ;;  %8358 = vst [vmem:[#allocation46_spill] sm:$0xff] %v6448_v4  ;;  %8362 = vst [vmem:[#allocation48_spill] sm:$0xff] %v6464_v27  ;;  %v890_v19 = vrot.slane %v6282_v15, 7 }
  0x6e   : > { %5292 = vmatpush3.msra.mxu0 %v4375_v33  ;;  %5088 = vmatmul.mubr.f32.gmra.mxu1 %v6384_v36  ;;  %v6440_v33 = vsel %vm8199_vm0, %v881_v37, %v882_v55  ;;  %v1077_v37 = vrot.slane %v6181_v0, 1 }
  0x6f   : > { %5167 = vmatprep.mubr.f32.mxu0 %v6388_v47  ;;  %5213 = vmatprep.subr.mxu1 %v4358_v54  ;;  %v8359_v47 = vmov 0 }
  0x70   : > { %5168 = vmatmul.mubr.msk.f32.gmra.mxu0 %vm6390_vm5, %v6419_v62  ;;  %5214 = vmatpush3.msra.mxu1 %v4358_v54  ;;  %v8360_v47 = vsel %vm6453_vm7, 4294967295, %v8359_v47  ;;  %v514_v54 = vand.u32 15, %v436_v42  ;;  %v4373_v62 = vld [vmem:[%s8125_s3 + $0x260] sm:$0xff]  ;;  %v521_v42 = vand.u32 15, %v437_v41  ;;  %v6492_v55 = vsel %vm8186_vm1, %v1076_v43, %v1077_v37  ;;  %v4356_v41 = vld [vmem:[%s8125_s3 + $0x1d8] sm:$0xff] }
  0x71   : > { %8361 = vst [vmem:[#allocation47_spill] sm:$0xff] %v8360_v47  ;;  %5293 = vmatprep.subr.mxu0 %v4374_v34  ;;  %5090 = vmatprep.mubr.msk.f32.mxu1 %vm6421_vm6, %v6433_v44  ;;  %8365 = vst [vmem:[#allocation49_spill] sm:$0xff] %v6492_v55  ;;  %v6499_v5 = vsel %vm8186_vm1, %v1077_v37, %v1078_v25  ;;  %v8367_v43 = vmov 0  ;;  %v528_v47 = vand.u32 15, %v438_v63  ;;  %v440_v37 = vadd.s32 88, %v6268_v6 }
  0x72   : > { %5294 = vmatpush3.msra.mxu0 %v4374_v34  ;;  %5091 = vmatmul.mubr.f32.gmra.mxu1 %v6440_v33  ;;  %v6484_v34 = vsel %vm8199_vm0, %v883_v29, %v884_v21  ;;  %8366 = vst [vmem:[#allocation50_spill] sm:$0xff] %v6499_v5  ;;  %v1079_v29 = vrot.slane %v6218_v28, 1  ;;  %vm6506_vm9 = vcmp.ne.s32.totalorder %v514_v54, 15  ;;  %vm6519_vm10 = vcmp.ne.s32.totalorder %v521_v42, 0  ;;  %v4355_v42 = vld [vmem:[%s8125_s3 + $0x1d0] sm:$0xff] }
  0x73   : > { %5170 = vmatprep.mubr.f32.mxu0 %v6448_v4  ;;  %5215 = vmatprep.subr.mxu1 %v4357_v38  ;;  %v1080_v4 = vrot.slane %v6237_v45, 1  ;;  %v8368_v43 = vsel %vm6506_vm9, 4294967295, %v8367_v43  ;;  %v535_v54 = vand.u32 15, %v439_v18  ;;  %v887_v28 = vrot.slane %v6237_v45, 7 }
  0x74   : > { %5171 = vmatmul.mubr.msk.f32.gmra.mxu0 %vm6453_vm7, %v6464_v27  ;;  %5216 = vmatpush3.msra.mxu1 %v4357_v38  ;;  %8369 = vst [vmem:[#allocation51_spill] sm:$0xff] %v8368_v43  ;;  %v6512_v38 = vsel %vm8199_vm0, %v884_v21, %v885_v50  ;;  %v4372_v27 = vld [vmem:[%s8125_s3 + $0x258] sm:$0xff]  ;;  %v441_v21 = vadd.s32 96, %v6268_v6  ;;  %v888_v63 = vrot.slane %v6252_v60, 7  ;;  %v6536_v18 = vsel %vm8186_vm1, %v1078_v25, %v1079_v29 }
  0x75   : > { %5295 = vmatprep.subr.mxu0 %v4373_v62  ;;  %5093 = vmatprep.mubr.msk.f32.mxu1 %vm6472_vm8, %v6478_v58  ;;  %8372 = vst [vmem:[#allocation52_spill] sm:$0xff] %v6536_v18  ;;  %v1082_v45 = vrot.slane %v6274_v10, 1  ;;  %vm6550_vm11 = vcmp.ne.s32.totalorder %v528_v47, 15  ;;  %v8374_v25 = vmov 0  ;;  %v889_v43 = vrot.slane %v6274_v10, 7 }
  0x76   : > { %5296 = vmatpush3.msra.mxu0 %v4373_v62  ;;  %5094 = vmatmul.mubr.f32.gmra.mxu1 %v6484_v34  ;;  %v6528_v62 = vsel %vm8199_vm0, %v885_v50, %v886_v7  ;;  %v1081_v50 = vrot.slane %v6252_v60, 1  ;;  %v8375_v25 = vsel %vm6550_vm11, 4294967295, %v8374_v25  ;;  %vm6560_vm12 = vcmp.ne.s32.totalorder %v535_v54, 0  ;;  %v4354_v54 = vld [vmem:[%s8125_s3 + $0x1c8] sm:$0xff] }
  0x77   : > { %5173 = vmatprep.mubr.f32.mxu0 %v6492_v55  ;;  %5217 = vmatprep.subr.mxu1 %v4356_v41  ;;  %v6543_v55 = vsel %vm8186_vm1, %v1079_v29, %v1080_v4  ;;  %8376 = vst [vmem:[#allocation54_spill] sm:$0xff] %v8375_v25  ;;  %v4371_v29 = vld [vmem:[%s8125_s3 + $0x250] sm:$0xff]  ;;  %v8377_v60 = vmov 0  ;;  %v6566_v47 = vsel %vm8199_vm0, %v886_v7, %v887_v28  ;;  %v443_v10 = vadd.s32 112, %v6268_v6 }
  0x78   : > { %5174 = vmatmul.mubr.msk.f32.gmra.mxu0 %vm6506_vm9, %v6499_v5  ;;  %5218 = vmatpush3.msra.mxu1 %v4356_v41  ;;  %8373 = vst [vmem:[#allocation53_spill] sm:$0xff] %v6543_v55  ;;  %v542_v41 = vand.u32 15, %v440_v37  ;;  %v442_v5 = vadd.s32 104, %v6268_v6  ;;  %v8378_v60 = vsel %vm6560_vm12, 4294967295, %v8377_v60  ;;  %v549_v37 = vand.u32 15, %v441_v21 }
  0x79   : > { %5297 = vmatprep.subr.mxu0 %v4372_v27  ;;  %5096 = vmatprep.mubr.msk.f32.mxu1 %vm6519_vm10, %v6512_v38  ;;  %8379 = vst [vmem:[#allocation55_spill] sm:$0xff] %v8378_v60  ;;  %v6580_v7 = vsel %vm8186_vm1, %v1080_v4, %v1081_v50  ;;  %v6587_v21 = vsel %vm8186_vm1, %v1081_v50, %v1082_v45  ;;  %v8382_v4 = vmov 0  ;;  %v444_v50 = vadd.s32 120, %v6268_v6 }
  0x7a   : > { %5298 = vmatpush3.msra.mxu0 %v4372_v27  ;;  %5097 = vmatmul.mubr.f32.gmra.mxu1 %v6528_v62  ;;  %v6572_v27 = vsel %vm8199_vm0, %v887_v28, %v888_v63  ;;  %8380 = vst [vmem:[#allocation56_spill] sm:$0xff] %v6580_v7  ;;  %8381 = vst [vmem:[#allocation57_spill] sm:$0xff] %v6587_v21  ;;  %v1083_v28 = vrot.slane %v6282_v15, 1  ;;  %vm6594_vm13 = vcmp.ne.s32.totalorder %v542_v41, 15  ;;  %v556_v25 = vand.u32 15, %v442_v5  ;;  %v4434_v15 = vld [vmem:[%s8125_s3 + $0x448] sm:$0xff] }
  0x7b   : > { %5176 = vmatprep.mubr.f32.mxu0 %v6536_v18  ;;  %5219 = vmatprep.subr.mxu1 %v4355_v42  ;;  %v1084_v18 = vrot.slane %v6026_v31, 1  ;;  %v8383_v4 = vsel %vm6594_vm13, 4294967295, %v8382_v4  ;;  %vm6607_vm14 = vcmp.ne.s32.totalorder %v549_v37, 0  ;;  %v563_v41 = vand.u32 15, %v443_v10  ;;  %v4353_v37 = vld [vmem:[%s8125_s3 + $0x1c0] sm:$0xff] }
  0x7c   : > { %5177 = vmatmul.mubr.msk.f32.gmra.mxu0 %vm6550_vm11, %v6543_v55  ;;  %5220 = vmatpush3.msra.mxu1 %v4355_v42  ;;  %8384 = vst [vmem:[#allocation58_spill] sm:$0xff] %v8383_v4  ;;  %v6600_v42 = vsel %vm8199_vm0, %v888_v63, %v889_v43  ;;  %v4370_v55 = vld [vmem:[%s8125_s3 + $0x248] sm:$0xff]  ;;  %v891_v60 = vrot.slane %v6026_v31, 7  ;;  %v445_v63 = vadd.s32 128, %v6268_v6  ;;  %v6616_v5 = vsel %vm8199_vm0, %v889_v43, %v890_v19 }
  0x7d   : > { %5299 = vmatprep.subr.mxu0 %v4371_v29  ;;  %5099 = vmatprep.mubr.msk.f32.mxu1 %vm6560_vm12, %v6566_v47  ;;  %8387 = vst [vmem:[#allocation59_spill] sm:$0xff] %v6616_v5  ;;  %v6624_v10 = vsel %vm8186_vm1, %v1082_v45, %v1083_v28  ;;  %v1085_v43 = vrot.slane %v6031_v35, 1  ;;  %v1086_v31 = vrot.slane %v6050_v46, 1  ;;  %vm6638_vm15 = vcmp.ne.s32.totalorder %v556_v25, 15 }
  0x7e   : > { %5300 = vmatpush3.msra.mxu0 %v4371_v29  ;;  %5100 = vmatmul.mubr.f32.gmra.mxu1 %v6572_v27  ;;  %v892_v29 = vrot.slane %v6031_v35, 7  ;;  %8388 = vst [vmem:[#allocation60_spill] sm:$0xff] %v6624_v10  ;;  %v8390_v45 = vmov 0  ;;  %v893_v4 = vrot.slane %v6050_v46, 7  ;;  %v8393_v35 = vmov 0 }
  0x7f   : > { %5179 = vmatprep.mubr.f32.mxu0 %v6580_v7  ;;  %5221 = vmatprep.subr.mxu1 %v4354_v54  ;;  %v6631_v7 = vsel %vm8186_vm1, %v1083_v28, %v1084_v18  ;;  %v8391_v45 = vsel %vm6638_vm15, 4294967295, %v8390_v45  ;;  %v4369_v28 = vld [vmem:[%s8125_s3 + $0x240] sm:$0xff]  ;;  %vm6648_vm1 = vcmp.ne.s32.totalorder %v563_v41, 0  ;;  %v6654_v25 = vsel %vm8199_vm0, %v890_v19, %v891_v60  ;;  %v4352_v41 = vld [vmem:[%s8125_s3 + $0x1b8] sm:$0xff] }
  0x80   : > { %5180 = vmatmul.mubr.msk.f32.gmra.mxu0 %vm6594_vm13, %v6587_v21  ;;  %5222 = vmatpush3.msra.mxu1 %v4354_v54  ;;  %8389 = vst [vmem:[#allocation61_spill] sm:$0xff] %v6631_v7  ;;  %8392 = vst [vmem:[#allocation62_spill] sm:$0xff] %v8391_v45  ;;  %v570_v54 = vand.u32 15, %v444_v50  ;;  %v446_v21 = vadd.s32 136, %v6268_v6  ;;  %v8394_v35 = vsel %vm6648_vm1, 4294967295, %v8393_v35  ;;  %v577_v50 = vand.u32 15, %v445_v63 }
  0x81   : > { %5301 = vmatprep.subr.mxu0 %v4370_v55  ;;  %5102 = vmatprep.mubr.msk.f32.mxu1 %vm6607_vm14, %v6600_v42  ;;  %8395 = vst [vmem:[#allocation63_spill] sm:$0xff] %v8394_v35  ;;  %v447_v46 = vadd.s32 144, %v6268_v6  ;;  %vm8396_vm13 = vcmp.lt.s32.totalorder %v6268_v6, 7  ;;  %v895_v35 = vrot.slane %v6087_v2, 7 }
  0x82   : > { %5302 = vmatpush3.msra.mxu0 %v4370_v55  ;;  %5103 = vmatmul.mubr.f32.gmra.mxu1 %v6616_v5  ;;  %v6660_v55 = vsel %vm8199_vm0, %v891_v60, %v892_v29  ;;  %v894_v5 = vrot.slane %v6063_v53, 7  ;;  %v6668_v19 = vsel %vm8396_vm13, %v1084_v18, %v1085_v43  ;;  %vm8398_vm11 = vmmov %vm8396_vm13  ;;  %v1087_v60 = vrot.slane %v6063_v53, 1  ;;  %v4432_v53 = vld [vmem:[%s8125_s3 + $0x438] sm:$0xff] }
  0x83   : > { %5182 = vmatprep.mubr.f32.mxu0 %v6624_v10  ;;  %5223 = vmatprep.subr.mxu1 %v4353_v37  ;;  %8397 = vst [vmem:[#allocation64_spill] sm:$0xff] %v6668_v19  ;;  %v6675_v63 = vsel %vm8398_vm11, %v1085_v43, %v1086_v31  ;;  %v1088_v10 = vrot.slane %v6087_v2, 1  ;;  %vm6682_vm0 = vcmp.ne.s32.totalorder %v570_v54, 15  ;;  %v8400_v18 = vmov 0 }
  0x84   : > { %5183 = vmatmul.mubr.msk.f32.gmra.mxu0 %vm6638_vm15, %v6631_v7  ;;  %5224 = vmatpush3.msra.mxu1 %v4353_v37  ;;  %8399 = vst [vmem:[#allocation65_spill] sm:$0xff] %v6675_v63  ;;  %v8401_v18 = vsel %vm6682_vm0, 4294967295, %v8400_v18  ;;  %vm8403_vm13 = vcmp.lt.s32.totalorder %v6268_v6, 1  ;;  %v584_v45 = vand.u32 15, %v446_v21  ;;  %v448_v43 = vadd.s32 152, %v6268_v6  ;;  %v4368_v7 = vld [vmem:[%s8125_s3 + $0x238] sm:$0xff] }
  0x85   : > { %5303 = vmatprep.subr.mxu0 %v4369_v28  ;;  %5105 = vmatprep.mubr.msk.f32.mxu1 %vm6648_vm1, %v6654_v25  ;;  %8402 = vst [vmem:[#allocation66_spill] sm:$0xff] %v8401_v18  ;;  %v6688_v37 = vsel %vm8403_vm13, %v892_v29, %v893_v4  ;;  %vm6695_vm11 = vcmp.ne.s32.totalorder %v577_v50, 0  ;;  %v591_v54 = vand.u32 15, %v447_v46  ;;  %v449_v29 = vadd.s32 160, %v6268_v6  ;;  %v4351_v50 = vld [vmem:[%s8125_s3 + $0x1b0] sm:$0xff] }
  0x86   : > { %5304 = vmatpush3.msra.mxu0 %v4369_v28  ;;  %5106 = vmatmul.mubr.f32.gmra.mxu1 %v6660_v55  ;;  %v6704_v21 = vsel %vm8403_vm13, %v893_v4, %v894_v5  ;;  %v896_v28 = vrot.slane %v6099_v9, 7  ;;  %vm8407_vm15 = vcmp.lt.s32.totalorder %v6268_v6, 7  ;;  %v1089_v4 = vrot.slane %v6099_v9, 1 }
  0x87   : > { %5185 = vmatprep.mubr.f32.mxu0 %v6668_v19  ;;  %5225 = vmatprep.subr.mxu1 %v4352_v41  ;;  %8406 = vst [vmem:[#allocation67_spill] sm:$0xff] %v6704_v21  ;;  %v6712_v46 = vsel %vm8407_vm15, %v1086_v31, %v1087_v60  ;;  %vm8409_vm9 = vmmov %vm8407_vm15  ;;  %v1090_v2 = vrot.slane %v6123_v24, 1  ;;  %vm6726_vm13 = vcmp.ne.s32.totalorder %v584_v45, 15  ;;  %v8411_v31 = vmov 0 }
  0x88   : > { %5186 = vmatmul.mubr.msk.f32.gmra.mxu0 %vm6682_vm0, %v6675_v63  ;;  %5226 = vmatpush3.msra.mxu1 %v4352_v41  ;;  %8408 = vst [vmem:[#allocation68_spill] sm:$0xff] %v6712_v46  ;;  %v6719_v19 = vsel %vm8409_vm9, %v1087_v60, %v1088_v10  ;;  %v8412_v31 = vsel %vm6726_vm13, 4294967295, %v8411_v31  ;;  %v598_v41 = vand.u32 15, %v448_v43  ;;  %v897_v18 = vrot.slane %v6123_v24, 7  ;;  %v4367_v60 = vld [vmem:[%s8125_s3 + $0x230] sm:$0xff] }
  0x89   : > { %8410 = vst [vmem:[#allocation69_spill] sm:$0xff] %v6719_v19  ;;  %5305 = vmatprep.subr.mxu0 %v4368_v7  ;;  %5108 = vmatprep.mubr.msk.f32.mxu1 %vm6695_vm11, %v6688_v37  ;;  %8413 = vst [vmem:[#allocation70_spill] sm:$0xff] %v8412_v31  ;;  %v450_v63 = vadd.s32 168, %v6268_v6  ;;  %vm6736_vm9 = vcmp.ne.s32.totalorder %v591_v54, 0  ;;  %v8414_v9 = vmov 0  ;;  %vm8417_vm15 = vcmp.lt.s32.totalorder %v6268_v6, 1 }
  0x8a   : > { %5306 = vmatpush3.msra.mxu0 %v4368_v7  ;;  %5109 = vmatmul.mubr.f32.gmra.mxu1 %v6704_v21  ;;  %v8415_v9 = vsel %vm6736_vm9, 4294967295, %v8414_v9  ;;  %v6742_v45 = vsel %vm8417_vm15, %v894_v5, %v895_v35  ;;  %v605_v43 = vand.u32 15, %v449_v29  ;;  %v451_v24 = vadd.s32 176, %v6268_v6  ;;  %vm8418_vm0 = vmmov %vm8417_vm15  ;;  %v4350_v54 = vld [vmem:[%s8125_s3 + $0x1a8] sm:$0xff] }
  0x8b   : > { %8416 = vst [vmem:[#allocation71_spill] sm:$0xff] %v8415_v9  ;;  %5188 = vmatprep.mubr.f32.mxu0 %v6712_v46  ;;  %5227 = vmatprep.subr.mxu1 %v4351_v50  ;;  %v6748_v7 = vsel %vm8418_vm0, %v895_v35, %v896_v28  ;;  %v898_v21 = vrot.slane %v6135_v32, 7  ;;  %vm8419_vm15 = vcmp.lt.s32.totalorder %v6268_v6, 7  ;;  %v1091_v35 = vrot.slane %v6135_v32, 1  ;;  %v4430_v32 = vld [vmem:[%s8125_s3 + $0x428] sm:$0xff] }
  0x8c   : > { %5189 = vmatmul.mubr.msk.f32.gmra.mxu0 %vm6726_vm13, %v6719_v19  ;;  %5228 = vmatpush3.msra.mxu1 %v4351_v50  ;;  %v6756_v5 = vsel %vm8419_vm15, %v1088_v10, %v1089_v4  ;;  %vm8421_vm7 = vmmov %vm8419_vm15  ;;  %v1092_v46 = vrot.slane %v6159_v48, 1  ;;  %vm6770_vm0 = vcmp.ne.s32.totalorder %v598_v41, 15  ;;  %v8423_v10 = vmov 0  ;;  %v4366_v19 = vld [vmem:[%s8125_s3 + $0x228] sm:$0xff] }
  0x8d   : > { %8420 = vst [vmem:[#allocation72_spill] sm:$0xff] %v6756_v5  ;;  %v6763_v29 = vsel %vm8421_vm7, %v1089_v4, %v1090_v2  ;;  %5307 = vmatprep.subr.mxu0 %v4367_v60  ;;  %5111 = vmatprep.mubr.msk.f32.mxu1 %vm6736_vm9, %v6742_v45  ;;  %v8424_v10 = vsel %vm6770_vm0, 4294967295, %v8423_v10  ;;  %vm8426_vm15 = vcmp.lt.s32.totalorder %v6268_v6, 1  ;;  %v612_v31 = vand.u32 15, %v450_v63 }
  0x8e   : > { %8422 = vst [vmem:[#allocation73_spill] sm:$0xff] %v6763_v29  ;;  %8425 = vst [vmem:[#allocation74_spill] sm:$0xff] %v8424_v10  ;;  %v6776_v50 = vsel %vm8426_vm15, %v896_v28, %v897_v18  ;;  %v452_v4 = vadd.s32 184, %v6268_v6  ;;  %5308 = vmatpush3.msra.mxu0 %v4367_v60  ;;  %5112 = vmatmul.mubr.f32.gmra.mxu1 %v6748_v7  ;;  %vm6783_vm7 = vcmp.ne.s32.totalorder %v605_v43, 0  ;;  %v619_v41 = vand.u32 15, %v451_v24  ;;  %v4349_v43 = vld [vmem:[%s8125_s3 + $0x1a0] sm:$0xff] }
  0x8f   : > { %v899_v9 = vrot.slane %v6159_v48, 7  ;;  %v453_v28 = vadd.s32 192, %v6268_v6  ;;  %5191 = vmatprep.mubr.f32.mxu0 %v6756_v5  ;;  %5229 = vmatprep.subr.mxu1 %v4350_v54  ;;  %v6792_v63 = vsel %vm8426_vm15, %v897_v18, %v898_v21  ;;  %v900_v60 = vrot.slane %v6171_v57, 7 }
  0x90   : > { %8429 = vst [vmem:[#allocation75_spill] sm:$0xff] %v6792_v63  ;;  %5192 = vmatmul.mubr.msk.f32.gmra.mxu0 %vm6770_vm0, %v6763_v29  ;;  %5230 = vmatpush3.msra.mxu1 %v4350_v54  ;;  %vm8430_vm13 = vcmp.lt.s32.totalorder %v6268_v6, 7  ;;  %v1093_v18 = vrot.slane %v6171_v57, 1  ;;  %v1094_v48 = vrot.slane %v6196_v12, 1  ;;  %vm6814_vm15 = vcmp.ne.s32.totalorder %v612_v31, 15 }
  0x91   : > { %v6800_v24 = vsel %vm8430_vm13, %v1090_v2, %v1091_v35  ;;  %vm8432_vm5 = vmmov %vm8430_vm13  ;;  %5309 = vmatprep.subr.mxu0 %v4366_v19  ;;  %5114 = vmatprep.mubr.msk.f32.mxu1 %vm6783_vm7, %v6776_v50  ;;  %v8434_v2 = vmov 0  ;;  %v626_v54 = vand.u32 15, %v452_v4  ;;  %v901_v10 = vrot.slane %v6196_v12, 7 }
  0x92   : > { %8431 = vst [vmem:[#allocation76_spill] sm:$0xff] %v6800_v24  ;;  %v6807_v5 = vsel %vm8432_vm5, %v1091_v35, %v1092_v46  ;;  %v8435_v2 = vsel %vm6814_vm15, 4294967295, %v8434_v2  ;;  %v454_v29 = vadd.s32 200, %v6268_v6  ;;  %5310 = vmatpush3.msra.mxu0 %v4366_v19  ;;  %5115 = vmatmul.mubr.f32.gmra.mxu1 %v6792_v63  ;;  %v4365_v35 = vld [vmem:[%s8125_s3 + $0x220] sm:$0xff]  ;;  %vm6824_vm5 = vcmp.ne.s32.totalorder %v619_v41, 0  ;;  %v4348_v41 = vld [vmem:[%s8125_s3 + $0x198] sm:$0xff] }
  0x93   : > { %8433 = vst [vmem:[#allocation77_spill] sm:$0xff] %v6807_v5  ;;  %8436 = vst [vmem:[#allocation78_spill] sm:$0xff] %v8435_v2  ;;  %v8437_v57 = vmov 0  ;;  %vm8440_vm13 = vcmp.lt.s32.totalorder %v6268_v6, 1  ;;  %v633_v4 = vand.u32 15, %v453_v28  ;;  %v455_v12 = vadd.s32 208, %v6268_v6  ;;  %5194 = vmatprep.mubr.f32.mxu0 %v6800_v24  ;;  %5231 = vmatprep.subr.mxu1 %v4349_v43 }
  0x94   : > { %v8438_v57 = vsel %vm6824_vm5, 4294967295, %v8437_v57  ;;  %v6830_v31 = vsel %vm8440_vm13, %v898_v21, %v899_v9  ;;  %vm8441_vm0 = vmmov %vm8440_vm13  ;;  %v902_v63 = vrot.slane %v6207_v20, 7  ;;  %5195 = vmatmul.mubr.msk.f32.gmra.mxu0 %vm6814_vm15, %v6807_v5  ;;  %5232 = vmatpush3.msra.mxu1 %v4349_v43  ;;  %vm8442_vm13 = vcmp.lt.s32.totalorder %v6268_v6, 7  ;;  %v4364_v5 = vld [vmem:[%s8125_s3 + $0x218] sm:$0xff] }
  0x95   : > { %8439 = vst [vmem:[#allocation79_spill] sm:$0xff] %v8438_v57  ;;  %v6836_v19 = vsel %vm8441_vm0, %v899_v9, %v900_v60  ;;  %v6844_v21 = vsel %vm8442_vm13, %v1092_v46, %v1093_v18  ;;  %vm8444_vm3 = vmmov %vm8442_vm13  ;;  %v1095_v9 = vrot.slane %v6207_v20, 1  ;;  %v1096_v24 = vrot.slane %v6232_v40, 1  ;;  %5311 = vmatprep.subr.mxu0 %v4365_v35  ;;  %5117 = vmatprep.mubr.msk.f32.mxu1 %vm6824_vm5, %v6830_v31 }
  0x96   : > { %8443 = vst [vmem:[#allocation80_spill] sm:$0xff] %v6844_v21  ;;  %v6851_v28 = vsel %vm8444_vm3, %v1093_v18, %v1094_v48  ;;  %vm6858_vm0 = vcmp.ne.s32.totalorder %v626_v54, 15  ;;  %v8446_v46 = vmov 0  ;;  %vm8449_vm13 = vcmp.lt.s32.totalorder %v6268_v6, 1  ;;  %5312 = vmatpush3.msra.mxu0 %v4365_v35  ;;  %5118 = vmatmul.mubr.f32.gmra.mxu1 %v6836_v19 }
  0x97   : > { %8445 = vst [vmem:[#allocation81_spill] sm:$0xff] %v6851_v28  ;;  %v8447_v46 = vsel %vm6858_vm0, 4294967295, %v8446_v46  ;;  %v6864_v43 = vsel %vm8449_vm13, %v900_v60, %v901_v10  ;;  %v640_v2 = vand.u32 15, %v454_v29  ;;  %v456_v18 = vadd.s32 216, %v6268_v6  ;;  %5197 = vmatprep.mubr.f32.mxu0 %v6844_v21  ;;  %5233 = vmatprep.subr.mxu1 %v4348_v41 }
  0x98   : > { %8448 = vst [vmem:[#allocation82_spill] sm:$0xff] %v8447_v46  ;;  %vm6871_vm3 = vcmp.ne.s32.totalorder %v633_v4, 0  ;;  %v8450_v20 = vmov 0  ;;  %v647_v54 = vand.u32 15, %v455_v12  ;;  %v903_v57 = vrot.slane %v6232_v40, 7  ;;  %5198 = vmatmul.mubr.msk.f32.gmra.mxu0 %vm6858_vm0, %v6851_v28  ;;  %5234 = vmatpush3.msra.mxu1 %v4348_v41  ;;  %v4347_v4 = vld [vmem:[%s8125_s3 + $0x190] sm:$0xff] }
  0x99   : > { %v8451_v20 = vsel %vm6871_vm3, 4294967295, %v8450_v20  ;;  %v457_v60 = vadd.s32 224, %v6268_v6  ;;  %v6880_v29 = vsel %vm8449_vm13, %v901_v10, %v902_v63  ;;  %v904_v35 = vrot.slane %v6243_v49, 7  ;;  %5313 = vmatprep.subr.mxu0 %v4364_v5  ;;  %5120 = vmatprep.mubr.msk.f32.mxu1 %vm6871_vm3, %v6864_v43 }
  0x9a   : > { %vm8452_vm15 = vcmp.lt.s32.totalorder %v6268_v6, 7  ;;  %v1097_v10 = vrot.slane %v6243_v49, 1  ;;  %vm6901_vm13 = vcmp.ne.s32.totalorder %v640_v2, 15  ;;  %v8456_v41 = vmov 0  ;;  %5314 = vmatpush3.msra.mxu0 %v4364_v5  ;;  %5121 = vmatmul.mubr.f32.gmra.mxu1 %v6880_v29 }
  0x9b   : > { %v6888_v12 = vsel %vm8452_vm15, %v1094_v48, %v1095_v9  ;;  %vm8454_vm5 = vmmov %vm8452_vm15  ;;  %v8457_v41 = vsel %vm6901_vm13, 4294967295, %v8456_v41  ;;  %v654_v48 = vand.u32 15, %v456_v18  ;;  %v1098_v46 = vrot.slane %v6264_v3, 1  ;;  %5235 = vmatprep.subr.mxu1 %v4347_v4 }
  0x9c   : > { %8453 = vst [vmem:[#allocation83_spill] sm:$0xff] %v6888_v12  ;;  %v6895_v21 = vsel %vm8454_vm5, %v1095_v9, %v1096_v24  ;;  %8458 = vst [vmem:[#allocation85_spill] sm:$0xff] %v8457_v41  ;;  %v458_v28 = vadd.s32 232, %v6268_v6  ;;  %v4363_v9 = vld [vmem:[%s8125_s3 + $0x210] sm:$0xff]  ;;  %vm6911_vm15 = vcmp.ne.s32.totalorder %v647_v54, 0  ;;  %v8459_v49 = vmov 0  ;;  %5200 = vmatprep.mubr.f32.mxu0 %v6888_v12  ;;  %5236 = vmatpush3.msra.mxu1 %v4347_v4 }
  0x9d   : > { %8455 = vst [vmem:[#allocation84_spill] sm:$0xff] %v6895_v21  ;;  %v8460_v49 = vsel %vm6911_vm15, 4294967295, %v8459_v49  ;;  %vm8461_vm5 = vcmp.lt.s32.totalorder %v6268_v6, 1  ;;  %v661_v18 = vand.u32 15, %v457_v60  ;;  %v905_v40 = vrot.slane %v6264_v3, 7  ;;  %5201 = vmatmul.mubr.msk.f32.gmra.mxu0 %vm6901_vm13, %v6895_v21  ;;  %5315 = vmatprep.subr.mxu0 %v4363_v9  ;;  %v4362_v21 = vld [vmem:[%s8125_s3 + $0x208] sm:$0xff] }
  0x9e   : > { %v6917_v2 = vsel %vm8461_vm5, %v902_v63, %v903_v57  ;;  %vm8462_vm0 = vmmov %vm8461_vm5  ;;  %vm8463_vm3 = vcmp.lt.s32.totalorder %v6268_v6, 7  ;;  %v4346_v63 = vld [vmem:[%s8125_s3 + $0x188] sm:$0xff]  ;;  %v1099_v60 = vrot.slane %v6276_v13, 1  ;;  %v8299_v41 = vrot.slane %v6359_v23, 1  ;;  %5316 = vmatpush3.msra.mxu0 %v4363_v9 }
  0x9f   : > { %v6923_v5 = vsel %vm8462_vm0, %v903_v57, %v904_v35  ;;  %v6930_v54 = vsel %vm8463_vm3, %v1096_v24, %v1097_v10  ;;  %5123 = vmatprep.mubr.msk.f32.mxu1 %vm6911_vm15, %v6917_v2  ;;  %vm6939_vm0 = vcmp.ne.s32.totalorder %v654_v48, 15  ;;  %v8464_v57 = vmov 0  ;;  %vm8467_vm5 = vmmov %vm8463_vm3  ;;  %5237 = vmatprep.subr.mxu1 %v4346_v63  ;;  %v4426_v12 = vld [vmem:[%s8125_s3 + $0x408] sm:$0xff] }
  0xa0   : > { %v8465_v57 = vsel %vm6939_vm0, 4294967295, %v8464_v57  ;;  %v6945_v4 = vsel %vm8467_vm5, %v1097_v10, %v1098_v46  ;;  %v668_v24 = vand.u32 15, %v458_v28  ;;  %5124 = vmatmul.mubr.f32.gmra.mxu1 %v6923_v5  ;;  %vm6952_vm3 = vcmp.ne.s32.totalorder %v661_v18, 0  ;;  %5203 = vmatprep.mubr.f32.mxu0 %v6930_v54 }
  0xa1   : > { %8466 = vst [vmem:[#allocation86_spill] sm:$0xff] %v8465_v57  ;;  %vm8470_vm13 = vcmp.lt.s32.totalorder %v6268_v6, 1  ;;  %v8471_v28 = vrot.slane %v6276_v13, 7  ;;  %5204 = vmatmul.mubr.msk.f32.gmra.mxu0 %vm6939_vm0, %v6945_v4  ;;  %5238 = vmatpush3.msra.mxu1 %v4346_v63  ;;  %vm8473_vm15 = vcmp.lt.s32.totalorder %v6268_v6, 7  ;;  %v4392_v63 = vld [vmem:[%s8125_s3 + $0x2f8] sm:$0xff] }
  0xa2   : > { %v6958_v48 = vsel %vm8470_vm13, %v904_v35, %v905_v40  ;;  %vm8472_vm5 = vmmov %vm8470_vm13  ;;  %v6972_v9 = vsel %vm8473_vm15, %v1098_v46, %v1099_v60  ;;  %v4345_v35 = vld [vmem:[%s8125_s3 + $0x180] sm:$0xff]  ;;  %5317 = vmatprep.subr.mxu0 %v4362_v21  ;;  %vm6980_vm13 = vcmp.ne.s32.totalorder %v668_v24, 15 }
  0xa3   : > { %v6965_v10 = vsel %vm8472_vm5, %v905_v40, %v8471_v28  ;;  %5126 = vmatprep.mubr.msk.f32.mxu1 %vm6952_vm3, %v6958_v48  ;;  %v8474_v40 = vmov 0  ;;  %vm8476_vm5 = vmmov %vm8473_vm15  ;;  %5318 = vmatpush3.msra.mxu0 %v4362_v21  ;;  %v4361_v46 = vld [vmem:[%s8125_s3 + $0x200] sm:$0xff]  ;;  %v4408_v21 = vld [vmem:[%s8125_s3 + $0x378] sm:$0xff]  ;;  %vm8501_vm15 = vnez %v8451_v20 }
  0xa4   : > { %v8475_v40 = vsel %vm6980_vm13, 4294967295, %v8474_v40  ;;  %v6988_v18 = vsel %vm8476_vm5, %v1099_v60, %v8299_v41  ;;  %5127 = vmatmul.mubr.f32.gmra.mxu1 %v6965_v10  ;;  %5206 = vmatprep.mubr.f32.mxu0 %v6972_v9  ;;  %v4391_v60 = vld [vmem:[%s8125_s3 + $0x2f0] sm:$0xff]  ;;  %v4405_v24 = vld [vmem:[%s8125_s3 + $0x360] sm:$0xff]  ;;  %v4388_v28 = vld [vmem:[%s8125_s3 + $0x2d8] sm:$0xff]  ;;  %vm8504_vm5 = vnez %v8460_v49 }
  0xa5   : > { %5239 = vmatprep.subr.mxu1 %v4345_v35  ;;  %5207 = vmatmul.mubr.msk.f32.gmra.mxu0 %vm6980_vm13, %v6988_v18  ;;  %v4385_v41 = vld [vmem:[%s8125_s3 + $0x2c0] sm:$0xff]  ;;  %v4428_v20 = vld [vmem:[%s8125_s3 + $0x418] sm:$0xff]  ;;  %v4427_v49 = vld [vmem:[%s8125_s3 + $0x410] sm:$0xff] }
  0xa6   : > { %5240 = vmatpush3.msra.mxu1 %v4345_v35  ;;  %5319 = vmatprep.subr.mxu0 %v4361_v46  ;;  %v4404_v35 = vld [vmem:[%s8125_s3 + $0x358] sm:$0xff] }
  0xa7   : > { %5241 = vmatprep.mubr.msk.f32.mxu1 %vm6322_vm2, %v6330_v61  ;;  %5320 = vmatpush3.msra.mxu0 %v4361_v46  ;;  %v4406_v61 = vld [vmem:[%s8125_s3 + $0x368] sm:$0xff]  ;;  %v8477_v46 = vld [vmem:[#allocation26_spill] sm:$0xff] }
  0xa8   : > { %5242 = vmatmul.mubr.f32.vlgmr.msra.gmra.mxu1 %v6337_v1  ;;  %5321 = vmatprep.mubr.f32.mxu0 %v6061_v52  ;;  %v4389_v1 = vld [vmem:[%s8125_s3 + $0x2e0] sm:$0xff] }
  0xa9   : > { %5369 = vmatprep.subr.mxu1 %v4392_v63  ;;  %5322 = vmatmul.mubr.f32.vlgmr.msra.gmra.mxu0 %v6073_v59  ;;  %v4390_v59 = vld [vmem:[%s8125_s3 + $0x2e8] sm:$0xff] }
  0xaa   : > { %5370 = vmatpush3.msra.mxu1 %v4392_v63  ;;  %5449 = vmatprep.subr.mxu0 %v4408_v21  ;;  %v8478_v63 = vld [vmem:[#allocation28_spill] sm:$0xff] }
  0xab   : > { %5244 = vmatprep.mubr.msk.f32.mxu1 %vm6355_vm4, %v6370_v26  ;;  %5450 = vmatpush3.msra.mxu0 %v4408_v21  ;;  %v4387_v21 = vld [vmem:[%s8125_s3 + $0x2d0] sm:$0xff] }
  0xac   : > { %5245 = vmatmul.mubr.f32.gmra.mxu1 %v6384_v36  ;;  %5324 = vmatprep.mubr.f32.mxu0 %v6097_v8 }
  0xad   : > { %5371 = vmatprep.subr.mxu1 %v4391_v60  ;;  %5325 = vmatmul.mubr.f32.gmra.mxu0 %v6109_v17 }
  0xae   : > { %5372 = vmatpush3.msra.mxu1 %v4391_v60  ;;  %5451 = vmatprep.subr.mxu0 %v4407_v11  ;;  %v8535_v60 = vld [vmem:[#allocation57_spill] sm:$0xff] }
  0xaf   : > { %5247 = vmatprep.mubr.msk.f32.mxu1 %vm6421_vm6, %v6433_v44  ;;  %5452 = vmatpush3.msra.mxu0 %v4407_v11  ;;  %v4403_v11 = vld [vmem:[%s8125_s3 + $0x350] sm:$0xff] }
  0xb0   : > { %5248 = vmatmul.mubr.f32.gmra.mxu1 %v6440_v33  ;;  %5327 = vmatprep.mubr.f32.mxu0 %v6133_v30  ;;  %v4440_v30 = vld [vmem:[%s8125_s3 + $0x478] sm:$0xff] }
  0xb1   : > { %5373 = vmatprep.subr.mxu1 %v4390_v59  ;;  %5328 = vmatmul.mubr.f32.gmra.mxu0 %v6145_v39  ;;  %v8505_v39 = vld [vmem:[#allocation29_spill] sm:$0xff] }
  0xb2   : > { %5374 = vmatpush3.msra.mxu1 %v4390_v59  ;;  %5453 = vmatprep.subr.mxu0 %v4406_v61  ;;  %v8480_v59 = vld [vmem:[#allocation30_spill] sm:$0xff] }
  0xb3   : > { %5250 = vmatprep.mubr.msk.f32.mxu1 %vm6472_vm8, %v6478_v58  ;;  %5454 = vmatpush3.msra.mxu0 %v4406_v61  ;;  %v8481_v61 = vld [vmem:[#allocation32_spill] sm:$0xff] }
  0xb4   : > { %5251 = vmatmul.mubr.f32.gmra.mxu1 %v6484_v34  ;;  %5330 = vmatprep.mubr.f32.mxu0 %v6169_v56  ;;  %v4379_v56 = vld [vmem:[%s8125_s3 + $0x290] sm:$0xff] }
  0xb5   : > { %5375 = vmatprep.subr.mxu1 %v4389_v1  ;;  %5331 = vmatmul.mubr.f32.gmra.mxu0 %v6181_v0  ;;  %v8497_v0 = vld [vmem:[#allocation79_spill] sm:$0xff] }
  0xb6   : > { %5376 = vmatpush3.msra.mxu1 %v4389_v1  ;;  %5455 = vmatprep.subr.mxu0 %v4405_v24  ;;  %v4386_v1 = vld [vmem:[%s8125_s3 + $0x2c8] sm:$0xff]  ;;  %vm8498_vm2 = vnez %v8497_v0  ;;  %v4429_v0 = vld [vmem:[%s8125_s3 + $0x420] sm:$0xff] }
  0xb7   : > { %5253 = vmatprep.mubr.msk.f32.mxu1 %vm6519_vm10, %v6512_v38  ;;  %5456 = vmatpush3.msra.mxu0 %v4405_v24  ;;  %v8482_v24 = vld [vmem:[#allocation59_spill] sm:$0xff] }
  0xb8   : > { %5254 = vmatmul.mubr.f32.gmra.mxu1 %v6528_v62  ;;  %5333 = vmatprep.mubr.f32.mxu0 %v8477_v46  ;;  %v8495_v46 = vld [vmem:[#allocation17_spill] sm:$0xff] }
  0xb9   : > { %5377 = vmatprep.subr.mxu1 %v4388_v28  ;;  %5334 = vmatmul.mubr.f32.gmra.mxu0 %v8478_v63 }
  0xba   : > { %5378 = vmatpush3.msra.mxu1 %v4388_v28  ;;  %5457 = vmatprep.subr.mxu0 %v4404_v35  ;;  %v4402_v28 = vld [vmem:[%s8125_s3 + $0x348] sm:$0xff] }
  0xbb   : > { %5256 = vmatprep.mubr.msk.f32.mxu1 %vm6560_vm12, %v6566_v47  ;;  %5458 = vmatpush3.msra.mxu0 %v4404_v35  ;;  %v8483_v35 = vld [vmem:[#allocation34_spill] sm:$0xff] }
  0xbc   : > { %5257 = vmatmul.mubr.f32.gmra.mxu1 %v6572_v27  ;;  %5336 = vmatprep.mubr.f32.mxu0 %v8480_v59  ;;  %v8489_v59 = vld [vmem:[#allocation13_spill] sm:$0xff] }
  0xbd   : > { %5379 = vmatprep.subr.mxu1 %v4387_v21  ;;  %5337 = vmatmul.mubr.f32.gmra.mxu0 %v8481_v61  ;;  %v4416_v61 = vld [vmem:[%s8125_s3 + $0x3b8] sm:$0xff] }
  0xbe   : > { %5380 = vmatpush3.msra.mxu1 %v4387_v21  ;;  %5459 = vmatprep.subr.mxu0 %v4403_v11  ;;  %v8484_v21 = vld [vmem:[#allocation36_spill] sm:$0xff] }
  0xbf   : > { %5259 = vmatprep.mubr.msk.f32.mxu1 %vm6607_vm14, %v6600_v42  ;;  %5460 = vmatpush3.msra.mxu0 %v4403_v11  ;;  %v4401_v11 = vld [vmem:[%s8125_s3 + $0x340] sm:$0xff] }
  0xc0   : > { %5260 = vmatmul.mubr.f32.gmra.mxu1 %v8482_v24  ;;  %5339 = vmatprep.mubr.f32.mxu0 %v8483_v35  ;;  %v8486_v35 = vld [vmem:[#allocation11_spill] sm:$0xff] }
  0xc1   : > { %5381 = vmatprep.subr.mxu1 %v4386_v1  ;;  %5340 = vmatmul.mubr.f32.gmra.mxu0 %v8484_v21  ;;  %v4384_v21 = vld [vmem:[%s8125_s3 + $0x2b8] sm:$0xff] }
  0xc2   : > { %5382 = vmatpush3.msra.mxu1 %v4386_v1  ;;  %5461 = vmatprep.subr.mxu0 %v4402_v28  ;;  %v8487_v1 = vld [vmem:[#allocation12_spill] sm:$0xff] }
  0xc3   : > { %5262 = vmatprep.mubr.msk.f32.mxu1 %vm6648_vm1, %v6654_v25  ;;  %5462 = vmatpush3.msra.mxu0 %v4402_v28  ;;  %v8488_v28 = vld [vmem:[#allocation67_spill] sm:$0xff] }
  0xc4   : > { %5263 = vmatmul.mubr.f32.gmra.mxu1 %v6660_v55  ;;  %5342 = vmatprep.mubr.f32.mxu0 %v8486_v35  ;;  %v4400_v35 = vld [vmem:[%s8125_s3 + $0x338] sm:$0xff] }
  0xc5   : > { %5383 = vmatprep.subr.mxu1 %v4385_v41  ;;  %5343 = vmatmul.mubr.f32.gmra.mxu0 %v8487_v1  ;;  %v4383_v1 = vld [vmem:[%s8125_s3 + $0x2b0] sm:$0xff] }
  0xc6   : > { %5384 = vmatpush3.msra.mxu1 %v4385_v41  ;;  %5463 = vmatprep.subr.mxu0 %v4401_v11  ;;  %v8490_v41 = vld [vmem:[#allocation14_spill] sm:$0xff] }
  0xc7   : > { %5265 = vmatprep.mubr.msk.f32.mxu1 %vm6695_vm11, %v6688_v37  ;;  %5464 = vmatpush3.msra.mxu0 %v4401_v11  ;;  %v4399_v11 = vld [vmem:[%s8125_s3 + $0x330] sm:$0xff] }
  0xc8   : > { %5266 = vmatmul.mubr.f32.gmra.mxu1 %v8488_v28  ;;  %5345 = vmatprep.mubr.f32.mxu0 %v8489_v59  ;;  %v8492_v59 = vld [vmem:[#allocation15_spill] sm:$0xff] }
  0xc9   : > { %5385 = vmatprep.subr.mxu1 %v4384_v21  ;;  %5346 = vmatmul.mubr.f32.gmra.mxu0 %v8490_v41  ;;  %v4382_v41 = vld [vmem:[%s8125_s3 + $0x2a8] sm:$0xff] }
  0xca   : > { %5386 = vmatpush3.msra.mxu1 %v4384_v21  ;;  %5465 = vmatprep.subr.mxu0 %v4400_v35  ;;  %v8493_v21 = vld [vmem:[#allocation16_spill] sm:$0xff] }
  0xcb   : > { %5268 = vmatprep.mubr.msk.f32.mxu1 %vm6736_vm9, %v6742_v45  ;;  %5466 = vmatpush3.msra.mxu0 %v4400_v35  ;;  %v8494_v35 = vld [vmem:[#allocation75_spill] sm:$0xff] }
  0xcc   : > { %5269 = vmatmul.mubr.f32.gmra.mxu1 %v6748_v7  ;;  %5348 = vmatprep.mubr.f32.mxu0 %v8492_v59  ;;  %v4398_v59 = vld [vmem:[%s8125_s3 + $0x328] sm:$0xff] }
  0xcd   : > { %5387 = vmatprep.subr.mxu1 %v4383_v1  ;;  %5349 = vmatmul.mubr.f32.gmra.mxu0 %v8493_v21  ;;  %v4381_v21 = vld [vmem:[%s8125_s3 + $0x2a0] sm:$0xff] }
  0xce   : > { %5388 = vmatpush3.msra.mxu1 %v4383_v1  ;;  %5467 = vmatprep.subr.mxu0 %v4399_v11  ;;  %v8496_v1 = vld [vmem:[#allocation19_spill] sm:$0xff] }
  0xcf   : > { %5271 = vmatprep.mubr.msk.f32.mxu1 %vm6783_vm7, %v6776_v50  ;;  %5468 = vmatpush3.msra.mxu0 %v4399_v11  ;;  %v4397_v11 = vld [vmem:[%s8125_s3 + $0x320] sm:$0xff] }
  0xd0   : > { %5272 = vmatmul.mubr.f32.gmra.mxu1 %v8494_v35  ;;  %5351 = vmatprep.mubr.f32.mxu0 %v8495_v46  ;;  %v8499_v46 = vld [vmem:[#allocation21_spill] sm:$0xff] }
  0xd1   : > { %5389 = vmatprep.subr.mxu1 %v4382_v41  ;;  %5352 = vmatmul.mubr.f32.gmra.mxu0 %v8496_v1  ;;  %v4380_v1 = vld [vmem:[%s8125_s3 + $0x298] sm:$0xff] }
  0xd2   : > { %5390 = vmatpush3.msra.mxu1 %v4382_v41  ;;  %5469 = vmatprep.subr.mxu0 %v4398_v59  ;;  %v8500_v41 = vld [vmem:[#allocation23_spill] sm:$0xff] }
  0xd3   : > { %5274 = vmatprep.mubr.msk.f32.mxu1 %vm8498_vm2, %v6830_v31  ;;  %5470 = vmatpush3.msra.mxu0 %v4398_v59  ;;  %v4396_v59 = vld [vmem:[%s8125_s3 + $0x318] sm:$0xff] }
  0xd4   : > { %5275 = vmatmul.mubr.f32.gmra.mxu1 %v6836_v19  ;;  %5354 = vmatprep.mubr.f32.mxu0 %v8499_v46  ;;  %v459_v46 = vadd.s32 240, %v6268_v6 }
  0xd5   : > { %5391 = vmatprep.subr.mxu1 %v4381_v21  ;;  %5355 = vmatmul.mubr.f32.gmra.mxu0 %v8500_v41  ;;  %v8502_v41 = vld [vmem:[#allocation25_spill] sm:$0xff] }
  0xd6   : > { %5392 = vmatpush3.msra.mxu1 %v4381_v21  ;;  %5471 = vmatprep.subr.mxu0 %v4397_v11  ;;  %v8503_v21 = vld [vmem:[#allocation27_spill] sm:$0xff] }
  0xd7   : > { %5277 = vmatprep.mubr.msk.f32.mxu1 %vm8501_vm15, %v6864_v43  ;;  %5472 = vmatpush3.msra.mxu0 %v4397_v11  ;;  %v4395_v11 = vld [vmem:[%s8125_s3 + $0x310] sm:$0xff] }
  0xd8   : > { %5278 = vmatmul.mubr.f32.gmra.mxu1 %v6880_v29  ;;  %5357 = vmatprep.mubr.f32.mxu0 %v8502_v41  ;;  %v675_v41 = vand.u32 15, %v459_v46  ;;  %v4394_v46 = vld [vmem:[%s8125_s3 + $0x308] sm:$0xff] }
  0xd9   : > { %5393 = vmatprep.subr.mxu1 %v4380_v1  ;;  %5358 = vmatmul.mubr.f32.gmra.mxu0 %v8503_v21  ;;  %v4378_v21 = vld [vmem:[%s8125_s3 + $0x288] sm:$0xff] }
  0xda   : > { %5394 = vmatpush3.msra.mxu1 %v4380_v1  ;;  %5473 = vmatprep.subr.mxu0 %v4396_v59  ;;  %v8506_v1 = vld [vmem:[#allocation31_spill] sm:$0xff]  ;;  %vm7177_vm13 = vcmp.ne.s32.totalorder %v675_v41, 0  ;;  %v8510_v41 = vld [vmem:[#allocation44_spill] sm:$0xff] }
  0xdb   : > { %5280 = vmatprep.mubr.msk.f32.mxu1 %vm8504_vm5, %v6917_v2  ;;  %5474 = vmatpush3.msra.mxu0 %v4396_v59  ;;  %v8507_v59 = vmov 0 }
  0xdc   : > { %5281 = vmatmul.mubr.f32.gmra.mxu1 %v6923_v5  ;;  %5360 = vmatprep.mubr.f32.mxu0 %v8505_v39  ;;  %v8508_v59 = vsel %vm7177_vm13, 4294967295, %v8507_v59  ;;  %v8514_v39 = vld [vmem:[#allocation39_spill] sm:$0xff] }
  0xdd   : > { %5395 = vmatprep.subr.mxu1 %v4379_v56  ;;  %5361 = vmatmul.mubr.f32.gmra.mxu0 %v8506_v1  ;;  %v8512_v1 = vld [vmem:[#allocation38_spill] sm:$0xff] }
  0xde   : > { %5396 = vmatpush3.msra.mxu1 %v4379_v56  ;;  %5475 = vmatprep.subr.mxu0 %v4395_v11  ;;  %v4377_v56 = vld [vmem:[%s8125_s3 + $0x280] sm:$0xff] }
  0xdf   : > { %5283 = vmatprep.mubr.msk.f32.mxu1 %vm6952_vm3, %v6958_v48  ;;  %5476 = vmatpush3.msra.mxu0 %v4395_v11  ;;  %v8509_v11 = vld [vmem:[#allocation43_spill] sm:$0xff] }
  0xe0   : > { %5284 = vmatmul.mubr.f32.gmra.mxu1 %v6965_v10  ;;  %5363 = vmatprep.mubr.f32.mxu0 %v6264_v3  ;;  %v4393_v3 = vld [vmem:[%s8125_s3 + $0x300] sm:$0xff] }
  0xe1   : > { %5397 = vmatprep.subr.mxu1 %v4378_v21  ;;  %5364 = vmatmul.mubr.f32.gmra.mxu0 %v6276_v13  ;;  %v4424_v13 = vld [vmem:[%s8125_s3 + $0x3f8] sm:$0xff] }
  0xe2   : > { %5398 = vmatpush3.msra.mxu1 %v4378_v21  ;;  %5477 = vmatprep.subr.mxu0 %v4394_v46  ;;  %v8511_v21 = vld [vmem:[#allocation37_spill] sm:$0xff] }
  0xe3   : > { %5286 = vmatprep.mubr.msk.f32.mxu1 %vm7177_vm13, %v8509_v11  ;;  %5478 = vmatpush3.msra.mxu0 %v4394_v46  ;;  %v8513_v46 = vld [vmem:[#allocation40_spill] sm:$0xff]  ;;  %vm8515_vm13 = vnez %v8514_v39  ;;  %v8517_v39 = vld [vmem:[#allocation45_spill] sm:$0xff] }
  0xe4   : > { %5287 = vmatmul.mubr.f32.gmra.mxu1 %v8510_v41  ;;  %5366 = vmatprep.mubr.f32.mxu0 %v6359_v23 }
  0xe5   : > { %5399 = vmatprep.subr.mxu1 %v4377_v56  ;;  %5367 = vmatmul.mubr.f32.gmra.mxu0 %v8511_v21 }
  0xe6   : > { %5400 = vmatpush3.msra.mxu1 %v4377_v56  ;;  %5479 = vmatprep.subr.mxu0 %v4393_v3  ;;  %v8518_v56 = vld [vmem:[#allocation42_spill] sm:$0xff] }
  0xe7   : > { %5401 = vmatprep.mubr.f32.mxu1 %v8512_v1  ;;  %5480 = vmatpush3.msra.mxu0 %v4393_v3  ;;  %v4423_v3 = vld [vmem:[%s8125_s3 + $0x3f0] sm:$0xff] }
  0xe8   : > { %5402 = vmatmul.mubr.msk.f32.vlgmr.msra.gmra.mxu1 %vm8515_vm13, %v8513_v46  ;;  %5481 = vmatprep.mubr.msk.f32.mxu0 %vm6355_vm4, %v6370_v26  ;;  %v8516_v1 = vld [vmem:[#allocation41_spill] sm:$0xff]  ;;  %vm8519_vm13 = vnez %v8518_v56  ;;  %v8521_v26 = vld [vmem:[#allocation48_spill] sm:$0xff]  ;;  %v8525_v46 = vld [vmem:[#allocation50_spill] sm:$0xff] }
  0xe9   : > { %5529 = vmatprep.subr.mxu1 %v4424_v13  ;;  %5482 = vmatmul.mubr.f32.vlgmr.msra.gmra.mxu0 %v6384_v36  ;;  %v8522_v36 = vld [vmem:[#allocation47_spill] sm:$0xff] }
  0xea   : > { %5530 = vmatpush3.msra.mxu1 %v4424_v13  ;;  %5609 = vmatprep.subr.mxu0 %v4440_v30  ;;  %v8520_v13 = vld [vmem:[#allocation46_spill] sm:$0xff]  ;;  %vm8523_vm4 = vnez %v8522_v36 }
  0xeb   : > { %5404 = vmatprep.mubr.f32.mxu1 %v8516_v1  ;;  %5610 = vmatpush3.msra.mxu0 %v4440_v30  ;;  %v4422_v30 = vld [vmem:[%s8125_s3 + $0x3e8] sm:$0xff] }
  0xec   : > { %5405 = vmatmul.mubr.msk.f32.gmra.mxu1 %vm8519_vm13, %v8517_v39  ;;  %5484 = vmatprep.mubr.msk.f32.mxu0 %vm6421_vm6, %v6433_v44  ;;  %v4421_v44 = vld [vmem:[%s8125_s3 + $0x3e0] sm:$0xff] }
  0xed   : > { %5531 = vmatprep.subr.mxu1 %v4423_v3  ;;  %5485 = vmatmul.mubr.f32.gmra.mxu0 %v6440_v33  ;;  %v8524_v33 = vld [vmem:[#allocation49_spill] sm:$0xff] }
  0xee   : > { %5532 = vmatpush3.msra.mxu1 %v4423_v3  ;;  %5611 = vmatprep.subr.mxu0 %v4439_v22  ;;  %v8526_v3 = vld [vmem:[#allocation51_spill] sm:$0xff] }
  0xef   : > { %5407 = vmatprep.mubr.f32.mxu1 %v8520_v13  ;;  %5612 = vmatpush3.msra.mxu0 %v4439_v22  ;;  %vm8527_vm6 = vnez %v8526_v3  ;;  %v8529_v22 = vld [vmem:[#allocation53_spill] sm:$0xff] }
  0xf0   : > { %5408 = vmatmul.mubr.msk.f32.gmra.mxu1 %vm8523_vm4, %v8521_v26  ;;  %5487 = vmatprep.mubr.msk.f32.mxu0 %vm6472_vm8, %v6478_v58  ;;  %v4420_v58 = vld [vmem:[%s8125_s3 + $0x3d8] sm:$0xff] }
  0xf1   : > { %5533 = vmatprep.subr.mxu1 %v4422_v30  ;;  %5488 = vmatmul.mubr.f32.gmra.mxu0 %v6484_v34  ;;  %v8528_v34 = vld [vmem:[#allocation52_spill] sm:$0xff] }
  0xf2   : > { %5534 = vmatpush3.msra.mxu1 %v4422_v30  ;;  %5613 = vmatprep.subr.mxu0 %v4438_v14  ;;  %v8530_v30 = vld [vmem:[#allocation54_spill] sm:$0xff] }
  0xf3   : > { %5410 = vmatprep.mubr.f32.mxu1 %v8524_v33  ;;  %5614 = vmatpush3.msra.mxu0 %v4438_v14  ;;  %vm8531_vm8 = vnez %v8530_v30  ;;  %v8597_v30 = vld [vmem:[#allocation57_spill] sm:$0xff] }
  0xf4   : > { %5411 = vmatmul.mubr.msk.f32.gmra.mxu1 %vm8527_vm6, %v8525_v46  ;;  %5490 = vmatprep.mubr.msk.f32.mxu0 %vm6519_vm10, %v6512_v38 }
  0xf5   : > { %5535 = vmatprep.subr.mxu1 %v4421_v44  ;;  %5491 = vmatmul.mubr.f32.gmra.mxu0 %v6528_v62  ;;  %v4419_v62 = vld [vmem:[%s8125_s3 + $0x3d0] sm:$0xff] }
  0xf6   : > { %5536 = vmatpush3.msra.mxu1 %v4421_v44  ;;  %5615 = vmatprep.subr.mxu0 %v4437_v16  ;;  %v8533_v44 = vld [vmem:[#allocation56_spill] sm:$0xff] }
  0xf7   : > { %5413 = vmatprep.mubr.f32.mxu1 %v8528_v34  ;;  %5616 = vmatpush3.msra.mxu0 %v4437_v16  ;;  %v7264_v38 = vpop.f32.mrf.mxu1 }
  0xf8   : > { %5414 = vmatmul.mubr.msk.f32.gmra.mxu1 %vm8531_vm8, %v8529_v22  ;;  %5493 = vmatprep.mubr.msk.f32.mxu0 %vm6560_vm12, %v6566_v47  ;;  %8532 = vst [vmem:[#allocation55_spill] sm:$0xff] %v7264_v38  ;;  %v7270_v14 = vpop.f32.mrf.mxu0  ;;  %v8536_v47 = vld [vmem:[#allocation58_spill] sm:$0xff]  ;;  %v8539_v38 = vld [vmem:[#allocation60_spill] sm:$0xff] }
  0xf9   : > { %5537 = vmatprep.subr.mxu1 %v4420_v58  ;;  %5494 = vmatmul.mubr.f32.gmra.mxu0 %v6572_v27  ;;  %v7273_v16 = vpop.f32.mrf.mxu1  ;;  %vm8537_vm10 = vnez %v8536_v47  ;;  %v4435_v27 = vld [vmem:[%s8125_s3 + $0x450] sm:$0xff] }
  0xfa   : > { %5538 = vmatpush3.msra.mxu1 %v4420_v58  ;;  %5617 = vmatprep.subr.mxu0 %v4436_v51  ;;  %8534 = vst [vmem:[#allocation59_spill] sm:$0xff] %v7273_v16  ;;  %v7281_v58 = vpop.f32.mrf.mxu0  ;;  %v8540_v47 = vld [vmem:[#allocation61_spill] sm:$0xff] }
  0xfb   : > { %5416 = vmatprep.mubr.f32.mxu1 %v8533_v44  ;;  %5618 = vmatpush3.msra.mxu0 %v4436_v51  ;;  %v4418_v51 = vld [vmem:[%s8125_s3 + $0x3c8] sm:$0xff] }
  0xfc   : > { %5417 = vmatmul.mubr.msk.f32.gmra.mxu1 %vm8537_vm10, %v8535_v60  ;;  %5496 = vmatprep.mubr.msk.f32.mxu0 %vm6607_vm14, %v6600_v42  ;;  %v7290_v16 = vpop.f32.mrf.mxu1  ;;  %v8541_v60 = vld [vmem:[#allocation62_spill] sm:$0xff] }
  0xfd   : > { %5539 = vmatprep.subr.mxu1 %v4419_v62  ;;  %5497 = vmatmul.mubr.f32.gmra.mxu0 %v8482_v24  ;;  %8538 = vst [vmem:[#allocation63_spill] sm:$0xff] %v7290_v16  ;;  %vm8542_vm12 = vnez %v8541_v60  ;;  %v8544_v16 = vld [vmem:[#allocation64_spill] sm:$0xff]  ;;  %v8545_v60 = vld [vmem:[#allocation65_spill] sm:$0xff] }
  0xfe   : > { %5540 = vmatpush3.msra.mxu1 %v4419_v62  ;;  %5619 = vmatprep.subr.mxu0 %v4435_v27  ;;  %v7299_v42 = vpop.f32.mrf.mxu0  ;;  %v7301_v24 = vpop.f32.mrf.mxu1  ;;  %v4417_v62 = vld [vmem:[%s8125_s3 + $0x3c0] sm:$0xff] }
  0xff   : > { %5419 = vmatprep.mubr.f32.mxu1 %v8539_v38  ;;  %5620 = vmatpush3.msra.mxu0 %v4435_v27  ;;  %8543 = vst [vmem:[#allocation67_spill] sm:$0xff] %v7301_v24  ;;  %v8546_v24 = vld [vmem:[#allocation66_spill] sm:$0xff] }
 0x100   : > { %5420 = vmatmul.mubr.msk.f32.gmra.mxu1 %vm8542_vm12, %v8540_v47  ;;  %5499 = vmatprep.mubr.msk.f32.mxu0 %vm6648_vm1, %v6654_v25  ;;  %v7310_v27 = vpop.f32.mrf.mxu0  ;;  %vm8547_vm14 = vnez %v8546_v24  ;;  %v4433_v25 = vld [vmem:[%s8125_s3 + $0x440] sm:$0xff]  ;;  %v8550_v24 = vld [vmem:[#allocation68_spill] sm:$0xff] }
 0x101   : > { %5541 = vmatprep.subr.mxu1 %v4418_v51  ;;  %5500 = vmatmul.mubr.f32.gmra.mxu0 %v6660_v55 }
 0x102   : > { %5542 = vmatpush3.msra.mxu1 %v4418_v51  ;;  %5621 = vmatprep.subr.mxu0 %v4434_v15  ;;  %v7319_v55 = vpop.f32.mrf.mxu1 }
 0x103   : > { %5422 = vmatprep.mubr.f32.mxu1 %v8544_v16  ;;  %5622 = vmatpush3.msra.mxu0 %v4434_v15  ;;  %8548 = vst [vmem:[#allocation71_spill] sm:$0xff] %v7319_v55  ;;  %v8551_v55 = vld [vmem:[#allocation69_spill] sm:$0xff] }
 0x104   : > { %5423 = vmatmul.mubr.msk.f32.gmra.mxu1 %vm8547_vm14, %v8545_v60  ;;  %5502 = vmatprep.mubr.msk.f32.mxu0 %vm6695_vm11, %v6688_v37  ;;  %v7328_v51 = vpop.f32.mrf.mxu0  ;;  %v7330_v15 = vpop.f32.mrf.mxu1  ;;  %v8552_v60 = vld [vmem:[#allocation70_spill] sm:$0xff] }
 0x105   : > { %5543 = vmatprep.subr.mxu1 %v4417_v62  ;;  %5503 = vmatmul.mubr.f32.gmra.mxu0 %v8488_v28  ;;  %8549 = vst [vmem:[#allocation75_spill] sm:$0xff] %v7330_v15  ;;  %vm8553_vm1 = vnez %v8552_v60  ;;  %v4415_v28 = vld [vmem:[%s8125_s3 + $0x3b0] sm:$0xff]  ;;  %v8557_v60 = vld [vmem:[#allocation74_spill] sm:$0xff] }
 0x106   : > { %5544 = vmatpush3.msra.mxu1 %v4417_v62  ;;  %5623 = vmatprep.subr.mxu0 %v4433_v25  ;;  %v7339_v37 = vpop.f32.mrf.mxu0  ;;  %v8556_v15 = vld [vmem:[#allocation73_spill] sm:$0xff]  ;;  %vm8558_vm11 = vnez %v8557_v60 }
 0x107   : > { %5425 = vmatprep.mubr.f32.mxu1 %v8550_v24  ;;  %5624 = vmatpush3.msra.mxu0 %v4433_v25  ;;  %v8555_v25 = vld [vmem:[#allocation72_spill] sm:$0xff]  ;;  %v8561_v60 = vld [vmem:[#allocation77_spill] sm:$0xff] }
 0x108   : > { %5426 = vmatmul.mubr.msk.f32.gmra.mxu1 %vm8553_vm1, %v8551_v55  ;;  %5505 = vmatprep.mubr.msk.f32.mxu0 %vm6736_vm9, %v6742_v45  ;;  %v7348_v62 = vpop.f32.mrf.mxu1  ;;  %v4431_v45 = vld [vmem:[%s8125_s3 + $0x430] sm:$0xff] }
 0x109   : > { %5545 = vmatprep.subr.mxu1 %v4416_v61  ;;  %5506 = vmatmul.mubr.f32.gmra.mxu0 %v6748_v7  ;;  %8554 = vst [vmem:[#allocation79_spill] sm:$0xff] %v7348_v62  ;;  %v8560_v62 = vld [vmem:[#allocation76_spill] sm:$0xff] }
 0x10a   : > { %5546 = vmatpush3.msra.mxu1 %v4416_v61  ;;  %5625 = vmatprep.subr.mxu0 %v4432_v53  ;;  %v7357_v7 = vpop.f32.mrf.mxu0  ;;  %v7359_v63 = vpop.f32.mrf.mxu1  ;;  %v4414_v61 = vld [vmem:[%s8125_s3 + $0x3a8] sm:$0xff] }
 0x10b   : > { %5428 = vmatprep.mubr.f32.mxu1 %v8555_v25  ;;  %5626 = vmatpush3.msra.mxu0 %v4432_v53  ;;  %8559 = vst [vmem:[#allocation43_spill] sm:$0xff] %v7359_v63  ;;  %v8562_v63 = vld [vmem:[#allocation78_spill] sm:$0xff] }
 0x10c   : > { %5429 = vmatmul.mubr.msk.f32.gmra.mxu1 %vm8558_vm11, %v8556_v15  ;;  %5508 = vmatprep.mubr.msk.f32.mxu0 %vm6783_vm7, %v6776_v50  ;;  %v7368_v53 = vpop.f32.mrf.mxu0  ;;  %vm8563_vm9 = vnez %v8562_v63  ;;  %v8566_v63 = vld [vmem:[#allocation80_spill] sm:$0xff] }
 0x10d   : > { %5547 = vmatprep.subr.mxu1 %v4415_v28  ;;  %5509 = vmatmul.mubr.f32.gmra.mxu0 %v8494_v35  ;;  %v4413_v35 = vld [vmem:[%s8125_s3 + $0x3a0] sm:$0xff] }
 0x10e   : > { %5548 = vmatpush3.msra.mxu1 %v4415_v28  ;;  %5627 = vmatprep.subr.mxu0 %v4431_v45  ;;  %v7377_v50 = vpop.f32.mrf.mxu1 }
 0x10f   : > { %5431 = vmatprep.mubr.f32.mxu1 %v8560_v62  ;;  %5628 = vmatpush3.msra.mxu0 %v4431_v45  ;;  %8564 = vst [vmem:[#allocation44_spill] sm:$0xff] %v7377_v50  ;;  %v8567_v50 = vld [vmem:[#allocation81_spill] sm:$0xff] }
 0x110   : > { %5432 = vmatmul.mubr.msk.f32.gmra.mxu1 %vm8563_vm9, %v8561_v60  ;;  %5511 = vmatprep.mubr.msk.f32.mxu0 %vm8498_vm2, %v6830_v31  ;;  %v7386_v28 = vpop.f32.mrf.mxu0  ;;  %v7388_v45 = vpop.f32.mrf.mxu1  ;;  %v8568_v60 = vld [vmem:[#allocation82_spill] sm:$0xff] }
 0x111   : > { %5549 = vmatprep.subr.mxu1 %v4414_v61  ;;  %5512 = vmatmul.mubr.f32.gmra.mxu0 %v6836_v19  ;;  %8565 = vst [vmem:[#allocation37_spill] sm:$0xff] %v7388_v45  ;;  %vm8569_vm7 = vnez %v8568_v60  ;;  %v4412_v19 = vld [vmem:[%s8125_s3 + $0x398] sm:$0xff]  ;;  %v8572_v45 = vld [vmem:[#allocation84_spill] sm:$0xff] }
 0x112   : > { %5550 = vmatpush3.msra.mxu1 %v4414_v61  ;;  %5629 = vmatprep.subr.mxu0 %v4430_v32  ;;  %v7397_v31 = vpop.f32.mrf.mxu0  ;;  %v8573_v60 = vld [vmem:[#allocation85_spill] sm:$0xff] }
 0x113   : > { %5434 = vmatprep.mubr.f32.mxu1 %v8566_v63  ;;  %5630 = vmatpush3.msra.mxu0 %v4430_v32  ;;  %v8571_v32 = vld [vmem:[#allocation83_spill] sm:$0xff]  ;;  %vm8574_vm2 = vnez %v8573_v60  ;;  %v8632_v60 = vld [vmem:[#allocation86_spill] sm:$0xff] }
 0x114   : > { %5435 = vmatmul.mubr.msk.f32.gmra.mxu1 %vm8569_vm7, %v8567_v50  ;;  %5514 = vmatprep.mubr.msk.f32.mxu0 %vm8501_vm15, %v6864_v43  ;;  %v7406_v61 = vpop.f32.mrf.mxu1  ;;  %vm8579_vm15 = vcmp.lt.s32.totalorder %v6268_v6, 7 }
 0x115   : > { %5551 = vmatprep.subr.mxu1 %v4413_v35  ;;  %5515 = vmatmul.mubr.f32.gmra.mxu0 %v6880_v29  ;;  %8570 = vst [vmem:[#allocation38_spill] sm:$0xff] %v7406_v61 }
 0x116   : > { %5552 = vmatpush3.msra.mxu1 %v4413_v35  ;;  %5631 = vmatprep.subr.mxu0 %v4429_v0  ;;  %v7415_v43 = vpop.f32.mrf.mxu0  ;;  %v7417_v29 = vpop.f32.mrf.mxu1  ;;  %v460_v35 = vadd.s32 248, %v6268_v6 }
 0x117   : > { %5437 = vmatprep.mubr.f32.mxu1 %v8571_v32  ;;  %5632 = vmatpush3.msra.mxu0 %v4429_v0  ;;  %8575 = vst [vmem:[#allocation40_spill] sm:$0xff] %v7417_v29  ;;  %v4411_v0 = vld [vmem:[%s8125_s3 + $0x390] sm:$0xff] }
 0x118   : > { %5438 = vmatmul.mubr.msk.f32.gmra.mxu1 %vm8574_vm2, %v8572_v45  ;;  %5517 = vmatprep.mubr.msk.f32.mxu0 %vm8504_vm5, %v6917_v2  ;;  %v7427_v61 = vpop.f32.mrf.mxu0  ;;  %vm8580_vm5 = vnez %v8508_v59  ;;  %v4409_v59 = vld [vmem:[%s8125_s3 + $0x380] sm:$0xff] }
 0x119   : > { %5553 = vmatprep.subr.mxu1 %v4412_v19  ;;  %5518 = vmatmul.mubr.f32.gmra.mxu0 %v6923_v5  ;;  %v1101_v5 = vrot.slane %v8511_v21, 1 }
 0x11a   : > { %5554 = vmatpush3.msra.mxu1 %v4412_v19  ;;  %5633 = vmatprep.subr.mxu0 %v4428_v20  ;;  %v7436_v2 = vpop.f32.mrf.mxu1  ;;  %v682_v19 = vand.u32 15, %v460_v35 }
 0x11b   : > { %5440 = vmatprep.mubr.f32.mxu1 %v6930_v54  ;;  %5634 = vmatpush3.msra.mxu0 %v4428_v20  ;;  %v4410_v20 = vld [vmem:[%s8125_s3 + $0x388] sm:$0xff] }
 0x11c   : > { %5441 = vmatmul.mubr.msk.f32.gmra.mxu1 %vm6939_vm0, %v6945_v4  ;;  %5520 = vmatprep.mubr.msk.f32.mxu0 %vm6952_vm3, %v6958_v48  ;;  %v7446_v29 = vpop.f32.mrf.mxu0  ;;  %v7448_v57 = vpop.f32.mrf.mxu1  ;;  %vm8577_vm3 = vnez %v8475_v40  ;;  %vm7468_vm0 = vcmp.ne.s32.totalorder %v682_v19, 15 }
 0x11d   : > { %5555 = vmatprep.subr.mxu1 %v4411_v0  ;;  %5521 = vmatmul.mubr.f32.gmra.mxu0 %v6965_v10  ;;  %8576 = vst [vmem:[#allocation39_spill] sm:$0xff] %v7448_v57  ;;  %v8578_v10 = vrot.slane %v6359_v23, 1 }
 0x11e   : > { %5556 = vmatpush3.msra.mxu1 %v4411_v0  ;;  %5635 = vmatprep.subr.mxu0 %v4427_v49  ;;  %v7457_v48 = vpop.f32.mrf.mxu0 }
 0x11f   : > { %5443 = vmatprep.mubr.f32.mxu1 %v6972_v9  ;;  %5636 = vmatpush3.msra.mxu0 %v4427_v49  ;;  %v7463_v35 = vsel %vm8579_vm15, %v8578_v10, %v1101_v5  ;;  %v8583_v49 = vrot.slane %v6061_v52, 1 }
 0x120   : > { %5444 = vmatmul.mubr.msk.f32.gmra.mxu1 %vm8577_vm3, %v6988_v18  ;;  %5523 = vmatprep.mubr.msk.f32.mxu0 %vm8580_vm5, %v8509_v11  ;;  %vm8584_vm3 = vmmov %vm8579_vm15  ;;  %v7479_v10 = vpop.f32.mrf.mxu1  ;;  %v4425_v11 = vld [vmem:[%s8125_s3 + $0x400] sm:$0xff] }
 0x121   : > { %5557 = vmatprep.subr.mxu1 %v4410_v20  ;;  %v7476_v57 = vsel %vm8584_vm3, %v1101_v5, %v8583_v49  ;;  %5524 = vmatmul.mubr.f32.gmra.mxu0 %v8510_v41  ;;  %8585 = vst [vmem:[#allocation41_spill] sm:$0xff] %v7479_v10  ;;  %v8587_v41 = vmov 0.0   ;;  %v8589_v10 = vld [vmem:[#allocation20_spill] sm:$0xff] }
 0x122   : > { %5558 = vmatpush3.msra.mxu1 %v4410_v20  ;;  %5637 = vmatprep.subr.mxu0 %v4426_v12  ;;  %v7488_v52 = vpop.f32.mrf.mxu0  ;;  %v7490_v6 = vpop.f32.mrf.mxu1 }
 0x123   : > { %5446 = vmatprep.mubr.f32.mxu1 %v7463_v35  ;;  %5638 = vmatpush3.msra.mxu0 %v4426_v12  ;;  %8586 = vst [vmem:[#allocation45_spill] sm:$0xff] %v7490_v6  ;;  %v8588_v12 = vld [vmem:[#allocation18_spill] sm:$0xff] }
 0x124   : > { %5447 = vmatmul.mubr.msk.f32.gmra.mxu1 %vm7468_vm0, %v7476_v57  ;;  %5526 = vmatprep.mubr.f32.mxu0 %v8587_v41  ;;  %v7497_v5 = vpop.f32.mrf.mxu0 }
 0x125   : > { %5559 = vmatprep.subr.mxu1 %v4409_v59  ;;  %5527 = vmatmul.mubr.f32.gmra.mxu0 %v8587_v41 }
 0x126   : > { %5560 = vmatpush3.msra.mxu1 %v4409_v59  ;;  %5639 = vmatprep.subr.mxu0 %v4425_v11  ;;  %v5083_v19 = vpop.f32.mrf.mxu1 }
 0x127   : > { %5561 = vmatprep.mubr.f32.mxu1 %v6097_v8  ;;  %5640 = vmatpush3.msra.mxu0 %v4425_v11  ;;  %v1721_v20 = vadd.f32 %v5083_v19, %v7270_v14  ;;  %v8590_v19 = vld [vmem:[#allocation22_spill] sm:$0xff] }
 0x128   : > { %5562 = vmatmul.mubr.f32.vlgmr.msra.gmra.mxu1 %v6109_v17  ;;  %5641 = vmatprep.mubr.f32.mxu0 %v8516_v1  ;;  %v5163_v49 = vpop.f32.mrf.mxu0  ;;  %v1715_v59 = vpop.f32.mrf.mxu1 }
 0x129   : > { %5564 = vmatprep.mubr.f32.mxu1 %v8588_v12  ;;  %5642 = vmatmul.mubr.msk.f32.vlgmr.msra.gmra.mxu0 %vm8519_vm13, %v8517_v39  ;;  %v7507_v6 = vadd.f32 %v5163_v49, %v1721_v20  ;;  %v1716_v8 = vadd.f32 %v1715_v59, %v7281_v58  ;;  %v8591_v20 = vld [vmem:[#allocation24_spill] sm:$0xff]  ;;  %v8592_v59 = vld [vmem:[#allocation26_spill] sm:$0xff]  ;;  %vm8633_vm13 = vnez %v8632_v60 }
 0x12a   : > { %5644 = vmatprep.mubr.f32.mxu0 %v8520_v13  ;;  %v1989_v11 = vpop.f32.mrf.mxu0  ;;  %v5086_v17 = vpop.f32.mrf.mxu1 }
 0x12b   : > { %v7512_v14 = vadd.f32 %v1989_v11, %v1716_v8  ;;  %v1731_v1 = vadd.f32 %v5086_v17, %v7299_v42  ;;  %v8593_v17 = vld [vmem:[#allocation28_spill] sm:$0xff] }
 0x12c   : > { %5565 = vmatmul.mubr.f32.gmra.mxu1 %v8589_v10  ;;  %v5166_v12 = vpop.f32.mrf.mxu0  ;;  %v1725_v39 = vpop.f32.mrf.mxu1 }
 0x12d   : > { %5567 = vmatprep.mubr.f32.mxu1 %v8590_v19  ;;  %5645 = vmatmul.mubr.msk.f32.gmra.mxu0 %vm8523_vm4, %v8521_v26  ;;  %v7519_v56 = vadd.f32 %v5166_v12, %v1731_v1  ;;  %v1726_v13 = vadd.f32 %v1725_v39, %v7310_v27  ;;  %v8594_v19 = vld [vmem:[#allocation30_spill] sm:$0xff]  ;;  %vm8637_vm4 = vnez %v8475_v40 }
 0x12e   : > { %5647 = vmatprep.mubr.f32.mxu0 %v8524_v33  ;;  %v1999_v58 = vpop.f32.mrf.mxu0  ;;  %v5089_v10 = vpop.f32.mrf.mxu1 }
 0x12f   : > { %v7524_v49 = vadd.f32 %v1999_v58, %v1726_v13  ;;  %v1741_v42 = vadd.f32 %v5089_v10, %v7328_v51  ;;  %v8595_v13 = vld [vmem:[#allocation32_spill] sm:$0xff]  ;;  %v8596_v10 = vld [vmem:[#allocation34_spill] sm:$0xff] }
 0x130   : > { %5568 = vmatmul.mubr.f32.gmra.mxu1 %v8591_v20  ;;  %v5169_v8 = vpop.f32.mrf.mxu0  ;;  %v1735_v26 = vpop.f32.mrf.mxu1 }
 0x131   : > { %5570 = vmatprep.mubr.f32.mxu1 %v8592_v59  ;;  %5648 = vmatmul.mubr.msk.f32.gmra.mxu0 %vm8527_vm6, %v8525_v46  ;;  %v7531_v36 = vadd.f32 %v5169_v8, %v1741_v42  ;;  %v1736_v33 = vadd.f32 %v1735_v26, %v7339_v37  ;;  %v8599_v26 = vld [vmem:[#allocation36_spill] sm:$0xff] }
 0x132   : > { %5650 = vmatprep.mubr.f32.mxu0 %v8528_v34  ;;  %v2009_v27 = vpop.f32.mrf.mxu0  ;;  %v5092_v11 = vpop.f32.mrf.mxu1 }
 0x133   : > { %v7536_v1 = vadd.f32 %v2009_v27, %v1736_v33  ;;  %v1751_v51 = vadd.f32 %v5092_v11, %v7357_v7  ;;  %v8600_v27 = vld [vmem:[#allocation11_spill] sm:$0xff] }
 0x134   : > { %5571 = vmatmul.mubr.f32.gmra.mxu1 %v8593_v17  ;;  %v5172_v12 = vpop.f32.mrf.mxu0  ;;  %v1745_v46 = vpop.f32.mrf.mxu1 }
 0x135   : > { %5573 = vmatprep.mubr.f32.mxu1 %v8594_v19  ;;  %5651 = vmatmul.mubr.msk.f32.gmra.mxu0 %vm8531_vm8, %v8529_v22  ;;  %v7543_v3 = vadd.f32 %v5172_v12, %v1751_v51  ;;  %v1746_v34 = vadd.f32 %v1745_v46, %v7368_v53  ;;  %v8602_v46 = vld [vmem:[#allocation12_spill] sm:$0xff] }
 0x136   : > { %5653 = vmatprep.mubr.f32.mxu0 %v8533_v44  ;;  %v2019_v37 = vpop.f32.mrf.mxu0  ;;  %v5095_v39 = vpop.f32.mrf.mxu1 }
 0x137   : > { %v7548_v58 = vadd.f32 %v2019_v37, %v1746_v34  ;;  %v1761_v7 = vadd.f32 %v5095_v39, %v7386_v28  ;;  %v8603_v37 = vld [vmem:[#allocation13_spill] sm:$0xff] }
 0x138   : > { %5574 = vmatmul.mubr.f32.gmra.mxu1 %v8595_v13  ;;  %v5175_v20 = vpop.f32.mrf.mxu0  ;;  %v1755_v42 = vpop.f32.mrf.mxu1  ;;  %v8604_v13 = vld [vmem:[#allocation65_spill] sm:$0xff] }
 0x139   : > { %5576 = vmatprep.mubr.f32.mxu1 %v8596_v10  ;;  %5654 = vmatmul.mubr.msk.f32.gmra.mxu0 %vm8537_vm10, %v8597_v30  ;;  %v7555_v59 = vadd.f32 %v5175_v20, %v1761_v7  ;;  %v1756_v44 = vadd.f32 %v1755_v42, %v7397_v31  ;;  %v8606_v30 = vld [vmem:[#allocation14_spill] sm:$0xff]  ;;  %v8607_v42 = vld [vmem:[#allocation15_spill] sm:$0xff] }
 0x13a   : > { %5656 = vmatprep.mubr.f32.mxu0 %v8539_v38  ;;  %v2029_v53 = vpop.f32.mrf.mxu0  ;;  %v5098_v8 = vpop.f32.mrf.mxu1 }
 0x13b   : > { %v7560_v33 = vadd.f32 %v2029_v53, %v1756_v44  ;;  %v1771_v28 = vadd.f32 %v5098_v8, %v7415_v43  ;;  %v8620_v53 = vld [vmem:[#allocation23_spill] sm:$0xff] }
 0x13c   : > { %5577 = vmatmul.mubr.f32.gmra.mxu1 %v8599_v26  ;;  %v5178_v11 = vpop.f32.mrf.mxu0  ;;  %v1765_v51 = vpop.f32.mrf.mxu1 }
 0x13d   : > { %5579 = vmatprep.mubr.f32.mxu1 %v8600_v27  ;;  %5657 = vmatmul.mubr.msk.f32.gmra.mxu0 %vm8542_vm12, %v8540_v47  ;;  %v7567_v19 = vadd.f32 %v5178_v11, %v1771_v28  ;;  %v1766_v38 = vadd.f32 %v1765_v51, %v7427_v61  ;;  %v8609_v27 = vld [vmem:[#allocation16_spill] sm:$0xff]  ;;  %v8611_v51 = vld [vmem:[#allocation17_spill] sm:$0xff] }
 0x13e   : > { %5659 = vmatprep.mubr.f32.mxu0 %v8544_v16  ;;  %v2039_v31 = vpop.f32.mrf.mxu0  ;;  %v5101_v12 = vpop.f32.mrf.mxu1 }
 0x13f   : > { %v7572_v34 = vadd.f32 %v2039_v31, %v1766_v38  ;;  %v1781_v43 = vadd.f32 %v5101_v12, %v7446_v29 }
 0x140   : > { %5580 = vmatmul.mubr.f32.gmra.mxu1 %v8602_v46  ;;  %v5181_v39 = vpop.f32.mrf.mxu0  ;;  %v1775_v7 = vpop.f32.mrf.mxu1 }
 0x141   : > { %5582 = vmatprep.mubr.f32.mxu1 %v8603_v37  ;;  %5660 = vmatmul.mubr.msk.f32.gmra.mxu0 %vm8547_vm14, %v8604_v13  ;;  %v7579_v10 = vadd.f32 %v5181_v39, %v1781_v43  ;;  %v1776_v16 = vadd.f32 %v1775_v7, %v7457_v48  ;;  %v8614_v37 = vld [vmem:[#allocation19_spill] sm:$0xff]  ;;  %v8616_v7 = vld [vmem:[#allocation21_spill] sm:$0xff] }
 0x142   : > { %5662 = vmatprep.mubr.f32.mxu0 %v8550_v24  ;;  %v2049_v61 = vpop.f32.mrf.mxu0  ;;  %v5104_v20 = vpop.f32.mrf.mxu1  ;;  %v8615_v13 = vld [vmem:[#allocation63_spill] sm:$0xff] }
 0x143   : > { %v7584_v22 = vadd.f32 %v2049_v61, %v1776_v16  ;;  %v1791_v29 = vadd.f32 %v5104_v20, %v7488_v52  ;;  %v8610_v52 = vld [vmem:[#allocation55_spill] sm:$0xff]  ;;  %v8617_v61 = vld [vmem:[#allocation77_spill] sm:$0xff] }
 0x144   : > { %5583 = vmatmul.mubr.f32.gmra.mxu1 %v8606_v30  ;;  %v5184_v44 = vpop.f32.mrf.mxu0  ;;  %v1785_v8 = vpop.f32.mrf.mxu1 }
 0x145   : > { %5585 = vmatprep.mubr.f32.mxu1 %v8607_v42  ;;  %5663 = vmatmul.mubr.msk.f32.gmra.mxu0 %vm8553_vm1, %v8551_v55  ;;  %v7591_v26 = vadd.f32 %v5184_v44, %v1791_v29  ;;  %v1786_v24 = vadd.f32 %v1785_v8, %v7497_v5  ;;  %v8613_v5 = vld [vmem:[#allocation59_spill] sm:$0xff] }
 0x146   : > { %5665 = vmatprep.mubr.f32.mxu0 %v8555_v25  ;;  %v2059_v48 = vpop.f32.mrf.mxu0  ;;  %v5107_v28 = vpop.f32.mrf.mxu1  ;;  %v8619_v29 = vld [vmem:[#allocation67_spill] sm:$0xff] }
 0x147   : > { %v7596_v11 = vadd.f32 %v2059_v48, %v1786_v24  ;;  %v1801_v17 = vadd.f32 %v5107_v28, %v8610_v52  ;;  %v8621_v24 = vld [vmem:[#allocation71_spill] sm:$0xff]  ;;  %v8622_v28 = vld [vmem:[#allocation25_spill] sm:$0xff] }
 0x148   : > { %5586 = vmatmul.mubr.f32.gmra.mxu1 %v8609_v27  ;;  %v5187_v38 = vpop.f32.mrf.mxu0  ;;  %v1795_v31 = vpop.f32.mrf.mxu1 }
 0x149   : > { %5588 = vmatprep.mubr.f32.mxu1 %v8611_v51  ;;  %5666 = vmatmul.mubr.msk.f32.gmra.mxu0 %vm8558_vm11, %v8556_v15  ;;  %v7603_v12 = vadd.f32 %v5187_v38, %v1801_v17  ;;  %v1796_v25 = vadd.f32 %v1795_v31, %v8613_v5  ;;  %v8624_v38 = vld [vmem:[#allocation75_spill] sm:$0xff] }
 0x14a   : > { %5668 = vmatprep.mubr.f32.mxu0 %v8560_v62  ;;  %v2069_v46 = vpop.f32.mrf.mxu0  ;;  %v5110_v43 = vpop.f32.mrf.mxu1  ;;  %v8625_v5 = vld [vmem:[#allocation27_spill] sm:$0xff] }
 0x14b   : > { %v7608_v39 = vadd.f32 %v2069_v46, %v1796_v25  ;;  %v1811_v47 = vadd.f32 %v5110_v43, %v8615_v13  ;;  %v8626_v46 = vld [vmem:[#allocation79_spill] sm:$0xff] }
 0x14c   : > { %5589 = vmatmul.mubr.f32.gmra.mxu1 %v8614_v37  ;;  %v5190_v16 = vpop.f32.mrf.mxu0  ;;  %v1805_v20 = vpop.f32.mrf.mxu1  ;;  %v8627_v37 = vld [vmem:[#allocation29_spill] sm:$0xff]  ;;  %v8629_v15 = vld [vmem:[#allocation31_spill] sm:$0xff] }
 0x14d   : > { %5591 = vmatprep.mubr.f32.mxu1 %v8616_v7  ;;  %5669 = vmatmul.mubr.msk.f32.gmra.mxu0 %vm8563_vm9, %v8617_v61  ;;  %v7615_v30 = vadd.f32 %v5190_v16, %v1811_v47  ;;  %v1806_v62 = vadd.f32 %v1805_v20, %v8619_v29  ;;  %v8628_v7 = vld [vmem:[#allocation43_spill] sm:$0xff]  ;;  %v8630_v29 = vld [vmem:[#allocation44_spill] sm:$0xff] }
 0x14e   : > { %5671 = vmatprep.mubr.f32.mxu0 %v8566_v63  ;;  %v2079_v42 = vpop.f32.mrf.mxu0  ;;  %v5113_v44 = vpop.f32.mrf.mxu1 }
 0x14f   : > { %v7620_v8 = vadd.f32 %v2079_v42, %v1806_v62  ;;  %v1821_v48 = vadd.f32 %v5113_v44, %v8621_v24  ;;  %v8631_v42 = vld [vmem:[#allocation33_spill] sm:$0xff] }
 0x150   : > { %5592 = vmatmul.mubr.f32.gmra.mxu1 %v8620_v53  ;;  %v5193_v27 = vpop.f32.mrf.mxu0  ;;  %v1815_v17 = vpop.f32.mrf.mxu1  ;;  %v8634_v24 = vld [vmem:[#allocation37_spill] sm:$0xff] }
 0x151   : > { %5594 = vmatprep.mubr.f32.mxu1 %v8622_v28  ;;  %5672 = vmatmul.mubr.msk.f32.gmra.mxu0 %vm8569_vm7, %v8567_v50  ;;  %v7627_v51 = vadd.f32 %v5193_v27, %v1821_v48  ;;  %v1816_v63 = vadd.f32 %v1815_v17, %v8624_v38  ;;  %v8635_v27 = vld [vmem:[#allocation35_spill] sm:$0xff]  ;;  %v8636_v17 = vld [vmem:[#allocation38_spill] sm:$0xff] }
 0x152   : > { %5674 = vmatprep.mubr.f32.mxu0 %v8571_v32  ;;  %v2089_v55 = vpop.f32.mrf.mxu0  ;;  %v5116_v31 = vpop.f32.mrf.mxu1 }
 0x153   : > { %v7632_v25 = vadd.f32 %v2089_v55, %v1816_v63  ;;  %v1831_v43 = vadd.f32 %v5116_v31, %v8626_v46  ;;  %v8638_v31 = vld [vmem:[#allocation40_spill] sm:$0xff] }
 0x154   : > { %5595 = vmatmul.mubr.f32.gmra.mxu1 %v8625_v5  ;;  %v5196_v13 = vpop.f32.mrf.mxu0  ;;  %v1825_v50 = vpop.f32.mrf.mxu1 }
 0x155   : > { %5597 = vmatprep.mubr.f32.mxu1 %v8627_v37  ;;  %5675 = vmatmul.mubr.msk.f32.gmra.mxu0 %vm8574_vm2, %v8572_v45  ;;  %v7639_v47 = vadd.f32 %v5196_v13, %v1831_v43  ;;  %v1826_v32 = vadd.f32 %v1825_v50, %v8628_v7  ;;  %v8639_v13 = vld [vmem:[#allocation39_spill] sm:$0xff] }
 0x156   : > { %5677 = vmatprep.mubr.f32.mxu0 %v6930_v54  ;;  %v2099_v16 = vpop.f32.mrf.mxu0  ;;  %v5119_v61 = vpop.f32.mrf.mxu1 }
 0x157   : > { %v7644_v20 = vadd.f32 %v2099_v16, %v1826_v32  ;;  %v1841_v62 = vadd.f32 %v5119_v61, %v8630_v29  ;;  %v8641_v61 = vld [vmem:[#allocation45_spill] sm:$0xff] }
 0x158   : > { %5598 = vmatmul.mubr.f32.gmra.mxu1 %v8629_v15  ;;  %v5199_v44 = vpop.f32.mrf.mxu0  ;;  %v1835_v45 = vpop.f32.mrf.mxu1 }
 0x159   : > { %5600 = vmatprep.mubr.f32.mxu1 %v8631_v42  ;;  %5678 = vmatmul.mubr.msk.f32.gmra.mxu0 %vm8633_vm13, %v6945_v4  ;;  %v7651_v53 = vadd.f32 %v5199_v44, %v1841_v62  ;;  %v1836_v54 = vadd.f32 %v1835_v45, %v8634_v24 }
 0x15a   : > { %5680 = vmatprep.mubr.f32.mxu0 %v6972_v9  ;;  %v2109_v48 = vpop.f32.mrf.mxu0  ;;  %v5122_v28 = vpop.f32.mrf.mxu1 }
 0x15b   : > { %v7656_v52 = vadd.f32 %v2109_v48, %v1836_v54  ;;  %v1851_v38 = vadd.f32 %v5122_v28, %v8636_v17 }
 0x15c   : > { %5601 = vmatmul.mubr.f32.gmra.mxu1 %v8635_v27  ;;  %v1845_v4 = vpop.f32.mrf.mxu1 }
 0x15d   : > { %5603 = vmatprep.mubr.f32.mxu1 %v6359_v23  ;;  %v5202_v63 = vpop.f32.mrf.mxu0  ;;  %5681 = vmatmul.mubr.msk.f32.gmra.mxu0 %vm8637_vm4, %v6988_v18  ;;  %v1846_v9 = vadd.f32 %v1845_v4, %v8638_v31 }
 0x15e   : > { %v7663_v55 = vadd.f32 %v5202_v63, %v1851_v38  ;;  %5683 = vmatprep.mubr.f32.mxu0 %v7463_v35 }
 0x15f   : > { %v2119_v5 = vpop.f32.mrf.mxu0 }
 0x160   : > { %v5125_v46 = vpop.f32.mrf.mxu1  ;;  %5604 = vmatmul.mubr.f32.gmra.mxu1 %v8511_v21  ;;  %v7668_v43 = vadd.f32 %v2119_v5, %v1846_v9 }
 0x161   : > { %v1861_v23 = vadd.f32 %v5125_v46, %v7436_v2  ;;  %5606 = vmatprep.mubr.f32.mxu1 %v8587_v41  ;;  %v5205_v37 = vpop.f32.mrf.mxu0  ;;  %5684 = vmatmul.mubr.msk.f32.gmra.mxu0 %vm7468_vm0, %v7476_v57  ;;  %v8640_v2 = vld [vmem:[#allocation41_spill] sm:$0xff] }
 0x162   : > { %v1855_v40 = vpop.f32.mrf.mxu1  ;;  %5686 = vmatprep.mubr.f32.mxu0 %v8587_v41 }
 0x163   : > { %v7675_v18 = vadd.f32 %v5205_v37, %v1861_v23  ;;  %v1856_v35 = vadd.f32 %v1855_v40, %v8639_v13  ;;  %v2129_v50 = vpop.f32.mrf.mxu0 }
 0x164   : > { %v5128_v21 = vpop.f32.mrf.mxu1  ;;  %5607 = vmatmul.mubr.f32.gmra.mxu1 %v8587_v41 }
 0x165   : > { %v7680_v7 = vadd.f32 %v2129_v50, %v1856_v35  ;;  %v1871_v32 = vadd.f32 %v5128_v21, %v8640_v2  ;;  %v5208_v16 = vpop.f32.mrf.mxu0  ;;  %5687 = vmatmul.mubr.f32.gmra.mxu0 %v8587_v41 }
 0x166   : > { %v1865_v0 = vpop.f32.mrf.mxu1 }
 0x167   : > { %v7684_v57 = vadd.f32 %v5208_v16, %v1871_v32  ;;  %v1866_v15 = vadd.f32 %v1865_v0, %v8641_v61  ;;  %v2139_v29 = vpop.f32.mrf.mxu0 }
 0x168   : > { %v5243_v62 = vpop.f32.mrf.mxu1 }
 0x169   : > { %v7687_v42 = vadd.f32 %v2139_v29, %v1866_v15  ;;  %v2455_v44 = vadd.f32 %v5243_v62, %v7507_v6  ;;  %v5323_v60 = vpop.f32.mrf.mxu0 }
 0x16a   : > { %v2295_v45 = vpop.f32.mrf.mxu1 }
 0x16b   : > { %v7690_v24 = vadd.f32 %v5323_v60, %v2455_v44  ;;  %v2454_v54 = vadd.f32 %v2295_v45, %v7512_v14  ;;  %v2601_v48 = vpop.f32.mrf.mxu0 }
 0x16c   : > { %v5246_v28 = vpop.f32.mrf.mxu1 }
 0x16d   : > { %v7693_v41 = vadd.f32 %v2601_v48, %v2454_v54  ;;  %v2457_v27 = vadd.f32 %v5246_v28, %v7519_v56  ;;  %v5326_v17 = vpop.f32.mrf.mxu0 }
 0x16e   : > { %v2305_v38 = vpop.f32.mrf.mxu1 }
 0x16f   : > { %v7696_v63 = vadd.f32 %v5326_v17, %v2457_v27  ;;  %v2456_v4 = vadd.f32 %v2305_v38, %v7524_v49  ;;  %v2611_v31 = vpop.f32.mrf.mxu0 }
 0x170   : > { %v5249_v6 = vpop.f32.mrf.mxu1 }
 0x171   : > { %v7699_v9 = vadd.f32 %v2611_v31, %v2456_v4  ;;  %v2459_v5 = vadd.f32 %v5249_v6, %v7531_v36  ;;  %v5329_v46 = vpop.f32.mrf.mxu0 }
 0x172   : > { %v2315_v14 = vpop.f32.mrf.mxu1 }
 0x173   : > { %v7702_v23 = vadd.f32 %v5329_v46, %v2459_v5  ;;  %v2458_v37 = vadd.f32 %v2315_v14, %v7536_v1  ;;  %v2621_v40 = vpop.f32.mrf.mxu0 }
 0x174   : > { %v5252_v56 = vpop.f32.mrf.mxu1 }
 0x175   : > { %v7705_v13 = vadd.f32 %v2621_v40, %v2458_v37  ;;  %v2461_v35 = vadd.f32 %v5252_v56, %v7543_v3  ;;  %v5332_v50 = vpop.f32.mrf.mxu0 }
 0x176   : > { %v2325_v49 = vpop.f32.mrf.mxu1 }
 0x177   : > { %v7708_v21 = vadd.f32 %v5332_v50, %v2461_v35  ;;  %v2460_v2 = vadd.f32 %v2325_v49, %v7548_v58  ;;  %v2631_v32 = vpop.f32.mrf.mxu0 }
 0x178   : > { %v5255_v36 = vpop.f32.mrf.mxu1 }
 0x179   : > { %v7711_v16 = vadd.f32 %v2631_v32, %v2460_v2  ;;  %v2463_v0 = vadd.f32 %v5255_v36, %v7555_v59  ;;  %v5335_v61 = vpop.f32.mrf.mxu0 }
 0x17a   : > { %v2335_v1 = vpop.f32.mrf.mxu1 }
 0x17b   : > { %v7714_v15 = vadd.f32 %v5335_v61, %v2463_v0  ;;  %v2462_v29 = vadd.f32 %v2335_v1, %v7560_v33  ;;  %v2641_v62 = vpop.f32.mrf.mxu0 }
 0x17c   : > { %v5258_v3 = vpop.f32.mrf.mxu1 }
 0x17d   : > { %v7717_v44 = vadd.f32 %v2641_v62, %v2462_v29  ;;  %v2465_v60 = vadd.f32 %v5258_v3, %v7567_v19  ;;  %v5338_v45 = vpop.f32.mrf.mxu0 }
 0x17e   : > { %v2345_v58 = vpop.f32.mrf.mxu1 }
 0x17f   : > { %v7720_v54 = vadd.f32 %v5338_v45, %v2465_v60  ;;  %v2464_v48 = vadd.f32 %v2345_v58, %v7572_v34  ;;  %v2651_v28 = vpop.f32.mrf.mxu0 }
 0x180   : > { %v5261_v59 = vpop.f32.mrf.mxu1 }
 0x181   : > { %v7723_v27 = vadd.f32 %v2651_v28, %v2464_v48  ;;  %v2467_v17 = vadd.f32 %v5261_v59, %v7579_v10  ;;  %v5341_v38 = vpop.f32.mrf.mxu0 }
 0x182   : > { %v2355_v33 = vpop.f32.mrf.mxu1 }
 0x183   : > { %v7726_v4 = vadd.f32 %v5341_v38, %v2467_v17  ;;  %v2466_v31 = vadd.f32 %v2355_v33, %v7584_v22  ;;  %v2661_v6 = vpop.f32.mrf.mxu0 }
 0x184   : > { %v5264_v19 = vpop.f32.mrf.mxu1 }
 0x185   : > { %v7729_v5 = vadd.f32 %v2661_v6, %v2466_v31  ;;  %v2469_v46 = vadd.f32 %v5264_v19, %v7591_v26  ;;  %v5344_v14 = vpop.f32.mrf.mxu0 }
 0x186   : > { %v2365_v34 = vpop.f32.mrf.mxu1 }
 0x187   : > { %v7732_v37 = vadd.f32 %v5344_v14, %v2469_v46  ;;  %v2468_v40 = vadd.f32 %v2365_v34, %v7596_v11  ;;  %v2671_v56 = vpop.f32.mrf.mxu0 }
 0x188   : > { %v5267_v10 = vpop.f32.mrf.mxu1 }
 0x189   : > { %v7735_v35 = vadd.f32 %v2671_v56, %v2468_v40  ;;  %v2471_v50 = vadd.f32 %v5267_v10, %v7603_v12  ;;  %v5347_v49 = vpop.f32.mrf.mxu0 }
 0x18a   : > { %v2375_v22 = vpop.f32.mrf.mxu1 }
 0x18b   : > { %v7738_v2 = vadd.f32 %v5347_v49, %v2471_v50  ;;  %v2470_v32 = vadd.f32 %v2375_v22, %v7608_v39  ;;  %v2681_v36 = vpop.f32.mrf.mxu0 }
 0x18c   : > { %v5270_v26 = vpop.f32.mrf.mxu1 }
 0x18d   : > { %v7741_v0 = vadd.f32 %v2681_v36, %v2470_v32  ;;  %v2473_v61 = vadd.f32 %v5270_v26, %v7615_v30  ;;  %v5350_v1 = vpop.f32.mrf.mxu0 }
 0x18e   : > { %v2385_v11 = vpop.f32.mrf.mxu1 }
 0x18f   : > { %v7744_v29 = vadd.f32 %v5350_v1, %v2473_v61  ;;  %v2472_v62 = vadd.f32 %v2385_v11, %v7620_v8  ;;  %v2691_v3 = vpop.f32.mrf.mxu0 }
 0x190   : > { %v5273_v12 = vpop.f32.mrf.mxu1 }
 0x191   : > { %8642 = vst [vmem:[#allocation42_spill] sm:$0xff] %v7744_v29  ;;  %v7747_v60 = vadd.f32 %v2691_v3, %v2472_v62  ;;  %v2475_v45 = vadd.f32 %v5273_v12, %v7627_v51  ;;  %v5353_v58 = vpop.f32.mrf.mxu0 }
 0x192   : > { %v2395_v39 = vpop.f32.mrf.mxu1 }
 0x193   : > { %8643 = vst [vmem:[#allocation46_spill] sm:$0xff] %v7747_v60  ;;  %v7750_v48 = vadd.f32 %v5353_v58, %v2475_v45  ;;  %v2474_v28 = vadd.f32 %v2395_v39, %v7632_v25  ;;  %v2701_v59 = vpop.f32.mrf.mxu0 }
 0x194   : > { %v5276_v30 = vpop.f32.mrf.mxu1 }
 0x195   : > { %8644 = vst [vmem:[#allocation48_spill] sm:$0xff] %v7750_v48  ;;  %v7753_v17 = vadd.f32 %v2701_v59, %v2474_v28  ;;  %v2477_v38 = vadd.f32 %v5276_v30, %v7639_v47  ;;  %v5356_v33 = vpop.f32.mrf.mxu0 }
 0x196   : > { %v2405_v8 = vpop.f32.mrf.mxu1 }
 0x197   : > { %8645 = vst [vmem:[#allocation47_spill] sm:$0xff] %v7753_v17  ;;  %v7756_v31 = vadd.f32 %v5356_v33, %v2477_v38  ;;  %v2476_v6 = vadd.f32 %v2405_v8, %v7644_v20  ;;  %v2711_v19 = vpop.f32.mrf.mxu0 }
 0x198   : > { %v5279_v51 = vpop.f32.mrf.mxu1 }
 0x199   : > { %8646 = vst [vmem:[#allocation49_spill] sm:$0xff] %v7756_v31  ;;  %v7759_v46 = vadd.f32 %v2711_v19, %v2476_v6  ;;  %v2479_v14 = vadd.f32 %v5279_v51, %v7651_v53  ;;  %v5359_v34 = vpop.f32.mrf.mxu0 }
 0x19a   : > { %v2415_v25 = vpop.f32.mrf.mxu1 }
 0x19b   : > { %8647 = vst [vmem:[#allocation50_spill] sm:$0xff] %v7759_v46  ;;  %v7762_v40 = vadd.f32 %v5359_v34, %v2479_v14  ;;  %v2478_v56 = vadd.f32 %v2415_v25, %v7656_v52  ;;  %v2721_v10 = vpop.f32.mrf.mxu0 }
 0x19c   : > { %v5282_v47 = vpop.f32.mrf.mxu1 }
 0x19d   : > { %8648 = vst [vmem:[#allocation51_spill] sm:$0xff] %v7762_v40  ;;  %v7765_v50 = vadd.f32 %v2721_v10, %v2478_v56  ;;  %v2481_v49 = vadd.f32 %v5282_v47, %v7663_v55  ;;  %v5362_v22 = vpop.f32.mrf.mxu0 }
 0x19e   : > { %v2425_v20 = vpop.f32.mrf.mxu1 }
 0x19f   : > { %8649 = vst [vmem:[#allocation52_spill] sm:$0xff] %v7765_v50  ;;  %v7768_v32 = vadd.f32 %v5362_v22, %v2481_v49  ;;  %v2480_v36 = vadd.f32 %v2425_v20, %v7668_v43  ;;  %v2731_v26 = vpop.f32.mrf.mxu0 }
 0x1a0   : > { %v5285_v53 = vpop.f32.mrf.mxu1 }
 0x1a1   : > { %8650 = vst [vmem:[#allocation53_spill] sm:$0xff] %v7768_v32  ;;  %v7771_v61 = vadd.f32 %v2731_v26, %v2480_v36  ;;  %v2483_v1 = vadd.f32 %v5285_v53, %v7675_v18  ;;  %v5365_v11 = vpop.f32.mrf.mxu0 }
 0x1a2   : > { %v2435_v52 = vpop.f32.mrf.mxu1 }
 0x1a3   : > { %8651 = vst [vmem:[#allocation54_spill] sm:$0xff] %v7771_v61  ;;  %v7774_v62 = vadd.f32 %v5365_v11, %v2483_v1  ;;  %v2482_v3 = vadd.f32 %v2435_v52, %v7680_v7  ;;  %v2741_v12 = vpop.f32.mrf.mxu0 }
 0x1a4   : > { %v5288_v55 = vpop.f32.mrf.mxu1 }
 0x1a5   : > { %8652 = vst [vmem:[#allocation56_spill] sm:$0xff] %v7774_v62  ;;  %v7777_v45 = vadd.f32 %v2741_v12, %v2482_v3  ;;  %v2485_v58 = vadd.f32 %v5288_v55, %v7684_v57  ;;  %v5368_v39 = vpop.f32.mrf.mxu0 }
 0x1a6   : > { %v2445_v43 = vpop.f32.mrf.mxu1 }
 0x1a7   : > { %8653 = vst [vmem:[#allocation60_spill] sm:$0xff] %v7777_v45  ;;  %v7780_v28 = vadd.f32 %v5368_v39, %v2485_v58  ;;  %v2484_v59 = vadd.f32 %v2445_v43, %v7687_v42  ;;  %v2751_v30 = vpop.f32.mrf.mxu0 }
 0x1a8   : > { %v5403_v18 = vpop.f32.mrf.mxu1 }
 0x1a9   : > { %8654 = vst [vmem:[#allocation61_spill] sm:$0xff] %v7780_v28  ;;  %v7783_v38 = vadd.f32 %v2751_v30, %v2484_v59  ;;  %v7785_v33 = vpop.f32.mrf.mxu0 }
 0x1aa   : > { %v2907_v8 = vpop.f32.mrf.mxu1 }
 0x1ab   : > { %8655 = vst [vmem:[#allocation64_spill] sm:$0xff] %v7783_v38  ;;  %v7787_v7 = vpop.f32.mrf.mxu0 }
 0x1ac   : > { %v5406_v6 = vpop.f32.mrf.mxu1 }
 0x1ad   : > { %v7789_v19 = vpop.f32.mrf.mxu0 }
 0x1ae   : > { %v7791_v51 = vpop.f32.mrf.mxu1 }
 0x1af   : > { %v7793_v57 = vpop.f32.mrf.mxu0 }
 0x1b0   : > { %v7795_v14 = vpop.f32.mrf.mxu1 }
 0x1b1   : > { %v7797_v34 = vpop.f32.mrf.mxu0 }
 0x1b2   : > { %v7799_v42 = vpop.f32.mrf.mxu1 }
 0x1b3   : > { %v7801_v25 = vpop.f32.mrf.mxu0 }
 0x1b4   : > { %v7803_v56 = vpop.f32.mrf.mxu1 }
 0x1b5   : > { %v7805_v10 = vpop.f32.mrf.mxu0 }
 0x1b6   : > { %v7807_v47 = vpop.f32.mrf.mxu1 }
 0x1b7   : > { %v7809_v49 = vpop.f32.mrf.mxu0 }
 0x1b8   : > { %v7811_v22 = vpop.f32.mrf.mxu1 }
 0x1b9   : > { %v7813_v20 = vpop.f32.mrf.mxu0 }
 0x1ba   : > { %v7815_v36 = vpop.f32.mrf.mxu1 }
 0x1bb   : > { %v7817_v26 = vpop.f32.mrf.mxu0 }
 0x1bc   : > { %v7819_v53 = vpop.f32.mrf.mxu1 }
 0x1bd   : > { %v7821_v1 = vpop.f32.mrf.mxu0 }
 0x1be   : > { %v7823_v11 = vpop.f32.mrf.mxu1 }
 0x1bf   : > { %v7825_v52 = vpop.f32.mrf.mxu0 }
 0x1c0   : > { %v7827_v3 = vpop.f32.mrf.mxu1 }
 0x1c1   : > { %v7829_v12 = vpop.f32.mrf.mxu0 }
 0x1c2   : > { %v7831_v55 = vpop.f32.mrf.mxu1 }
 0x1c3   : > { %v7833_v58 = vpop.f32.mrf.mxu0 }
 0x1c4   : > { %v7835_v39 = vpop.f32.mrf.mxu1 }
 0x1c5   : > { %v7837_v43 = vpop.f32.mrf.mxu0 }
 0x1c6   : > { %v7839_v59 = vpop.f32.mrf.mxu1 }
 0x1c7   : > { %v7841_v30 = vpop.f32.mrf.mxu0 }
 0x1c8   : > { %v7843_v38 = vpop.f32.mrf.mxu1 }
 0x1c9   : > { %v7845_v28 = vpop.f32.mrf.mxu0 }
 0x1ca   : > { %v7847_v45 = vpop.f32.mrf.mxu1 }
 0x1cb   : > { %v7849_v62 = vpop.f32.mrf.mxu0 }
 0x1cc   : > { %8656 = vst [vmem:[#allocation68_spill] sm:$0xff] %v7849_v62  ;;  %v7851_v61 = vpop.f32.mrf.mxu1 }
 0x1cd   : > { %8657 = vst [vmem:[#allocation69_spill] sm:$0xff] %v7851_v61  ;;  %v7853_v32 = vpop.f32.mrf.mxu0 }
 0x1ce   : > { %8658 = vst [vmem:[#allocation72_spill] sm:$0xff] %v7853_v32  ;;  %v7855_v50 = vpop.f32.mrf.mxu1 }
 0x1cf   : > { %8659 = vst [vmem:[#allocation73_spill] sm:$0xff] %v7855_v50  ;;  %v7857_v40 = vpop.f32.mrf.mxu0 }
 0x1d0   : > { %8660 = vst [vmem:[#allocation76_spill] sm:$0xff] %v7857_v40  ;;  %v7859_v46 = vpop.f32.mrf.mxu1 }
 0x1d1   : > { %8661 = vst [vmem:[#allocation80_spill] sm:$0xff] %v7859_v46  ;;  %v7861_v31 = vpop.f32.mrf.mxu0 }
 0x1d2   : > { %8662 = vst [vmem:[#allocation81_spill] sm:$0xff] %v7861_v31  ;;  %v7863_v17 = vpop.f32.mrf.mxu1 }
 0x1d3   : > { %8663 = vst [vmem:[#allocation83_spill] sm:$0xff] %v7863_v17  ;;  %v7865_v48 = vpop.f32.mrf.mxu0 }
 0x1d4   : > { %8664 = vst [vmem:[#allocation84_spill] sm:$0xff] %v7865_v48  ;;  %v7867_v60 = vpop.f32.mrf.mxu1 }
 0x1d5   : > { %8665 = vst [vmem:[#allocation85_spill] sm:$0xff] %v7867_v60  ;;  %v7869_v29 = vpop.f32.mrf.mxu0 }
 0x1d6   : > { %8666 = vst [vmem:[#allocation18_spill] sm:$0xff] %v7869_v29  ;;  %v7871_v62 = vpop.f32.mrf.mxu1 }
 0x1d7   : > { %8667 = vst [vmem:[#allocation20_spill] sm:$0xff] %v7871_v62  ;;  %v7873_v61 = vpop.f32.mrf.mxu0 }
 0x1d8   : > { %8668 = vst [vmem:[#allocation22_spill] sm:$0xff] %v7873_v61  ;;  %v7875_v32 = vpop.f32.mrf.mxu1 }
 0x1d9   : > { %8669 = vst [vmem:[#allocation24_spill] sm:$0xff] %v7875_v32  ;;  %v7877_v50 = vpop.f32.mrf.mxu0 }
 0x1da   : > { %8670 = vst [vmem:[#allocation26_spill] sm:$0xff] %v7877_v50  ;;  %v7879_v40 = vpop.f32.mrf.mxu1  ;;  %v3067_v50 = vadd.f32 %v5403_v18, %v7690_v24  ;;  %v3068_v24 = vadd.f32 %v7791_v51, %v7699_v9 }
 0x1db   : > { %8671 = vst [vmem:[#allocation28_spill] sm:$0xff] %v7879_v40  ;;  %v7881_v46 = vpop.f32.mrf.mxu0 }
 0x1dc   : > { %8672 = vst [vmem:[#allocation30_spill] sm:$0xff] %v7881_v46  ;;  %v7883_v31 = vpop.f32.mrf.mxu1 }
 0x1dd   : > { %8673 = vst [vmem:[#allocation32_spill] sm:$0xff] %v7883_v31  ;;  %v7885_v17 = vpop.f32.mrf.mxu0  ;;  %v3066_v31 = vadd.f32 %v2907_v8, %v7693_v41  ;;  %v3071_v41 = vadd.f32 %v7795_v14, %v7702_v23  ;;  %v3070_v23 = vadd.f32 %v7799_v42, %v7705_v13  ;;  %v3072_v13 = vadd.f32 %v7807_v47, %v7711_v16 }
 0x1de   : > { %8674 = vst [vmem:[#allocation34_spill] sm:$0xff] %v7885_v17  ;;  %v7887_v48 = vpop.f32.mrf.mxu1 }
 0x1df   : > { %8675 = vst [vmem:[#allocation57_spill] sm:$0xff] %v7887_v48  ;;  %v7889_v60 = vpop.f32.mrf.mxu0  ;;  %v3377_v51 = vadd.f32 %v7797_v34, %v3071_v41  ;;  %v3378_v47 = vadd.f32 %v7809_v49, %v3072_v13 }
 0x1e0   : > { %8676 = vst [vmem:[#allocation58_spill] sm:$0xff] %v7889_v60  ;;  %v7891_v29 = vpop.f32.mrf.mxu1  ;;  %v3373_v60 = vadd.f32 %v7785_v33, %v3067_v50 }
 0x1e1   : > { %8677 = vst [vmem:[#allocation36_spill] sm:$0xff] %v7891_v29  ;;  %v7893_v62 = vpop.f32.mrf.mxu0  ;;  %v3069_v29 = vadd.f32 %v5406_v6, %v7696_v63 }
 0x1e2   : > { %8678 = vst [vmem:[#allocation11_spill] sm:$0xff] %v7893_v62  ;;  %v7895_v61 = vpop.f32.mrf.mxu1 }
 0x1e3   : > { %8679 = vst [vmem:[#allocation62_spill] sm:$0xff] %v7895_v61  ;;  %v7898_v40 = vpop.f32.mrf.mxu0  ;;  %v3372_v61 = vadd.f32 %v7787_v7, %v3066_v31  ;;  %v3375_v33 = vadd.f32 %v7789_v19, %v3069_v29 }
 0x1e4   : > { %v7900_v46 = vpop.f32.mrf.mxu1 }
 0x1e5   : > { %v7903_v17 = vpop.f32.mrf.mxu0 }
 0x1e6   : > { %8680 = vst [vmem:[#allocation12_spill] sm:$0xff] %v7903_v17  ;;  %v7905_v48 = vpop.f32.mrf.mxu1 }
 0x1e7   : > { %v7909_v62 = vpop.f32.mrf.mxu0 }
 0x1e8   : > { %8681 = vst [vmem:[#allocation13_spill] sm:$0xff] %v7909_v62  ;;  %v5563_v32 = vpop.f32.mrf.mxu1 }
 0x1e9   : > { %v3679_v18 = vadd.f32 %v5563_v32, %v3373_v60  ;;  %v5643_v63 = vpop.f32.mrf.mxu0  ;;  %v3374_v60 = vadd.f32 %v7793_v57, %v3068_v24  ;;  %v3073_v57 = vadd.f32 %v7803_v56, %v7708_v21 }
 0x1ea   : > { %v3519_v50 = vpop.f32.mrf.mxu1 }
 0x1eb   : > { %v3985_v31 = vadd.f32 %v5643_v63, %v3679_v18  ;;  %v3678_v8 = vadd.f32 %v3519_v50, %v3372_v61  ;;  %v3825_v7 = vpop.f32.mrf.mxu0  ;;  %v3376_v63 = vadd.f32 %v7801_v25, %v3070_v23  ;;  %v3379_v16 = vadd.f32 %v7805_v10, %v3073_v57 }
 0x1ec   : > { %v5566_v9 = vpop.f32.mrf.mxu1 }
 0x1ed   : > { %4125 = vst [vmem:[%s7921_s14 + $0x8] sm:$0xff] %v3985_v31  ;;  %v3984_v32 = vadd.f32 %v3825_v7, %v3678_v8  ;;  %v3681_v6 = vadd.f32 %v5566_v9, %v3375_v33  ;;  %v4055_v14 = vmul.f32 %v3985_v31, %v3985_v31  ;;  %v5646_v62 = vpop.f32.mrf.mxu0 }
 0x1ee   : > { %v3529_v17 = vpop.f32.mrf.mxu1 }
 0x1ef   : > { %v4016_v29 = vadd.f32 %v3985_v31, %v3984_v32  ;;  %v4054_v19 = vmul.f32 %v3984_v32, %v3984_v32  ;;  %4124 = vst [vmem:[%s7921_s14] sm:$0xff] %v3984_v32  ;;  %v3987_v61 = vadd.f32 %v5646_v62, %v3681_v6  ;;  %v3680_v18 = vadd.f32 %v3529_v17, %v3374_v60  ;;  %v3835_v42 = vpop.f32.mrf.mxu0 }
 0x1f0   : > { %v5569_v24 = vpop.f32.mrf.mxu1  ;;  %v3075_v62 = vadd.f32 %v7811_v22, %v7714_v15  ;;  %v3074_v22 = vadd.f32 %v7815_v36, %v7717_v44  ;;  %v3077_v6 = vadd.f32 %v7819_v53, %v7720_v54 }
 0x1f1   : > { %v4086_v34 = vadd.f32 %v4055_v14, %v4054_v19  ;;  %4127 = vst [vmem:[%s7921_s14 + $0x18] sm:$0xff] %v3987_v61  ;;  %v3986_v41 = vadd.f32 %v3835_v42, %v3680_v18  ;;  %v3683_v50 = vadd.f32 %v5569_v24, %v3377_v51  ;;  %v5649_v33 = vpop.f32.mrf.mxu0  ;;  %v4057_v9 = vmul.f32 %v3987_v61, %v3987_v61 }
 0x1f2   : > { %v3539_v17 = vpop.f32.mrf.mxu1  ;;  %v3381_v15 = vadd.f32 %v7813_v20, %v3075_v62  ;;  %v3380_v24 = vadd.f32 %v7817_v26, %v3074_v22 }
 0x1f3   : > { %v4017_v31 = vadd.f32 %v4016_v29, %v3986_v41  ;;  %v4056_v8 = vmul.f32 %v3986_v41, %v3986_v41  ;;  %4126 = vst [vmem:[%s7921_s14 + $0x10] sm:$0xff] %v3986_v41  ;;  %v3989_v21 = vadd.f32 %v5649_v33, %v3683_v50  ;;  %v3682_v56 = vadd.f32 %v3539_v17, %v3376_v63  ;;  %v3845_v25 = vpop.f32.mrf.mxu0 }
 0x1f4   : > { %v5572_v7 = vpop.f32.mrf.mxu1  ;;  %v3383_v63 = vadd.f32 %v7821_v1, %v3077_v6 }
 0x1f5   : > { %v4087_v60 = vadd.f32 %v4086_v34, %v4056_v8  ;;  %4129 = vst [vmem:[%s7921_s14 + $0x28] sm:$0xff] %v3989_v21  ;;  %v3988_v23 = vadd.f32 %v3845_v25, %v3682_v56  ;;  %v4018_v32 = vadd.f32 %v4017_v31, %v3987_v61  ;;  %v3685_v51 = vadd.f32 %v5572_v7, %v3379_v16  ;;  %v5652_v10 = vpop.f32.mrf.mxu0 }
 0x1f6   : > { %v3549_v14 = vpop.f32.mrf.mxu1  ;;  %v3076_v61 = vadd.f32 %v7823_v11, %v7723_v27  ;;  %v4059_v57 = vmul.f32 %v3989_v21, %v3989_v21  ;;  %v3079_v34 = vadd.f32 %v7827_v3, %v7726_v4  ;;  %v3078_v31 = vadd.f32 %v7831_v55, %v7729_v5 }
 0x1f7   : > { %v4019_v49 = vadd.f32 %v4018_v32, %v3988_v23  ;;  %v4058_v29 = vmul.f32 %v3988_v23, %v3988_v23  ;;  %v4088_v19 = vadd.f32 %v4087_v60, %v4057_v9  ;;  %4128 = vst [vmem:[%s7921_s14 + $0x20] sm:$0xff] %v3988_v23  ;;  %v3684_v18 = vadd.f32 %v3549_v14, %v3378_v47  ;;  %v3855_v13 = vpop.f32.mrf.mxu0 }
 0x1f8   : > { %v3991_v20 = vadd.f32 %v5652_v10, %v3685_v51  ;;  %v5575_v44 = vpop.f32.mrf.mxu1  ;;  %v3382_v17 = vadd.f32 %v7825_v52, %v3076_v61  ;;  %v3385_v16 = vadd.f32 %v7829_v12, %v3079_v34  ;;  %v3081_v52 = vadd.f32 %v7835_v39, %v7732_v37  ;;  %v8683_v34 = vld [vmem:[#allocation69_spill] sm:$0xff] }
 0x1f9   : > { %v4089_v36 = vadd.f32 %v4088_v19, %v4058_v29  ;;  %v3990_v42 = vadd.f32 %v3855_v13, %v3684_v18  ;;  %v4020_v54 = vadd.f32 %v4019_v49, %v3989_v21  ;;  %v3687_v53 = vadd.f32 %v5575_v44, %v3381_v15  ;;  %v5655_v41 = vpop.f32.mrf.mxu0 }
 0x1fa   : > { %4131 = vst [vmem:[%s7921_s14 + $0x38] sm:$0xff] %v3991_v20  ;;  %v3559_v27 = vpop.f32.mrf.mxu1  ;;  %v4061_v21 = vmul.f32 %v3991_v20, %v3991_v20  ;;  %v3384_v22 = vadd.f32 %v7833_v58, %v3078_v31  ;;  %v3080_v12 = vadd.f32 %v7839_v59, %v7735_v35  ;;  %v3083_v37 = vadd.f32 %v7843_v38, %v7738_v2  ;;  %v8686_v31 = vld [vmem:[#allocation73_spill] sm:$0xff] }
 0x1fb   : > { %v4021_v11 = vadd.f32 %v4020_v54, %v3990_v42  ;;  %v4060_v50 = vmul.f32 %v3990_v42, %v3990_v42  ;;  %v4090_v62 = vadd.f32 %v4089_v36, %v4059_v57  ;;  %4130 = vst [vmem:[%s7921_s14 + $0x30] sm:$0xff] %v3990_v42  ;;  %v3993_v33 = vadd.f32 %v5655_v41, %v3687_v53  ;;  %v3865_v8 = vpop.f32.mrf.mxu0 }
 0x1fc   : > { %v3686_v26 = vadd.f32 %v3559_v27, %v3380_v24  ;;  %v5578_v1 = vpop.f32.mrf.mxu1  ;;  %v3387_v19 = vadd.f32 %v7837_v43, %v3081_v52  ;;  %v3386_v13 = vadd.f32 %v7841_v30, %v3080_v12  ;;  %v3082_v2 = vadd.f32 %v7847_v45, %v7741_v0  ;;  %v8689_v52 = vld [vmem:[#allocation72_spill] sm:$0xff] }
 0x1fd   : > { %v4091_v4 = vadd.f32 %v4090_v62, %v4060_v50  ;;  %4133 = vst [vmem:[%s7921_s14 + $0x48] sm:$0xff] %v3993_v33  ;;  %v4022_v3 = vadd.f32 %v4021_v11, %v3991_v20  ;;  %v3689_v56 = vadd.f32 %v5578_v1, %v3383_v63  ;;  %v5658_v25 = vpop.f32.mrf.mxu0  ;;  %v4063_v39 = vmul.f32 %v3993_v33, %v3993_v33  ;;  %v8682_v63 = vld [vmem:[#allocation42_spill] sm:$0xff]  ;;  %v8690_v12 = vld [vmem:[#allocation76_spill] sm:$0xff] }
 0x1fe   : > { %v3992_v47 = vadd.f32 %v3865_v8, %v3686_v26  ;;  %v3569_v7 = vpop.f32.mrf.mxu1  ;;  %v3389_v36 = vadd.f32 %v7845_v28, %v3083_v37  ;;  %v3085_v41 = vadd.f32 %v8683_v34, %v8682_v63  ;;  %v8692_v37 = vld [vmem:[#allocation83_spill] sm:$0xff]  ;;  %v8698_v63 = vld [vmem:[#allocation20_spill] sm:$0xff] }
 0x1ff   : > { %v4092_v9 = vadd.f32 %v4091_v4, %v4061_v21  ;;  %v3995_v5 = vadd.f32 %v5658_v25, %v3689_v56  ;;  %v3688_v55 = vadd.f32 %v3569_v7, %v3382_v17  ;;  %v3875_v32 = vpop.f32.mrf.mxu0  ;;  %v8685_v17 = vld [vmem:[#allocation46_spill] sm:$0xff]  ;;  %v8687_v21 = vld [vmem:[#allocation48_spill] sm:$0xff] }
 0x200   : > { %v4023_v60 = vadd.f32 %v4022_v3, %v3992_v47  ;;  %v4062_v23 = vmul.f32 %v3992_v47, %v3992_v47  ;;  %4132 = vst [vmem:[%s7921_s14 + $0x40] sm:$0xff] %v3992_v47  ;;  %v5581_v15 = vpop.f32.mrf.mxu1  ;;  %v3084_v26 = vadd.f32 %v8686_v31, %v8685_v17  ;;  %v8688_v4 = vld [vmem:[#allocation80_spill] sm:$0xff]  ;;  %v8701_v17 = vld [vmem:[#allocation18_spill] sm:$0xff] }
 0x201   : > { %4135 = vst [vmem:[%s7921_s14 + $0x58] sm:$0xff] %v3995_v5  ;;  %v3994_v6 = vadd.f32 %v3875_v32, %v3688_v55  ;;  %v3691_v51 = vadd.f32 %v5581_v15, %v3385_v16  ;;  %v5661_v49 = vpop.f32.mrf.mxu0  ;;  %v4065_v43 = vmul.f32 %v3995_v5, %v3995_v5  ;;  %v3087_v3 = vadd.f32 %v8688_v4, %v8687_v21 }
 0x202   : > { %v4093_v10 = vadd.f32 %v4092_v9, %v4062_v23  ;;  %v4024_v14 = vadd.f32 %v4023_v60, %v3993_v33  ;;  %v3579_v29 = vpop.f32.mrf.mxu1  ;;  %v8684_v33 = vld [vmem:[#allocation68_spill] sm:$0xff]  ;;  %v3391_v9 = vadd.f32 %v8689_v52, %v3085_v41 }
 0x203   : > { %v4064_v18 = vmul.f32 %v3994_v6, %v3994_v6  ;;  %4134 = vst [vmem:[%s7921_s14 + $0x50] sm:$0xff] %v3994_v6  ;;  %v3997_v58 = vadd.f32 %v5661_v49, %v3691_v51  ;;  %v3690_v61 = vadd.f32 %v3579_v29, %v3384_v22  ;;  %v3885_v59 = vpop.f32.mrf.mxu0  ;;  %v3388_v28 = vadd.f32 %v8684_v33, %v3082_v2  ;;  %v8691_v51 = vld [vmem:[#allocation47_spill] sm:$0xff]  ;;  %v8693_v49 = vld [vmem:[#allocation81_spill] sm:$0xff] }
 0x204   : > { %v4025_v57 = vadd.f32 %v4024_v14, %v3994_v6  ;;  %v4094_v35 = vadd.f32 %v4093_v10, %v4063_v39  ;;  %v5584_v20 = vpop.f32.mrf.mxu1  ;;  %v3390_v6 = vadd.f32 %v8690_v12, %v3084_v26  ;;  %v3086_v39 = vadd.f32 %v8692_v37, %v8691_v51  ;;  %v8707_v51 = vld [vmem:[#allocation32_spill] sm:$0xff] }
 0x205   : > { %4137 = vst [vmem:[%s7921_s14 + $0x68] sm:$0xff] %v3997_v58  ;;  %v3996_v38 = vadd.f32 %v3885_v59, %v3690_v61  ;;  %v3693_v44 = vadd.f32 %v5584_v20, %v3387_v19  ;;  %v5664_v53 = vpop.f32.mrf.mxu0  ;;  %v4067_v56 = vmul.f32 %v3997_v58, %v3997_v58  ;;  %v3393_v29 = vadd.f32 %v8693_v49, %v3087_v3  ;;  %v8695_v59 = vld [vmem:[#allocation85_spill] sm:$0xff] }
 0x206   : > { %v4095_v42 = vadd.f32 %v4094_v35, %v4064_v18  ;;  %v4026_v54 = vadd.f32 %v4025_v57, %v3995_v5  ;;  %v3589_v24 = vpop.f32.mrf.mxu1  ;;  %v8694_v35 = vld [vmem:[#allocation49_spill] sm:$0xff] }
 0x207   : > { %v4066_v27 = vmul.f32 %v3996_v38, %v3996_v38  ;;  %4136 = vst [vmem:[%s7921_s14 + $0x60] sm:$0xff] %v3996_v38  ;;  %v3999_v30 = vadd.f32 %v5664_v53, %v3693_v44  ;;  %v3692_v11 = vadd.f32 %v3589_v24, %v3386_v13  ;;  %v3895_v45 = vpop.f32.mrf.mxu0  ;;  %v3089_v20 = vadd.f32 %v8695_v59, %v8694_v35  ;;  %v8697_v24 = vld [vmem:[#allocation50_spill] sm:$0xff]  ;;  %v8710_v35 = vld [vmem:[#allocation57_spill] sm:$0xff] }
 0x208   : > { %v4027_v50 = vadd.f32 %v4026_v54, %v3996_v38  ;;  %v4096_v0 = vadd.f32 %v4095_v42, %v4065_v43  ;;  %v5587_v62 = vpop.f32.mrf.mxu1  ;;  %v8696_v54 = vld [vmem:[#allocation84_spill] sm:$0xff]  ;;  %v3088_v34 = vadd.f32 %v8698_v63, %v8697_v24  ;;  %v8713_v24 = vld [vmem:[#allocation34_spill] sm:$0xff] }
 0x209   : > { %4139 = vst [vmem:[%s7921_s14 + $0x78] sm:$0xff] %v3999_v30  ;;  %v3998_v8 = vadd.f32 %v3895_v45, %v3692_v11  ;;  %v3695_v1 = vadd.f32 %v5587_v62, %v3389_v36  ;;  %v5667_v25 = vpop.f32.mrf.mxu0  ;;  %v4069_v19 = vmul.f32 %v3999_v30, %v3999_v30  ;;  %v3392_v53 = vadd.f32 %v8696_v54, %v3086_v39  ;;  %v8700_v11 = vld [vmem:[#allocation24_spill] sm:$0xff] }
 0x20a   : > { %v4097_v16 = vadd.f32 %v4096_v0, %v4066_v27  ;;  %v4028_v47 = vadd.f32 %v4027_v50, %v3997_v58  ;;  %v3599_v7 = vpop.f32.mrf.mxu1  ;;  %v3395_v31 = vadd.f32 %v8701_v17, %v3089_v20 }
 0x20b   : > { %v4068_v5 = vmul.f32 %v3998_v8, %v3998_v8  ;;  %4138 = vst [vmem:[%s7921_s14 + $0x70] sm:$0xff] %v3998_v8  ;;  %v4001_v55 = vadd.f32 %v5667_v25, %v3695_v1  ;;  %v3694_v60 = vadd.f32 %v3599_v7, %v3388_v28  ;;  %v3905_v15 = vpop.f32.mrf.mxu0  ;;  %v8703_v25 = vld [vmem:[#allocation52_spill] sm:$0xff] }
 0x20c   : > { %v4029_v23 = vadd.f32 %v4028_v47, %v3998_v8  ;;  %v4098_v32 = vadd.f32 %v4097_v16, %v4067_v56  ;;  %v5590_v22 = vpop.f32.mrf.mxu1  ;;  %v8702_v16 = vld [vmem:[#allocation22_spill] sm:$0xff]  ;;  %v8704_v7 = vld [vmem:[#allocation28_spill] sm:$0xff] }
 0x20d   : > { %4141 = vst [vmem:[%s7921_s14 + $0x88] sm:$0xff] %v4001_v55  ;;  %v4000_v10 = vadd.f32 %v3905_v15, %v3694_v60  ;;  %v3697_v14 = vadd.f32 %v5590_v22, %v3391_v9  ;;  %v5670_v61 = vpop.f32.mrf.mxu0  ;;  %v4071_v0 = vmul.f32 %v4001_v55, %v4001_v55  ;;  %v3394_v47 = vadd.f32 %v8702_v16, %v3088_v34 }
 0x20e   : > { %v4099_v18 = vadd.f32 %v4098_v32, %v4068_v5  ;;  %v4030_v58 = vadd.f32 %v4029_v23, %v3999_v30  ;;  %v3609_v57 = vpop.f32.mrf.mxu1  ;;  %v8699_v30 = vld [vmem:[#allocation51_spill] sm:$0xff]  ;;  %v3090_v52 = vadd.f32 %v8704_v7, %v8703_v25 }
 0x20f   : > { %v4070_v13 = vmul.f32 %v4000_v10, %v4000_v10  ;;  %4140 = vst [vmem:[%s7921_s14 + $0x80] sm:$0xff] %v4000_v10  ;;  %v4003_v2 = vadd.f32 %v5670_v61, %v3697_v14  ;;  %v3696_v38 = vadd.f32 %v3609_v57, %v3390_v6  ;;  %v3915_v43 = vpop.f32.mrf.mxu0  ;;  %v3091_v50 = vadd.f32 %v8700_v11, %v8699_v30  ;;  %v8706_v6 = vld [vmem:[#allocation53_spill] sm:$0xff]  ;;  %v8709_v57 = vld [vmem:[#allocation54_spill] sm:$0xff] }
 0x210   : > { %v4031_v44 = vadd.f32 %v4030_v58, %v4000_v10  ;;  %v4100_v36 = vadd.f32 %v4099_v18, %v4069_v19  ;;  %v5593_v42 = vpop.f32.mrf.mxu1  ;;  %v3093_v37 = vadd.f32 %v8707_v51, %v8706_v6  ;;  %v8708_v58 = vld [vmem:[#allocation30_spill] sm:$0xff]  ;;  %v3092_v59 = vadd.f32 %v8710_v35, %v8709_v57  ;;  %v8721_v57 = vld [vmem:[#allocation13_spill] sm:$0xff] }
 0x211   : > { %4143 = vst [vmem:[%s7921_s14 + $0x98] sm:$0xff] %v4003_v2  ;;  %v4002_v41 = vadd.f32 %v3915_v43, %v3696_v38  ;;  %v3699_v27 = vadd.f32 %v5593_v42, %v3393_v29  ;;  %v5673_v33 = vpop.f32.mrf.mxu0  ;;  %v4073_v23 = vmul.f32 %v4003_v2, %v4003_v2  ;;  %v3396_v61 = vadd.f32 %v8708_v58, %v3090_v52  ;;  %v8712_v38 = vld [vmem:[#allocation36_spill] sm:$0xff] }
 0x212   : > { %v4101_v45 = vadd.f32 %v4100_v36, %v4070_v13  ;;  %v4032_v62 = vadd.f32 %v4031_v44, %v4001_v55  ;;  %v3619_v28 = vpop.f32.mrf.mxu1  ;;  %v8705_v55 = vld [vmem:[#allocation26_spill] sm:$0xff]  ;;  %v3399_v63 = vadd.f32 %v8713_v24, %v3093_v37 }
 0x213   : > { %v4072_v26 = vmul.f32 %v4002_v41, %v4002_v41  ;;  %4142 = vst [vmem:[%s7921_s14 + $0x90] sm:$0xff] %v4002_v41  ;;  %v4005_v8 = vadd.f32 %v5673_v33, %v3699_v27  ;;  %v3698_v1 = vadd.f32 %v3619_v28, %v3392_v53  ;;  %v3925_v3 = vpop.f32.mrf.mxu0  ;;  %v3397_v60 = vadd.f32 %v8705_v55, %v3091_v50  ;;  %v8715_v33 = vld [vmem:[#allocation60_spill] sm:$0xff]  ;;  %v8716_v28 = vld [vmem:[#allocation62_spill] sm:$0xff] }
 0x214   : > { %v4033_v21 = vadd.f32 %v4032_v62, %v4002_v41  ;;  %v4102_v4 = vadd.f32 %v4101_v45, %v4071_v0  ;;  %v5596_v56 = vpop.f32.mrf.mxu1  ;;  %v8714_v45 = vld [vmem:[#allocation58_spill] sm:$0xff]  ;;  %v3094_v17 = vadd.f32 %v8716_v28, %v8715_v33 }
 0x215   : > { %4145 = vst [vmem:[%s7921_s14 + $0xa8] sm:$0xff] %v4005_v8  ;;  %v4004_v9 = vadd.f32 %v3925_v3, %v3698_v1  ;;  %v3701_v5 = vadd.f32 %v5596_v56, %v3395_v31  ;;  %v5676_v22 = vpop.f32.mrf.mxu0  ;;  %v4075_v36 = vmul.f32 %v4005_v8, %v4005_v8  ;;  %v3398_v62 = vadd.f32 %v8714_v45, %v3092_v59 }
 0x216   : > { %v4103_v32 = vadd.f32 %v4102_v4, %v4072_v26  ;;  %v4034_v15 = vadd.f32 %v4033_v21, %v4003_v2  ;;  %v3629_v12 = vpop.f32.mrf.mxu1  ;;  %v8711_v2 = vld [vmem:[#allocation56_spill] sm:$0xff] }
 0x217   : > { %v4074_v39 = vmul.f32 %v4004_v9, %v4004_v9  ;;  %4144 = vst [vmem:[%s7921_s14 + $0xa0] sm:$0xff] %v4004_v9  ;;  %v4007_v10 = vadd.f32 %v5676_v22, %v3701_v5  ;;  %v3700_v14 = vadd.f32 %v3629_v12, %v3394_v47  ;;  %v3935_v19 = vpop.f32.mrf.mxu0  ;;  %v3095_v44 = vadd.f32 %v8712_v38, %v8711_v2  ;;  %v8718_v47 = vld [vmem:[#allocation61_spill] sm:$0xff] }
 0x218   : > { %v4035_v49 = vadd.f32 %v4034_v15, %v4004_v9  ;;  %v4104_v29 = vadd.f32 %v4103_v32, %v4073_v23  ;;  %v5599_v18 = vpop.f32.mrf.mxu1  ;;  %v3097_v25 = vadd.f32 %v7900_v46, %v8718_v47  ;;  %v3400_v32 = vadd.f32 %v7898_v40, %v3094_v17  ;;  %v8719_v15 = vld [vmem:[#allocation64_spill] sm:$0xff] }
 0x219   : > { %4147 = vst [vmem:[%s7921_s14 + $0xb8] sm:$0xff] %v4007_v10  ;;  %v4006_v20 = vadd.f32 %v3935_v19, %v3700_v14  ;;  %v3703_v13 = vadd.f32 %v5599_v18, %v3397_v60  ;;  %v5679_v54 = vpop.f32.mrf.mxu0  ;;  %v4077_v21 = vmul.f32 %v4007_v10, %v4007_v10  ;;  %v3096_v22 = vadd.f32 %v7905_v48, %v8719_v15  ;;  %v8720_v14 = vld [vmem:[#allocation12_spill] sm:$0xff] }
 0x21a   : > { %v4105_v43 = vadd.f32 %v4104_v29, %v4074_v39  ;;  %v4036_v42 = vadd.f32 %v4035_v49, %v4005_v8  ;;  %v3639_v53 = vpop.f32.mrf.mxu1  ;;  %v8717_v8 = vld [vmem:[#allocation11_spill] sm:$0xff]  ;;  %v3403_v49 = vadd.f32 %v8720_v14, %v3097_v25 }
 0x21b   : > { %v4076_v34 = vmul.f32 %v4006_v20, %v4006_v20  ;;  %4146 = vst [vmem:[%s7921_s14 + $0xb0] sm:$0xff] %v4006_v20  ;;  %v4009_v41 = vadd.f32 %v5679_v54, %v3703_v13  ;;  %v3702_v27 = vadd.f32 %v3639_v53, %v3396_v61  ;;  %v3945_v50 = vpop.f32.mrf.mxu0  ;;  %v3401_v1 = vadd.f32 %v8717_v8, %v3095_v44 }
 0x21c   : > { %v4037_v30 = vadd.f32 %v4036_v42, %v4006_v20  ;;  %v4106_v11 = vadd.f32 %v4105_v43, %v4075_v36  ;;  %v5602_v0 = vpop.f32.mrf.mxu1  ;;  %v3402_v35 = vadd.f32 %v8721_v57, %v3096_v22 }
 0x21d   : > { %4149 = vst [vmem:[%s7921_s14 + $0xc8] sm:$0xff] %v4009_v41  ;;  %v4008_v31 = vadd.f32 %v3945_v50, %v3702_v27  ;;  %v3705_v26 = vadd.f32 %v5602_v0, %v3399_v63  ;;  %v5682_v56 = vpop.f32.mrf.mxu0  ;;  %v4079_v51 = vmul.f32 %v4009_v41, %v4009_v41 }
 0x21e   : > { %v4107_v4 = vadd.f32 %v4106_v11, %v4076_v34  ;;  %v4038_v3 = vadd.f32 %v4037_v30, %v4007_v10  ;;  %v3649_v16 = vpop.f32.mrf.mxu1 }
 0x21f   : > { %v4078_v7 = vmul.f32 %v4008_v31, %v4008_v31  ;;  %4148 = vst [vmem:[%s7921_s14 + $0xc0] sm:$0xff] %v4008_v31  ;;  %v4011_v52 = vadd.f32 %v5682_v56, %v3705_v26  ;;  %v3704_v9 = vadd.f32 %v3649_v16, %v3398_v62  ;;  %v3955_v60 = vpop.f32.mrf.mxu0 }
 0x220   : > { %v4039_v5 = vadd.f32 %v4038_v3, %v4008_v31  ;;  %v4108_v55 = vadd.f32 %v4107_v4, %v4077_v21  ;;  %v5605_v23 = vpop.f32.mrf.mxu1 }
 0x221   : > { %4151 = vst [vmem:[%s7921_s14 + $0xd8] sm:$0xff] %v4011_v52  ;;  %v4010_v12 = vadd.f32 %v3955_v60, %v3704_v9  ;;  %v3707_v6 = vadd.f32 %v5605_v23, %v3401_v1  ;;  %v5685_v39 = vpop.f32.mrf.mxu0  ;;  %v4081_v13 = vmul.f32 %v4011_v52, %v4011_v52 }
 0x222   : > { %v4109_v46 = vadd.f32 %v4108_v55, %v4078_v7  ;;  %v4040_v37 = vadd.f32 %v4039_v5, %v4009_v41  ;;  %v3659_v10 = vpop.f32.mrf.mxu1 }
 0x223   : > { %v4080_v29 = vmul.f32 %v4010_v12, %v4010_v12  ;;  %4150 = vst [vmem:[%s7921_s14 + $0xd0] sm:$0xff] %v4010_v12  ;;  %v4013_v19 = vadd.f32 %v5685_v39, %v3707_v6  ;;  %v3706_v18 = vadd.f32 %v3659_v10, %v3400_v32  ;;  %v3965_v61 = vpop.f32.mrf.mxu0 }
 0x224   : > { %v4041_v40 = vadd.f32 %v4040_v37, %v4010_v12  ;;  %v4110_v58 = vadd.f32 %v4109_v46, %v4079_v51  ;;  %v5608_v48 = vpop.f32.mrf.mxu1 }
 0x225   : > { %4153 = vst [vmem:[%s7921_s14 + $0xe8] sm:$0xff] %v4013_v19  ;;  %v4012_v59 = vadd.f32 %v3965_v61, %v3706_v18  ;;  %v3709_v20 = vadd.f32 %v5608_v48, %v3403_v49  ;;  %v5688_v44 = vpop.f32.mrf.mxu0  ;;  %v4083_v41 = vmul.f32 %v4013_v19, %v4013_v19 }
 0x226   : > { %v4111_v2 = vadd.f32 %v4110_v58, %v4080_v29  ;;  %v4042_v38 = vadd.f32 %v4041_v40, %v4011_v52  ;;  %v3669_v36 = vpop.f32.mrf.mxu1 }
 0x227   : > { %v4082_v43 = vmul.f32 %v4012_v59, %v4012_v59  ;;  %4152 = vst [vmem:[%s7921_s14 + $0xe0] sm:$0xff] %v4012_v59  ;;  %v4015_v42 = vadd.f32 %v5688_v44, %v3709_v20  ;;  %v3708_v54 = vadd.f32 %v3669_v36, %v3402_v35  ;;  %v3975_v63 = vpop.f32.mrf.mxu0 }
 0x228   : > { %v4043_v53 = vadd.f32 %v4042_v38, %v4012_v59  ;;  %v4112_v24 = vadd.f32 %v4111_v2, %v4081_v13 }
 0x229   : > { %4155 = vst [vmem:[%s7921_s14 + $0xf8] sm:$0xff] %v4015_v42  ;;  %v4014_v34 = vadd.f32 %v3975_v63, %v3708_v54  ;;  %v4085_v45 = vmul.f32 %v4015_v42, %v4015_v42 }
 0x22a   : > { %v4113_v27 = vadd.f32 %v4112_v24, %v4082_v43  ;;  %v4044_v30 = vadd.f32 %v4043_v53, %v4013_v19 }
 0x22b   : > { %v4084_v11 = vmul.f32 %v4014_v34, %v4014_v34  ;;  %4154 = vst [vmem:[%s7921_s14 + $0xf0] sm:$0xff] %v4014_v34  ;;  %s5770_s14 = sshll.u32 %s5859_s12, 4  ;;  %s5771_s14 = int_to_ptr.vmem [resolvable:$false] %s5770_s14 }
 0x22c   : > { %v4045_v50 = vadd.f32 %v4044_v30, %v4014_v34  ;;  %v4114_v0 = vadd.f32 %v4113_v27, %v4083_v41  ;;  %s5772_s19 = scalar_lea.vmem %s5771_s14, 32  ;;  %p5773_p0 = scmp.lt.s32.totalorder %s8052_s15, %s5771_s14 }
 0x22d   : > { %p5774_p1 = scmp.lt.s32.totalorder %s5772_s19, %s5766_s11 }
 0x22e   : > { %v4046_v62 = vadd.f32 %v4045_v50, %v4015_v42  ;;  %v4115_v33 = vadd.f32 %v4114_v0, %v4084_v11 }
 0x22f   : > { %p5775_p2 = por %p5774_p1, %p5773_p0 }
 0x230   : > { %v4047_v28 = vrot.slane %v4046_v62, 4  ;;  %v4116_v17 = vadd.f32 %v4115_v33, %v4085_v45 }
 0x231   : > { %p5776_p3 = pnand %p5775_p2, %p5769_p13 }
 0x232   : > { %v4048_v31 = vadd.f32 %v4047_v28, %v4046_v62  ;;  %v4117_v26 = vrot.slane %v4116_v17, 4 }
 0x234   : > { %v4049_v8 = vrot.slane %v4048_v31, 2  ;;  %v4118_v1 = vadd.f32 %v4117_v26, %v4116_v17 }
 0x236   : > { %v4050_v21 = vadd.f32 %v4049_v8, %v4048_v31  ;;  %v4119_v4 = vrot.slane %v4118_v1, 2 }
 0x238   : > { %v4051_v3 = vrot.slane %v4050_v21, 1  ;;  %v4120_v56 = vadd.f32 %v4119_v4, %v4118_v1 }
 0x23a   : > { %v4052_v16 = vadd.f32 %v4051_v3, %v4050_v21  ;;  %v4121_v47 = vrot.slane %v4120_v56, 1 }
 0x23c   : > { %4053 = vst [vmem:[%s255_s17] sm:$0x1] %v4052_v16  ;;  %v4122_v25 = vadd.f32 %v4121_v47, %v4120_v56 }
 0x23d   : > { %5779 = shalt.err (!%p5776_p3)
}
 0x23e   : > { %s5780_s9 = scalar_lea.hbm %s8050_s26, 16  ;;  %s5784_s25 = scalar_lea.hbm %s8127_s5, 32 }
 0x23f   : > { %p5781_p4 = scmp.ne.s32.totalorder %s8050_s26, %s5780_s9  ;;  %p5785_p9 = scmp.lt.s32.totalorder %s8050_s26, %s8127_s5 }
 0x240   : > { %p5786_p10 = scmp.lt.s32.totalorder %s5784_s25, %s5780_s9 }
 0x241   : > { %p5782_p7 = pnand %p5781_p4, %p5934_p5 }
 0x242   : > { %p5787_p11 = por %p5786_p10, %p5785_p9 }
 0x243   : > { %p5783_p8 = pneg %p5782_p7 }
 0x245   : > { %p5788_p12 = pnand %p5787_p11, %p5783_p8 }
 0x247   : > { %5791 = shalt.err (!%p5788_p12)
}
 0x248   : > { %5721 = dma.vmem_to_hbm [thread:$0]  (%p5934_p5), %s8052_s15, 16, %s8050_s26, %s4162_s10   ;;  %4123 = vst [vmem:[%s261_s16] sm:$0x1] %v4122_v25 }
 0x249   : > { %s4166_s11 = scalar_lea.sflag [#allocation8], %s8040_s13  ;;  %s5792_s14 = scalar_lea.vmem %s8059_s18, 16 }
 0x24a   : > { %p5793_p13 = scmp.ne.s32.totalorder %s8059_s18, %s5792_s14  ;;  %s5860_s19 = smov [#allocation7]  }
 0x24b   : > { %s5796_s9 = sshll.u32 %s5860_s19, 4  ;;  %s5797_s9 = int_to_ptr.vmem [resolvable:$false] %s5796_s9 }
 0x24c   : > { %p5794_p0 = pnand %p5793_p13, %p5934_p5  ;;  %s5798_s17 = scalar_lea.vmem %s5797_s9, 32 }
 0x24d   : > { %p5799_p2 = scmp.lt.s32.totalorder %s8059_s18, %s5797_s9  ;;  %p5800_p3 = scmp.lt.s32.totalorder %s5798_s17, %s5792_s14 }
 0x24e   : > { %p5795_p1 = pneg %p5794_p0 }
 0x24f   : > { %p5801_p4 = por %p5800_p3, %p5799_p2 }
 0x251   : > { %p5802_p7 = pnand %p5801_p4, %p5795_p1 }
 0x253   : > { %5805 = shalt.err (!%p5802_p7)
}
 0x254   : > { %s5806_s15 = scalar_lea.hbm %s8057_s29, 16  ;;  %s5810_s26 = scalar_lea.hbm %s8128_s6, 32 }
 0x255   : > { %p5807_p8 = scmp.ne.s32.totalorder %s8057_s29, %s5806_s15  ;;  %p5811_p11 = scmp.lt.s32.totalorder %s8057_s29, %s8128_s6 }
 0x256   : > { %p5812_p12 = scmp.lt.s32.totalorder %s5810_s26, %s5806_s15 }
 0x257   : > { %p5808_p9 = pnand %p5807_p8, %p5934_p5 }
 0x258   : > { %p5813_p13 = por %p5812_p12, %p5811_p11 }
 0x259   : > { %p5809_p10 = pneg %p5808_p9 }
 0x25b   : > { %p5814_p0 = pnand %p5813_p13, %p5809_p10 }
 0x25d   : > { %5817 = shalt.err (!%p5814_p0)
}
 0x25e   : > { %5722 = dma.vmem_to_hbm [thread:$0]  (%p5934_p5), %s8059_s18, 16, %s8057_s29, %s4166_s11  }
 0x25f PF: > { %p5732_p1 = scmp.ge.s32.totalorder %s5856_s24, 2  ;;  %s4215_s25 = sand.u32 1, %s5844_s21  }
 0x260   : > { %s4216_s28 = scalar_lea.sflag [#allocation6], %s4215_s25 }
 0x261   : > { %p5726_p2 = pnand %p5732_p1, %p5938_p6 }
 0x263   : > { %p5727_p3 = pneg %p5726_p2 }
 0x265   : > { %5835 = dma.done.wait (%p5727_p3), %s4216_s28, 16  }
 0x266   : > { %5837 = vsyncadd (%p5727_p3), %s4216_s28, 4294967280  ;;  %s4224_s12 = scalar_lea.sflag [#allocation8], %s4215_s25 }
 0x267   : > { %5839 = dma.done.wait (%p5727_p3), %s4224_s12, 16  }
 0x268   : > { %5841 = vsyncadd (%p5727_p3), %s4224_s12, 4294967280  ;;  %p20_p5 = scmp.ge.s32.totalorder %s5921_s27, 4   ;;  %s8722_s21 = smov %s5848_s22 }
 0x269   : > { %s8723_s22 = smov %s5852_s23  ;;  %s8724_s23 = smov %s5932_s30 }
 0x26a   : > { %s8725_s24 = smov %s5921_s27  ;;  %22 = sbr.rel (!%p20_p5) target bundleno = 5 (0x5), region = 108 }
 0x26f   :  { %4228 = vsyncpa [#allocation6], 1 }
 0x270   :  { %4230 = vsyncpa [#allocation6 + $0x1], 1 }
 0x271   :  { %4231 = vsyncpa [#allocation8], 1 }
 0x272   :  { %4233 = vsyncpa [#allocation8 + $0x1], 1 }

</bundles_post_ra>
